<compile_context>
chip_gen: v7x
topology: tpu7x:2x2x1
jax: 0.10.0
libtpu: 0.0.40
codegen_flags: <defaults>
</compile_context>

<pallas_src>
import math
import jax
import jax.numpy as jnp
from jax.experimental import pallas as pl
from jax.experimental.pallas import tpu as pltpu

B, S, H, F, V = 2, 8, 768, 768, 128   # batch, seq, hidden(=768 per module), ffn, vocab
LN_EPS = 1e-12


def _layernorm(x, gamma, beta):
    mu = jnp.mean(x, axis=-1, keepdims=True)
    var = jnp.mean((x - mu) ** 2, axis=-1, keepdims=True)
    return (x - mu) * jax.lax.rsqrt(var + LN_EPS) * gamma + beta


# ----------------------------------------------------------------------------
# Fused kernel: backbone encoder layer + MarkdownRDModel head (net + top)
# ----------------------------------------------------------------------------
def fused_kernel(emb_ref, bias_ref, fts_ref,
                 wqkv_ref, wo_ref, w1_ref, b1_ref, w2_ref, b2_ref,
                 g1_ref, be1_ref, g2_ref, be2_ref,
                 wnet_ref, bnet_ref, wtoph_ref, wtopf_ref, btop_ref,
                 out_ref):
    # TODO(synk): the pretrained HF AutoModel backbone (architecture + checkpoint)
    # cannot be reproduced from the module source; this deterministic single-head,
    # single-layer encoder stands in for `self.model(ids, mask)[0]`.
    h = emb_ref[...]                                   # (B, S, H) f32
    h2 = h.reshape(B * S, H)                           # flatten: one M=16 MXU pass
    h2_bf = h2.astype(jnp.bfloat16)

    # fused QKV: one (B*S, H) @ (H, 3H) bf16 matmul, f32 accumulation
    qkv = jnp.dot(h2_bf, wqkv_ref[...], preferred_element_type=jnp.float32)
    q = qkv[:, :H].reshape(B, S, H)                    # 1/sqrt(H) folded into wq
    k = qkv[:, H:2 * H].reshape(B, S, H)
    v = qkv[:, 2 * H:].reshape(B, S, H)

    scores = jnp.einsum('bqd,bkd->bqk', q, k,
                        preferred_element_type=jnp.float32) + bias_ref[...]
    # NOTE: fully-masked rows (all -1e9) degrade to uniform attention, not NaN.
    m = jnp.max(scores, axis=-1, keepdims=True)
    e = jnp.exp(scores - m)
    attn = e * pl.reciprocal(jnp.sum(e, axis=-1, keepdims=True), approx=True)

    ctx = jnp.einsum('bqk,bkd->bqd', attn, v,
                     preferred_element_type=jnp.float32).reshape(B * S, H)
    ctx = jnp.dot(ctx.astype(jnp.bfloat16), wo_ref[...],
                  preferred_element_type=jnp.float32)

    h1 = _layernorm(h2 + ctx, g1_ref[...], be1_ref[...])          # f32

    ff = jnp.dot(h1.astype(jnp.bfloat16), w1_ref[...],
                 preferred_element_type=jnp.float32) + b1_ref[...]
    ff = jnp.maximum(ff, 0.0)
    ff = jnp.dot(ff.astype(jnp.bfloat16), w2_ref[...],
                 preferred_element_type=jnp.float32) + b2_ref[...]

    x2 = _layernorm(h1 + ff, g2_ref[...], be2_ref[...])           # (B*S, H)

    # ---- MarkdownRDModel head: x[:,0,:] -> Dropout -> Linear -> ReLU -> top ----
    cls = x2.reshape(B, S, H)[:, 0, :]                            # (B, H)
    # nn.Dropout(0.1) is identity at inference time.
    # TODO(synk): training-mode dropout (PyTorch-RNG dependent) is not reproduced.
    hid = jnp.dot(cls.astype(jnp.bfloat16), wnet_ref[...],
                  preferred_element_type=jnp.float32) + bnet_ref[...]
    hid = jnp.maximum(hid, 0.0)                                   # nn.ReLU
    # top(cat([hid, fts], 1)) == sum(hid * W_top[:H]) + fts * W_top[H] + b_top
    out = (jnp.sum(hid * wtoph_ref[...], axis=-1, keepdims=True)  # VPU mul + lane reduce
           + fts_ref[...] * wtopf_ref[...]
           + btop_ref[...])
    out_ref[...] = out                                            # (B, 1)


# ----------------------------------------------------------------------------
# Wrapper
# ----------------------------------------------------------------------------
_VMEM = pl.BlockSpec(memory_space=pltpu.MemorySpace.VMEM)
_CPARAMS = pltpu.CompilerParams(vmem_limit_bytes=24 * 1024 * 1024)  # v7x-safe


def fused_forward(emb, attn_bias, fts, p):
    args = (emb, attn_bias, fts,
            p['wqkv'], p['wo'], p['w1'], p['b1'], p['w2'], p['b2'],
            p['g1'], p['be1'], p['g2'], p['be2'],
            p['w_net'], p['b_net'], p['w_top_h'], p['w_top_f'], p['b_top'])
    return pl.pallas_call(
        fused_kernel,
        out_shape=jax.ShapeDtypeStruct((B, 1), jnp.float32),
        in_specs=[_VMEM] * len(args),
        out_specs=_VMEM,
        compiler_params=_CPARAMS,
    )(*args)


@jax.jit
def markdown_rd_forward(ids, mask, fts, p):
    # Glue: embedding lookup + attention-mask bias (parameter/index plumbing).
    emb = p['tok_emb'][ids] + p['pos_emb'][None, :, :]                # (B, S, H) f32
    attn_bias = (1.0 - mask.astype(jnp.float32))[:, None, :] * -1e9   # (B, 1, S)
    return fused_forward(emb, attn_bias, fts, p)


# ----------------------------------------------------------------------------
# Deterministic parameter init (synthetic; no checkpoint load)
# ----------------------------------------------------------------------------
def init_params(key):
    ks = jax.random.split(key, 12)
    s = 0.02
    n = lambda k, shape: jax.random.normal(k, shape, jnp.float32) * s

    wq = n(ks[2], (H, H)) * (1.0 / math.sqrt(H))   # fold attention scale into wq
    wk = n(ks[3], (H, H))
    wv = n(ks[4], (H, H))
    w_top = n(ks[10], (H + 1, 1))                  # nn.Linear(768 + 1, 1) weight (T)

    p = dict(
        tok_emb=n(ks[0], (V, H)),
        pos_emb=n(ks[1], (S, H)),
        wqkv=jnp.concatenate([wq, wk, wv], axis=1).astype(jnp.bfloat16),   # (H, 3H)
        wo=n(ks[5], (H, H)).astype(jnp.bfloat16),
        w1=n(ks[6], (H, F)).astype(jnp.bfloat16), b1=jnp.zeros((1, F), jnp.float32),
        w2=n(ks[7], (F, H)).astype(jnp.bfloat16), b2=jnp.zeros((1, H), jnp.float32),
        g1=jnp.ones((1, H), jnp.float32), be1=jnp.zeros((1, H), jnp.float32),
        g2=jnp.ones((1, H), jnp.float32), be2=jnp.zeros((1, H), jnp.float32),
        w_net=n(ks[8], (H, H)).astype(jnp.bfloat16),
        b_net=n(ks[9], (1, H)),
        w_top_h=w_top[:H, :].T,        # (1, H) f32 — used as VPU broadcast-mul
        w_top_f=w_top[H:, :],          # (1, 1)
        b_top=n(ks[11], (1, 1)),
    )
    return p


# ----------------------------------------------------------------------------
# Pure-JAX reference (same math, incl. bf16 weight/activation casts)
# ----------------------------------------------------------------------------
def reference(ids, mask, fts, p):
    emb = p['tok_emb'][ids] + p['pos_emb'][None, :, :]
    bias = (1.0 - mask.astype(jnp.float32))[:, None, :] * -1e9
    h2 = emb.reshape(B * S, H)
    qkv = jnp.dot(h2.astype(jnp.bfloat16), p['wqkv'], preferred_element_type=jnp.float32)
    q = qkv[:, :H].reshape(B, S, H)
    k = qkv[:, H:2 * H].reshape(B, S, H)
    v = qkv[:, 2 * H:].reshape(B, S, H)
    sc = jnp.einsum('bqd,bkd->bqk', q, k) + bias
    attn = jax.nn.softmax(sc, axis=-1)
    ctx = jnp.einsum('bqk,bkd->bqd', attn, v).reshape(B * S, H)
    ctx = jnp.dot(ctx.astype(jnp.bfloat16), p['wo'], preferred_element_type=jnp.float32)
    h1 = _layernorm(h2 + ctx, p['g1'], p['be1'])
    ff = jnp.maximum(jnp.dot(h1.astype(jnp.bfloat16), p['w1'],
                             preferred_element_type=jnp.float32) + p['b1'], 0.0)
    ff = jnp.dot(ff.astype(jnp.bfloat16), p['w2'],
                 preferred_element_type=jnp.float32) + p['b2']
    x2 = _layernorm(h1 + ff, p['g2'], p['be2'])
    cls = x2.reshape(B, S, H)[:, 0, :]
    hid = jnp.maximum(jnp.dot(cls.astype(jnp.bfloat16), p['w_net'],
                              preferred_element_type=jnp.float32) + p['b_net'], 0.0)
    return (jnp.sum(hid * p['w_top_h'], axis=-1, keepdims=True)
            + fts * p['w_top_f'] + p['b_top'])


if __name__ == "__main__":
    key = jax.random.PRNGKey(0)
    k_ids, k_fts, k_params = jax.random.split(key, 3)

    ids = jax.random.randint(k_ids, (B, S), 0, V, dtype=jnp.int32)
    mask = jnp.ones((B, S), dtype=jnp.int32)          # attention mask (all valid)
    fts = jax.random.normal(k_fts, (B, 1), jnp.float32)
    params = init_params(k_params)

    out = markdown_rd_forward(ids, mask, fts, params)
    out = jax.block_until_ready(out)

    ref = reference(ids, mask, fts, params)
    assert out.shape == (B, 1), out.shape
    assert jnp.allclose(out, ref, atol=2e-3, rtol=1e-3), (out, ref)
    print("KERNEL_OK")
</pallas_src>

<mosaic_0001>
module attributes {stable_mosaic.version = 11 : i64} {
  func.func @fused_kernel(%arg0: memref<2x8x768xf32, #tpu.memory_space<vmem>>, %arg1: memref<2x1x8xf32, #tpu.memory_space<vmem>>, %arg2: memref<2x1xf32, #tpu.memory_space<vmem>>, %arg3: memref<768x2304xbf16, #tpu.memory_space<vmem>>, %arg4: memref<768x768xbf16, #tpu.memory_space<vmem>>, %arg5: memref<768x768xbf16, #tpu.memory_space<vmem>>, %arg6: memref<1x768xf32, #tpu.memory_space<vmem>>, %arg7: memref<768x768xbf16, #tpu.memory_space<vmem>>, %arg8: memref<1x768xf32, #tpu.memory_space<vmem>>, %arg9: memref<1x768xf32, #tpu.memory_space<vmem>>, %arg10: memref<1x768xf32, #tpu.memory_space<vmem>>, %arg11: memref<1x768xf32, #tpu.memory_space<vmem>>, %arg12: memref<1x768xf32, #tpu.memory_space<vmem>>, %arg13: memref<768x768xbf16, #tpu.memory_space<vmem>>, %arg14: memref<1x768xf32, #tpu.memory_space<vmem>>, %arg15: memref<1x768xf32, #tpu.memory_space<vmem>>, %arg16: memref<1x1xf32, #tpu.memory_space<vmem>>, %arg17: memref<1x1xf32, #tpu.memory_space<vmem>>, %arg18: memref<2x1xf32, #tpu.memory_space<vmem>>) attributes {dimension_semantics = [], scalar_prefetch = 0 : i64, scratch_operands = 0 : i64, tpu.core_type = #tpu.core_type<tc>} {
    %c0 = arith.constant 0 : index
    %c0_0 = arith.constant 0 : index
    %c0_1 = arith.constant 0 : index
    %0 = vector.load %arg0[%c0, %c0_0, %c0_1] : memref<2x8x768xf32, #tpu.memory_space<vmem>>, vector<2x8x768xf32>
    %1 = vector.shape_cast %0 : vector<2x8x768xf32> to vector<16x768xf32>
    %2 = arith.truncf %1 : vector<16x768xf32> to vector<16x768xbf16>
    %c0_2 = arith.constant 0 : index
    %c0_3 = arith.constant 0 : index
    %3 = vector.load %arg3[%c0_2, %c0_3] : memref<768x2304xbf16, #tpu.memory_space<vmem>>, vector<768x2304xbf16>
    %cst = arith.constant dense<0.000000e+00> : vector<16x2304xf32>
    %4 = tpu.matmul %2, %3, %cst {dimension_numbers = #tpu.dot_dimension_numbers<[1], [0], [0], [1], [0, 0, 1, 1], [], []>} : vector<16x768xbf16>, vector<768x2304xbf16>, vector<16x2304xf32> -> vector<16x2304xf32>
    %5 = vector.extract_strided_slice %4 {offsets = [0, 0], sizes = [16, 768], strides = [1, 1]} : vector<16x2304xf32> to vector<16x768xf32>
    %6 = vector.shape_cast %5 : vector<16x768xf32> to vector<2x8x768xf32>
    %7 = vector.extract_strided_slice %4 {offsets = [0, 768], sizes = [16, 768], strides = [1, 1]} : vector<16x2304xf32> to vector<16x768xf32>
    %8 = vector.shape_cast %7 : vector<16x768xf32> to vector<2x8x768xf32>
    %9 = vector.extract_strided_slice %4 {offsets = [0, 1536], sizes = [16, 768], strides = [1, 1]} : vector<16x2304xf32> to vector<16x768xf32>
    %10 = vector.shape_cast %9 : vector<16x768xf32> to vector<2x8x768xf32>
    "tpu.trace_start"() <{level = 10 : i32, message = "bqd,bkd->bqk"}> : () -> ()
    %cst_4 = arith.constant dense<0.000000e+00> : vector<2x8x8xf32>
    %11 = tpu.matmul %6, %8, %cst_4 {dimension_numbers = #tpu.dot_dimension_numbers<[2], [2], [1], [1], [0, 0, 0, 1, 1, 1], [0], [0]>} : vector<2x8x768xf32>, vector<2x8x768xf32>, vector<2x8x8xf32> -> vector<2x8x8xf32>
    "tpu.trace_stop"() : () -> ()
    %c0_5 = arith.constant 0 : index
    %c0_6 = arith.constant 0 : index
    %c0_7 = arith.constant 0 : index
    %12 = vector.load %arg1[%c0_5, %c0_6, %c0_7] : memref<2x1x8xf32, #tpu.memory_space<vmem>>, vector<2x1x8xf32>
    %13 = vector.broadcast %12 : vector<2x1x8xf32> to vector<2x8x8xf32>
    %14 = arith.addf %11, %13 : vector<2x8x8xf32>
    %cst_8 = arith.constant dense<0xFF800000> : vector<2x8xf32>
    %15 = vector.multi_reduction <maximumf>, %14, %cst_8 [2] : vector<2x8x8xf32> to vector<2x8xf32>
    %16 = vector.shape_cast %15 : vector<2x8xf32> to vector<2x8x1xf32>
    %17 = vector.broadcast %16 : vector<2x8x1xf32> to vector<2x8x8xf32>
    %18 = arith.subf %14, %17 : vector<2x8x8xf32>
    %19 = math.exp %18 : vector<2x8x8xf32>
    %cst_9 = arith.constant dense<0.000000e+00> : vector<2x8xf32>
    %20 = vector.multi_reduction <add>, %19, %cst_9 [2] : vector<2x8x8xf32> to vector<2x8xf32>
    %21 = vector.shape_cast %20 : vector<2x8xf32> to vector<2x8x1xf32>
    %22 = tpu.reciprocal %21 {approx = true} : vector<2x8x1xf32> -> vector<2x8x1xf32>
    %23 = vector.broadcast %22 : vector<2x8x1xf32> to vector<2x8x8xf32>
    %24 = arith.mulf %19, %23 : vector<2x8x8xf32>
    "tpu.trace_start"() <{level = 10 : i32, message = "bqk,bkd->bqd"}> : () -> ()
    %cst_10 = arith.constant dense<0.000000e+00> : vector<2x8x768xf32>
    %25 = tpu.matmul %24, %10, %cst_10 {dimension_numbers = #tpu.dot_dimension_numbers<[2], [1], [1], [2], [0, 0, 0, 1, 1, 2], [0], [0]>} : vector<2x8x8xf32>, vector<2x8x768xf32>, vector<2x8x768xf32> -> vector<2x8x768xf32>
    "tpu.trace_stop"() : () -> ()
    %26 = vector.shape_cast %25 : vector<2x8x768xf32> to vector<16x768xf32>
    %27 = arith.truncf %26 : vector<16x768xf32> to vector<16x768xbf16>
    %c0_11 = arith.constant 0 : index
    %c0_12 = arith.constant 0 : index
    %28 = vector.load %arg4[%c0_11, %c0_12] : memref<768x768xbf16, #tpu.memory_space<vmem>>, vector<768x768xbf16>
    %cst_13 = arith.constant dense<0.000000e+00> : vector<16x768xf32>
    %29 = tpu.matmul %27, %28, %cst_13 {dimension_numbers = #tpu.dot_dimension_numbers<[1], [0], [0], [1], [0, 0, 1, 1], [], []>} : vector<16x768xbf16>, vector<768x768xbf16>, vector<16x768xf32> -> vector<16x768xf32>
    %30 = arith.addf %1, %29 : vector<16x768xf32>
    %c0_14 = arith.constant 0 : index
    %c0_15 = arith.constant 0 : index
    %31 = vector.load %arg9[%c0_14, %c0_15] : memref<1x768xf32, #tpu.memory_space<vmem>>, vector<1x768xf32>
    %c0_16 = arith.constant 0 : index
    %c0_17 = arith.constant 0 : index
    %32 = vector.load %arg10[%c0_16, %c0_17] : memref<1x768xf32, #tpu.memory_space<vmem>>, vector<1x768xf32>
    %cst_18 = arith.constant dense<0.000000e+00> : vector<16xf32>
    %33 = vector.multi_reduction <add>, %30, %cst_18 [1] : vector<16x768xf32> to vector<16xf32>
    %34 = vector.shape_cast %33 : vector<16xf32> to vector<16x1xf32>
    %cst_19 = arith.constant 7.680000e+02 : f32
    %35 = vector.broadcast %cst_19 : f32 to vector<16x1xf32>
    %36 = arith.divf %34, %35 : vector<16x1xf32>
    %37 = vector.broadcast %36 : vector<16x1xf32> to vector<16x768xf32>
    %38 = arith.subf %30, %37 : vector<16x768xf32>
    %39 = arith.mulf %38, %38 : vector<16x768xf32>
    %cst_20 = arith.constant dense<0.000000e+00> : vector<16xf32>
    %40 = vector.multi_reduction <add>, %39, %cst_20 [1] : vector<16x768xf32> to vector<16xf32>
    %41 = vector.shape_cast %40 : vector<16xf32> to vector<16x1xf32>
    %cst_21 = arith.constant 7.680000e+02 : f32
    %42 = vector.broadcast %cst_21 : f32 to vector<16x1xf32>
    %43 = arith.divf %41, %42 : vector<16x1xf32>
    %44 = vector.broadcast %36 : vector<16x1xf32> to vector<16x768xf32>
    %45 = arith.subf %30, %44 : vector<16x768xf32>
    %cst_22 = arith.constant 9.99999996E-13 : f32
    %46 = vector.broadcast %cst_22 : f32 to vector<16x1xf32>
    %47 = arith.addf %43, %46 : vector<16x1xf32>
    %48 = math.rsqrt %47 : vector<16x1xf32>
    %49 = vector.broadcast %48 : vector<16x1xf32> to vector<16x768xf32>
    %50 = arith.mulf %45, %49 : vector<16x768xf32>
    %51 = vector.broadcast %31 : vector<1x768xf32> to vector<16x768xf32>
    %52 = arith.mulf %50, %51 : vector<16x768xf32>
    %53 = vector.broadcast %32 : vector<1x768xf32> to vector<16x768xf32>
    %54 = arith.addf %52, %53 : vector<16x768xf32>
    %55 = arith.truncf %54 : vector<16x768xf32> to vector<16x768xbf16>
    %c0_23 = arith.constant 0 : index
    %c0_24 = arith.constant 0 : index
    %56 = vector.load %arg5[%c0_23, %c0_24] : memref<768x768xbf16, #tpu.memory_space<vmem>>, vector<768x768xbf16>
    %cst_25 = arith.constant dense<0.000000e+00> : vector<16x768xf32>
    %57 = tpu.matmul %55, %56, %cst_25 {dimension_numbers = #tpu.dot_dimension_numbers<[1], [0], [0], [1], [0, 0, 1, 1], [], []>} : vector<16x768xbf16>, vector<768x768xbf16>, vector<16x768xf32> -> vector<16x768xf32>
    %c0_26 = arith.constant 0 : index
    %c0_27 = arith.constant 0 : index
    %58 = vector.load %arg6[%c0_26, %c0_27] : memref<1x768xf32, #tpu.memory_space<vmem>>, vector<1x768xf32>
    %59 = vector.broadcast %58 : vector<1x768xf32> to vector<16x768xf32>
    %60 = arith.addf %57, %59 : vector<16x768xf32>
    %cst_28 = arith.constant 0.000000e+00 : f32
    %61 = vector.broadcast %cst_28 : f32 to vector<16x768xf32>
    %62 = arith.maximumf %60, %61 : vector<16x768xf32>
    %63 = arith.truncf %62 : vector<16x768xf32> to vector<16x768xbf16>
    %c0_29 = arith.constant 0 : index
    %c0_30 = arith.constant 0 : index
    %64 = vector.load %arg7[%c0_29, %c0_30] : memref<768x768xbf16, #tpu.memory_space<vmem>>, vector<768x768xbf16>
    %cst_31 = arith.constant dense<0.000000e+00> : vector<16x768xf32>
    %65 = tpu.matmul %63, %64, %cst_31 {dimension_numbers = #tpu.dot_dimension_numbers<[1], [0], [0], [1], [0, 0, 1, 1], [], []>} : vector<16x768xbf16>, vector<768x768xbf16>, vector<16x768xf32> -> vector<16x768xf32>
    %c0_32 = arith.constant 0 : index
    %c0_33 = arith.constant 0 : index
    %66 = vector.load %arg8[%c0_32, %c0_33] : memref<1x768xf32, #tpu.memory_space<vmem>>, vector<1x768xf32>
    %67 = vector.broadcast %66 : vector<1x768xf32> to vector<16x768xf32>
    %68 = arith.addf %65, %67 : vector<16x768xf32>
    %69 = arith.addf %54, %68 : vector<16x768xf32>
    %c0_34 = arith.constant 0 : index
    %c0_35 = arith.constant 0 : index
    %70 = vector.load %arg11[%c0_34, %c0_35] : memref<1x768xf32, #tpu.memory_space<vmem>>, vector<1x768xf32>
    %c0_36 = arith.constant 0 : index
    %c0_37 = arith.constant 0 : index
    %71 = vector.load %arg12[%c0_36, %c0_37] : memref<1x768xf32, #tpu.memory_space<vmem>>, vector<1x768xf32>
    %cst_38 = arith.constant dense<0.000000e+00> : vector<16xf32>
    %72 = vector.multi_reduction <add>, %69, %cst_38 [1] : vector<16x768xf32> to vector<16xf32>
    %73 = vector.shape_cast %72 : vector<16xf32> to vector<16x1xf32>
    %cst_39 = arith.constant 7.680000e+02 : f32
    %74 = vector.broadcast %cst_39 : f32 to vector<16x1xf32>
    %75 = arith.divf %73, %74 : vector<16x1xf32>
    %76 = vector.broadcast %75 : vector<16x1xf32> to vector<16x768xf32>
    %77 = arith.subf %69, %76 : vector<16x768xf32>
    %78 = arith.mulf %77, %77 : vector<16x768xf32>
    %cst_40 = arith.constant dense<0.000000e+00> : vector<16xf32>
    %79 = vector.multi_reduction <add>, %78, %cst_40 [1] : vector<16x768xf32> to vector<16xf32>
    %80 = vector.shape_cast %79 : vector<16xf32> to vector<16x1xf32>
    %cst_41 = arith.constant 7.680000e+02 : f32
    %81 = vector.broadcast %cst_41 : f32 to vector<16x1xf32>
    %82 = arith.divf %80, %81 : vector<16x1xf32>
    %83 = vector.broadcast %75 : vector<16x1xf32> to vector<16x768xf32>
    %84 = arith.subf %69, %83 : vector<16x768xf32>
    %cst_42 = arith.constant 9.99999996E-13 : f32
    %85 = vector.broadcast %cst_42 : f32 to vector<16x1xf32>
    %86 = arith.addf %82, %85 : vector<16x1xf32>
    %87 = math.rsqrt %86 : vector<16x1xf32>
    %88 = vector.broadcast %87 : vector<16x1xf32> to vector<16x768xf32>
    %89 = arith.mulf %84, %88 : vector<16x768xf32>
    %90 = vector.broadcast %70 : vector<1x768xf32> to vector<16x768xf32>
    %91 = arith.mulf %89, %90 : vector<16x768xf32>
    %92 = vector.broadcast %71 : vector<1x768xf32> to vector<16x768xf32>
    %93 = arith.addf %91, %92 : vector<16x768xf32>
    %94 = vector.shape_cast %93 : vector<16x768xf32> to vector<2x8x768xf32>
    %95 = vector.extract_strided_slice %94 {offsets = [0, 0, 0], sizes = [2, 1, 768], strides = [1, 1, 1]} : vector<2x8x768xf32> to vector<2x1x768xf32>
    %96 = vector.shape_cast %95 : vector<2x1x768xf32> to vector<2x768xf32>
    %97 = arith.truncf %96 : vector<2x768xf32> to vector<2x768xbf16>
    %c0_43 = arith.constant 0 : index
    %c0_44 = arith.constant 0 : index
    %98 = vector.load %arg13[%c0_43, %c0_44] : memref<768x768xbf16, #tpu.memory_space<vmem>>, vector<768x768xbf16>
    %cst_45 = arith.constant dense<0.000000e+00> : vector<2x768xf32>
    %99 = tpu.matmul %97, %98, %cst_45 {dimension_numbers = #tpu.dot_dimension_numbers<[1], [0], [0], [1], [0, 0, 1, 1], [], []>} : vector<2x768xbf16>, vector<768x768xbf16>, vector<2x768xf32> -> vector<2x768xf32>
    %c0_46 = arith.constant 0 : index
    %c0_47 = arith.constant 0 : index
    %100 = vector.load %arg14[%c0_46, %c0_47] : memref<1x768xf32, #tpu.memory_space<vmem>>, vector<1x768xf32>
    %101 = vector.broadcast %100 : vector<1x768xf32> to vector<2x768xf32>
    %102 = arith.addf %99, %101 : vector<2x768xf32>
    %cst_48 = arith.constant 0.000000e+00 : f32
    %103 = vector.broadcast %cst_48 : f32 to vector<2x768xf32>
    %104 = arith.maximumf %102, %103 : vector<2x768xf32>
    %c0_49 = arith.constant 0 : index
    %c0_50 = arith.constant 0 : index
    %105 = vector.load %arg15[%c0_49, %c0_50] : memref<1x768xf32, #tpu.memory_space<vmem>>, vector<1x768xf32>
    %106 = vector.broadcast %105 : vector<1x768xf32> to vector<2x768xf32>
    %107 = arith.mulf %104, %106 : vector<2x768xf32>
    %cst_51 = arith.constant dense<0.000000e+00> : vector<2xf32>
    %108 = vector.multi_reduction <add>, %107, %cst_51 [1] : vector<2x768xf32> to vector<2xf32>
    %109 = vector.shape_cast %108 : vector<2xf32> to vector<2x1xf32>
    %c0_52 = arith.constant 0 : index
    %c0_53 = arith.constant 0 : index
    %110 = vector.load %arg2[%c0_52, %c0_53] : memref<2x1xf32, #tpu.memory_space<vmem>>, vector<2x1xf32>
    %c0_54 = arith.constant 0 : index
    %c0_55 = arith.constant 0 : index
    %111 = vector.load %arg16[%c0_54, %c0_55] : memref<1x1xf32, #tpu.memory_space<vmem>>, vector<1x1xf32>
    %112 = vector.broadcast %111 : vector<1x1xf32> to vector<2x1xf32>
    %113 = arith.mulf %110, %112 : vector<2x1xf32>
    %114 = arith.addf %109, %113 : vector<2x1xf32>
    %c0_56 = arith.constant 0 : index
    %c0_57 = arith.constant 0 : index
    %115 = vector.load %arg17[%c0_56, %c0_57] : memref<1x1xf32, #tpu.memory_space<vmem>>, vector<1x1xf32>
    %116 = vector.broadcast %115 : vector<1x1xf32> to vector<2x1xf32>
    %117 = arith.addf %114, %116 : vector<2x1xf32>
    %c0_58 = arith.constant 0 : index
    %c0_59 = arith.constant 0 : index
    %118 = vector.load %arg18[%c0_58, %c0_59] : memref<2x1xf32, #tpu.memory_space<vmem>>, vector<2x1xf32>
    tpu.vector_store %arg18[%c0_58, %c0_59], %117 {strides = array<i32>} : memref<2x1xf32, #tpu.memory_space<vmem>>, vector<2x1xf32>,
    return
  }
}

</mosaic_0001>

<bundles_post_ra>
// kernel: markdown_rd_forward.1
= control target key start
LH: loop header
LB: loop body
LE: loop exit
PB: predicated region body
PF: predicated region fallthrough
CT: control target
= control target key end

     0   :  { %s23174_s0 = inlined_call_operand.vmem [shape: f32[2,8,768], index: 0, kind: input, shape index: {}]   ;;  %s23175_s1 = inlined_call_operand.vmem [shape: f32[2,1,8], index: 1, kind: input, shape index: {}]   ;;  %s23176_s2 = inlined_call_operand.vmem [shape: f32[2,1], index: 2, kind: input, shape index: {}]   ;;  %s23177_s3 = inlined_call_operand.hbm [shape: bf16[768,2304], index: 3, kind: input, shape index: {}]   ;;  %s23178_s4 = inlined_call_operand.hbm [shape: bf16[768,768], index: 4, kind: input, shape index: {}]   ;;  %s23179_s5 = inlined_call_operand.hbm [shape: bf16[768,768], index: 5, kind: input, shape index: {}]   ;;  %s23180_s6 = inlined_call_operand.hbm [shape: f32[1,768], index: 6, kind: input, shape index: {}]   ;;  %s23181_s7 = inlined_call_operand.hbm [shape: bf16[768,768], index: 7, kind: input, shape index: {}]   ;;  %s23182_s8 = inlined_call_operand.hbm [shape: f32[1,768], index: 8, kind: input, shape index: {}]   ;;  %s23183_s9 = inlined_call_operand.hbm [shape: f32[1,768], index: 9, kind: input, shape index: {}]   ;;  %s23184_s10 = inlined_call_operand.hbm [shape: f32[1,768], index: 10, kind: input, shape index: {}]   ;;  %s23185_s11 = inlined_call_operand.hbm [shape: f32[1,768], index: 11, kind: input, shape index: {}]   ;;  %s23186_s12 = inlined_call_operand.hbm [shape: f32[1,768], index: 12, kind: input, shape index: {}]   ;;  %s23187_s13 = inlined_call_operand.hbm [shape: bf16[768,768], index: 13, kind: input, shape index: {}]   ;;  %s23188_s14 = inlined_call_operand.hbm [shape: f32[1,768], index: 14, kind: input, shape index: {}]   ;;  %s23189_s15 = inlined_call_operand.hbm [shape: f32[1,768], index: 15, kind: input, shape index: {}]   ;;  %s23190_s16 = inlined_call_operand.<no memory space> [shape: f32[1,1], index: 16, kind: input, shape index: {}]   ;;  %s23191_s18 = inlined_call_operand.vmem [shape: f32[2,1], index: 18, kind: output, shape index: {}]   ;;  %s23192_s17 = inlined_call_operand.<no memory space> [shape: f32[1,1], index: 17, kind: input, shape index: {}]  }
   0x1   :  { %23195 = sst [smem:[#allocation31_spill]] %s23174_s0  ;;  %v23_v0 = vstv %s23190_s16  ;;  %v25_v1 = vstv %s23192_s17 }
   0x2   :  { %23196 = sst [smem:[#allocation32_spill]] %s23175_s1  ;;  %24 = vst [vmem:[#allocation2] sm:$0x1] %v23_v0  ;;  %26 = vst [vmem:[#allocation3] sm:$0x1] %v25_v1 }
   0x3   :  { %23197 = sst [smem:[#allocation33_spill]] %s23176_s2 }
   0x4   :  { %27 = vsyncpa [#allocation5], 0 }
   0x5   :  { %28 = vsyncpa [#allocation7], 0 }
   0x6   :  { %29 = vsyncpa [#allocation10], 0 }
   0x7   :  { %30 = vsyncpa [#allocation13], 0 }
   0x8   :  { %31 = vsyncpa [#allocation16], 0 }
   0x9   :  { %32 = vsyncpa [#allocation19], 0 }
   0xa   :  { %33 = vsyncpa [#allocation22], 0  ;;  %s22142_s0 = smov [#allocation6]   ;;  %s21842_s16 = scalar_lea.hbm %s23178_s4, 36864 }
   0xb   :  { %s57_s19 = sshll.u32 %s22142_s0, 4  ;;  %p21843_p0 = scmp.ne.s32.totalorder %s23178_s4, %s21842_s16  ;;  %s58_s19 = int_to_ptr.vmem [resolvable:$true] %s57_s19 }
   0xc   :  { %p21846_p1 = scmp.lt.u32.totalorder %s21842_s16, %s23178_s4 }
   0xe   :  { %p21848_p2 = pnand %p21846_p1, %p21843_p0 }
  0x10   :  { %21851 = shalt.err (!%p21848_p2)
}
  0x11   :  { %s21852_s23 = scalar_lea.vmem %s58_s19, 36864  ;;  %p21857_p4 = scmp.lt.s32.totalorder %s58_s19, %s58_s19 }
  0x12   :  { %p21853_p3 = scmp.ne.s32.totalorder %s58_s19, %s21852_s23  ;;  %p21858_p5 = scmp.lt.s32.totalorder %s21852_s23, %s21852_s23 }
  0x14   :  { %p21859_p6 = por %p21858_p5, %p21857_p4 }
  0x16   :  { %p21860_p7 = pnand %p21859_p6, %p21853_p3 }
  0x18   :  { %21863 = shalt.err (!%p21860_p7)
}
  0x19   :  { %s22143_s24 = smov 384   ;;  %s22144_s25 = smov 24  }
  0x1a   :  { %63 = dma.hbm_to_vmem [thread:$0]  %s23178_s4, 36864, %s58_s19, [#allocation7], %s22143_s24, %s22143_s24, %s22144_s25  }
  0x1b   :  { %s22145_s28 = smov [#allocation9]   ;;  %s22146_s30 = smov [#allocation12]  }
  0x1c   :  { %s82_s29 = sshll.u32 %s22145_s28, 4  ;;  %s104_s0 = sshll.u32 %s22146_s30, 4  ;;  %s83_s29 = int_to_ptr.vmem [resolvable:$true] %s82_s29  ;;  %s105_s0 = int_to_ptr.vmem [resolvable:$true] %s104_s0 }
  0x1d   :  { %s21864_s16 = scalar_lea.hbm %s23180_s6, 96 }
  0x1e   :  { %p21865_p8 = scmp.ne.s32.totalorder %s23180_s6, %s21864_s16  ;;  %p21868_p9 = scmp.lt.u32.totalorder %s21864_s16, %s23180_s6 }
  0x20   :  { %p21870_p10 = pnand %p21868_p9, %p21865_p8 }
  0x22   :  { %21873 = shalt.err (!%p21870_p10)
}
  0x23   :  { %s21874_s4 = scalar_lea.vmem %s83_s29, 96  ;;  %p21879_p12 = scmp.lt.s32.totalorder %s83_s29, %s83_s29 }
  0x24   :  { %p21875_p11 = scmp.ne.s32.totalorder %s83_s29, %s21874_s4  ;;  %p21880_p13 = scmp.lt.s32.totalorder %s21874_s4, %s21874_s4 }
  0x26   :  { %p21881_p0 = por %p21880_p13, %p21879_p12 }
  0x28   :  { %p21882_p1 = pnand %p21881_p0, %p21875_p11 }
  0x2a   :  { %21885 = shalt.err (!%p21882_p1)
}
  0x2b   :  { %85 = dma.hbm_to_vmem [thread:$0]  %s23180_s6, 96, %s83_s29, [#allocation10]  }
  0x2c   :  { %s21886_s28 = scalar_lea.hbm %s23182_s8, 96 }
  0x2d   :  { %p21887_p2 = scmp.ne.s32.totalorder %s23182_s8, %s21886_s28  ;;  %p21890_p3 = scmp.lt.u32.totalorder %s21886_s28, %s23182_s8 }
  0x2f   :  { %p21892_p4 = pnand %p21890_p3, %p21887_p2 }
  0x31   :  { %21895 = shalt.err (!%p21892_p4)
}
  0x32   :  { %s21896_s21 = scalar_lea.vmem %s105_s0, 96  ;;  %p21901_p6 = scmp.lt.s32.totalorder %s105_s0, %s105_s0 }
  0x33   :  { %p21897_p5 = scmp.ne.s32.totalorder %s105_s0, %s21896_s21  ;;  %p21902_p7 = scmp.lt.s32.totalorder %s21896_s21, %s21896_s21 }
  0x35   :  { %p21903_p8 = por %p21902_p7, %p21901_p6 }
  0x37   :  { %p21904_p9 = pnand %p21903_p8, %p21897_p5 }
  0x39   :  { %21907 = shalt.err (!%p21904_p9)
}
  0x3a   :  { %107 = dma.hbm_to_vmem [thread:$0]  %s23182_s8, 96, %s105_s0, [#allocation13]  }
  0x3b   :  { %s22147_s22 = smov [#allocation15]   ;;  %s22148_s2 = smov [#allocation18]  }
  0x3c   :  { %s124_s17 = sshll.u32 %s22147_s22, 4  ;;  %s144_s4 = sshll.u32 %s22148_s2, 4  ;;  %s125_s17 = int_to_ptr.vmem [resolvable:$true] %s124_s17  ;;  %s145_s4 = int_to_ptr.vmem [resolvable:$true] %s144_s4 }
  0x3d   :  { %s21908_s26 = scalar_lea.hbm %s23184_s10, 96 }
  0x3e   :  { %p21909_p10 = scmp.ne.s32.totalorder %s23184_s10, %s21908_s26  ;;  %p21912_p11 = scmp.lt.u32.totalorder %s21908_s26, %s23184_s10 }
  0x40   :  { %p21914_p12 = pnand %p21912_p11, %p21909_p10 }
  0x42   :  { %21917 = shalt.err (!%p21914_p12)
}
  0x43   :  { %s21918_s8 = scalar_lea.vmem %s125_s17, 96  ;;  %p21923_p0 = scmp.lt.s32.totalorder %s125_s17, %s125_s17 }
  0x44   :  { %p21919_p13 = scmp.ne.s32.totalorder %s125_s17, %s21918_s8  ;;  %p21924_p1 = scmp.lt.s32.totalorder %s21918_s8, %s21918_s8 }
  0x46   :  { %p21925_p2 = por %p21924_p1, %p21923_p0 }
  0x48   :  { %p21926_p3 = pnand %p21925_p2, %p21919_p13 }
  0x4a   :  { %21929 = shalt.err (!%p21926_p3)
}
  0x4b   :  { %127 = dma.hbm_to_vmem [thread:$0]  %s23184_s10, 96, %s125_s17, [#allocation16]  }
  0x4c   :  { %s21930_s6 = scalar_lea.hbm %s23186_s12, 96 }
  0x4d   :  { %p21931_p4 = scmp.ne.s32.totalorder %s23186_s12, %s21930_s6  ;;  %p21934_p5 = scmp.lt.u32.totalorder %s21930_s6, %s23186_s12 }
  0x4f   :  { %p21936_p6 = pnand %p21934_p5, %p21931_p4 }
  0x51   :  { %21939 = shalt.err (!%p21936_p6)
}
  0x52   :  { %s21940_s23 = scalar_lea.vmem %s145_s4, 96  ;;  %p21945_p8 = scmp.lt.s32.totalorder %s145_s4, %s145_s4 }
  0x53   :  { %p21941_p7 = scmp.ne.s32.totalorder %s145_s4, %s21940_s23  ;;  %p21946_p9 = scmp.lt.s32.totalorder %s21940_s23, %s21940_s23 }
  0x55   :  { %p21947_p10 = por %p21946_p9, %p21945_p8 }
  0x57   :  { %p21948_p11 = pnand %p21947_p10, %p21941_p7 }
  0x59   :  { %21951 = shalt.err (!%p21948_p11)
}
  0x5a   :  { %147 = dma.hbm_to_vmem [thread:$0]  %s23186_s12, 96, %s145_s4, [#allocation19]  }
  0x5b   :  { %s22149_s26 = smov [#allocation21]   ;;  %s22150_s28 = smov [#allocation4]  }
  0x5c   :  { %s166_s27 = sshll.u32 %s22149_s26, 4  ;;  %s45_s30 = sshll.u32 %s22150_s28, 4  ;;  %s167_s27 = int_to_ptr.vmem [resolvable:$true] %s166_s27  ;;  %s46_s30 = int_to_ptr.vmem [resolvable:$true] %s45_s30 }
  0x5d   :  { %s21952_s0 = scalar_lea.hbm %s23188_s14, 96 }
  0x5e   :  { %p21953_p12 = scmp.ne.s32.totalorder %s23188_s14, %s21952_s0  ;;  %p21956_p13 = scmp.lt.u32.totalorder %s21952_s0, %s23188_s14 }
  0x60   :  { %p21958_p0 = pnand %p21956_p13, %p21953_p12 }
  0x62   :  { %21961 = shalt.err (!%p21958_p0)
}
  0x63   :  { %s21962_s12 = scalar_lea.vmem %s167_s27, 96  ;;  %p21967_p2 = scmp.lt.s32.totalorder %s167_s27, %s167_s27 }
  0x64   :  { %p21963_p1 = scmp.ne.s32.totalorder %s167_s27, %s21962_s12  ;;  %p21968_p3 = scmp.lt.s32.totalorder %s21962_s12, %s21962_s12 }
  0x66   :  { %p21969_p4 = por %p21968_p3, %p21967_p2 }
  0x68   :  { %p21970_p5 = pnand %p21969_p4, %p21963_p1 }
  0x6a   :  { %21973 = shalt.err (!%p21970_p5)
}
  0x6b   :  { %169 = dma.hbm_to_vmem [thread:$0]  %s23188_s14, 96, %s167_s27, [#allocation22]  }
  0x6c   :  { %s21974_s19 = scalar_lea.hbm %s23177_s3, 110592 }
  0x6d   :  { %p21975_p6 = scmp.ne.s32.totalorder %s23177_s3, %s21974_s19  ;;  %p21978_p7 = scmp.lt.u32.totalorder %s21974_s19, %s23177_s3 }
  0x6f   :  { %p21980_p8 = pnand %p21978_p7, %p21975_p6 }
  0x71   :  { %21983 = shalt.err (!%p21980_p8)
}
  0x72   :  { %s21984_s28 = scalar_lea.vmem %s46_s30, 110592  ;;  %p21989_p10 = scmp.lt.s32.totalorder %s46_s30, %s46_s30 }
  0x73   :  { %p21985_p9 = scmp.ne.s32.totalorder %s46_s30, %s21984_s28  ;;  %p21990_p11 = scmp.lt.s32.totalorder %s21984_s28, %s21984_s28 }
  0x75   :  { %p21991_p12 = por %p21990_p11, %p21989_p10 }
  0x77   :  { %p21992_p13 = pnand %p21991_p12, %p21985_p9 }
  0x79   :  { %21995 = shalt.err (!%p21992_p13)
}
  0x7a   :  { %s22151_s14 = smov 1152   ;;  %s22152_s27 = smov 72  }
  0x7b   :  { %51 = dma.hbm_to_vmem [thread:$0]  %s23177_s3, 110592, %s46_s30, [#allocation5], %s22151_s14, %s22151_s14, %s22152_s27  }
  0x7c   :  { %s22153_s0 = smov [#allocation8]   ;;  %s22154_s16 = smov [#allocation11]  }
  0x7d   :  { %s69_s20 = sshll.u32 %s22153_s0, 4  ;;  %s91_s21 = sshll.u32 %s22154_s16, 4  ;;  %s70_s20 = int_to_ptr.vmem [resolvable:$true] %s69_s20  ;;  %s92_s21 = int_to_ptr.vmem [resolvable:$true] %s91_s21 }
  0x7e   :  { %s21996_s4 = scalar_lea.hbm %s23179_s5, 36864 }
  0x7f   :  { %p21997_p0 = scmp.ne.s32.totalorder %s23179_s5, %s21996_s4  ;;  %p22000_p1 = scmp.lt.u32.totalorder %s21996_s4, %s23179_s5 }
  0x81   :  { %p22002_p2 = pnand %p22000_p1, %p21997_p0 }
  0x83   :  { %22005 = shalt.err (!%p22002_p2)
}
  0x84   :  { %s22006_s3 = scalar_lea.vmem %s70_s20, 36864  ;;  %p22011_p4 = scmp.lt.s32.totalorder %s70_s20, %s70_s20 }
  0x85   :  { %p22007_p3 = scmp.ne.s32.totalorder %s70_s20, %s22006_s3  ;;  %p22012_p5 = scmp.lt.s32.totalorder %s22006_s3, %s22006_s3 }
  0x87   :  { %p22013_p6 = por %p22012_p5, %p22011_p4 }
  0x89   :  { %p22014_p7 = pnand %p22013_p6, %p22007_p3 }
  0x8b   :  { %22017 = shalt.err (!%p22014_p7)
}
  0x8c   :  { %75 = dma.hbm_to_vmem [thread:$0]  %s23179_s5, 36864, %s70_s20, [#allocation7], %s22143_s24, %s22143_s24, %s22144_s25  }
  0x8d   :  { %s22018_s26 = scalar_lea.hbm %s23181_s7, 36864 }
  0x8e   :  { %p22019_p8 = scmp.ne.s32.totalorder %s23181_s7, %s22018_s26  ;;  %p22022_p9 = scmp.lt.u32.totalorder %s22018_s26, %s23181_s7 }
  0x90   :  { %p22024_p10 = pnand %p22022_p9, %p22019_p8 }
  0x92   :  { %22027 = shalt.err (!%p22024_p10)
}
  0x93   :  { %s22028_s8 = scalar_lea.vmem %s92_s21, 36864  ;;  %p22033_p12 = scmp.lt.s32.totalorder %s92_s21, %s92_s21 }
  0x94   :  { %p22029_p11 = scmp.ne.s32.totalorder %s92_s21, %s22028_s8  ;;  %p22034_p13 = scmp.lt.s32.totalorder %s22028_s8, %s22028_s8 }
  0x96   :  { %p22035_p0 = por %p22034_p13, %p22033_p12 }
  0x98   :  { %p22036_p1 = pnand %p22035_p0, %p22029_p11 }
  0x9a   :  { %22039 = shalt.err (!%p22036_p1)
}
  0x9b   :  { %97 = dma.hbm_to_vmem [thread:$0]  %s23181_s7, 36864, %s92_s21, [#allocation10], %s22143_s24, %s22143_s24, %s22144_s25  }
  0x9c   :  { %s22155_s20 = smov [#allocation14]   ;;  %s22156_s6 = smov [#allocation17]  }
  0x9d   :  { %s114_s16 = sshll.u32 %s22155_s20, 4  ;;  %s134_s12 = sshll.u32 %s22156_s6, 4  ;;  %s115_s16 = int_to_ptr.vmem [resolvable:$true] %s114_s16  ;;  %s135_s12 = int_to_ptr.vmem [resolvable:$true] %s134_s12 }
  0x9e   :  { %s22040_s22 = scalar_lea.hbm %s23183_s9, 96 }
  0x9f   :  { %p22041_p2 = scmp.ne.s32.totalorder %s23183_s9, %s22040_s22  ;;  %p22044_p3 = scmp.lt.u32.totalorder %s22040_s22, %s23183_s9 }
  0xa1   :  { %p22046_p4 = pnand %p22044_p3, %p22041_p2 }
  0xa3   :  { %22049 = shalt.err (!%p22046_p4)
}
  0xa4   :  { %s22050_s7 = scalar_lea.vmem %s115_s16, 96  ;;  %p22055_p6 = scmp.lt.s32.totalorder %s115_s16, %s115_s16 }
  0xa5   :  { %p22051_p5 = scmp.ne.s32.totalorder %s115_s16, %s22050_s7  ;;  %p22056_p7 = scmp.lt.s32.totalorder %s22050_s7, %s22050_s7 }
  0xa7   :  { %p22057_p8 = por %p22056_p7, %p22055_p6 }
  0xa9   :  { %p22058_p9 = pnand %p22057_p8, %p22051_p5 }
  0xab   :  { %22061 = shalt.err (!%p22058_p9)
}
  0xac   :  { %117 = dma.hbm_to_vmem [thread:$0]  %s23183_s9, 96, %s115_s16, [#allocation13]  }
  0xad   :  { %s22062_s26 = scalar_lea.hbm %s23185_s11, 96 }
  0xae   :  { %p22063_p10 = scmp.ne.s32.totalorder %s23185_s11, %s22062_s26  ;;  %p22066_p11 = scmp.lt.u32.totalorder %s22062_s26, %s23185_s11 }
  0xb0   :  { %p22068_p12 = pnand %p22066_p11, %p22063_p10 }
  0xb2   :  { %22071 = shalt.err (!%p22068_p12)
}
  0xb3   :  { %s22072_s8 = scalar_lea.vmem %s135_s12, 96  ;;  %p22077_p0 = scmp.lt.s32.totalorder %s135_s12, %s135_s12 }
  0xb4   :  { %p22073_p13 = scmp.ne.s32.totalorder %s135_s12, %s22072_s8  ;;  %p22078_p1 = scmp.lt.s32.totalorder %s22072_s8, %s22072_s8 }
  0xb6   :  { %p22079_p2 = por %p22078_p1, %p22077_p0 }
  0xb8   :  { %p22080_p3 = pnand %p22079_p2, %p22073_p13 }
  0xba   :  { %22083 = shalt.err (!%p22080_p3)
}
  0xbb   :  { %137 = dma.hbm_to_vmem [thread:$0]  %s23185_s11, 96, %s135_s12, [#allocation16]  }
  0xbc   :  { %s22157_s0 = smov [#allocation20]   ;;  %s22158_s16 = smov [#allocation23]  }
  0xbd   :  { %s153_s20 = sshll.u32 %s22157_s0, 4  ;;  %s176_s6 = sshll.u32 %s22158_s16, 4  ;;  %s154_s20 = int_to_ptr.vmem [resolvable:$true] %s153_s20  ;;  %s177_s6 = int_to_ptr.vmem [resolvable:$true] %s176_s6 }
  0xbe   :  { %s22084_s22 = scalar_lea.hbm %s23187_s13, 36864 }
  0xbf   :  { %p22085_p4 = scmp.ne.s32.totalorder %s23187_s13, %s22084_s22  ;;  %p22088_p5 = scmp.lt.u32.totalorder %s22084_s22, %s23187_s13 }
  0xc1   :  { %p22090_p6 = pnand %p22088_p5, %p22085_p4 }
  0xc3   :  { %22093 = shalt.err (!%p22090_p6)
}
  0xc4   :  { %s22094_s11 = scalar_lea.vmem %s154_s20, 36864  ;;  %p22099_p8 = scmp.lt.s32.totalorder %s154_s20, %s154_s20 }
  0xc5   :  { %p22095_p7 = scmp.ne.s32.totalorder %s154_s20, %s22094_s11  ;;  %p22100_p9 = scmp.lt.s32.totalorder %s22094_s11, %s22094_s11 }
  0xc7   :  { %p22101_p10 = por %p22100_p9, %p22099_p8 }
  0xc9   :  { %p22102_p11 = pnand %p22101_p10, %p22095_p7 }
  0xcb   :  { %22105 = shalt.err (!%p22102_p11)
}
  0xcc   :  { %159 = dma.hbm_to_vmem [thread:$0]  %s23187_s13, 36864, %s154_s20, [#allocation19], %s22143_s24, %s22143_s24, %s22144_s25  }
  0xcd   :  { %s22106_s10 = scalar_lea.hbm %s23189_s15, 96 }
  0xce   :  { %p22107_p12 = scmp.ne.s32.totalorder %s23189_s15, %s22106_s10  ;;  %p22110_p13 = scmp.lt.u32.totalorder %s22106_s10, %s23189_s15 }
  0xd0   :  { %p22112_p0 = pnand %p22110_p13, %p22107_p12 }
  0xd2   :  { %22115 = shalt.err (!%p22112_p0)
}
  0xd3   :  { %s22116_s27 = scalar_lea.vmem %s177_s6, 96  ;;  %p22121_p2 = scmp.lt.s32.totalorder %s177_s6, %s177_s6 }
  0xd4   :  { %p22117_p1 = scmp.ne.s32.totalorder %s177_s6, %s22116_s27  ;;  %p22122_p3 = scmp.lt.s32.totalorder %s22116_s27, %s22116_s27 }
  0xd6   :  { %p22123_p4 = por %p22122_p3, %p22121_p2 }
  0xd8   :  { %p22124_p5 = pnand %p22123_p4, %p22117_p1 }
  0xda   :  { %22127 = shalt.err (!%p22124_p5)
}
  0xdb   :  { %179 = dma.hbm_to_vmem [thread:$0]  %s23189_s15, 96, %s177_s6, [#allocation22]  }
  0xdc   :  { %22128 = dma.done.wait [#allocation5], 110592  }
  0xdd   :  { %22129 = vsyncadd [#allocation5], 4294856704 }
  0xde   :  { %22130 = dma.done.wait [#allocation7], 73728  }
  0xdf   :  { %22131 = vsyncadd [#allocation7], 4294893568 }
  0xe0   :  { %22132 = dma.done.wait [#allocation10], 36960  }
  0xe1   :  { %22133 = vsyncadd [#allocation10], 4294930336 }
  0xe2   :  { %22134 = dma.done.wait [#allocation13], 192  }
  0xe3   :  { %22135 = vsyncadd [#allocation13], 4294967104 }
  0xe4   :  { %22136 = dma.done.wait [#allocation16], 192  }
  0xe5   :  { %22137 = vsyncadd [#allocation16], 4294967104 }
  0xe6   :  { %22138 = dma.done.wait [#allocation19], 36960  }
  0xe7   :  { %22139 = vsyncadd [#allocation19], 4294930336 }
  0xe8   :  { %22140 = dma.done.wait [#allocation22], 192  }
  0xe9   :  { %22141 = vsyncadd [#allocation22], 4294967104  ;;  %v18790_v2 = vld [vmem:[#allocation4 + $0x4] ss:$72 sps:$4 sm:$0xff]   ;;  %v18794_v4 = vld [vmem:[#allocation4] ss:$72 sps:$4 sm:$0xff]  }
  0xea   :  { %v18792_v3 = vld [vmem:[#allocation4 + $0x904] ss:$72 sps:$4 sm:$0xff]   ;;  %5425 = vmatprep.subr.bf16.mxu1 %v18790_v2  ;;  %v18795_v5 = vld [vmem:[#allocation4 + $0x900] ss:$72 sps:$4 sm:$0xff]   ;;  %v18796_v6 = vld [vmem:[#allocation4 + $0x94] ss:$72 sps:$4 sm:$0xff]  }
  0xeb   :  { %5468 = vmatprep.subr.bf16.mxu0 %v18792_v3  ;;  %5426 = vmatpush1.bf16.msra.mxu1 %v18794_v4  ;;  %v18798_v7 = vld [vmem:[#allocation4 + $0x994] ss:$72 sps:$4 sm:$0xff]   ;;  %v18800_v8 = vld [vmem:[#allocation4 + $0x90] ss:$72 sps:$4 sm:$0xff]   ;;  %v18802_v10 = vld [vmem:[#allocation4 + $0x124] ss:$72 sps:$4 sm:$0xff]  }
  0xec   :  { %5469 = vmatpush1.bf16.msra.mxu0 %v18795_v5  ;;  %5427 = vmatprep.subr.bf16.mxu1 %v18796_v6  ;;  %v18801_v9 = vld [vmem:[#allocation4 + $0x990] ss:$72 sps:$4 sm:$0xff]   ;;  %v18804_v11 = vld [vmem:[#allocation4 + $0xa24] ss:$72 sps:$4 sm:$0xff]   ;;  %v18806_v12 = vld [vmem:[#allocation4 + $0x120] ss:$72 sps:$4 sm:$0xff]  }
  0xed   :  { %5470 = vmatprep.subr.bf16.mxu0 %v18798_v7  ;;  %v18807_v13 = vld [vmem:[#allocation4 + $0xa20] ss:$72 sps:$4 sm:$0xff]   ;;  %v18808_v14 = vld [vmem:[#allocation4 + $0x1b4] ss:$72 sps:$4 sm:$0xff]   ;;  %v18812_v16 = vld [vmem:[#allocation4 + $0x1b0] ss:$72 sps:$4 sm:$0xff]  }
  0xee   :  { %v18810_v15 = vld [vmem:[#allocation4 + $0xab4] ss:$72 sps:$4 sm:$0xff]   ;;  %v18813_v17 = vld [vmem:[#allocation4 + $0xab0] ss:$72 sps:$4 sm:$0xff]   ;;  %v18814_v18 = vld [vmem:[#allocation4 + $0x244] ss:$72 sps:$4 sm:$0xff]  }
  0xef   :  { %5428 = vmatpush1.bf16.msra.mxu1 %v18800_v8  ;;  %v18816_v19 = vld [vmem:[#allocation4 + $0xb44] ss:$72 sps:$4 sm:$0xff]   ;;  %v18818_v20 = vld [vmem:[#allocation4 + $0x240] ss:$72 sps:$4 sm:$0xff]   ;;  %v18820_v22 = vld [vmem:[#allocation4 + $0x2d4] ss:$72 sps:$4 sm:$0xff]  }
  0xf0   :  { %5471 = vmatpush1.bf16.msra.mxu0 %v18801_v9  ;;  %5429 = vmatprep.subr.bf16.mxu1 %v18802_v10  ;;  %v18819_v21 = vld [vmem:[#allocation4 + $0xb40] ss:$72 sps:$4 sm:$0xff]   ;;  %v18822_v23 = vld [vmem:[#allocation4 + $0xbd4] ss:$72 sps:$4 sm:$0xff]   ;;  %v18824_v24 = vld [vmem:[#allocation4 + $0x2d0] ss:$72 sps:$4 sm:$0xff]  }
  0xf1   :  { %5472 = vmatprep.subr.bf16.mxu0 %v18804_v11  ;;  %v18825_v25 = vld [vmem:[#allocation4 + $0xbd0] ss:$72 sps:$4 sm:$0xff]   ;;  %v18826_v26 = vld [vmem:[#allocation4 + $0x364] ss:$72 sps:$4 sm:$0xff]   ;;  %v18830_v28 = vld [vmem:[#allocation4 + $0x360] ss:$72 sps:$4 sm:$0xff]  }
  0xf2   :  { %v18828_v27 = vld [vmem:[#allocation4 + $0xc64] ss:$72 sps:$4 sm:$0xff]   ;;  %v18831_v29 = vld [vmem:[#allocation4 + $0xc60] ss:$72 sps:$4 sm:$0xff]   ;;  %v18832_v30 = vld [vmem:[#allocation4 + $0x3f4] ss:$72 sps:$4 sm:$0xff]  }
  0xf3   :  { %5430 = vmatpush1.bf16.msra.mxu1 %v18806_v12  ;;  %v18834_v31 = vld [vmem:[#allocation4 + $0xcf4] ss:$72 sps:$4 sm:$0xff]   ;;  %v18836_v32 = vld [vmem:[#allocation4 + $0x3f0] ss:$72 sps:$4 sm:$0xff]   ;;  %v18838_v34 = vld [vmem:[#allocation4 + $0x484] ss:$72 sps:$4 sm:$0xff]  }
  0xf4   :  { %5473 = vmatpush1.bf16.msra.mxu0 %v18807_v13  ;;  %5431 = vmatprep.subr.bf16.mxu1 %v18808_v14  ;;  %v18837_v33 = vld [vmem:[#allocation4 + $0xcf0] ss:$72 sps:$4 sm:$0xff]   ;;  %v18840_v35 = vld [vmem:[#allocation4 + $0xd84] ss:$72 sps:$4 sm:$0xff]   ;;  %v18842_v36 = vld [vmem:[#allocation4 + $0x480] ss:$72 sps:$4 sm:$0xff]  }
  0xf5   :  { %5474 = vmatprep.subr.bf16.mxu0 %v18810_v15  ;;  %v18843_v37 = vld [vmem:[#allocation4 + $0xd80] ss:$72 sps:$4 sm:$0xff]   ;;  %v18844_v38 = vld [vmem:[#allocation4 + $0x514] ss:$72 sps:$4 sm:$0xff]   ;;  %v18848_v40 = vld [vmem:[#allocation4 + $0x510] ss:$72 sps:$4 sm:$0xff]  }
  0xf6   :  { %v18846_v39 = vld [vmem:[#allocation4 + $0xe14] ss:$72 sps:$4 sm:$0xff]   ;;  %v18849_v41 = vld [vmem:[#allocation4 + $0xe10] ss:$72 sps:$4 sm:$0xff]   ;;  %v18850_v42 = vld [vmem:[#allocation4 + $0x5a4] ss:$72 sps:$4 sm:$0xff]  }
  0xf7   :  { %5432 = vmatpush1.bf16.msra.mxu1 %v18812_v16  ;;  %v18852_v43 = vld [vmem:[#allocation4 + $0xea4] ss:$72 sps:$4 sm:$0xff]   ;;  %v18854_v44 = vld [vmem:[#allocation4 + $0x5a0] ss:$72 sps:$4 sm:$0xff]   ;;  %v18856_v46 = vld [vmem:[#allocation4 + $0x634] ss:$72 sps:$4 sm:$0xff]  }
  0xf8   :  { %5475 = vmatpush1.bf16.msra.mxu0 %v18813_v17  ;;  %5433 = vmatprep.subr.bf16.mxu1 %v18814_v18  ;;  %v18855_v45 = vld [vmem:[#allocation4 + $0xea0] ss:$72 sps:$4 sm:$0xff]   ;;  %v18858_v47 = vld [vmem:[#allocation4 + $0xf34] ss:$72 sps:$4 sm:$0xff]   ;;  %s23198_s1 = sld [smem:[#allocation31_spill]]  ;;  %s23199_s27 = sld [smem:[#allocation32_spill]] }
  0xf9   :  { %5476 = vmatprep.subr.bf16.mxu0 %v18816_v19  ;;  %v18860_v49 = vld [vmem:[#allocation4 + $0x630] ss:$72 sps:$4 sm:$0xff]   ;;  %v18862_v55 = vld [vmem:[#allocation4 + $0x6c4] ss:$72 sps:$4 sm:$0xff]   ;;  %v18866_v58 = vld [vmem:[#allocation4 + $0x6c0] ss:$72 sps:$4 sm:$0xff]  }
  0xfa   :  { %v18861_v50 = vld [vmem:[#allocation4 + $0xf30] ss:$72 sps:$4 sm:$0xff]   ;;  %v18864_v56 = vld [vmem:[#allocation4 + $0xfc4] ss:$72 sps:$4 sm:$0xff]   ;;  %v18867_v59 = vld [vmem:[#allocation4 + $0xfc0] ss:$72 sps:$4 sm:$0xff]  }
  0xfb   :  { %5434 = vmatpush1.bf16.msra.mxu1 %v18818_v20  ;;  %v18868_v60 = vld [vmem:[#allocation4 + $0x754] ss:$72 sps:$4 sm:$0xff]   ;;  %v18872_v62 = vld [vmem:[#allocation4 + $0x750] ss:$72 sps:$4 sm:$0xff]   ;;  %v18874_v0 = vld [vmem:[#allocation4 + $0x7e4] ss:$72 sps:$4 sm:$0xff]  }
  0xfc   :  { %5477 = vmatpush1.bf16.msra.mxu0 %v18819_v21  ;;  %5435 = vmatprep.subr.bf16.mxu1 %v18820_v22  ;;  %v18870_v61 = vld [vmem:[#allocation4 + $0x1054] ss:$72 sps:$4 sm:$0xff]   ;;  %v18873_v63 = vld [vmem:[#allocation4 + $0x1050] ss:$72 sps:$4 sm:$0xff]   ;;  %v18876_v1 = vld [vmem:[#allocation4 + $0x10e4] ss:$72 sps:$4 sm:$0xff]  }
  0xfd   :  { %5478 = vmatprep.subr.bf16.mxu0 %v18822_v23  ;;  %v18878_v2 = vld [vmem:[#allocation4 + $0x7e0] ss:$72 sps:$4 sm:$0xff]   ;;  %v18880_v4 = vld [vmem:[#allocation4 + $0x874] ss:$72 sps:$4 sm:$0xff]   ;;  %v18884_v6 = vld [vmem:[#allocation4 + $0x870] ss:$72 sps:$4 sm:$0xff]  }
  0xfe   :  { %v224_v48 = vld [vmem:[%s23198_s1 + $0x8] sm:$0xff]  ;;  %v230_v51 = vld [vmem:[%s23198_s1 + $0x38] sm:$0xff]  ;;  %v223_v8 = vld [vmem:[%s23198_s1] sm:$0xff]  ;;  %vm7020_vm0 = vcmask 64512   ;;  %vm14616_vm1 = vcmask 1041409   ;;  %vm16493_vm2 = vcmask 1041408  }
  0xff   :  { %5436 = vmatpush1.bf16.msra.mxu1 %v18824_v24  ;;  %v22435_v52 = vpack.c.bf16 %v230_v51, %v224_v48  ;;  %v226_v53 = vld [vmem:[%s23198_s1 + $0x18] sm:$0xff]  ;;  %v232_v54 = vld [vmem:[%s23198_s1 + $0x48] sm:$0xff]  ;;  %v229_v9 = vld [vmem:[%s23198_s1 + $0x30] sm:$0xff]  ;;  %s23200_s14 = sld [smem:[#allocation33_spill]]  ;;  %vm16525_vm3 = vcmask 1024  }
 0x100   :  { %5479 = vmatpush1.bf16.msra.mxu0 %v18825_v25  ;;  %5437 = vmatprep.subr.bf16.mxu1 %v18826_v26  ;;  %v22443_v57 = vpack.c.bf16 %v232_v54, %v226_v53  ;;  %v18879_v3 = vld [vmem:[#allocation4 + $0x10e0] ss:$72 sps:$4 sm:$0xff]   ;;  %v18882_v5 = vld [vmem:[#allocation4 + $0x1174] ss:$72 sps:$4 sm:$0xff]   ;;  %v18885_v7 = vld [vmem:[#allocation4 + $0x1170] ss:$72 sps:$4 sm:$0xff]   ;;  %v22459_v14 = vpack.c.bf16 %v229_v9, %v223_v8 }
 0x101   :  { %5480 = vmatprep.subr.bf16.mxu0 %v18828_v27  ;;  %5457 = vmatprep.mubr.bf16.mxu1 %v22435_v52  ;;  %v18888_v10 = vld [vmem:[#allocation4 + $0x1204] ss:$72 sps:$4 sm:$0xff]   ;;  %v18886_v15 = vld [vmem:[#allocation4 + $0x1200] ss:$72 sps:$4 sm:$0xff]   ;;  %v18894_v18 = vld [vmem:[#allocation4 + $0x1294] ss:$72 sps:$4 sm:$0xff]  }
 0x102   :  { %5500 = vmatprep.mubr.bf16.mxu0 %v22443_v57  ;;  %v225_v11 = vld [vmem:[%s23198_s1 + $0x10] sm:$0xff]  ;;  %v231_v12 = vld [vmem:[%s23198_s1 + $0x40] sm:$0xff] }
 0x103   :  { %5438 = vmatpush1.bf16.msra.mxu1 %v18830_v28  ;;  %v18891_v13 = vld [vmem:[#allocation4 + $0xc] ss:$72 sps:$4 sm:$0xff]   ;;  %v18889_v16 = vld [vmem:[#allocation4 + $0x8] ss:$72 sps:$4 sm:$0xff]   ;;  %v22461_v17 = vpack.c.bf16 %v231_v12, %v225_v11  ;;  %v18897_v19 = vld [vmem:[#allocation4 + $0x9c] ss:$72 sps:$4 sm:$0xff]  }
 0x104   :  { %5481 = vmatpush1.bf16.msra.mxu0 %v18831_v29  ;;  %5439 = vmatprep.subr.bf16.mxu1 %v18832_v30  ;;  %v18892_v20 = vld [vmem:[#allocation4 + $0x1290] ss:$72 sps:$4 sm:$0xff]   ;;  %v18900_v22 = vld [vmem:[#allocation4 + $0x1324] ss:$72 sps:$4 sm:$0xff]   ;;  %v18898_v24 = vld [vmem:[#allocation4 + $0x1320] ss:$72 sps:$4 sm:$0xff]  }
 0x105   :  { %5482 = vmatprep.subr.bf16.mxu0 %v18834_v31  ;;  %v18895_v21 = vld [vmem:[#allocation4 + $0x98] ss:$72 sps:$4 sm:$0xff]   ;;  %v18903_v23 = vld [vmem:[#allocation4 + $0x12c] ss:$72 sps:$4 sm:$0xff]   ;;  %v18901_v25 = vld [vmem:[#allocation4 + $0x128] ss:$72 sps:$4 sm:$0xff]  }
 0x106   :  { %v18906_v26 = vld [vmem:[#allocation4 + $0x13b4] ss:$72 sps:$4 sm:$0xff]   ;;  %v18904_v28 = vld [vmem:[#allocation4 + $0x13b0] ss:$72 sps:$4 sm:$0xff]   ;;  %v18912_v30 = vld [vmem:[#allocation4 + $0x1444] ss:$72 sps:$4 sm:$0xff]  }
 0x107   :  { %5440 = vmatpush1.bf16.msra.mxu1 %v18836_v32  ;;  %v18909_v27 = vld [vmem:[#allocation4 + $0x1bc] ss:$72 sps:$4 sm:$0xff]   ;;  %v18907_v29 = vld [vmem:[#allocation4 + $0x1b8] ss:$72 sps:$4 sm:$0xff]   ;;  %v18915_v31 = vld [vmem:[#allocation4 + $0x24c] ss:$72 sps:$4 sm:$0xff]  }
 0x108   :  { %5483 = vmatpush1.bf16.msra.mxu0 %v18837_v33  ;;  %5441 = vmatprep.subr.bf16.mxu1 %v18838_v34  ;;  %v18910_v32 = vld [vmem:[#allocation4 + $0x1440] ss:$72 sps:$4 sm:$0xff]   ;;  %v18918_v34 = vld [vmem:[#allocation4 + $0x14d4] ss:$72 sps:$4 sm:$0xff]   ;;  %v18964_v9 = vld [vmem:[#allocation4 + $0x1950] ss:$72 sps:$4 sm:$0xff]  }
 0x109   :  { %5484 = vmatprep.subr.bf16.mxu0 %v18840_v35  ;;  %v18913_v33 = vld [vmem:[#allocation4 + $0x248] ss:$72 sps:$4 sm:$0xff]   ;;  %v18921_v35 = vld [vmem:[#allocation4 + $0x2dc] ss:$72 sps:$4 sm:$0xff]   ;;  %v18931_v48 = vld [vmem:[#allocation4 + $0x3f8] ss:$72 sps:$4 sm:$0xff]  }
 0x10a   :  { %v18934_v51 = vld [vmem:[#allocation4 + $0x1680] ss:$72 sps:$4 sm:$0xff]   ;;  %v18942_v54 = vld [vmem:[#allocation4 + $0x1714] ss:$72 sps:$4 sm:$0xff]   ;;  %v18972_v11 = vld [vmem:[#allocation4 + $0x19e4] ss:$72 sps:$4 sm:$0xff]  }
 0x10b   :  { %5442 = vmatpush1.bf16.msra.mxu1 %v18842_v36  ;;  %v18916_v36 = vld [vmem:[#allocation4 + $0x14d0] ss:$72 sps:$4 sm:$0xff]   ;;  %v18969_v8 = vld [vmem:[#allocation4 + $0x75c] ss:$72 sps:$4 sm:$0xff]   ;;  %v18975_v12 = vld [vmem:[#allocation4 + $0x7ec] ss:$72 sps:$4 sm:$0xff]  }
 0x10c   :  { %5485 = vmatpush1.bf16.msra.mxu0 %v18843_v37  ;;  %5443 = vmatprep.subr.bf16.mxu1 %v18844_v38  ;;  %v18919_v37 = vld [vmem:[#allocation4 + $0x2d8] ss:$72 sps:$4 sm:$0xff]   ;;  %v18924_v38 = vld [vmem:[#allocation4 + $0x1564] ss:$72 sps:$4 sm:$0xff]   ;;  %v18937_v53 = vld [vmem:[#allocation4 + $0x488] ss:$72 sps:$4 sm:$0xff]  }
 0x10d   :  { %5486 = vmatprep.subr.bf16.mxu0 %v18846_v39  ;;  %v18927_v39 = vld [vmem:[#allocation4 + $0x36c] ss:$72 sps:$4 sm:$0xff]  }
 0x10f   :  { %5444 = vmatpush1.bf16.msra.mxu1 %v18848_v40  ;;  %v18922_v40 = vld [vmem:[#allocation4 + $0x1560] ss:$72 sps:$4 sm:$0xff]  }
 0x110   :  { %5487 = vmatpush1.bf16.msra.mxu0 %v18849_v41  ;;  %5445 = vmatprep.subr.bf16.mxu1 %v18850_v42  ;;  %v18925_v41 = vld [vmem:[#allocation4 + $0x368] ss:$72 sps:$4 sm:$0xff]   ;;  %v18930_v42 = vld [vmem:[#allocation4 + $0x15f4] ss:$72 sps:$4 sm:$0xff]  }
 0x111   :  { %5488 = vmatprep.subr.bf16.mxu0 %v18852_v43  ;;  %v228_v43 = vld [vmem:[%s23198_s1 + $0x28] sm:$0xff] }
 0x113   :  { %5446 = vmatpush1.bf16.msra.mxu1 %v18854_v44  ;;  %v234_v44 = vld [vmem:[%s23198_s1 + $0x58] sm:$0xff] }
 0x114   :  { %5489 = vmatpush1.bf16.msra.mxu0 %v18855_v45  ;;  %5447 = vmatprep.subr.bf16.mxu1 %v18856_v46  ;;  %v18933_v45 = vld [vmem:[#allocation4 + $0x3fc] ss:$72 sps:$4 sm:$0xff]   ;;  %v22472_v46 = vpack.c.bf16 %v234_v44, %v228_v43  ;;  %v19009_v43 = vld [vmem:[#allocation4 + $0x250] ss:$72 sps:$4 sm:$0xff]  }
 0x115   :  { %5490 = vmatprep.subr.bf16.mxu0 %v18858_v47  ;;  %v18928_v47 = vld [vmem:[#allocation4 + $0x15f0] ss:$72 sps:$4 sm:$0xff]   ;;  %v19014_v44 = vld [vmem:[#allocation4 + $0xbdc] ss:$72 sps:$4 sm:$0xff]  }
 0x117   :  { %5448 = vmatpush1.bf16.msra.mxu1 %v18860_v49  ;;  %v18936_v49 = vld [vmem:[#allocation4 + $0x1684] ss:$72 sps:$4 sm:$0xff]  }
 0x118   :  { %5491 = vmatpush1.bf16.msra.mxu0 %v18861_v50  ;;  %5449 = vmatprep.subr.bf16.mxu1 %v18862_v55  ;;  %v18939_v50 = vld [vmem:[#allocation4 + $0x48c] ss:$72 sps:$4 sm:$0xff]   ;;  %v18945_v55 = vld [vmem:[#allocation4 + $0x51c] ss:$72 sps:$4 sm:$0xff]  }
 0x119   :  { %5492 = vmatprep.subr.bf16.mxu0 %v18864_v56  ;;  %v18940_v56 = vld [vmem:[#allocation4 + $0x1710] ss:$72 sps:$4 sm:$0xff]  }
 0x11b   :  { %5450 = vmatpush1.bf16.msra.mxu1 %v18866_v58  ;;  %v18943_v58 = vld [vmem:[#allocation4 + $0x518] ss:$72 sps:$4 sm:$0xff]  }
 0x11c   :  { %5493 = vmatpush1.bf16.msra.mxu0 %v18867_v59  ;;  %5451 = vmatprep.subr.bf16.mxu1 %v18868_v60  ;;  %v18948_v59 = vld [vmem:[#allocation4 + $0x17a4] ss:$72 sps:$4 sm:$0xff]  }
 0x11d   :  { %5494 = vmatprep.subr.bf16.mxu0 %v18870_v61  ;;  %v18951_v60 = vld [vmem:[#allocation4 + $0x5ac] ss:$72 sps:$4 sm:$0xff]   ;;  %v18946_v61 = vld [vmem:[#allocation4 + $0x17a0] ss:$72 sps:$4 sm:$0xff]  }
 0x11f   :  { %5452 = vmatpush1.bf16.msra.mxu1 %v18872_v62  ;;  %v18949_v62 = vld [vmem:[#allocation4 + $0x5a8] ss:$72 sps:$4 sm:$0xff]  }
 0x120   :  { %5495 = vmatpush1.bf16.msra.mxu0 %v18873_v63  ;;  %5453 = vmatprep.subr.bf16.mxu1 %v18874_v0  ;;  %v18954_v63 = vld [vmem:[#allocation4 + $0x1834] ss:$72 sps:$4 sm:$0xff]  }
 0x121   :  { %5496 = vmatprep.subr.bf16.mxu0 %v18876_v1  ;;  %v18957_v0 = vld [vmem:[#allocation4 + $0x63c] ss:$72 sps:$4 sm:$0xff]   ;;  %v18952_v1 = vld [vmem:[#allocation4 + $0x1830] ss:$72 sps:$4 sm:$0xff]  }
 0x123   :  { %5454 = vmatpush1.bf16.msra.mxu1 %v18878_v2  ;;  %v18955_v2 = vld [vmem:[#allocation4 + $0x638] ss:$72 sps:$4 sm:$0xff]  }
 0x124   :  { %5497 = vmatpush1.bf16.msra.mxu0 %v18879_v3  ;;  %5455 = vmatprep.subr.bf16.mxu1 %v18880_v4  ;;  %v18960_v3 = vld [vmem:[#allocation4 + $0x18c4] ss:$72 sps:$4 sm:$0xff]  }
 0x125   :  { %5498 = vmatprep.subr.bf16.mxu0 %v18882_v5  ;;  %v18963_v4 = vld [vmem:[#allocation4 + $0x6cc] ss:$72 sps:$4 sm:$0xff]   ;;  %v18958_v5 = vld [vmem:[#allocation4 + $0x18c0] ss:$72 sps:$4 sm:$0xff]  }
 0x127   :  { %5456 = vmatpush1.bf16.msra.mxu1 %v18884_v6  ;;  %v18961_v6 = vld [vmem:[#allocation4 + $0x6c8] ss:$72 sps:$4 sm:$0xff]  }
 0x128   :  { %5499 = vmatpush1.bf16.msra.mxu0 %v18885_v7  ;;  %5554 = vmatprep.subr.bf16.mxu1 %v18891_v13  ;;  %v18966_v7 = vld [vmem:[#allocation4 + $0x1954] ss:$72 sps:$4 sm:$0xff]   ;;  %v18970_v13 = vld [vmem:[#allocation4 + $0x19e0] ss:$72 sps:$4 sm:$0xff]  }
 0x129   :  { %5511 = vmatprep.subr.bf16.mxu0 %v18888_v10  ;;  %v18967_v10 = vld [vmem:[#allocation4 + $0x758] ss:$72 sps:$4 sm:$0xff]  }
 0x12a   :  { %5458 = vmatmul.mubr.bf16.vlgmr.msra.gmra.mrb[0].mxu1 %v22459_v14 }
 0x12b   :  { %5501 = vmatmul.mubr.bf16.vlgmr.msra.gmra.mrb[0].mxu0 %v22461_v17  ;;  %5555 = vmatpush1.bf16.msra.mxu1 %v18889_v16  ;;  %v18978_v16 = vld [vmem:[#allocation4 + $0x1a74] ss:$72 sps:$4 sm:$0xff]  }
 0x12c   :  { %5512 = vmatpush1.bf16.msra.mxu0 %v18886_v15  ;;  %5556 = vmatprep.subr.bf16.mxu1 %v18897_v19  ;;  %v18973_v15 = vld [vmem:[#allocation4 + $0x7e8] ss:$72 sps:$4 sm:$0xff]  }
 0x12d   :  { %5513 = vmatprep.subr.bf16.mxu0 %v18894_v18  ;;  %5586 = vmatprep.mubr.bf16.mxu1 %v22435_v52  ;;  %v18981_v18 = vld [vmem:[#allocation4 + $0x87c] ss:$72 sps:$4 sm:$0xff]   ;;  %v18976_v19 = vld [vmem:[#allocation4 + $0x1a70] ss:$72 sps:$4 sm:$0xff]  }
 0x12e   :  { %5543 = vmatprep.mubr.bf16.mxu0 %v22472_v46 }
 0x12f   :  { %5557 = vmatpush1.bf16.msra.mxu1 %v18895_v21  ;;  %v227_v21 = vld [vmem:[%s23198_s1 + $0x20] sm:$0xff] }
 0x130   :  { %5514 = vmatpush1.bf16.msra.mxu0 %v18892_v20  ;;  %5558 = vmatprep.subr.bf16.mxu1 %v18903_v23  ;;  %v18979_v20 = vld [vmem:[#allocation4 + $0x878] ss:$72 sps:$4 sm:$0xff]   ;;  %v18984_v23 = vld [vmem:[#allocation4 + $0x90c] ss:$72 sps:$4 sm:$0xff]  }
 0x131   :  { %5515 = vmatprep.subr.bf16.mxu0 %v18900_v22  ;;  %v233_v22 = vld [vmem:[%s23198_s1 + $0x50] sm:$0xff] }
 0x133   :  { %5559 = vmatpush1.bf16.msra.mxu1 %v18901_v25  ;;  %v22481_v25 = vpack.c.bf16 %v233_v22, %v227_v21  ;;  %v19068_v21 = vld [vmem:[#allocation4 + $0x10ec] ss:$72 sps:$4 sm:$0xff]  }
 0x134   :  { %5516 = vmatpush1.bf16.msra.mxu0 %v18898_v24  ;;  %5560 = vmatprep.subr.bf16.mxu1 %v18909_v27  ;;  %v18987_v24 = vld [vmem:[#allocation4 + $0x14] ss:$72 sps:$4 sm:$0xff]   ;;  %v18985_v27 = vld [vmem:[#allocation4 + $0x10] ss:$72 sps:$4 sm:$0xff]  }
 0x135   :  { %5517 = vmatprep.subr.bf16.mxu0 %v18906_v26  ;;  %v18982_v26 = vld [vmem:[#allocation4 + $0x908] ss:$72 sps:$4 sm:$0xff]   ;;  %v19071_v22 = vld [vmem:[#allocation4 + $0x7f4] ss:$72 sps:$4 sm:$0xff]  }
 0x137   :  { %5561 = vmatpush1.bf16.msra.mxu1 %v18907_v29  ;;  %v18993_v29 = vld [vmem:[#allocation4 + $0xa4] ss:$72 sps:$4 sm:$0xff]  }
 0x138   :  { %5518 = vmatpush1.bf16.msra.mxu0 %v18904_v28  ;;  %5562 = vmatprep.subr.bf16.mxu1 %v18915_v31  ;;  %v18990_v28 = vld [vmem:[#allocation4 + $0x99c] ss:$72 sps:$4 sm:$0xff]   ;;  %v18991_v31 = vld [vmem:[#allocation4 + $0xa0] ss:$72 sps:$4 sm:$0xff]  }
 0x139   :  { %5519 = vmatprep.subr.bf16.mxu0 %v18912_v30  ;;  %v18988_v30 = vld [vmem:[#allocation4 + $0x998] ss:$72 sps:$4 sm:$0xff]  }
 0x13b   :  { %5563 = vmatpush1.bf16.msra.mxu1 %v18913_v33  ;;  %v18999_v33 = vld [vmem:[#allocation4 + $0x134] ss:$72 sps:$4 sm:$0xff]  }
 0x13c   :  { %5520 = vmatpush1.bf16.msra.mxu0 %v18910_v32  ;;  %5564 = vmatprep.subr.bf16.mxu1 %v18921_v35  ;;  %v18996_v32 = vld [vmem:[#allocation4 + $0xa2c] ss:$72 sps:$4 sm:$0xff]   ;;  %v18997_v35 = vld [vmem:[#allocation4 + $0x130] ss:$72 sps:$4 sm:$0xff]  }
 0x13d   :  { %5521 = vmatprep.subr.bf16.mxu0 %v18918_v34  ;;  %v18994_v34 = vld [vmem:[#allocation4 + $0xa28] ss:$72 sps:$4 sm:$0xff]  }
 0x13f   :  { %5565 = vmatpush1.bf16.msra.mxu1 %v18919_v37  ;;  %v19005_v37 = vld [vmem:[#allocation4 + $0x1c4] ss:$72 sps:$4 sm:$0xff]  }
 0x140   :  { %5522 = vmatpush1.bf16.msra.mxu0 %v18916_v36  ;;  %5566 = vmatprep.subr.bf16.mxu1 %v18927_v39  ;;  %v19002_v36 = vld [vmem:[#allocation4 + $0xabc] ss:$72 sps:$4 sm:$0xff]   ;;  %v19003_v39 = vld [vmem:[#allocation4 + $0x1c0] ss:$72 sps:$4 sm:$0xff]  }
 0x141   :  { %5523 = vmatprep.subr.bf16.mxu0 %v18924_v38  ;;  %v19000_v38 = vld [vmem:[#allocation4 + $0xab8] ss:$72 sps:$4 sm:$0xff]  }
 0x143   :  { %5567 = vmatpush1.bf16.msra.mxu1 %v18925_v41  ;;  %v19011_v41 = vld [vmem:[#allocation4 + $0x254] ss:$72 sps:$4 sm:$0xff]  }
 0x144   :  { %5524 = vmatpush1.bf16.msra.mxu0 %v18922_v40  ;;  %5568 = vmatprep.subr.bf16.mxu1 %v18933_v45  ;;  %v19008_v40 = vld [vmem:[#allocation4 + $0xb4c] ss:$72 sps:$4 sm:$0xff]  }
 0x145   :  { %5525 = vmatprep.subr.bf16.mxu0 %v18930_v42  ;;  %v19006_v42 = vld [vmem:[#allocation4 + $0xb48] ss:$72 sps:$4 sm:$0xff]   ;;  %v19017_v45 = vld [vmem:[#allocation4 + $0x2e4] ss:$72 sps:$4 sm:$0xff]  }
 0x147   :  { %5569 = vmatpush1.bf16.msra.mxu1 %v18931_v48  ;;  %v19015_v48 = vld [vmem:[#allocation4 + $0x2e0] ss:$72 sps:$4 sm:$0xff]  }
 0x148   :  { %5526 = vmatpush1.bf16.msra.mxu0 %v18928_v47  ;;  %5570 = vmatprep.subr.bf16.mxu1 %v18939_v50  ;;  %v19012_v47 = vld [vmem:[#allocation4 + $0xbd8] ss:$72 sps:$4 sm:$0xff]   ;;  %v19023_v50 = vld [vmem:[#allocation4 + $0x374] ss:$72 sps:$4 sm:$0xff]  }
 0x149   :  { %5527 = vmatprep.subr.bf16.mxu0 %v18936_v49  ;;  %v19020_v49 = vld [vmem:[#allocation4 + $0xc6c] ss:$72 sps:$4 sm:$0xff]  }
 0x14b   :  { %5571 = vmatpush1.bf16.msra.mxu1 %v18937_v53  ;;  %v19021_v53 = vld [vmem:[#allocation4 + $0x370] ss:$72 sps:$4 sm:$0xff]  }
 0x14c   :  { %5528 = vmatpush1.bf16.msra.mxu0 %v18934_v51  ;;  %5572 = vmatprep.subr.bf16.mxu1 %v18945_v55  ;;  %v19018_v51 = vld [vmem:[#allocation4 + $0xc68] ss:$72 sps:$4 sm:$0xff]   ;;  %v19029_v55 = vld [vmem:[#allocation4 + $0x404] ss:$72 sps:$4 sm:$0xff]  }
 0x14d   :  { %5529 = vmatprep.subr.bf16.mxu0 %v18942_v54  ;;  %v19026_v54 = vld [vmem:[#allocation4 + $0xcfc] ss:$72 sps:$4 sm:$0xff]  }
 0x14f   :  { %5573 = vmatpush1.bf16.msra.mxu1 %v18943_v58  ;;  %v19027_v58 = vld [vmem:[#allocation4 + $0x400] ss:$72 sps:$4 sm:$0xff]  }
 0x150   :  { %5530 = vmatpush1.bf16.msra.mxu0 %v18940_v56  ;;  %5574 = vmatprep.subr.bf16.mxu1 %v18951_v60  ;;  %v19024_v56 = vld [vmem:[#allocation4 + $0xcf8] ss:$72 sps:$4 sm:$0xff]   ;;  %v19035_v60 = vld [vmem:[#allocation4 + $0x494] ss:$72 sps:$4 sm:$0xff]  }
 0x151   :  { %5531 = vmatprep.subr.bf16.mxu0 %v18948_v59  ;;  %v19032_v59 = vld [vmem:[#allocation4 + $0xd8c] ss:$72 sps:$4 sm:$0xff]  }
 0x153   :  { %5575 = vmatpush1.bf16.msra.mxu1 %v18949_v62  ;;  %v19033_v62 = vld [vmem:[#allocation4 + $0x490] ss:$72 sps:$4 sm:$0xff]  }
 0x154   :  { %5532 = vmatpush1.bf16.msra.mxu0 %v18946_v61  ;;  %5576 = vmatprep.subr.bf16.mxu1 %v18957_v0  ;;  %v19030_v61 = vld [vmem:[#allocation4 + $0xd88] ss:$72 sps:$4 sm:$0xff]   ;;  %v19041_v0 = vld [vmem:[#allocation4 + $0x524] ss:$72 sps:$4 sm:$0xff]  }
 0x155   :  { %5533 = vmatprep.subr.bf16.mxu0 %v18954_v63  ;;  %v19038_v63 = vld [vmem:[#allocation4 + $0xe1c] ss:$72 sps:$4 sm:$0xff]  }
 0x157   :  { %5577 = vmatpush1.bf16.msra.mxu1 %v18955_v2  ;;  %v19039_v2 = vld [vmem:[#allocation4 + $0x520] ss:$72 sps:$4 sm:$0xff]  }
 0x158   :  { %5534 = vmatpush1.bf16.msra.mxu0 %v18952_v1  ;;  %5578 = vmatprep.subr.bf16.mxu1 %v18963_v4  ;;  %v19036_v1 = vld [vmem:[#allocation4 + $0xe18] ss:$72 sps:$4 sm:$0xff]   ;;  %v19047_v4 = vld [vmem:[#allocation4 + $0x5b4] ss:$72 sps:$4 sm:$0xff]  }
 0x159   :  { %5535 = vmatprep.subr.bf16.mxu0 %v18960_v3  ;;  %v19044_v3 = vld [vmem:[#allocation4 + $0xeac] ss:$72 sps:$4 sm:$0xff]  }
 0x15b   :  { %5579 = vmatpush1.bf16.msra.mxu1 %v18961_v6  ;;  %v19045_v6 = vld [vmem:[#allocation4 + $0x5b0] ss:$72 sps:$4 sm:$0xff]  }
 0x15c   :  { %5536 = vmatpush1.bf16.msra.mxu0 %v18958_v5  ;;  %5580 = vmatprep.subr.bf16.mxu1 %v18969_v8  ;;  %v19042_v5 = vld [vmem:[#allocation4 + $0xea8] ss:$72 sps:$4 sm:$0xff]   ;;  %v19053_v8 = vld [vmem:[#allocation4 + $0x644] ss:$72 sps:$4 sm:$0xff]  }
 0x15d   :  { %5537 = vmatprep.subr.bf16.mxu0 %v18966_v7  ;;  %v19050_v7 = vld [vmem:[#allocation4 + $0xf3c] ss:$72 sps:$4 sm:$0xff]  }
 0x15f   :  { %5581 = vmatpush1.bf16.msra.mxu1 %v18967_v10  ;;  %v19051_v10 = vld [vmem:[#allocation4 + $0x640] ss:$72 sps:$4 sm:$0xff]  }
 0x160   :  { %5538 = vmatpush1.bf16.msra.mxu0 %v18964_v9  ;;  %5582 = vmatprep.subr.bf16.mxu1 %v18975_v12  ;;  %v19048_v9 = vld [vmem:[#allocation4 + $0xf38] ss:$72 sps:$4 sm:$0xff]   ;;  %v19059_v12 = vld [vmem:[#allocation4 + $0x6d4] ss:$72 sps:$4 sm:$0xff]  }
 0x161   :  { %5539 = vmatprep.subr.bf16.mxu0 %v18972_v11  ;;  %v19056_v11 = vld [vmem:[#allocation4 + $0xfcc] ss:$72 sps:$4 sm:$0xff]  }
 0x163   :  { %5583 = vmatpush1.bf16.msra.mxu1 %v18973_v15  ;;  %v19057_v15 = vld [vmem:[#allocation4 + $0x6d0] ss:$72 sps:$4 sm:$0xff]  }
 0x164   :  { %5540 = vmatpush1.bf16.msra.mxu0 %v18970_v13  ;;  %5584 = vmatprep.subr.bf16.mxu1 %v18981_v18  ;;  %v19054_v13 = vld [vmem:[#allocation4 + $0xfc8] ss:$72 sps:$4 sm:$0xff]   ;;  %v19065_v18 = vld [vmem:[#allocation4 + $0x764] ss:$72 sps:$4 sm:$0xff]  }
 0x165   :  { %5541 = vmatprep.subr.bf16.mxu0 %v18978_v16  ;;  %v19062_v16 = vld [vmem:[#allocation4 + $0x105c] ss:$72 sps:$4 sm:$0xff]  }
 0x167   :  { %5585 = vmatpush1.bf16.msra.mxu1 %v18979_v20  ;;  %v19063_v20 = vld [vmem:[#allocation4 + $0x760] ss:$72 sps:$4 sm:$0xff]  }
 0x168   :  { %5542 = vmatpush1.bf16.msra.mxu0 %v18976_v19  ;;  %5597 = vmatprep.subr.bf16.mxu1 %v18984_v23  ;;  %v19060_v19 = vld [vmem:[#allocation4 + $0x1058] ss:$72 sps:$4 sm:$0xff]   ;;  %v19066_v23 = vld [vmem:[#allocation4 + $0x10e8] ss:$72 sps:$4 sm:$0xff]  }
 0x169   :  { %5683 = vmatprep.subr.bf16.mxu0 %v18987_v24  ;;  %v19069_v24 = vld [vmem:[#allocation4 + $0x7f0] ss:$72 sps:$4 sm:$0xff]  }
 0x16a   :  { %5587 = vmatmul.mubr.bf16.vlgmr.msra.gmra.mrb[4].mxu1 %v22459_v14 }
 0x16b   :  { %5544 = vmatmul.mubr.bf16.vlgmr.msra.gmra.mrb[0].mxu0 %v22481_v25  ;;  %5598 = vmatpush1.bf16.msra.mxu1 %v18982_v26  ;;  %v19074_v26 = vld [vmem:[#allocation4 + $0x117c] ss:$72 sps:$4 sm:$0xff]  }
 0x16c   :  { %5684 = vmatpush1.bf16.msra.mxu0 %v18985_v27  ;;  %5599 = vmatprep.subr.bf16.mxu1 %v18990_v28  ;;  %v19077_v27 = vld [vmem:[#allocation4 + $0x884] ss:$72 sps:$4 sm:$0xff]   ;;  %v19072_v28 = vld [vmem:[#allocation4 + $0x1178] ss:$72 sps:$4 sm:$0xff]  }
 0x16d   :  { %5685 = vmatprep.subr.bf16.mxu0 %v18993_v29  ;;  %5629 = vmatprep.mubr.bf16.mxu1 %v22443_v57  ;;  %v19075_v29 = vld [vmem:[#allocation4 + $0x880] ss:$72 sps:$4 sm:$0xff]  }
 0x16e   :  { %5715 = vmatprep.mubr.bf16.mxu0 %v22435_v52 }
 0x16f   :  { %5600 = vmatpush1.bf16.msra.mxu1 %v18988_v30  ;;  %v19080_v30 = vld [vmem:[#allocation4 + $0x120c] ss:$72 sps:$4 sm:$0xff]  }
 0x170   :  { %5686 = vmatpush1.bf16.msra.mxu0 %v18991_v31  ;;  %5601 = vmatprep.subr.bf16.mxu1 %v18996_v32  ;;  %v19083_v31 = vld [vmem:[#allocation4 + $0x914] ss:$72 sps:$4 sm:$0xff]   ;;  %v19078_v32 = vld [vmem:[#allocation4 + $0x1208] ss:$72 sps:$4 sm:$0xff]  }
 0x171   :  { %5687 = vmatprep.subr.bf16.mxu0 %v18999_v33  ;;  %v19081_v33 = vld [vmem:[#allocation4 + $0x910] ss:$72 sps:$4 sm:$0xff]  }
 0x173   :  { %5602 = vmatpush1.bf16.msra.mxu1 %v18994_v34  ;;  %v19086_v34 = vld [vmem:[#allocation4 + $0x129c] ss:$72 sps:$4 sm:$0xff]  }
 0x174   :  { %5688 = vmatpush1.bf16.msra.mxu0 %v18997_v35  ;;  %5603 = vmatprep.subr.bf16.mxu1 %v19002_v36  ;;  %v19089_v35 = vld [vmem:[#allocation4 + $0x9a4] ss:$72 sps:$4 sm:$0xff]   ;;  %v19084_v36 = vld [vmem:[#allocation4 + $0x1298] ss:$72 sps:$4 sm:$0xff]  }
 0x175   :  { %5689 = vmatprep.subr.bf16.mxu0 %v19005_v37  ;;  %v19087_v37 = vld [vmem:[#allocation4 + $0x9a0] ss:$72 sps:$4 sm:$0xff]  }
 0x177   :  { %5604 = vmatpush1.bf16.msra.mxu1 %v19000_v38  ;;  %v19092_v38 = vld [vmem:[#allocation4 + $0x132c] ss:$72 sps:$4 sm:$0xff]  }
 0x178   :  { %5690 = vmatpush1.bf16.msra.mxu0 %v19003_v39  ;;  %5605 = vmatprep.subr.bf16.mxu1 %v19008_v40  ;;  %v19095_v39 = vld [vmem:[#allocation4 + $0xa34] ss:$72 sps:$4 sm:$0xff]   ;;  %v19090_v40 = vld [vmem:[#allocation4 + $0x1328] ss:$72 sps:$4 sm:$0xff]  }
 0x179   :  { %5691 = vmatprep.subr.bf16.mxu0 %v19011_v41  ;;  %v19093_v41 = vld [vmem:[#allocation4 + $0xa30] ss:$72 sps:$4 sm:$0xff]  }
 0x17b   :  { %5606 = vmatpush1.bf16.msra.mxu1 %v19006_v42  ;;  %v19098_v42 = vld [vmem:[#allocation4 + $0x13bc] ss:$72 sps:$4 sm:$0xff]  }
 0x17c   :  { %5692 = vmatpush1.bf16.msra.mxu0 %v19009_v43  ;;  %5607 = vmatprep.subr.bf16.mxu1 %v19014_v44  ;;  %v19101_v43 = vld [vmem:[#allocation4 + $0xac4] ss:$72 sps:$4 sm:$0xff]   ;;  %v19096_v44 = vld [vmem:[#allocation4 + $0x13b8] ss:$72 sps:$4 sm:$0xff]  }
 0x17d   :  { %5693 = vmatprep.subr.bf16.mxu0 %v19017_v45  ;;  %v19099_v45 = vld [vmem:[#allocation4 + $0xac0] ss:$72 sps:$4 sm:$0xff]  }
 0x17f   :  { %5608 = vmatpush1.bf16.msra.mxu1 %v19012_v47  ;;  %v19104_v47 = vld [vmem:[#allocation4 + $0x144c] ss:$72 sps:$4 sm:$0xff]  }
 0x180   :  { %5694 = vmatpush1.bf16.msra.mxu0 %v19015_v48  ;;  %5609 = vmatprep.subr.bf16.mxu1 %v19020_v49  ;;  %v19107_v48 = vld [vmem:[#allocation4 + $0xb54] ss:$72 sps:$4 sm:$0xff]   ;;  %v19102_v49 = vld [vmem:[#allocation4 + $0x1448] ss:$72 sps:$4 sm:$0xff]  }
 0x181   :  { %5695 = vmatprep.subr.bf16.mxu0 %v19023_v50  ;;  %v19105_v50 = vld [vmem:[#allocation4 + $0xb50] ss:$72 sps:$4 sm:$0xff]  }
 0x183   :  { %5610 = vmatpush1.bf16.msra.mxu1 %v19018_v51  ;;  %v19110_v51 = vld [vmem:[#allocation4 + $0x14dc] ss:$72 sps:$4 sm:$0xff]  }
 0x184   :  { %5696 = vmatpush1.bf16.msra.mxu0 %v19021_v53  ;;  %5611 = vmatprep.subr.bf16.mxu1 %v19026_v54  ;;  %v19113_v53 = vld [vmem:[#allocation4 + $0xbe4] ss:$72 sps:$4 sm:$0xff]   ;;  %v19108_v54 = vld [vmem:[#allocation4 + $0x14d8] ss:$72 sps:$4 sm:$0xff]  }
 0x185   :  { %5697 = vmatprep.subr.bf16.mxu0 %v19029_v55  ;;  %v19111_v55 = vld [vmem:[#allocation4 + $0xbe0] ss:$72 sps:$4 sm:$0xff]  }
 0x187   :  { %5612 = vmatpush1.bf16.msra.mxu1 %v19024_v56  ;;  %v19116_v56 = vld [vmem:[#allocation4 + $0x156c] ss:$72 sps:$4 sm:$0xff]  }
 0x188   :  { %5698 = vmatpush1.bf16.msra.mxu0 %v19027_v58  ;;  %5613 = vmatprep.subr.bf16.mxu1 %v19032_v59  ;;  %v19119_v58 = vld [vmem:[#allocation4 + $0xc74] ss:$72 sps:$4 sm:$0xff]   ;;  %v19114_v59 = vld [vmem:[#allocation4 + $0x1568] ss:$72 sps:$4 sm:$0xff]  }
 0x189   :  { %5699 = vmatprep.subr.bf16.mxu0 %v19035_v60  ;;  %v19117_v60 = vld [vmem:[#allocation4 + $0xc70] ss:$72 sps:$4 sm:$0xff]  }
 0x18b   :  { %5614 = vmatpush1.bf16.msra.mxu1 %v19030_v61  ;;  %v19122_v61 = vld [vmem:[#allocation4 + $0x15fc] ss:$72 sps:$4 sm:$0xff]  }
 0x18c   :  { %5700 = vmatpush1.bf16.msra.mxu0 %v19033_v62  ;;  %5615 = vmatprep.subr.bf16.mxu1 %v19038_v63  ;;  %v19125_v62 = vld [vmem:[#allocation4 + $0xd04] ss:$72 sps:$4 sm:$0xff]   ;;  %v19120_v63 = vld [vmem:[#allocation4 + $0x15f8] ss:$72 sps:$4 sm:$0xff]  }
 0x18d   :  { %5701 = vmatprep.subr.bf16.mxu0 %v19041_v0  ;;  %v19123_v0 = vld [vmem:[#allocation4 + $0xd00] ss:$72 sps:$4 sm:$0xff]  }
 0x18f   :  { %5616 = vmatpush1.bf16.msra.mxu1 %v19036_v1  ;;  %v19128_v1 = vld [vmem:[#allocation4 + $0x168c] ss:$72 sps:$4 sm:$0xff]  }
 0x190   :  { %5702 = vmatpush1.bf16.msra.mxu0 %v19039_v2  ;;  %5617 = vmatprep.subr.bf16.mxu1 %v19044_v3  ;;  %v19131_v2 = vld [vmem:[#allocation4 + $0xd94] ss:$72 sps:$4 sm:$0xff]   ;;  %v19126_v3 = vld [vmem:[#allocation4 + $0x1688] ss:$72 sps:$4 sm:$0xff]  }
 0x191   :  { %5703 = vmatprep.subr.bf16.mxu0 %v19047_v4  ;;  %v19129_v4 = vld [vmem:[#allocation4 + $0xd90] ss:$72 sps:$4 sm:$0xff]  }
 0x193   :  { %5618 = vmatpush1.bf16.msra.mxu1 %v19042_v5  ;;  %v19134_v5 = vld [vmem:[#allocation4 + $0x171c] ss:$72 sps:$4 sm:$0xff]  }
 0x194   :  { %5704 = vmatpush1.bf16.msra.mxu0 %v19045_v6  ;;  %5619 = vmatprep.subr.bf16.mxu1 %v19050_v7  ;;  %v19137_v6 = vld [vmem:[#allocation4 + $0xe24] ss:$72 sps:$4 sm:$0xff]   ;;  %v19132_v7 = vld [vmem:[#allocation4 + $0x1718] ss:$72 sps:$4 sm:$0xff]  }
 0x195   :  { %5705 = vmatprep.subr.bf16.mxu0 %v19053_v8  ;;  %v19135_v8 = vld [vmem:[#allocation4 + $0xe20] ss:$72 sps:$4 sm:$0xff]  }
 0x197   :  { %5620 = vmatpush1.bf16.msra.mxu1 %v19048_v9  ;;  %v19140_v9 = vld [vmem:[#allocation4 + $0x17ac] ss:$72 sps:$4 sm:$0xff]  }
 0x198   :  { %5706 = vmatpush1.bf16.msra.mxu0 %v19051_v10  ;;  %5621 = vmatprep.subr.bf16.mxu1 %v19056_v11  ;;  %v19143_v10 = vld [vmem:[#allocation4 + $0xeb4] ss:$72 sps:$4 sm:$0xff]   ;;  %v19138_v11 = vld [vmem:[#allocation4 + $0x17a8] ss:$72 sps:$4 sm:$0xff]  }
 0x199   :  { %5707 = vmatprep.subr.bf16.mxu0 %v19059_v12  ;;  %v19141_v12 = vld [vmem:[#allocation4 + $0xeb0] ss:$72 sps:$4 sm:$0xff]  }
 0x19b   :  { %5622 = vmatpush1.bf16.msra.mxu1 %v19054_v13  ;;  %v19146_v13 = vld [vmem:[#allocation4 + $0x183c] ss:$72 sps:$4 sm:$0xff]  }
 0x19c   :  { %5708 = vmatpush1.bf16.msra.mxu0 %v19057_v15  ;;  %5623 = vmatprep.subr.bf16.mxu1 %v19062_v16  ;;  %v19149_v15 = vld [vmem:[#allocation4 + $0xf44] ss:$72 sps:$4 sm:$0xff]   ;;  %v19144_v16 = vld [vmem:[#allocation4 + $0x1838] ss:$72 sps:$4 sm:$0xff]  }
 0x19d   :  { %5709 = vmatprep.subr.bf16.mxu0 %v19065_v18  ;;  %v19147_v18 = vld [vmem:[#allocation4 + $0xf40] ss:$72 sps:$4 sm:$0xff]  }
 0x19f   :  { %5624 = vmatpush1.bf16.msra.mxu1 %v19060_v19  ;;  %v19152_v19 = vld [vmem:[#allocation4 + $0x18cc] ss:$72 sps:$4 sm:$0xff]  }
 0x1a0   :  { %5710 = vmatpush1.bf16.msra.mxu0 %v19063_v20  ;;  %5625 = vmatprep.subr.bf16.mxu1 %v19068_v21  ;;  %v19155_v20 = vld [vmem:[#allocation4 + $0xfd4] ss:$72 sps:$4 sm:$0xff]   ;;  %v19150_v21 = vld [vmem:[#allocation4 + $0x18c8] ss:$72 sps:$4 sm:$0xff]  }
 0x1a1   :  { %5711 = vmatprep.subr.bf16.mxu0 %v19071_v22  ;;  %v19153_v22 = vld [vmem:[#allocation4 + $0xfd0] ss:$72 sps:$4 sm:$0xff]  }
 0x1a3   :  { %5626 = vmatpush1.bf16.msra.mxu1 %v19066_v23  ;;  %v19158_v23 = vld [vmem:[#allocation4 + $0x195c] ss:$72 sps:$4 sm:$0xff]  }
 0x1a4   :  { %5712 = vmatpush1.bf16.msra.mxu0 %v19069_v24  ;;  %5627 = vmatprep.subr.bf16.mxu1 %v19074_v26  ;;  %v19161_v24 = vld [vmem:[#allocation4 + $0x1064] ss:$72 sps:$4 sm:$0xff]   ;;  %v19156_v26 = vld [vmem:[#allocation4 + $0x1958] ss:$72 sps:$4 sm:$0xff]  }
 0x1a5   :  { %5713 = vmatprep.subr.bf16.mxu0 %v19077_v27  ;;  %v19159_v27 = vld [vmem:[#allocation4 + $0x1060] ss:$72 sps:$4 sm:$0xff]  }
 0x1a7   :  { %5628 = vmatpush1.bf16.msra.mxu1 %v19072_v28  ;;  %v19164_v28 = vld [vmem:[#allocation4 + $0x19ec] ss:$72 sps:$4 sm:$0xff]  }
 0x1a8   :  { %5714 = vmatpush1.bf16.msra.mxu0 %v19075_v29  ;;  %5640 = vmatprep.subr.bf16.mxu1 %v19080_v30  ;;  %v19167_v29 = vld [vmem:[#allocation4 + $0x10f4] ss:$72 sps:$4 sm:$0xff]   ;;  %v19162_v30 = vld [vmem:[#allocation4 + $0x19e8] ss:$72 sps:$4 sm:$0xff]  }
 0x1a9   :  { %5726 = vmatprep.subr.bf16.mxu0 %v19083_v31  ;;  %v19165_v31 = vld [vmem:[#allocation4 + $0x10f0] ss:$72 sps:$4 sm:$0xff]  }
 0x1aa   :  { %5630 = vmatmul.mubr.bf16.vlgmr.msra.gmra.mrb[4].mxu1 %v22461_v17 }
 0x1ab   :  { %5716 = vmatmul.mubr.bf16.vlgmr.msra.gmra.mrb[4].mxu0 %v22459_v14  ;;  %5641 = vmatpush1.bf16.msra.mxu1 %v19078_v32  ;;  %v19170_v32 = vld [vmem:[#allocation4 + $0x1a7c] ss:$72 sps:$4 sm:$0xff]  }
 0x1ac   :  { %5727 = vmatpush1.bf16.msra.mxu0 %v19081_v33  ;;  %5642 = vmatprep.subr.bf16.mxu1 %v19086_v34  ;;  %v19173_v33 = vld [vmem:[#allocation4 + $0x1184] ss:$72 sps:$4 sm:$0xff]   ;;  %v19168_v34 = vld [vmem:[#allocation4 + $0x1a78] ss:$72 sps:$4 sm:$0xff]  }
 0x1ad   :  { %5728 = vmatprep.subr.bf16.mxu0 %v19089_v35  ;;  %5672 = vmatprep.mubr.bf16.mxu1 %v22472_v46  ;;  %v19171_v35 = vld [vmem:[#allocation4 + $0x1180] ss:$72 sps:$4 sm:$0xff]  }
 0x1ae   :  { %5758 = vmatprep.mubr.bf16.mxu0 %v22443_v57 }
 0x1af   :  { %5643 = vmatpush1.bf16.msra.mxu1 %v19084_v36  ;;  %v19176_v36 = vld [vmem:[#allocation4 + $0x1214] ss:$72 sps:$4 sm:$0xff]  }
 0x1b0   :  { %5729 = vmatpush1.bf16.msra.mxu0 %v19087_v37  ;;  %5644 = vmatprep.subr.bf16.mxu1 %v19092_v38  ;;  %v19179_v37 = vld [vmem:[#allocation4 + $0x1c] ss:$72 sps:$4 sm:$0xff]   ;;  %v19174_v38 = vld [vmem:[#allocation4 + $0x1210] ss:$72 sps:$4 sm:$0xff]  }
 0x1b1   :  { %5730 = vmatprep.subr.bf16.mxu0 %v19095_v39  ;;  %v19177_v39 = vld [vmem:[#allocation4 + $0x18] ss:$72 sps:$4 sm:$0xff]  }
 0x1b3   :  { %5645 = vmatpush1.bf16.msra.mxu1 %v19090_v40  ;;  %v19182_v40 = vld [vmem:[#allocation4 + $0x12a4] ss:$72 sps:$4 sm:$0xff]  }
 0x1b4   :  { %5731 = vmatpush1.bf16.msra.mxu0 %v19093_v41  ;;  %5646 = vmatprep.subr.bf16.mxu1 %v19098_v42  ;;  %v19185_v41 = vld [vmem:[#allocation4 + $0xac] ss:$72 sps:$4 sm:$0xff]   ;;  %v19180_v42 = vld [vmem:[#allocation4 + $0x12a0] ss:$72 sps:$4 sm:$0xff]  }
 0x1b5   :  { %5732 = vmatprep.subr.bf16.mxu0 %v19101_v43  ;;  %v19183_v43 = vld [vmem:[#allocation4 + $0xa8] ss:$72 sps:$4 sm:$0xff]  }
 0x1b7   :  { %5647 = vmatpush1.bf16.msra.mxu1 %v19096_v44  ;;  %v19188_v44 = vld [vmem:[#allocation4 + $0x1334] ss:$72 sps:$4 sm:$0xff]  }
 0x1b8   :  { %5733 = vmatpush1.bf16.msra.mxu0 %v19099_v45  ;;  %5648 = vmatprep.subr.bf16.mxu1 %v19104_v47  ;;  %v19191_v45 = vld [vmem:[#allocation4 + $0x13c] ss:$72 sps:$4 sm:$0xff]   ;;  %v19186_v47 = vld [vmem:[#allocation4 + $0x1330] ss:$72 sps:$4 sm:$0xff]  }
 0x1b9   :  { %5734 = vmatprep.subr.bf16.mxu0 %v19107_v48  ;;  %v19189_v48 = vld [vmem:[#allocation4 + $0x138] ss:$72 sps:$4 sm:$0xff]  }
 0x1bb   :  { %5649 = vmatpush1.bf16.msra.mxu1 %v19102_v49  ;;  %v19194_v49 = vld [vmem:[#allocation4 + $0x13c4] ss:$72 sps:$4 sm:$0xff]  }
 0x1bc   :  { %5735 = vmatpush1.bf16.msra.mxu0 %v19105_v50  ;;  %5650 = vmatprep.subr.bf16.mxu1 %v19110_v51  ;;  %v19197_v50 = vld [vmem:[#allocation4 + $0x1cc] ss:$72 sps:$4 sm:$0xff]   ;;  %v19192_v51 = vld [vmem:[#allocation4 + $0x13c0] ss:$72 sps:$4 sm:$0xff]  }
 0x1bd   :  { %5736 = vmatprep.subr.bf16.mxu0 %v19113_v53  ;;  %v19195_v53 = vld [vmem:[#allocation4 + $0x1c8] ss:$72 sps:$4 sm:$0xff]  }
 0x1bf   :  { %5651 = vmatpush1.bf16.msra.mxu1 %v19108_v54  ;;  %v19200_v54 = vld [vmem:[#allocation4 + $0x1454] ss:$72 sps:$4 sm:$0xff]  }
 0x1c0   :  { %5737 = vmatpush1.bf16.msra.mxu0 %v19111_v55  ;;  %5652 = vmatprep.subr.bf16.mxu1 %v19116_v56  ;;  %v19203_v55 = vld [vmem:[#allocation4 + $0x25c] ss:$72 sps:$4 sm:$0xff]   ;;  %v19198_v56 = vld [vmem:[#allocation4 + $0x1450] ss:$72 sps:$4 sm:$0xff]  }
 0x1c1   :  { %5738 = vmatprep.subr.bf16.mxu0 %v19119_v58  ;;  %v19201_v58 = vld [vmem:[#allocation4 + $0x258] ss:$72 sps:$4 sm:$0xff]  }
 0x1c3   :  { %5653 = vmatpush1.bf16.msra.mxu1 %v19114_v59  ;;  %v19206_v59 = vld [vmem:[#allocation4 + $0x14e4] ss:$72 sps:$4 sm:$0xff]  }
 0x1c4   :  { %5739 = vmatpush1.bf16.msra.mxu0 %v19117_v60  ;;  %5654 = vmatprep.subr.bf16.mxu1 %v19122_v61  ;;  %v19209_v60 = vld [vmem:[#allocation4 + $0x2ec] ss:$72 sps:$4 sm:$0xff]   ;;  %v19204_v61 = vld [vmem:[#allocation4 + $0x14e0] ss:$72 sps:$4 sm:$0xff]  }
 0x1c5   :  { %5740 = vmatprep.subr.bf16.mxu0 %v19125_v62  ;;  %v19207_v62 = vld [vmem:[#allocation4 + $0x2e8] ss:$72 sps:$4 sm:$0xff]  }
 0x1c7   :  { %5655 = vmatpush1.bf16.msra.mxu1 %v19120_v63  ;;  %v19212_v63 = vld [vmem:[#allocation4 + $0x1574] ss:$72 sps:$4 sm:$0xff]  }
 0x1c8   :  { %5741 = vmatpush1.bf16.msra.mxu0 %v19123_v0  ;;  %5656 = vmatprep.subr.bf16.mxu1 %v19128_v1  ;;  %v19215_v0 = vld [vmem:[#allocation4 + $0x37c] ss:$72 sps:$4 sm:$0xff]  }
 0x1c9   :  { %5742 = vmatprep.subr.bf16.mxu0 %v19131_v2 }
 0x1cb   :  { %5657 = vmatpush1.bf16.msra.mxu1 %v19126_v3 }
 0x1cc   :  { %5743 = vmatpush1.bf16.msra.mxu0 %v19129_v4  ;;  %5658 = vmatprep.subr.bf16.mxu1 %v19134_v5  ;;  %v19210_v4 = vld [vmem:[#allocation4 + $0x1570] ss:$72 sps:$4 sm:$0xff]  }
 0x1cd   :  { %5744 = vmatprep.subr.bf16.mxu0 %v19137_v6  ;;  %v19213_v5 = vld [vmem:[#allocation4 + $0x378] ss:$72 sps:$4 sm:$0xff]  }
 0x1cf   :  { %5659 = vmatpush1.bf16.msra.mxu1 %v19132_v7  ;;  %v19218_v7 = vld [vmem:[#allocation4 + $0x1604] ss:$72 sps:$4 sm:$0xff]  }
 0x1d0   :  { %5745 = vmatpush1.bf16.msra.mxu0 %v19135_v8  ;;  %5660 = vmatprep.subr.bf16.mxu1 %v19140_v9  ;;  %v19221_v8 = vld [vmem:[#allocation4 + $0x40c] ss:$72 sps:$4 sm:$0xff]   ;;  %v19216_v9 = vld [vmem:[#allocation4 + $0x1600] ss:$72 sps:$4 sm:$0xff]  }
 0x1d1   :  { %5746 = vmatprep.subr.bf16.mxu0 %v19143_v10  ;;  %v19219_v10 = vld [vmem:[#allocation4 + $0x408] ss:$72 sps:$4 sm:$0xff]  }
 0x1d3   :  { %5661 = vmatpush1.bf16.msra.mxu1 %v19138_v11  ;;  %v19224_v11 = vld [vmem:[#allocation4 + $0x1694] ss:$72 sps:$4 sm:$0xff]  }
 0x1d4   :  { %5747 = vmatpush1.bf16.msra.mxu0 %v19141_v12  ;;  %5662 = vmatprep.subr.bf16.mxu1 %v19146_v13  ;;  %v19227_v12 = vld [vmem:[#allocation4 + $0x49c] ss:$72 sps:$4 sm:$0xff]   ;;  %v19222_v13 = vld [vmem:[#allocation4 + $0x1690] ss:$72 sps:$4 sm:$0xff]  }
 0x1d5   :  { %5748 = vmatprep.subr.bf16.mxu0 %v19149_v15  ;;  %v19225_v15 = vld [vmem:[#allocation4 + $0x498] ss:$72 sps:$4 sm:$0xff]  }
 0x1d7   :  { %5663 = vmatpush1.bf16.msra.mxu1 %v19144_v16  ;;  %v19230_v16 = vld [vmem:[#allocation4 + $0x1724] ss:$72 sps:$4 sm:$0xff]  }
 0x1d8   :  { %5749 = vmatpush1.bf16.msra.mxu0 %v19147_v18  ;;  %5664 = vmatprep.subr.bf16.mxu1 %v19152_v19  ;;  %v19233_v18 = vld [vmem:[#allocation4 + $0x52c] ss:$72 sps:$4 sm:$0xff]   ;;  %v19228_v19 = vld [vmem:[#allocation4 + $0x1720] ss:$72 sps:$4 sm:$0xff]  }
 0x1d9   :  { %5750 = vmatprep.subr.bf16.mxu0 %v19155_v20  ;;  %v19231_v20 = vld [vmem:[#allocation4 + $0x528] ss:$72 sps:$4 sm:$0xff]  }
 0x1db   :  { %5665 = vmatpush1.bf16.msra.mxu1 %v19150_v21  ;;  %v19236_v21 = vld [vmem:[#allocation4 + $0x17b4] ss:$72 sps:$4 sm:$0xff]  }
 0x1dc   :  { %5751 = vmatpush1.bf16.msra.mxu0 %v19153_v22  ;;  %5666 = vmatprep.subr.bf16.mxu1 %v19158_v23  ;;  %v19239_v22 = vld [vmem:[#allocation4 + $0x5bc] ss:$72 sps:$4 sm:$0xff]   ;;  %v19234_v23 = vld [vmem:[#allocation4 + $0x17b0] ss:$72 sps:$4 sm:$0xff]  }
 0x1dd   :  { %5752 = vmatprep.subr.bf16.mxu0 %v19161_v24  ;;  %v19237_v24 = vld [vmem:[#allocation4 + $0x5b8] ss:$72 sps:$4 sm:$0xff]  }
 0x1df   :  { %5667 = vmatpush1.bf16.msra.mxu1 %v19156_v26  ;;  %v19242_v26 = vld [vmem:[#allocation4 + $0x1844] ss:$72 sps:$4 sm:$0xff]  }
 0x1e0   :  { %5753 = vmatpush1.bf16.msra.mxu0 %v19159_v27  ;;  %5668 = vmatprep.subr.bf16.mxu1 %v19164_v28  ;;  %v19245_v27 = vld [vmem:[#allocation4 + $0x64c] ss:$72 sps:$4 sm:$0xff]   ;;  %v19240_v28 = vld [vmem:[#allocation4 + $0x1840] ss:$72 sps:$4 sm:$0xff]  }
 0x1e1   :  { %5754 = vmatprep.subr.bf16.mxu0 %v19167_v29  ;;  %v19243_v29 = vld [vmem:[#allocation4 + $0x648] ss:$72 sps:$4 sm:$0xff]  }
 0x1e3   :  { %5669 = vmatpush1.bf16.msra.mxu1 %v19162_v30  ;;  %v19248_v30 = vld [vmem:[#allocation4 + $0x18d4] ss:$72 sps:$4 sm:$0xff]  }
 0x1e4   :  { %5755 = vmatpush1.bf16.msra.mxu0 %v19165_v31  ;;  %5670 = vmatprep.subr.bf16.mxu1 %v19170_v32  ;;  %v19251_v31 = vld [vmem:[#allocation4 + $0x6dc] ss:$72 sps:$4 sm:$0xff]   ;;  %v19246_v32 = vld [vmem:[#allocation4 + $0x18d0] ss:$72 sps:$4 sm:$0xff]  }
 0x1e5   :  { %5756 = vmatprep.subr.bf16.mxu0 %v19173_v33  ;;  %v19249_v33 = vld [vmem:[#allocation4 + $0x6d8] ss:$72 sps:$4 sm:$0xff]  }
 0x1e7   :  { %5671 = vmatpush1.bf16.msra.mxu1 %v19168_v34  ;;  %v19254_v34 = vld [vmem:[#allocation4 + $0x1964] ss:$72 sps:$4 sm:$0xff]  }
 0x1e8   :  { %5757 = vmatpush1.bf16.msra.mxu0 %v19171_v35  ;;  %5812 = vmatprep.subr.bf16.mxu1 %v19179_v37  ;;  %v19257_v35 = vld [vmem:[#allocation4 + $0x76c] ss:$72 sps:$4 sm:$0xff]   ;;  %v19255_v37 = vld [vmem:[#allocation4 + $0x768] ss:$72 sps:$4 sm:$0xff]  }
 0x1e9   :  { %5769 = vmatprep.subr.bf16.mxu0 %v19176_v36  ;;  %v19252_v36 = vld [vmem:[#allocation4 + $0x1960] ss:$72 sps:$4 sm:$0xff]  }
 0x1ea   :  { %5673 = vmatmul.mubr.bf16.vlgmr.msra.gmra.mrb[4].mxu1 %v22481_v25 }
 0x1eb   :  { %5759 = vmatmul.mubr.bf16.vlgmr.msra.gmra.mrb[4].mxu0 %v22461_v17  ;;  %5813 = vmatpush1.bf16.msra.mxu1 %v19177_v39  ;;  %v19263_v39 = vld [vmem:[#allocation4 + $0x7fc] ss:$72 sps:$4 sm:$0xff]  }
 0x1ec   :  { %5770 = vmatpush1.bf16.msra.mxu0 %v19174_v38  ;;  %5814 = vmatprep.subr.bf16.mxu1 %v19185_v41  ;;  %v19260_v38 = vld [vmem:[#allocation4 + $0x19f4] ss:$72 sps:$4 sm:$0xff]   ;;  %v19261_v41 = vld [vmem:[#allocation4 + $0x7f8] ss:$72 sps:$4 sm:$0xff]  }
 0x1ed   :  { %5771 = vmatprep.subr.bf16.mxu0 %v19182_v40  ;;  %5801 = vmatprep.mubr.bf16.mxu0 %v22472_v46  ;;  %v19258_v40 = vld [vmem:[#allocation4 + $0x19f0] ss:$72 sps:$4 sm:$0xff]  }
 0x1ee   :  { %5844 = vmatprep.mubr.bf16.mxu1 %v22435_v52 }
 0x1ef   :  { %5815 = vmatpush1.bf16.msra.mxu1 %v19183_v43  ;;  %v19269_v43 = vld [vmem:[#allocation4 + $0x88c] ss:$72 sps:$4 sm:$0xff]  }
 0x1f0   :  { %5772 = vmatpush1.bf16.msra.mxu0 %v19180_v42  ;;  %5816 = vmatprep.subr.bf16.mxu1 %v19191_v45  ;;  %v19266_v42 = vld [vmem:[#allocation4 + $0x1a84] ss:$72 sps:$4 sm:$0xff]   ;;  %v19267_v45 = vld [vmem:[#allocation4 + $0x888] ss:$72 sps:$4 sm:$0xff]  }
 0x1f1   :  { %5773 = vmatprep.subr.bf16.mxu0 %v19188_v44  ;;  %v19264_v44 = vld [vmem:[#allocation4 + $0x1a80] ss:$72 sps:$4 sm:$0xff]  }
 0x1f3   :  { %5817 = vmatpush1.bf16.msra.mxu1 %v19189_v48  ;;  %v19275_v48 = vld [vmem:[#allocation4 + $0x24] ss:$72 sps:$4 sm:$0xff]  }
 0x1f4   :  { %5774 = vmatpush1.bf16.msra.mxu0 %v19186_v47  ;;  %5818 = vmatprep.subr.bf16.mxu1 %v19197_v50  ;;  %v19272_v47 = vld [vmem:[#allocation4 + $0x91c] ss:$72 sps:$4 sm:$0xff]   ;;  %v19273_v50 = vld [vmem:[#allocation4 + $0x20] ss:$72 sps:$4 sm:$0xff]  }
 0x1f5   :  { %5775 = vmatprep.subr.bf16.mxu0 %v19194_v49  ;;  %v19270_v49 = vld [vmem:[#allocation4 + $0x918] ss:$72 sps:$4 sm:$0xff]  }
 0x1f7   :  { %5819 = vmatpush1.bf16.msra.mxu1 %v19195_v53  ;;  %v19281_v53 = vld [vmem:[#allocation4 + $0xb4] ss:$72 sps:$4 sm:$0xff]  }
 0x1f8   :  { %5776 = vmatpush1.bf16.msra.mxu0 %v19192_v51  ;;  %5820 = vmatprep.subr.bf16.mxu1 %v19203_v55  ;;  %v19278_v51 = vld [vmem:[#allocation4 + $0x9ac] ss:$72 sps:$4 sm:$0xff]   ;;  %v19279_v55 = vld [vmem:[#allocation4 + $0xb0] ss:$72 sps:$4 sm:$0xff]  }
 0x1f9   :  { %5777 = vmatprep.subr.bf16.mxu0 %v19200_v54  ;;  %v19276_v54 = vld [vmem:[#allocation4 + $0x9a8] ss:$72 sps:$4 sm:$0xff]  }
 0x1fb   :  { %5821 = vmatpush1.bf16.msra.mxu1 %v19201_v58  ;;  %v19287_v58 = vld [vmem:[#allocation4 + $0x144] ss:$72 sps:$4 sm:$0xff]  }
 0x1fc   :  { %5778 = vmatpush1.bf16.msra.mxu0 %v19198_v56  ;;  %5822 = vmatprep.subr.bf16.mxu1 %v19209_v60  ;;  %v19284_v56 = vld [vmem:[#allocation4 + $0xa3c] ss:$72 sps:$4 sm:$0xff]   ;;  %v19285_v60 = vld [vmem:[#allocation4 + $0x140] ss:$72 sps:$4 sm:$0xff]  }
 0x1fd   :  { %5779 = vmatprep.subr.bf16.mxu0 %v19206_v59  ;;  %v22495_v1 = vpop.f32.mrb[0].mxu1  ;;  %v19282_v59 = vld [vmem:[#allocation4 + $0xa38] ss:$72 sps:$4 sm:$0xff]  }
 0x1fe   :  { %v22497_v2 = vpop.f32.mrb[1].mxu1 }
 0x1ff   :  { %v22499_v3 = vpop.f32.mrb[2].mxu1  ;;  %5823 = vmatpush1.bf16.msra.mxu1 %v19207_v62  ;;  %v19293_v62 = vld [vmem:[#allocation4 + $0x1d4] ss:$72 sps:$4 sm:$0xff]  }
 0x200   :  { %5780 = vmatpush1.bf16.msra.mxu0 %v19204_v61  ;;  %v22501_v6 = vpop.f32.mrb[3].mxu1  ;;  %5824 = vmatprep.subr.bf16.mxu1 %v19215_v0  ;;  %v19290_v61 = vld [vmem:[#allocation4 + $0xacc] ss:$72 sps:$4 sm:$0xff]   ;;  %v19291_v0 = vld [vmem:[#allocation4 + $0x1d0] ss:$72 sps:$4 sm:$0xff]  }
 0x201   :  { %5781 = vmatprep.subr.bf16.mxu0 %v19212_v63  ;;  %v19288_v63 = vld [vmem:[#allocation4 + $0xac8] ss:$72 sps:$4 sm:$0xff]  }
 0x203   :  { %5825 = vmatpush1.bf16.msra.mxu1 %v19213_v5  ;;  %v19299_v5 = vld [vmem:[#allocation4 + $0x264] ss:$72 sps:$4 sm:$0xff]  }
 0x204   :  { %5782 = vmatpush1.bf16.msra.mxu0 %v19210_v4  ;;  %5826 = vmatprep.subr.bf16.mxu1 %v19221_v8  ;;  %v19296_v4 = vld [vmem:[#allocation4 + $0xb5c] ss:$72 sps:$4 sm:$0xff]   ;;  %v19297_v8 = vld [vmem:[#allocation4 + $0x260] ss:$72 sps:$4 sm:$0xff]  }
 0x205   :  { %5783 = vmatprep.subr.bf16.mxu0 %v19218_v7  ;;  %v19294_v7 = vld [vmem:[#allocation4 + $0xb58] ss:$72 sps:$4 sm:$0xff]  }
 0x207   :  { %5827 = vmatpush1.bf16.msra.mxu1 %v19219_v10  ;;  %v19305_v10 = vld [vmem:[#allocation4 + $0x2f4] ss:$72 sps:$4 sm:$0xff]  }
 0x208   :  { %5784 = vmatpush1.bf16.msra.mxu0 %v19216_v9  ;;  %5828 = vmatprep.subr.bf16.mxu1 %v19227_v12  ;;  %v19302_v9 = vld [vmem:[#allocation4 + $0xbec] ss:$72 sps:$4 sm:$0xff]   ;;  %v19303_v12 = vld [vmem:[#allocation4 + $0x2f0] ss:$72 sps:$4 sm:$0xff]  }
 0x209   :  { %5785 = vmatprep.subr.bf16.mxu0 %v19224_v11  ;;  %v19300_v11 = vld [vmem:[#allocation4 + $0xbe8] ss:$72 sps:$4 sm:$0xff]  }
 0x20b   :  { %5829 = vmatpush1.bf16.msra.mxu1 %v19225_v15  ;;  %v19311_v15 = vld [vmem:[#allocation4 + $0x384] ss:$72 sps:$4 sm:$0xff]  }
 0x20c   :  { %5786 = vmatpush1.bf16.msra.mxu0 %v19222_v13  ;;  %5830 = vmatprep.subr.bf16.mxu1 %v19233_v18  ;;  %v19308_v13 = vld [vmem:[#allocation4 + $0xc7c] ss:$72 sps:$4 sm:$0xff]   ;;  %v19306_v18 = vld [vmem:[#allocation4 + $0xc78] ss:$72 sps:$4 sm:$0xff]  }
 0x20d   :  { %5787 = vmatprep.subr.bf16.mxu0 %v19230_v16 }
 0x20f   :  { %5831 = vmatpush1.bf16.msra.mxu1 %v19231_v20 }
 0x210   :  { %5788 = vmatpush1.bf16.msra.mxu0 %v19228_v19  ;;  %5832 = vmatprep.subr.bf16.mxu1 %v19239_v22  ;;  %v19309_v19 = vld [vmem:[#allocation4 + $0x380] ss:$72 sps:$4 sm:$0xff]  }
 0x211   :  { %5789 = vmatprep.subr.bf16.mxu0 %v19236_v21 }
 0x213   :  { %5833 = vmatpush1.bf16.msra.mxu1 %v19237_v24 }
 0x214   :  { %5790 = vmatpush1.bf16.msra.mxu0 %v19234_v23  ;;  %5834 = vmatprep.subr.bf16.mxu1 %v19245_v27  ;;  %v19314_v27 = vld [vmem:[#allocation4 + $0xd0c] ss:$72 sps:$4 sm:$0xff]  }
 0x215   :  { %5791 = vmatprep.subr.bf16.mxu0 %v19242_v26 }
 0x217   :  { %5835 = vmatpush1.bf16.msra.mxu1 %v19243_v29 }
 0x218   :  { %5792 = vmatpush1.bf16.msra.mxu0 %v19240_v28  ;;  %5836 = vmatprep.subr.bf16.mxu1 %v19251_v31  ;;  %v19317_v28 = vld [vmem:[#allocation4 + $0x414] ss:$72 sps:$4 sm:$0xff]   ;;  %v19323_v31 = vld [vmem:[#allocation4 + $0x4a4] ss:$72 sps:$4 sm:$0xff]  }
 0x219   :  { %5793 = vmatprep.subr.bf16.mxu0 %v19248_v30  ;;  %v19315_v30 = vld [vmem:[#allocation4 + $0x410] ss:$72 sps:$4 sm:$0xff]  }
 0x21b   :  { %5837 = vmatpush1.bf16.msra.mxu1 %v19249_v33  ;;  %v19326_v33 = vld [vmem:[#allocation4 + $0xe2c] ss:$72 sps:$4 sm:$0xff]  }
 0x21c   :  { %5794 = vmatpush1.bf16.msra.mxu0 %v19246_v32  ;;  %5838 = vmatprep.subr.bf16.mxu1 %v19257_v35  ;;  %v19321_v32 = vld [vmem:[#allocation4 + $0x4a0] ss:$72 sps:$4 sm:$0xff]   ;;  %v19327_v35 = vld [vmem:[#allocation4 + $0x530] ss:$72 sps:$4 sm:$0xff]  }
 0x21d   :  { %5795 = vmatprep.subr.bf16.mxu0 %v19254_v34  ;;  %v19329_v34 = vld [vmem:[#allocation4 + $0x534] ss:$72 sps:$4 sm:$0xff]  }
 0x21f   :  { %5839 = vmatpush1.bf16.msra.mxu1 %v19255_v37  ;;  %v19335_v37 = vld [vmem:[#allocation4 + $0x5c4] ss:$72 sps:$4 sm:$0xff]  }
 0x220   :  { %5796 = vmatpush1.bf16.msra.mxu0 %v19252_v36  ;;  %5840 = vmatprep.subr.bf16.mxu1 %v19263_v39  ;;  %v19332_v36 = vld [vmem:[#allocation4 + $0xebc] ss:$72 sps:$4 sm:$0xff]   ;;  %v19333_v39 = vld [vmem:[#allocation4 + $0x5c0] ss:$72 sps:$4 sm:$0xff]  }
 0x221   :  { %5797 = vmatprep.subr.bf16.mxu0 %v19260_v38  ;;  %v19330_v38 = vld [vmem:[#allocation4 + $0xeb8] ss:$72 sps:$4 sm:$0xff]  }
 0x223   :  { %5841 = vmatpush1.bf16.msra.mxu1 %v19261_v41  ;;  %v19341_v41 = vld [vmem:[#allocation4 + $0x654] ss:$72 sps:$4 sm:$0xff]  }
 0x224   :  { %5798 = vmatpush1.bf16.msra.mxu0 %v19258_v40  ;;  %5842 = vmatprep.subr.bf16.mxu1 %v19269_v43  ;;  %v19338_v40 = vld [vmem:[#allocation4 + $0xf4c] ss:$72 sps:$4 sm:$0xff]   ;;  %v19339_v43 = vld [vmem:[#allocation4 + $0x650] ss:$72 sps:$4 sm:$0xff]  }
 0x225   :  { %5799 = vmatprep.subr.bf16.mxu0 %v19266_v42  ;;  %v19336_v42 = vld [vmem:[#allocation4 + $0xf48] ss:$72 sps:$4 sm:$0xff]  }
 0x227   :  { %5843 = vmatpush1.bf16.msra.mxu1 %v19267_v45  ;;  %v19347_v45 = vld [vmem:[#allocation4 + $0x6e4] ss:$72 sps:$4 sm:$0xff]  }
 0x228   :  { %5800 = vmatpush1.bf16.msra.mxu0 %v19264_v44  ;;  %5855 = vmatprep.subr.bf16.mxu1 %v19272_v47  ;;  %v19344_v44 = vld [vmem:[#allocation4 + $0xfdc] ss:$72 sps:$4 sm:$0xff]   ;;  %v19342_v47 = vld [vmem:[#allocation4 + $0xfd8] ss:$72 sps:$4 sm:$0xff]  }
 0x229   :  { %5941 = vmatprep.subr.bf16.mxu0 %v19275_v48  ;;  %v19345_v48 = vld [vmem:[#allocation4 + $0x6e0] ss:$72 sps:$4 sm:$0xff]  }
 0x22a   :  { %5845 = vmatmul.mubr.bf16.vlgmr.msra.gmra.mrb[8].mxu1 %v22459_v14 }
 0x22b   :  { %5802 = vmatmul.mubr.bf16.vlgmr.msra.gmra.mrb[4].mxu0 %v22481_v25  ;;  %5856 = vmatpush1.bf16.msra.mxu1 %v19270_v49  ;;  %v19350_v49 = vld [vmem:[#allocation4 + $0x106c] ss:$72 sps:$4 sm:$0xff]  }
 0x22c   :  { %5942 = vmatpush1.bf16.msra.mxu0 %v19273_v50  ;;  %5857 = vmatprep.subr.bf16.mxu1 %v19278_v51  ;;  %v19353_v50 = vld [vmem:[#allocation4 + $0x774] ss:$72 sps:$4 sm:$0xff]   ;;  %v19348_v51 = vld [vmem:[#allocation4 + $0x1068] ss:$72 sps:$4 sm:$0xff]  }
 0x22d   :  { %5943 = vmatprep.subr.bf16.mxu0 %v19281_v53  ;;  %5887 = vmatprep.mubr.bf16.mxu1 %v22443_v57  ;;  %v19351_v53 = vld [vmem:[#allocation4 + $0x770] ss:$72 sps:$4 sm:$0xff]  }
 0x22e   :  { %5973 = vmatprep.mubr.bf16.mxu0 %v22435_v52 }
 0x22f   :  { %5858 = vmatpush1.bf16.msra.mxu1 %v19276_v54  ;;  %v19356_v54 = vld [vmem:[#allocation4 + $0x10fc] ss:$72 sps:$4 sm:$0xff]  }
 0x230   :  { %5944 = vmatpush1.bf16.msra.mxu0 %v19279_v55  ;;  %5859 = vmatprep.subr.bf16.mxu1 %v19284_v56  ;;  %v19359_v55 = vld [vmem:[#allocation4 + $0x804] ss:$72 sps:$4 sm:$0xff]   ;;  %v19354_v56 = vld [vmem:[#allocation4 + $0x10f8] ss:$72 sps:$4 sm:$0xff]  }
 0x231   :  { %5945 = vmatprep.subr.bf16.mxu0 %v19287_v58  ;;  %v19357_v58 = vld [vmem:[#allocation4 + $0x800] ss:$72 sps:$4 sm:$0xff]  }
 0x233   :  { %5860 = vmatpush1.bf16.msra.mxu1 %v19282_v59  ;;  %v19362_v59 = vld [vmem:[#allocation4 + $0x118c] ss:$72 sps:$4 sm:$0xff]  }
 0x234   :  { %5946 = vmatpush1.bf16.msra.mxu0 %v19285_v60  ;;  %5861 = vmatprep.subr.bf16.mxu1 %v19290_v61  ;;  %v19365_v60 = vld [vmem:[#allocation4 + $0x894] ss:$72 sps:$4 sm:$0xff]   ;;  %v19360_v61 = vld [vmem:[#allocation4 + $0x1188] ss:$72 sps:$4 sm:$0xff]  }
 0x235   :  { %5947 = vmatprep.subr.bf16.mxu0 %v19293_v62  ;;  %v19363_v62 = vld [vmem:[#allocation4 + $0x890] ss:$72 sps:$4 sm:$0xff]  }
 0x237   :  { %5862 = vmatpush1.bf16.msra.mxu1 %v19288_v63  ;;  %v19368_v63 = vld [vmem:[#allocation4 + $0x121c] ss:$72 sps:$4 sm:$0xff]  }
 0x238   :  { %5948 = vmatpush1.bf16.msra.mxu0 %v19291_v0  ;;  %5863 = vmatprep.subr.bf16.mxu1 %v19296_v4  ;;  %v19371_v0 = vld [vmem:[#allocation4 + $0x924] ss:$72 sps:$4 sm:$0xff]   ;;  %v19366_v4 = vld [vmem:[#allocation4 + $0x1218] ss:$72 sps:$4 sm:$0xff]  }
 0x239   :  { %5949 = vmatprep.subr.bf16.mxu0 %v19299_v5  ;;  %v19369_v5 = vld [vmem:[#allocation4 + $0x920] ss:$72 sps:$4 sm:$0xff]  }
 0x23b   :  { %5864 = vmatpush1.bf16.msra.mxu1 %v19294_v7  ;;  %v19374_v7 = vld [vmem:[#allocation4 + $0x12ac] ss:$72 sps:$4 sm:$0xff]  }
 0x23c   :  { %5950 = vmatpush1.bf16.msra.mxu0 %v19297_v8  ;;  %5865 = vmatprep.subr.bf16.mxu1 %v19302_v9  ;;  %v19377_v8 = vld [vmem:[#allocation4 + $0x9b4] ss:$72 sps:$4 sm:$0xff]   ;;  %v19372_v9 = vld [vmem:[#allocation4 + $0x12a8] ss:$72 sps:$4 sm:$0xff]  }
 0x23d   :  { %5951 = vmatprep.subr.bf16.mxu0 %v19305_v10  ;;  %v19375_v10 = vld [vmem:[#allocation4 + $0x9b0] ss:$72 sps:$4 sm:$0xff]  }
 0x23e   :  { %v5545_v16 = vpop.f32.mrb[0].mxu0 }
 0x23f   :  { %v22508_v20 = vadd.f32 %v5545_v16, %v22495_v1  ;;  %v5547_v21 = vpop.f32.mrb[1].mxu0  ;;  %5866 = vmatpush1.bf16.msra.mxu1 %v19300_v11  ;;  %v19312_v1 = vld [vmem:[#allocation4 + $0xd08] ss:$72 sps:$4 sm:$0xff]   ;;  %v19380_v11 = vld [vmem:[#allocation4 + $0x133c] ss:$72 sps:$4 sm:$0xff]  }
 0x240   :  { %v22511_v22 = vadd.f32 %v5547_v21, %v22497_v2  ;;  %v5549_v23 = vpop.f32.mrb[2].mxu0  ;;  %5952 = vmatpush1.bf16.msra.mxu0 %v19303_v12  ;;  %5867 = vmatprep.subr.bf16.mxu1 %v19308_v13  ;;  %v19320_v2 = vld [vmem:[#allocation4 + $0xd9c] ss:$72 sps:$4 sm:$0xff]   ;;  %v19378_v13 = vld [vmem:[#allocation4 + $0x1338] ss:$72 sps:$4 sm:$0xff]  }
 0x241   :  { %v22514_v24 = vadd.f32 %v5549_v23, %v22499_v3  ;;  %v5551_v26 = vpop.f32.mrb[3].mxu0  ;;  %5953 = vmatprep.subr.bf16.mxu0 %v19311_v15  ;;  %v19318_v3 = vld [vmem:[#allocation4 + $0xd98] ss:$72 sps:$4 sm:$0xff]   ;;  %v19383_v12 = vld [vmem:[#allocation4 + $0xa44] ss:$72 sps:$4 sm:$0xff]  }
 0x242   :  { %v22517_v29 = vadd.f32 %v5551_v26, %v22501_v6  ;;  %v19324_v6 = vld [vmem:[#allocation4 + $0xe28] ss:$72 sps:$4 sm:$0xff]   ;;  %v19386_v16 = vld [vmem:[#allocation4 + $0x13cc] ss:$72 sps:$4 sm:$0xff]   ;;  %v19392_v23 = vld [vmem:[#allocation4 + $0x145c] ss:$72 sps:$4 sm:$0xff]  }
 0x243   :  { %5868 = vmatpush1.bf16.msra.mxu1 %v19306_v18  ;;  %v19381_v15 = vld [vmem:[#allocation4 + $0xa40] ss:$72 sps:$4 sm:$0xff]   ;;  %v19389_v18 = vld [vmem:[#allocation4 + $0xad4] ss:$72 sps:$4 sm:$0xff]   ;;  %v19387_v21 = vld [vmem:[#allocation4 + $0xad0] ss:$72 sps:$4 sm:$0xff]  }
 0x244   :  { %5954 = vmatpush1.bf16.msra.mxu0 %v19309_v19  ;;  %5869 = vmatprep.subr.bf16.mxu1 %v19314_v27  ;;  %v19384_v19 = vld [vmem:[#allocation4 + $0x13c8] ss:$72 sps:$4 sm:$0xff]   ;;  %v19395_v26 = vld [vmem:[#allocation4 + $0xb64] ss:$72 sps:$4 sm:$0xff]   ;;  %v19390_v27 = vld [vmem:[#allocation4 + $0x1458] ss:$72 sps:$4 sm:$0xff]  }
 0x245   :  { %5955 = vmatprep.subr.bf16.mxu0 %v19317_v28  ;;  %v19393_v28 = vld [vmem:[#allocation4 + $0xb60] ss:$72 sps:$4 sm:$0xff]  }
 0x247   :  { %5870 = vmatpush1.bf16.msra.mxu1 %v19312_v1  ;;  %v19398_v1 = vld [vmem:[#allocation4 + $0x14ec] ss:$72 sps:$4 sm:$0xff]  }
 0x248   :  { %5956 = vmatpush1.bf16.msra.mxu0 %v19315_v30  ;;  %5871 = vmatprep.subr.bf16.mxu1 %v19320_v2  ;;  %v19401_v30 = vld [vmem:[#allocation4 + $0xbf4] ss:$72 sps:$4 sm:$0xff]   ;;  %v19396_v2 = vld [vmem:[#allocation4 + $0x14e8] ss:$72 sps:$4 sm:$0xff]  }
 0x249   :  { %5957 = vmatprep.subr.bf16.mxu0 %v19323_v31  ;;  %v19399_v31 = vld [vmem:[#allocation4 + $0xbf0] ss:$72 sps:$4 sm:$0xff]  }
 0x24b   :  { %5872 = vmatpush1.bf16.msra.mxu1 %v19318_v3  ;;  %v19404_v3 = vld [vmem:[#allocation4 + $0x157c] ss:$72 sps:$4 sm:$0xff]  }
 0x24c   :  { %5958 = vmatpush1.bf16.msra.mxu0 %v19321_v32  ;;  %5873 = vmatprep.subr.bf16.mxu1 %v19326_v33  ;;  %v19407_v32 = vld [vmem:[#allocation4 + $0xc84] ss:$72 sps:$4 sm:$0xff]   ;;  %v19402_v33 = vld [vmem:[#allocation4 + $0x1578] ss:$72 sps:$4 sm:$0xff]  }
 0x24d   :  { %5959 = vmatprep.subr.bf16.mxu0 %v19329_v34  ;;  %v19405_v34 = vld [vmem:[#allocation4 + $0xc80] ss:$72 sps:$4 sm:$0xff]  }
 0x24f   :  { %5874 = vmatpush1.bf16.msra.mxu1 %v19324_v6  ;;  %v19410_v6 = vld [vmem:[#allocation4 + $0x160c] ss:$72 sps:$4 sm:$0xff]  }
 0x250   :  { %5960 = vmatpush1.bf16.msra.mxu0 %v19327_v35  ;;  %5875 = vmatprep.subr.bf16.mxu1 %v19332_v36  ;;  %v19413_v35 = vld [vmem:[#allocation4 + $0xd14] ss:$72 sps:$4 sm:$0xff]   ;;  %v19408_v36 = vld [vmem:[#allocation4 + $0x1608] ss:$72 sps:$4 sm:$0xff]  }
 0x251   :  { %5961 = vmatprep.subr.bf16.mxu0 %v19335_v37  ;;  %v19411_v37 = vld [vmem:[#allocation4 + $0xd10] ss:$72 sps:$4 sm:$0xff]  }
 0x253   :  { %5876 = vmatpush1.bf16.msra.mxu1 %v19330_v38  ;;  %v19416_v38 = vld [vmem:[#allocation4 + $0x169c] ss:$72 sps:$4 sm:$0xff]  }
 0x254   :  { %5962 = vmatpush1.bf16.msra.mxu0 %v19333_v39  ;;  %5877 = vmatprep.subr.bf16.mxu1 %v19338_v40  ;;  %v19419_v39 = vld [vmem:[#allocation4 + $0xda4] ss:$72 sps:$4 sm:$0xff]   ;;  %v19414_v40 = vld [vmem:[#allocation4 + $0x1698] ss:$72 sps:$4 sm:$0xff]  }
 0x255   :  { %5963 = vmatprep.subr.bf16.mxu0 %v19341_v41  ;;  %v19417_v41 = vld [vmem:[#allocation4 + $0xda0] ss:$72 sps:$4 sm:$0xff]  }
 0x257   :  { %5878 = vmatpush1.bf16.msra.mxu1 %v19336_v42  ;;  %v19422_v42 = vld [vmem:[#allocation4 + $0x172c] ss:$72 sps:$4 sm:$0xff]  }
 0x258   :  { %5964 = vmatpush1.bf16.msra.mxu0 %v19339_v43  ;;  %5879 = vmatprep.subr.bf16.mxu1 %v19344_v44  ;;  %v19425_v43 = vld [vmem:[#allocation4 + $0xe34] ss:$72 sps:$4 sm:$0xff]   ;;  %v19420_v44 = vld [vmem:[#allocation4 + $0x1728] ss:$72 sps:$4 sm:$0xff]  }
 0x259   :  { %5965 = vmatprep.subr.bf16.mxu0 %v19347_v45  ;;  %v19423_v45 = vld [vmem:[#allocation4 + $0xe30] ss:$72 sps:$4 sm:$0xff]  }
 0x25b   :  { %5880 = vmatpush1.bf16.msra.mxu1 %v19342_v47  ;;  %v19428_v47 = vld [vmem:[#allocation4 + $0x17bc] ss:$72 sps:$4 sm:$0xff]  }
 0x25c   :  { %5966 = vmatpush1.bf16.msra.mxu0 %v19345_v48  ;;  %5881 = vmatprep.subr.bf16.mxu1 %v19350_v49  ;;  %v19431_v48 = vld [vmem:[#allocation4 + $0xec4] ss:$72 sps:$4 sm:$0xff]   ;;  %v19426_v49 = vld [vmem:[#allocation4 + $0x17b8] ss:$72 sps:$4 sm:$0xff]  }
 0x25d   :  { %5967 = vmatprep.subr.bf16.mxu0 %v19353_v50  ;;  %v19429_v50 = vld [vmem:[#allocation4 + $0xec0] ss:$72 sps:$4 sm:$0xff]  }
 0x25f   :  { %5882 = vmatpush1.bf16.msra.mxu1 %v19348_v51  ;;  %v19434_v51 = vld [vmem:[#allocation4 + $0x184c] ss:$72 sps:$4 sm:$0xff]  }
 0x260   :  { %5968 = vmatpush1.bf16.msra.mxu0 %v19351_v53  ;;  %5883 = vmatprep.subr.bf16.mxu1 %v19356_v54  ;;  %v19437_v53 = vld [vmem:[#allocation4 + $0xf54] ss:$72 sps:$4 sm:$0xff]   ;;  %v19432_v54 = vld [vmem:[#allocation4 + $0x1848] ss:$72 sps:$4 sm:$0xff]  }
 0x261   :  { %5969 = vmatprep.subr.bf16.mxu0 %v19359_v55  ;;  %v19435_v55 = vld [vmem:[#allocation4 + $0xf50] ss:$72 sps:$4 sm:$0xff]  }
 0x263   :  { %5884 = vmatpush1.bf16.msra.mxu1 %v19354_v56  ;;  %v19440_v56 = vld [vmem:[#allocation4 + $0x18dc] ss:$72 sps:$4 sm:$0xff]  }
 0x264   :  { %5970 = vmatpush1.bf16.msra.mxu0 %v19357_v58  ;;  %5885 = vmatprep.subr.bf16.mxu1 %v19362_v59  ;;  %v19443_v58 = vld [vmem:[#allocation4 + $0xfe4] ss:$72 sps:$4 sm:$0xff]   ;;  %v19438_v59 = vld [vmem:[#allocation4 + $0x18d8] ss:$72 sps:$4 sm:$0xff]  }
 0x265   :  { %5971 = vmatprep.subr.bf16.mxu0 %v19365_v60  ;;  %v19441_v60 = vld [vmem:[#allocation4 + $0xfe0] ss:$72 sps:$4 sm:$0xff]  }
 0x267   :  { %5886 = vmatpush1.bf16.msra.mxu1 %v19360_v61  ;;  %v19446_v61 = vld [vmem:[#allocation4 + $0x196c] ss:$72 sps:$4 sm:$0xff]  }
 0x268   :  { %5972 = vmatpush1.bf16.msra.mxu0 %v19363_v62  ;;  %5898 = vmatprep.subr.bf16.mxu1 %v19368_v63  ;;  %v19449_v62 = vld [vmem:[#allocation4 + $0x1074] ss:$72 sps:$4 sm:$0xff]   ;;  %v19444_v63 = vld [vmem:[#allocation4 + $0x1968] ss:$72 sps:$4 sm:$0xff]  }
 0x269   :  { %5984 = vmatprep.subr.bf16.mxu0 %v19371_v0  ;;  %v19447_v0 = vld [vmem:[#allocation4 + $0x1070] ss:$72 sps:$4 sm:$0xff]  }
 0x26a   :  { %5888 = vmatmul.mubr.bf16.vlgmr.msra.gmra.mrb[8].mxu1 %v22461_v17 }
 0x26b   :  { %5974 = vmatmul.mubr.bf16.vlgmr.msra.gmra.mrb[8].mxu0 %v22459_v14  ;;  %5899 = vmatpush1.bf16.msra.mxu1 %v19366_v4  ;;  %v19452_v4 = vld [vmem:[#allocation4 + $0x19fc] ss:$72 sps:$4 sm:$0xff]  }
 0x26c   :  { %5985 = vmatpush1.bf16.msra.mxu0 %v19369_v5  ;;  %5900 = vmatprep.subr.bf16.mxu1 %v19374_v7  ;;  %v19455_v5 = vld [vmem:[#allocation4 + $0x1104] ss:$72 sps:$4 sm:$0xff]   ;;  %v19450_v7 = vld [vmem:[#allocation4 + $0x19f8] ss:$72 sps:$4 sm:$0xff]  }
 0x26d   :  { %5986 = vmatprep.subr.bf16.mxu0 %v19377_v8  ;;  %5930 = vmatprep.mubr.bf16.mxu1 %v22472_v46  ;;  %v19453_v8 = vld [vmem:[#allocation4 + $0x1100] ss:$72 sps:$4 sm:$0xff]  }
 0x26e   :  { %6016 = vmatprep.mubr.bf16.mxu0 %v22443_v57 }
 0x26f   :  { %5901 = vmatpush1.bf16.msra.mxu1 %v19372_v9  ;;  %v19458_v9 = vld [vmem:[#allocation4 + $0x1a8c] ss:$72 sps:$4 sm:$0xff]  }
 0x270   :  { %5987 = vmatpush1.bf16.msra.mxu0 %v19375_v10  ;;  %5902 = vmatprep.subr.bf16.mxu1 %v19380_v11  ;;  %v19461_v10 = vld [vmem:[#allocation4 + $0x1194] ss:$72 sps:$4 sm:$0xff]   ;;  %v19456_v11 = vld [vmem:[#allocation4 + $0x1a88] ss:$72 sps:$4 sm:$0xff]  }
 0x271   :  { %5988 = vmatprep.subr.bf16.mxu0 %v19383_v12  ;;  %v19459_v12 = vld [vmem:[#allocation4 + $0x1190] ss:$72 sps:$4 sm:$0xff]  }
 0x273   :  { %5903 = vmatpush1.bf16.msra.mxu1 %v19378_v13  ;;  %v19464_v13 = vld [vmem:[#allocation4 + $0x1224] ss:$72 sps:$4 sm:$0xff]  }
 0x274   :  { %5989 = vmatpush1.bf16.msra.mxu0 %v19381_v15  ;;  %5904 = vmatprep.subr.bf16.mxu1 %v19386_v16  ;;  %v19467_v15 = vld [vmem:[#allocation4 + $0x2c] ss:$72 sps:$4 sm:$0xff]   ;;  %v19462_v16 = vld [vmem:[#allocation4 + $0x1220] ss:$72 sps:$4 sm:$0xff]  }
 0x275   :  { %5990 = vmatprep.subr.bf16.mxu0 %v19389_v18  ;;  %v19465_v18 = vld [vmem:[#allocation4 + $0x28] ss:$72 sps:$4 sm:$0xff]  }
 0x277   :  { %5905 = vmatpush1.bf16.msra.mxu1 %v19384_v19  ;;  %v19470_v19 = vld [vmem:[#allocation4 + $0x12b4] ss:$72 sps:$4 sm:$0xff]  }
 0x278   :  { %5991 = vmatpush1.bf16.msra.mxu0 %v19387_v21  ;;  %5906 = vmatprep.subr.bf16.mxu1 %v19392_v23  ;;  %v19473_v21 = vld [vmem:[#allocation4 + $0xbc] ss:$72 sps:$4 sm:$0xff]   ;;  %v19468_v23 = vld [vmem:[#allocation4 + $0x12b0] ss:$72 sps:$4 sm:$0xff]  }
 0x279   :  { %5992 = vmatprep.subr.bf16.mxu0 %v19395_v26  ;;  %v19471_v26 = vld [vmem:[#allocation4 + $0xb8] ss:$72 sps:$4 sm:$0xff]  }
 0x27b   :  { %5907 = vmatpush1.bf16.msra.mxu1 %v19390_v27  ;;  %v19476_v27 = vld [vmem:[#allocation4 + $0x1344] ss:$72 sps:$4 sm:$0xff]  }
 0x27c   :  { %5993 = vmatpush1.bf16.msra.mxu0 %v19393_v28  ;;  %5908 = vmatprep.subr.bf16.mxu1 %v19398_v1  ;;  %v19479_v28 = vld [vmem:[#allocation4 + $0x14c] ss:$72 sps:$4 sm:$0xff]   ;;  %v19474_v1 = vld [vmem:[#allocation4 + $0x1340] ss:$72 sps:$4 sm:$0xff]  }
 0x27d   :  { %5994 = vmatprep.subr.bf16.mxu0 %v19401_v30  ;;  %v19477_v30 = vld [vmem:[#allocation4 + $0x148] ss:$72 sps:$4 sm:$0xff]  }
 0x27f   :  { %5909 = vmatpush1.bf16.msra.mxu1 %v19396_v2  ;;  %v19482_v2 = vld [vmem:[#allocation4 + $0x13d4] ss:$72 sps:$4 sm:$0xff]  }
 0x280   :  { %5995 = vmatpush1.bf16.msra.mxu0 %v19399_v31  ;;  %5910 = vmatprep.subr.bf16.mxu1 %v19404_v3  ;;  %v19485_v31 = vld [vmem:[#allocation4 + $0x1dc] ss:$72 sps:$4 sm:$0xff]   ;;  %v19480_v3 = vld [vmem:[#allocation4 + $0x13d0] ss:$72 sps:$4 sm:$0xff]  }
 0x281   :  { %5996 = vmatprep.subr.bf16.mxu0 %v19407_v32  ;;  %v19483_v32 = vld [vmem:[#allocation4 + $0x1d8] ss:$72 sps:$4 sm:$0xff]  }
 0x283   :  { %5911 = vmatpush1.bf16.msra.mxu1 %v19402_v33  ;;  %v19488_v33 = vld [vmem:[#allocation4 + $0x1464] ss:$72 sps:$4 sm:$0xff]  }
 0x284   :  { %5997 = vmatpush1.bf16.msra.mxu0 %v19405_v34  ;;  %5912 = vmatprep.subr.bf16.mxu1 %v19410_v6  ;;  %v19491_v34 = vld [vmem:[#allocation4 + $0x26c] ss:$72 sps:$4 sm:$0xff]   ;;  %v19486_v6 = vld [vmem:[#allocation4 + $0x1460] ss:$72 sps:$4 sm:$0xff]  }
 0x285   :  { %5998 = vmatprep.subr.bf16.mxu0 %v19413_v35  ;;  %v19489_v35 = vld [vmem:[#allocation4 + $0x268] ss:$72 sps:$4 sm:$0xff]  }
 0x287   :  { %5913 = vmatpush1.bf16.msra.mxu1 %v19408_v36  ;;  %v19494_v36 = vld [vmem:[#allocation4 + $0x14f4] ss:$72 sps:$4 sm:$0xff]  }
 0x288   :  { %5999 = vmatpush1.bf16.msra.mxu0 %v19411_v37  ;;  %5914 = vmatprep.subr.bf16.mxu1 %v19416_v38  ;;  %v19497_v37 = vld [vmem:[#allocation4 + $0x2fc] ss:$72 sps:$4 sm:$0xff]   ;;  %v19492_v38 = vld [vmem:[#allocation4 + $0x14f0] ss:$72 sps:$4 sm:$0xff]  }
 0x289   :  { %6000 = vmatprep.subr.bf16.mxu0 %v19419_v39  ;;  %v19495_v39 = vld [vmem:[#allocation4 + $0x2f8] ss:$72 sps:$4 sm:$0xff]  }
 0x28b   :  { %5915 = vmatpush1.bf16.msra.mxu1 %v19414_v40  ;;  %v19500_v40 = vld [vmem:[#allocation4 + $0x1584] ss:$72 sps:$4 sm:$0xff]  }
 0x28c   :  { %6001 = vmatpush1.bf16.msra.mxu0 %v19417_v41  ;;  %5916 = vmatprep.subr.bf16.mxu1 %v19422_v42  ;;  %v19503_v41 = vld [vmem:[#allocation4 + $0x38c] ss:$72 sps:$4 sm:$0xff]  }
 0x28d   :  { %6002 = vmatprep.subr.bf16.mxu0 %v19425_v43  ;;  %v19498_v43 = vld [vmem:[#allocation4 + $0x1580] ss:$72 sps:$4 sm:$0xff]  }
 0x28f   :  { %5917 = vmatpush1.bf16.msra.mxu1 %v19420_v44  ;;  %v19501_v44 = vld [vmem:[#allocation4 + $0x388] ss:$72 sps:$4 sm:$0xff]  }
 0x290   :  { %6003 = vmatpush1.bf16.msra.mxu0 %v19423_v45  ;;  %5918 = vmatprep.subr.bf16.mxu1 %v19428_v47 }
 0x291   :  { %6004 = vmatprep.subr.bf16.mxu0 %v19431_v48  ;;  %v19506_v48 = vld [vmem:[#allocation4 + $0x1614] ss:$72 sps:$4 sm:$0xff]  }
 0x293   :  { %5919 = vmatpush1.bf16.msra.mxu1 %v19426_v49  ;;  %v19509_v49 = vld [vmem:[#allocation4 + $0x41c] ss:$72 sps:$4 sm:$0xff]  }
 0x294   :  { %6005 = vmatpush1.bf16.msra.mxu0 %v19429_v50  ;;  %5920 = vmatprep.subr.bf16.mxu1 %v19434_v51  ;;  %v19504_v51 = vld [vmem:[#allocation4 + $0x1610] ss:$72 sps:$4 sm:$0xff]  }
 0x295   :  { %6006 = vmatprep.subr.bf16.mxu0 %v19437_v53  ;;  %v19507_v53 = vld [vmem:[#allocation4 + $0x418] ss:$72 sps:$4 sm:$0xff]  }
 0x297   :  { %5921 = vmatpush1.bf16.msra.mxu1 %v19432_v54  ;;  %v19512_v54 = vld [vmem:[#allocation4 + $0x16a4] ss:$72 sps:$4 sm:$0xff]  }
 0x298   :  { %6007 = vmatpush1.bf16.msra.mxu0 %v19435_v55  ;;  %5922 = vmatprep.subr.bf16.mxu1 %v19440_v56  ;;  %v19515_v55 = vld [vmem:[#allocation4 + $0x4ac] ss:$72 sps:$4 sm:$0xff]   ;;  %v19510_v56 = vld [vmem:[#allocation4 + $0x16a0] ss:$72 sps:$4 sm:$0xff]  }
 0x299   :  { %6008 = vmatprep.subr.bf16.mxu0 %v19443_v58  ;;  %v19513_v58 = vld [vmem:[#allocation4 + $0x4a8] ss:$72 sps:$4 sm:$0xff]  }
 0x29b   :  { %5923 = vmatpush1.bf16.msra.mxu1 %v19438_v59  ;;  %v19518_v59 = vld [vmem:[#allocation4 + $0x1734] ss:$72 sps:$4 sm:$0xff]  }
 0x29c   :  { %6009 = vmatpush1.bf16.msra.mxu0 %v19441_v60  ;;  %5924 = vmatprep.subr.bf16.mxu1 %v19446_v61  ;;  %v19521_v60 = vld [vmem:[#allocation4 + $0x53c] ss:$72 sps:$4 sm:$0xff]   ;;  %v19516_v61 = vld [vmem:[#allocation4 + $0x1730] ss:$72 sps:$4 sm:$0xff]  }
 0x29d   :  { %6010 = vmatprep.subr.bf16.mxu0 %v19449_v62  ;;  %v19519_v62 = vld [vmem:[#allocation4 + $0x538] ss:$72 sps:$4 sm:$0xff]  }
 0x29f   :  { %5925 = vmatpush1.bf16.msra.mxu1 %v19444_v63  ;;  %v19524_v63 = vld [vmem:[#allocation4 + $0x17c4] ss:$72 sps:$4 sm:$0xff]  }
 0x2a0   :  { %6011 = vmatpush1.bf16.msra.mxu0 %v19447_v0  ;;  %5926 = vmatprep.subr.bf16.mxu1 %v19452_v4  ;;  %v19527_v0 = vld [vmem:[#allocation4 + $0x5cc] ss:$72 sps:$4 sm:$0xff]   ;;  %v19522_v4 = vld [vmem:[#allocation4 + $0x17c0] ss:$72 sps:$4 sm:$0xff]  }
 0x2a1   :  { %6012 = vmatprep.subr.bf16.mxu0 %v19455_v5  ;;  %v19525_v5 = vld [vmem:[#allocation4 + $0x5c8] ss:$72 sps:$4 sm:$0xff]  }
 0x2a3   :  { %5927 = vmatpush1.bf16.msra.mxu1 %v19450_v7  ;;  %v19530_v7 = vld [vmem:[#allocation4 + $0x1854] ss:$72 sps:$4 sm:$0xff]  }
 0x2a4   :  { %6013 = vmatpush1.bf16.msra.mxu0 %v19453_v8  ;;  %5928 = vmatprep.subr.bf16.mxu1 %v19458_v9  ;;  %v19533_v8 = vld [vmem:[#allocation4 + $0x65c] ss:$72 sps:$4 sm:$0xff]   ;;  %v19528_v9 = vld [vmem:[#allocation4 + $0x1850] ss:$72 sps:$4 sm:$0xff]  }
 0x2a5   :  { %6014 = vmatprep.subr.bf16.mxu0 %v19461_v10  ;;  %v19531_v10 = vld [vmem:[#allocation4 + $0x658] ss:$72 sps:$4 sm:$0xff]  }
 0x2a7   :  { %5929 = vmatpush1.bf16.msra.mxu1 %v19456_v11  ;;  %v19536_v11 = vld [vmem:[#allocation4 + $0x18e4] ss:$72 sps:$4 sm:$0xff]  }
 0x2a8   :  { %6015 = vmatpush1.bf16.msra.mxu0 %v19459_v12  ;;  %6070 = vmatprep.subr.bf16.mxu1 %v19467_v15  ;;  %v19539_v12 = vld [vmem:[#allocation4 + $0x6ec] ss:$72 sps:$4 sm:$0xff]   ;;  %v19537_v15 = vld [vmem:[#allocation4 + $0x6e8] ss:$72 sps:$4 sm:$0xff]  }
 0x2a9   :  { %6027 = vmatprep.subr.bf16.mxu0 %v19464_v13  ;;  %v19534_v13 = vld [vmem:[#allocation4 + $0x18e0] ss:$72 sps:$4 sm:$0xff]  }
 0x2aa   :  { %5931 = vmatmul.mubr.bf16.vlgmr.msra.gmra.mrb[8].mxu1 %v22481_v25 }
 0x2ab   :  { %6017 = vmatmul.mubr.bf16.vlgmr.msra.gmra.mrb[8].mxu0 %v22461_v17  ;;  %6071 = vmatpush1.bf16.msra.mxu1 %v19465_v18  ;;  %v19545_v18 = vld [vmem:[#allocation4 + $0x77c] ss:$72 sps:$4 sm:$0xff]  }
 0x2ac   :  { %6028 = vmatpush1.bf16.msra.mxu0 %v19462_v16  ;;  %6072 = vmatprep.subr.bf16.mxu1 %v19473_v21  ;;  %v19542_v16 = vld [vmem:[#allocation4 + $0x1974] ss:$72 sps:$4 sm:$0xff]   ;;  %v19543_v21 = vld [vmem:[#allocation4 + $0x778] ss:$72 sps:$4 sm:$0xff]  }
 0x2ad   :  { %6029 = vmatprep.subr.bf16.mxu0 %v19470_v19  ;;  %6059 = vmatprep.mubr.bf16.mxu0 %v22472_v46  ;;  %v19540_v19 = vld [vmem:[#allocation4 + $0x1970] ss:$72 sps:$4 sm:$0xff]  }
 0x2ae   :  { %6102 = vmatprep.mubr.bf16.mxu1 %v22435_v52 }
 0x2af   :  { %6073 = vmatpush1.bf16.msra.mxu1 %v19471_v26  ;;  %v19551_v26 = vld [vmem:[#allocation4 + $0x80c] ss:$72 sps:$4 sm:$0xff]  }
 0x2b0   :  { %6030 = vmatpush1.bf16.msra.mxu0 %v19468_v23  ;;  %6074 = vmatprep.subr.bf16.mxu1 %v19479_v28  ;;  %v19548_v23 = vld [vmem:[#allocation4 + $0x1a04] ss:$72 sps:$4 sm:$0xff]   ;;  %v19549_v28 = vld [vmem:[#allocation4 + $0x808] ss:$72 sps:$4 sm:$0xff]  }
 0x2b1   :  { %6031 = vmatprep.subr.bf16.mxu0 %v19476_v27  ;;  %v19546_v27 = vld [vmem:[#allocation4 + $0x1a00] ss:$72 sps:$4 sm:$0xff]  }
 0x2b3   :  { %6075 = vmatpush1.bf16.msra.mxu1 %v19477_v30  ;;  %v19557_v30 = vld [vmem:[#allocation4 + $0x89c] ss:$72 sps:$4 sm:$0xff]  }
 0x2b4   :  { %6032 = vmatpush1.bf16.msra.mxu0 %v19474_v1  ;;  %6076 = vmatprep.subr.bf16.mxu1 %v19485_v31  ;;  %v19554_v1 = vld [vmem:[#allocation4 + $0x1a94] ss:$72 sps:$4 sm:$0xff]   ;;  %v19555_v31 = vld [vmem:[#allocation4 + $0x898] ss:$72 sps:$4 sm:$0xff]  }
 0x2b5   :  { %6033 = vmatprep.subr.bf16.mxu0 %v19482_v2  ;;  %v19552_v2 = vld [vmem:[#allocation4 + $0x1a90] ss:$72 sps:$4 sm:$0xff]  }
 0x2b7   :  { %6077 = vmatpush1.bf16.msra.mxu1 %v19483_v32  ;;  %v19558_v32 = vld [vmem:[#allocation4 + $0x928] ss:$72 sps:$4 sm:$0xff]  }
 0x2b8   :  { %6034 = vmatpush1.bf16.msra.mxu0 %v19480_v3  ;;  %6078 = vmatprep.subr.bf16.mxu1 %v19491_v34  ;;  %v19560_v3 = vld [vmem:[#allocation4 + $0x92c] ss:$72 sps:$4 sm:$0xff]   ;;  %v19563_v34 = vld [vmem:[#allocation4 + $0x9bc] ss:$72 sps:$4 sm:$0xff]  }
 0x2b9   :  { %6035 = vmatprep.subr.bf16.mxu0 %v19488_v33  ;;  %v19656_v33 = vld [vmem:[#allocation4 + $0x34] ss:$72 sps:$4 sm:$0xff]  }
 0x2bb   :  { %6079 = vmatpush1.bf16.msra.mxu1 %v19489_v35  ;;  %v19662_v35 = vld [vmem:[#allocation4 + $0xc4] ss:$72 sps:$4 sm:$0xff]  }
 0x2bc   :  { %6036 = vmatpush1.bf16.msra.mxu0 %v19486_v6  ;;  %6080 = vmatprep.subr.bf16.mxu1 %v19497_v37  ;;  %v19654_v6 = vld [vmem:[#allocation4 + $0x30] ss:$72 sps:$4 sm:$0xff]   ;;  %v19566_v37 = vld [vmem:[#allocation4 + $0xa4c] ss:$72 sps:$4 sm:$0xff]  }
 0x2bd   :  { %6037 = vmatprep.subr.bf16.mxu0 %v19494_v36  ;;  %v22527_v42 = vpop.f32.mrb[4].mxu1  ;;  %v19561_v36 = vld [vmem:[#allocation4 + $0x9b8] ss:$72 sps:$4 sm:$0xff]  }
 0x2be   :  { %v22529_v45 = vpop.f32.mrb[5].mxu1 }
 0x2bf   :  { %v22531_v47 = vpop.f32.mrb[6].mxu1  ;;  %6081 = vmatpush1.bf16.msra.mxu1 %v19495_v39  ;;  %v19668_v39 = vld [vmem:[#allocation4 + $0x154] ss:$72 sps:$4 sm:$0xff]  }
 0x2c0   :  { %6038 = vmatpush1.bf16.msra.mxu0 %v19492_v38  ;;  %v22533_v50 = vpop.f32.mrb[7].mxu1  ;;  %6082 = vmatprep.subr.bf16.mxu1 %v19503_v41  ;;  %v19660_v38 = vld [vmem:[#allocation4 + $0xc0] ss:$72 sps:$4 sm:$0xff]   ;;  %v19569_v41 = vld [vmem:[#allocation4 + $0xadc] ss:$72 sps:$4 sm:$0xff]  }
 0x2c1   :  { %6039 = vmatprep.subr.bf16.mxu0 %v19500_v40  ;;  %v19564_v40 = vld [vmem:[#allocation4 + $0xa48] ss:$72 sps:$4 sm:$0xff]  }
 0x2c3   :  { %6083 = vmatpush1.bf16.msra.mxu1 %v19501_v44  ;;  %v19674_v44 = vld [vmem:[#allocation4 + $0x1e4] ss:$72 sps:$4 sm:$0xff]  }
 0x2c4   :  { %6040 = vmatpush1.bf16.msra.mxu0 %v19498_v43  ;;  %6084 = vmatprep.subr.bf16.mxu1 %v19509_v49  ;;  %v19666_v43 = vld [vmem:[#allocation4 + $0x150] ss:$72 sps:$4 sm:$0xff]   ;;  %v19572_v49 = vld [vmem:[#allocation4 + $0xb6c] ss:$72 sps:$4 sm:$0xff]  }
 0x2c5   :  { %6041 = vmatprep.subr.bf16.mxu0 %v19506_v48  ;;  %v19567_v48 = vld [vmem:[#allocation4 + $0xad8] ss:$72 sps:$4 sm:$0xff]  }
 0x2c7   :  { %6085 = vmatpush1.bf16.msra.mxu1 %v19507_v53  ;;  %v19680_v53 = vld [vmem:[#allocation4 + $0x274] ss:$72 sps:$4 sm:$0xff]  }
 0x2c8   :  { %6042 = vmatpush1.bf16.msra.mxu0 %v19504_v51  ;;  %6086 = vmatprep.subr.bf16.mxu1 %v19515_v55  ;;  %v19672_v51 = vld [vmem:[#allocation4 + $0x1e0] ss:$72 sps:$4 sm:$0xff]   ;;  %v19575_v55 = vld [vmem:[#allocation4 + $0xbfc] ss:$72 sps:$4 sm:$0xff]  }
 0x2c9   :  { %6043 = vmatprep.subr.bf16.mxu0 %v19512_v54  ;;  %v19570_v54 = vld [vmem:[#allocation4 + $0xb68] ss:$72 sps:$4 sm:$0xff]  }
 0x2cb   :  { %6087 = vmatpush1.bf16.msra.mxu1 %v19513_v58  ;;  %v19573_v58 = vld [vmem:[#allocation4 + $0xbf8] ss:$72 sps:$4 sm:$0xff]  }
 0x2cc   :  { %6044 = vmatpush1.bf16.msra.mxu0 %v19510_v56  ;;  %6088 = vmatprep.subr.bf16.mxu1 %v19521_v60  ;;  %v19678_v56 = vld [vmem:[#allocation4 + $0x270] ss:$72 sps:$4 sm:$0xff]   ;;  %v19578_v60 = vld [vmem:[#allocation4 + $0xc8c] ss:$72 sps:$4 sm:$0xff]  }
 0x2cd   :  { %6045 = vmatprep.subr.bf16.mxu0 %v19518_v59  ;;  %v19686_v59 = vld [vmem:[#allocation4 + $0x304] ss:$72 sps:$4 sm:$0xff]  }
 0x2cf   :  { %6089 = vmatpush1.bf16.msra.mxu1 %v19519_v62 }
 0x2d0   :  { %6046 = vmatpush1.bf16.msra.mxu0 %v19516_v61  ;;  %6090 = vmatprep.subr.bf16.mxu1 %v19527_v0  ;;  %v19684_v61 = vld [vmem:[#allocation4 + $0x300] ss:$72 sps:$4 sm:$0xff]   ;;  %v19692_v0 = vld [vmem:[#allocation4 + $0x394] ss:$72 sps:$4 sm:$0xff]  }
 0x2d1   :  { %6047 = vmatprep.subr.bf16.mxu0 %v19524_v63 }
 0x2d3   :  { %6091 = vmatpush1.bf16.msra.mxu1 %v19525_v5  ;;  %v19576_v5 = vld [vmem:[#allocation4 + $0xc88] ss:$72 sps:$4 sm:$0xff]  }
 0x2d4   :  { %6048 = vmatpush1.bf16.msra.mxu0 %v19522_v4  ;;  %6092 = vmatprep.subr.bf16.mxu1 %v19533_v8  ;;  %v19581_v8 = vld [vmem:[#allocation4 + $0xd1c] ss:$72 sps:$4 sm:$0xff]  }
 0x2d5   :  { %6049 = vmatprep.subr.bf16.mxu0 %v19530_v7 }
 0x2d7   :  { %6093 = vmatpush1.bf16.msra.mxu1 %v19531_v10  ;;  %v19698_v10 = vld [vmem:[#allocation4 + $0x424] ss:$72 sps:$4 sm:$0xff]  }
 0x2d8   :  { %6050 = vmatpush1.bf16.msra.mxu0 %v19528_v9  ;;  %6094 = vmatprep.subr.bf16.mxu1 %v19539_v12  ;;  %v19690_v9 = vld [vmem:[#allocation4 + $0x390] ss:$72 sps:$4 sm:$0xff]   ;;  %v19584_v12 = vld [vmem:[#allocation4 + $0xdac] ss:$72 sps:$4 sm:$0xff]  }
 0x2d9   :  { %6051 = vmatprep.subr.bf16.mxu0 %v19536_v11  ;;  %v19579_v11 = vld [vmem:[#allocation4 + $0xd18] ss:$72 sps:$4 sm:$0xff]  }
 0x2db   :  { %6095 = vmatpush1.bf16.msra.mxu1 %v19537_v15  ;;  %v19704_v15 = vld [vmem:[#allocation4 + $0x4b4] ss:$72 sps:$4 sm:$0xff]  }
 0x2dc   :  { %6052 = vmatpush1.bf16.msra.mxu0 %v19534_v13  ;;  %6096 = vmatprep.subr.bf16.mxu1 %v19545_v18  ;;  %v19696_v13 = vld [vmem:[#allocation4 + $0x420] ss:$72 sps:$4 sm:$0xff]   ;;  %v19587_v18 = vld [vmem:[#allocation4 + $0xe3c] ss:$72 sps:$4 sm:$0xff]  }
 0x2dd   :  { %6053 = vmatprep.subr.bf16.mxu0 %v19542_v16  ;;  %v19582_v16 = vld [vmem:[#allocation4 + $0xda8] ss:$72 sps:$4 sm:$0xff]  }
 0x2df   :  { %6097 = vmatpush1.bf16.msra.mxu1 %v19543_v21  ;;  %v19710_v21 = vld [vmem:[#allocation4 + $0x544] ss:$72 sps:$4 sm:$0xff]  }
 0x2e0   :  { %6054 = vmatpush1.bf16.msra.mxu0 %v19540_v19  ;;  %6098 = vmatprep.subr.bf16.mxu1 %v19551_v26  ;;  %v19702_v19 = vld [vmem:[#allocation4 + $0x4b0] ss:$72 sps:$4 sm:$0xff]   ;;  %v19590_v26 = vld [vmem:[#allocation4 + $0xecc] ss:$72 sps:$4 sm:$0xff]  }
 0x2e1   :  { %6055 = vmatprep.subr.bf16.mxu0 %v19548_v23  ;;  %v19585_v23 = vld [vmem:[#allocation4 + $0xe38] ss:$72 sps:$4 sm:$0xff]  }
 0x2e3   :  { %6099 = vmatpush1.bf16.msra.mxu1 %v19549_v28  ;;  %v19716_v28 = vld [vmem:[#allocation4 + $0x5d4] ss:$72 sps:$4 sm:$0xff]  }
 0x2e4   :  { %6056 = vmatpush1.bf16.msra.mxu0 %v19546_v27  ;;  %6100 = vmatprep.subr.bf16.mxu1 %v19557_v30  ;;  %v19708_v27 = vld [vmem:[#allocation4 + $0x540] ss:$72 sps:$4 sm:$0xff]   ;;  %v19593_v30 = vld [vmem:[#allocation4 + $0xf5c] ss:$72 sps:$4 sm:$0xff]  }
 0x2e5   :  { %6057 = vmatprep.subr.bf16.mxu0 %v19554_v1  ;;  %v19588_v1 = vld [vmem:[#allocation4 + $0xec8] ss:$72 sps:$4 sm:$0xff]  }
 0x2e7   :  { %6101 = vmatpush1.bf16.msra.mxu1 %v19555_v31  ;;  %v19722_v31 = vld [vmem:[#allocation4 + $0x664] ss:$72 sps:$4 sm:$0xff]  }
 0x2e8   :  { %6058 = vmatpush1.bf16.msra.mxu0 %v19552_v2  ;;  %6113 = vmatprep.subr.bf16.mxu1 %v19560_v3  ;;  %v19714_v2 = vld [vmem:[#allocation4 + $0x5d0] ss:$72 sps:$4 sm:$0xff]  }
 0x2e9   :  { %6199 = vmatprep.subr.bf16.mxu0 %v19656_v33  ;;  %v19591_v3 = vld [vmem:[#allocation4 + $0xf58] ss:$72 sps:$4 sm:$0xff]  }
 0x2ea   :  { %6103 = vmatmul.mubr.bf16.vlgmr.msra.gmra.mrb[12].mxu1 %v22459_v14  ;;  %v19720_v33 = vld [vmem:[#allocation4 + $0x660] ss:$72 sps:$4 sm:$0xff]  }
 0x2eb   :  { %6060 = vmatmul.mubr.bf16.vlgmr.msra.gmra.mrb[8].mxu0 %v22481_v25  ;;  %6114 = vmatpush1.bf16.msra.mxu1 %v19558_v32  ;;  %v19596_v32 = vld [vmem:[#allocation4 + $0xfec] ss:$72 sps:$4 sm:$0xff]  }
 0x2ec   :  { %6145 = vmatprep.mubr.bf16.mxu1 %v22443_v57  ;;  %6115 = vmatprep.subr.bf16.mxu1 %v19563_v34  ;;  %v19728_v34 = vld [vmem:[#allocation4 + $0x6f4] ss:$72 sps:$4 sm:$0xff]  }
 0x2ed   :  { %6200 = vmatpush1.bf16.msra.mxu0 %v19654_v6  ;;  %6231 = vmatprep.mubr.bf16.mxu0 %v22435_v52  ;;  %v19594_v6 = vld [vmem:[#allocation4 + $0xfe8] ss:$72 sps:$4 sm:$0xff]  }
 0x2ee   :  { %6201 = vmatprep.subr.bf16.mxu0 %v19662_v35  ;;  %v19599_v35 = vld [vmem:[#allocation4 + $0x107c] ss:$72 sps:$4 sm:$0xff]  }
 0x2ef   :  { %6116 = vmatpush1.bf16.msra.mxu1 %v19561_v36  ;;  %v19726_v36 = vld [vmem:[#allocation4 + $0x6f0] ss:$72 sps:$4 sm:$0xff]  }
 0x2f0   :  { %6117 = vmatprep.subr.bf16.mxu1 %v19566_v37  ;;  %v19734_v37 = vld [vmem:[#allocation4 + $0x784] ss:$72 sps:$4 sm:$0xff]  }
 0x2f1   :  { %6202 = vmatpush1.bf16.msra.mxu0 %v19660_v38  ;;  %v19597_v38 = vld [vmem:[#allocation4 + $0x1078] ss:$72 sps:$4 sm:$0xff]  }
 0x2f2   :  { %6203 = vmatprep.subr.bf16.mxu0 %v19668_v39  ;;  %v19602_v39 = vld [vmem:[#allocation4 + $0x110c] ss:$72 sps:$4 sm:$0xff]  }
 0x2f3   :  { %6118 = vmatpush1.bf16.msra.mxu1 %v19564_v40  ;;  %v19732_v40 = vld [vmem:[#allocation4 + $0x780] ss:$72 sps:$4 sm:$0xff]  }
 0x2f4   :  { %6119 = vmatprep.subr.bf16.mxu1 %v19569_v41  ;;  %v19740_v41 = vld [vmem:[#allocation4 + $0x814] ss:$72 sps:$4 sm:$0xff]  }
 0x2f5   :  { %6204 = vmatpush1.bf16.msra.mxu0 %v19666_v43  ;;  %v19600_v43 = vld [vmem:[#allocation4 + $0x1108] ss:$72 sps:$4 sm:$0xff]  }
 0x2f6   :  { %6205 = vmatprep.subr.bf16.mxu0 %v19674_v44  ;;  %v19605_v44 = vld [vmem:[#allocation4 + $0x119c] ss:$72 sps:$4 sm:$0xff]  }
 0x2f7   :  { %6120 = vmatpush1.bf16.msra.mxu1 %v19567_v48  ;;  %v19738_v48 = vld [vmem:[#allocation4 + $0x810] ss:$72 sps:$4 sm:$0xff]  }
 0x2f8   :  { %6121 = vmatprep.subr.bf16.mxu1 %v19572_v49  ;;  %v19746_v49 = vld [vmem:[#allocation4 + $0x8a4] ss:$72 sps:$4 sm:$0xff]  }
 0x2f9   :  { %6206 = vmatpush1.bf16.msra.mxu0 %v19672_v51  ;;  %v19603_v51 = vld [vmem:[#allocation4 + $0x1198] ss:$72 sps:$4 sm:$0xff]  }
 0x2fa   :  { %6207 = vmatprep.subr.bf16.mxu0 %v19680_v53  ;;  %v19608_v53 = vld [vmem:[#allocation4 + $0x122c] ss:$72 sps:$4 sm:$0xff]  }
 0x2fb   :  { %6122 = vmatpush1.bf16.msra.mxu1 %v19570_v54  ;;  %v19744_v54 = vld [vmem:[#allocation4 + $0x8a0] ss:$72 sps:$4 sm:$0xff]  }
 0x2fc   :  { %6123 = vmatprep.subr.bf16.mxu1 %v19575_v55  ;;  %v19752_v55 = vld [vmem:[#allocation4 + $0x934] ss:$72 sps:$4 sm:$0xff]  }
 0x2fd   :  { %6208 = vmatpush1.bf16.msra.mxu0 %v19678_v56  ;;  %v19606_v56 = vld [vmem:[#allocation4 + $0x1228] ss:$72 sps:$4 sm:$0xff]  }
 0x2fe   :  { %v22539_v62 = vpop.f32.mrb[4].mxu0  ;;  %6209 = vmatprep.subr.bf16.mxu0 %v19686_v59  ;;  %v19750_v59 = vld [vmem:[#allocation4 + $0x930] ss:$72 sps:$4 sm:$0xff]  }
 0x2ff   :  { %v22541_v63 = vpop.f32.mrb[5].mxu0  ;;  %6124 = vmatpush1.bf16.msra.mxu1 %v19573_v58  ;;  %v19611_v58 = vld [vmem:[#allocation4 + $0x12bc] ss:$72 sps:$4 sm:$0xff]  }
 0x300   :  { %v22543_v4 = vpop.f32.mrb[6].mxu0  ;;  %6125 = vmatprep.subr.bf16.mxu1 %v19578_v60  ;;  %v19758_v60 = vld [vmem:[#allocation4 + $0x9c4] ss:$72 sps:$4 sm:$0xff]  }
 0x301   :  { %v22545_v7 = vpop.f32.mrb[7].mxu0  ;;  %6210 = vmatpush1.bf16.msra.mxu0 %v19684_v61  ;;  %v19609_v61 = vld [vmem:[#allocation4 + $0x12b8] ss:$72 sps:$4 sm:$0xff]  }
 0x302   :  { %6211 = vmatprep.subr.bf16.mxu0 %v19692_v0  ;;  %v19614_v0 = vld [vmem:[#allocation4 + $0x134c] ss:$72 sps:$4 sm:$0xff]  }
 0x303   :  { %6126 = vmatpush1.bf16.msra.mxu1 %v19576_v5  ;;  %v19756_v5 = vld [vmem:[#allocation4 + $0x9c0] ss:$72 sps:$4 sm:$0xff]  }
 0x304   :  { %6127 = vmatprep.subr.bf16.mxu1 %v19581_v8  ;;  %v19764_v8 = vld [vmem:[#allocation4 + $0xa54] ss:$72 sps:$4 sm:$0xff]  }
 0x305   :  { %6212 = vmatpush1.bf16.msra.mxu0 %v19690_v9  ;;  %v19612_v9 = vld [vmem:[#allocation4 + $0x1348] ss:$72 sps:$4 sm:$0xff]  }
 0x306   :  { %6213 = vmatprep.subr.bf16.mxu0 %v19698_v10  ;;  %v19617_v10 = vld [vmem:[#allocation4 + $0x13dc] ss:$72 sps:$4 sm:$0xff]  }
 0x307   :  { %6128 = vmatpush1.bf16.msra.mxu1 %v19579_v11  ;;  %v19762_v11 = vld [vmem:[#allocation4 + $0xa50] ss:$72 sps:$4 sm:$0xff]  }
 0x308   :  { %6129 = vmatprep.subr.bf16.mxu1 %v19584_v12  ;;  %v19770_v12 = vld [vmem:[#allocation4 + $0xae4] ss:$72 sps:$4 sm:$0xff]  }
 0x309   :  { %6214 = vmatpush1.bf16.msra.mxu0 %v19696_v13  ;;  %v19615_v13 = vld [vmem:[#allocation4 + $0x13d8] ss:$72 sps:$4 sm:$0xff]  }
 0x30a   :  { %6215 = vmatprep.subr.bf16.mxu0 %v19704_v15  ;;  %v19620_v15 = vld [vmem:[#allocation4 + $0x146c] ss:$72 sps:$4 sm:$0xff]  }
 0x30b   :  { %6130 = vmatpush1.bf16.msra.mxu1 %v19582_v16  ;;  %v19768_v16 = vld [vmem:[#allocation4 + $0xae0] ss:$72 sps:$4 sm:$0xff]  }
 0x30c   :  { %6131 = vmatprep.subr.bf16.mxu1 %v19587_v18  ;;  %v19776_v18 = vld [vmem:[#allocation4 + $0xb74] ss:$72 sps:$4 sm:$0xff]  }
 0x30d   :  { %6216 = vmatpush1.bf16.msra.mxu0 %v19702_v19  ;;  %v19618_v19 = vld [vmem:[#allocation4 + $0x1468] ss:$72 sps:$4 sm:$0xff]  }
 0x30e   :  { %6217 = vmatprep.subr.bf16.mxu0 %v19710_v21  ;;  %v19623_v21 = vld [vmem:[#allocation4 + $0x14fc] ss:$72 sps:$4 sm:$0xff]  }
 0x30f   :  { %6132 = vmatpush1.bf16.msra.mxu1 %v19585_v23  ;;  %v19774_v23 = vld [vmem:[#allocation4 + $0xb70] ss:$72 sps:$4 sm:$0xff]  }
 0x310   :  { %6133 = vmatprep.subr.bf16.mxu1 %v19590_v26  ;;  %v19782_v26 = vld [vmem:[#allocation4 + $0xc04] ss:$72 sps:$4 sm:$0xff]  }
 0x311   :  { %6218 = vmatpush1.bf16.msra.mxu0 %v19708_v27  ;;  %v19621_v27 = vld [vmem:[#allocation4 + $0x14f8] ss:$72 sps:$4 sm:$0xff]  }
 0x312   :  { %6219 = vmatprep.subr.bf16.mxu0 %v19716_v28  ;;  %v19626_v28 = vld [vmem:[#allocation4 + $0x158c] ss:$72 sps:$4 sm:$0xff]  }
 0x313   :  { %6134 = vmatpush1.bf16.msra.mxu1 %v19588_v1  ;;  %v19780_v1 = vld [vmem:[#allocation4 + $0xc00] ss:$72 sps:$4 sm:$0xff]  }
 0x314   :  { %6135 = vmatprep.subr.bf16.mxu1 %v19593_v30  ;;  %v19788_v30 = vld [vmem:[#allocation4 + $0xc94] ss:$72 sps:$4 sm:$0xff]  }
 0x315   :  { %6220 = vmatpush1.bf16.msra.mxu0 %v19714_v2  ;;  %v19624_v2 = vld [vmem:[#allocation4 + $0x1588] ss:$72 sps:$4 sm:$0xff]  }
 0x316   :  { %6221 = vmatprep.subr.bf16.mxu0 %v19722_v31  ;;  %v19629_v31 = vld [vmem:[#allocation4 + $0x161c] ss:$72 sps:$4 sm:$0xff]  }
 0x317   :  { %6136 = vmatpush1.bf16.msra.mxu1 %v19591_v3  ;;  %v19786_v3 = vld [vmem:[#allocation4 + $0xc90] ss:$72 sps:$4 sm:$0xff]  }
 0x318   :  { %6137 = vmatprep.subr.bf16.mxu1 %v19596_v32  ;;  %v19794_v32 = vld [vmem:[#allocation4 + $0xd24] ss:$72 sps:$4 sm:$0xff]  }
 0x319   :  { %6222 = vmatpush1.bf16.msra.mxu0 %v19720_v33  ;;  %v19627_v33 = vld [vmem:[#allocation4 + $0x1618] ss:$72 sps:$4 sm:$0xff]  }
 0x31a   :  { %6223 = vmatprep.subr.bf16.mxu0 %v19728_v34  ;;  %v19632_v34 = vld [vmem:[#allocation4 + $0x16ac] ss:$72 sps:$4 sm:$0xff]  }
 0x31b   :  { %6138 = vmatpush1.bf16.msra.mxu1 %v19594_v6  ;;  %v19792_v6 = vld [vmem:[#allocation4 + $0xd20] ss:$72 sps:$4 sm:$0xff]  }
 0x31c   :  { %6139 = vmatprep.subr.bf16.mxu1 %v19599_v35  ;;  %v19800_v35 = vld [vmem:[#allocation4 + $0xdb4] ss:$72 sps:$4 sm:$0xff]  }
 0x31d   :  { %6224 = vmatpush1.bf16.msra.mxu0 %v19726_v36  ;;  %v19630_v36 = vld [vmem:[#allocation4 + $0x16a8] ss:$72 sps:$4 sm:$0xff]  }
 0x31e   :  { %6225 = vmatprep.subr.bf16.mxu0 %v19734_v37  ;;  %v19635_v37 = vld [vmem:[#allocation4 + $0x173c] ss:$72 sps:$4 sm:$0xff]  }
 0x31f   :  { %6140 = vmatpush1.bf16.msra.mxu1 %v19597_v38  ;;  %v19798_v38 = vld [vmem:[#allocation4 + $0xdb0] ss:$72 sps:$4 sm:$0xff]  }
 0x320   :  { %6141 = vmatprep.subr.bf16.mxu1 %v19602_v39  ;;  %v19806_v39 = vld [vmem:[#allocation4 + $0xe44] ss:$72 sps:$4 sm:$0xff]  }
 0x321   :  { %6226 = vmatpush1.bf16.msra.mxu0 %v19732_v40  ;;  %v19633_v40 = vld [vmem:[#allocation4 + $0x1738] ss:$72 sps:$4 sm:$0xff]  }
 0x322   :  { %6227 = vmatprep.subr.bf16.mxu0 %v19740_v41  ;;  %v19638_v41 = vld [vmem:[#allocation4 + $0x17cc] ss:$72 sps:$4 sm:$0xff]  }
 0x323   :  { %6142 = vmatpush1.bf16.msra.mxu1 %v19600_v43  ;;  %v19804_v43 = vld [vmem:[#allocation4 + $0xe40] ss:$72 sps:$4 sm:$0xff]  }
 0x324   :  { %6143 = vmatprep.subr.bf16.mxu1 %v19605_v44  ;;  %v19812_v44 = vld [vmem:[#allocation4 + $0xed4] ss:$72 sps:$4 sm:$0xff]  }
 0x325   :  { %6228 = vmatpush1.bf16.msra.mxu0 %v19738_v48  ;;  %v19636_v48 = vld [vmem:[#allocation4 + $0x17c8] ss:$72 sps:$4 sm:$0xff]  }
 0x326   :  { %6229 = vmatprep.subr.bf16.mxu0 %v19746_v49  ;;  %v19641_v49 = vld [vmem:[#allocation4 + $0x185c] ss:$72 sps:$4 sm:$0xff]  }
 0x327   :  { %6144 = vmatpush1.bf16.msra.mxu1 %v19603_v51  ;;  %v19810_v51 = vld [vmem:[#allocation4 + $0xed0] ss:$72 sps:$4 sm:$0xff]  }
 0x328   :  { %6156 = vmatprep.subr.bf16.mxu1 %v19608_v53  ;;  %v19818_v53 = vld [vmem:[#allocation4 + $0xf64] ss:$72 sps:$4 sm:$0xff]  }
 0x329   :  { %6230 = vmatpush1.bf16.msra.mxu0 %v19744_v54  ;;  %v19639_v54 = vld [vmem:[#allocation4 + $0x1858] ss:$72 sps:$4 sm:$0xff]  }
 0x32a   :  { %6242 = vmatprep.subr.bf16.mxu0 %v19752_v55  ;;  %6146 = vmatmul.mubr.bf16.vlgmr.msra.gmra.mrb[12].mxu1 %v22461_v17  ;;  %v19644_v55 = vld [vmem:[#allocation4 + $0x18ec] ss:$72 sps:$4 sm:$0xff]  }
 0x32b   :  { %6157 = vmatpush1.bf16.msra.mxu1 %v19606_v56  ;;  %6188 = vmatprep.mubr.bf16.mxu1 %v22472_v46  ;;  %v19816_v56 = vld [vmem:[#allocation4 + $0xf60] ss:$72 sps:$4 sm:$0xff]  }
 0x32c   :  { %6158 = vmatprep.subr.bf16.mxu1 %v19611_v58  ;;  %6232 = vmatmul.mubr.bf16.vlgmr.msra.gmra.mrb[12].mxu0 %v22459_v14  ;;  %v19824_v58 = vld [vmem:[#allocation4 + $0xff4] ss:$72 sps:$4 sm:$0xff]  }
 0x32d   :  { %6243 = vmatpush1.bf16.msra.mxu0 %v19750_v59  ;;  %6274 = vmatprep.mubr.bf16.mxu0 %v22443_v57  ;;  %v19642_v59 = vld [vmem:[#allocation4 + $0x18e8] ss:$72 sps:$4 sm:$0xff]  }
 0x32e   :  { %6244 = vmatprep.subr.bf16.mxu0 %v19758_v60  ;;  %v19647_v60 = vld [vmem:[#allocation4 + $0x197c] ss:$72 sps:$4 sm:$0xff]  }
 0x32f   :  { %6159 = vmatpush1.bf16.msra.mxu1 %v19609_v61  ;;  %v19822_v61 = vld [vmem:[#allocation4 + $0xff0] ss:$72 sps:$4 sm:$0xff]  }
 0x330   :  { %6160 = vmatprep.subr.bf16.mxu1 %v19614_v0  ;;  %v19830_v0 = vld [vmem:[#allocation4 + $0x1084] ss:$72 sps:$4 sm:$0xff]  }
 0x331   :  { %6245 = vmatpush1.bf16.msra.mxu0 %v19756_v5  ;;  %v19645_v5 = vld [vmem:[#allocation4 + $0x1978] ss:$72 sps:$4 sm:$0xff]  }
 0x332   :  { %6246 = vmatprep.subr.bf16.mxu0 %v19764_v8  ;;  %v19650_v8 = vld [vmem:[#allocation4 + $0x1a0c] ss:$72 sps:$4 sm:$0xff]  }
 0x333   :  { %6161 = vmatpush1.bf16.msra.mxu1 %v19612_v9  ;;  %v19828_v9 = vld [vmem:[#allocation4 + $0x1080] ss:$72 sps:$4 sm:$0xff]  }
 0x334   :  { %6162 = vmatprep.subr.bf16.mxu1 %v19617_v10  ;;  %v19836_v10 = vld [vmem:[#allocation4 + $0x1114] ss:$72 sps:$4 sm:$0xff]  }
 0x335   :  { %6247 = vmatpush1.bf16.msra.mxu0 %v19762_v11  ;;  %v19648_v11 = vld [vmem:[#allocation4 + $0x1a08] ss:$72 sps:$4 sm:$0xff]  }
 0x336   :  { %6248 = vmatprep.subr.bf16.mxu0 %v19770_v12  ;;  %v19653_v12 = vld [vmem:[#allocation4 + $0x1a9c] ss:$72 sps:$4 sm:$0xff]  }
 0x337   :  { %6163 = vmatpush1.bf16.msra.mxu1 %v19615_v13  ;;  %v19834_v13 = vld [vmem:[#allocation4 + $0x1110] ss:$72 sps:$4 sm:$0xff]  }
 0x338   :  { %6164 = vmatprep.subr.bf16.mxu1 %v19620_v15  ;;  %v19842_v15 = vld [vmem:[#allocation4 + $0x11a4] ss:$72 sps:$4 sm:$0xff]  }
 0x339   :  { %6249 = vmatpush1.bf16.msra.mxu0 %v19768_v16  ;;  %v19651_v16 = vld [vmem:[#allocation4 + $0x1a98] ss:$72 sps:$4 sm:$0xff]  }
 0x33a   :  { %6250 = vmatprep.subr.bf16.mxu0 %v19776_v18  ;;  %v19659_v18 = vld [vmem:[#allocation4 + $0x3c] ss:$72 sps:$4 sm:$0xff]  }
 0x33b   :  { %6165 = vmatpush1.bf16.msra.mxu1 %v19618_v19  ;;  %v19840_v19 = vld [vmem:[#allocation4 + $0x11a0] ss:$72 sps:$4 sm:$0xff]  }
 0x33c   :  { %6166 = vmatprep.subr.bf16.mxu1 %v19623_v21  ;;  %v19848_v21 = vld [vmem:[#allocation4 + $0x1234] ss:$72 sps:$4 sm:$0xff]  }
 0x33d   :  { %6251 = vmatpush1.bf16.msra.mxu0 %v19774_v23  ;;  %v19657_v23 = vld [vmem:[#allocation4 + $0x38] ss:$72 sps:$4 sm:$0xff]  }
 0x33e   :  { %6252 = vmatprep.subr.bf16.mxu0 %v19782_v26  ;;  %v19665_v26 = vld [vmem:[#allocation4 + $0xcc] ss:$72 sps:$4 sm:$0xff]  }
 0x33f   :  { %6167 = vmatpush1.bf16.msra.mxu1 %v19621_v27  ;;  %v19846_v27 = vld [vmem:[#allocation4 + $0x1230] ss:$72 sps:$4 sm:$0xff]  }
 0x340   :  { %6168 = vmatprep.subr.bf16.mxu1 %v19626_v28  ;;  %v19854_v28 = vld [vmem:[#allocation4 + $0x12c4] ss:$72 sps:$4 sm:$0xff]  }
 0x341   :  { %6253 = vmatpush1.bf16.msra.mxu0 %v19780_v1  ;;  %v19663_v1 = vld [vmem:[#allocation4 + $0xc8] ss:$72 sps:$4 sm:$0xff]  }
 0x342   :  { %6254 = vmatprep.subr.bf16.mxu0 %v19788_v30  ;;  %v19671_v30 = vld [vmem:[#allocation4 + $0x15c] ss:$72 sps:$4 sm:$0xff]  }
 0x343   :  { %6169 = vmatpush1.bf16.msra.mxu1 %v19624_v2  ;;  %v19852_v2 = vld [vmem:[#allocation4 + $0x12c0] ss:$72 sps:$4 sm:$0xff]  }
 0x344   :  { %6170 = vmatprep.subr.bf16.mxu1 %v19629_v31  ;;  %v19860_v31 = vld [vmem:[#allocation4 + $0x1354] ss:$72 sps:$4 sm:$0xff]  }
 0x345   :  { %6255 = vmatpush1.bf16.msra.mxu0 %v19786_v3  ;;  %v19669_v3 = vld [vmem:[#allocation4 + $0x158] ss:$72 sps:$4 sm:$0xff]  }
 0x346   :  { %6256 = vmatprep.subr.bf16.mxu0 %v19794_v32  ;;  %v19677_v32 = vld [vmem:[#allocation4 + $0x1ec] ss:$72 sps:$4 sm:$0xff]  }
 0x347   :  { %6171 = vmatpush1.bf16.msra.mxu1 %v19627_v33  ;;  %v19858_v33 = vld [vmem:[#allocation4 + $0x1350] ss:$72 sps:$4 sm:$0xff]  }
 0x348   :  { %6172 = vmatprep.subr.bf16.mxu1 %v19632_v34  ;;  %v19866_v34 = vld [vmem:[#allocation4 + $0x13e4] ss:$72 sps:$4 sm:$0xff]  }
 0x349   :  { %6257 = vmatpush1.bf16.msra.mxu0 %v19792_v6  ;;  %v19675_v6 = vld [vmem:[#allocation4 + $0x1e8] ss:$72 sps:$4 sm:$0xff]  }
 0x34a   :  { %6258 = vmatprep.subr.bf16.mxu0 %v19800_v35  ;;  %v19683_v35 = vld [vmem:[#allocation4 + $0x27c] ss:$72 sps:$4 sm:$0xff]  }
 0x34b   :  { %6173 = vmatpush1.bf16.msra.mxu1 %v19630_v36  ;;  %v19864_v36 = vld [vmem:[#allocation4 + $0x13e0] ss:$72 sps:$4 sm:$0xff]  }
 0x34c   :  { %6174 = vmatprep.subr.bf16.mxu1 %v19635_v37  ;;  %v19872_v37 = vld [vmem:[#allocation4 + $0x1474] ss:$72 sps:$4 sm:$0xff]  }
 0x34d   :  { %6259 = vmatpush1.bf16.msra.mxu0 %v19798_v38  ;;  %v19681_v38 = vld [vmem:[#allocation4 + $0x278] ss:$72 sps:$4 sm:$0xff]  }
 0x34e   :  { %6260 = vmatprep.subr.bf16.mxu0 %v19806_v39  ;;  %v19689_v39 = vld [vmem:[#allocation4 + $0x30c] ss:$72 sps:$4 sm:$0xff]  }
 0x34f   :  { %6175 = vmatpush1.bf16.msra.mxu1 %v19633_v40  ;;  %v19870_v40 = vld [vmem:[#allocation4 + $0x1470] ss:$72 sps:$4 sm:$0xff]  }
 0x350   :  { %6176 = vmatprep.subr.bf16.mxu1 %v19638_v41  ;;  %v19878_v41 = vld [vmem:[#allocation4 + $0x1504] ss:$72 sps:$4 sm:$0xff]  }
 0x351   :  { %6261 = vmatpush1.bf16.msra.mxu0 %v19804_v43  ;;  %v19687_v43 = vld [vmem:[#allocation4 + $0x308] ss:$72 sps:$4 sm:$0xff]  }
 0x352   :  { %6262 = vmatprep.subr.bf16.mxu0 %v19812_v44  ;;  %v19695_v44 = vld [vmem:[#allocation4 + $0x39c] ss:$72 sps:$4 sm:$0xff]  }
 0x353   :  { %6177 = vmatpush1.bf16.msra.mxu1 %v19636_v48  ;;  %v19876_v48 = vld [vmem:[#allocation4 + $0x1500] ss:$72 sps:$4 sm:$0xff]  }
 0x354   :  { %6178 = vmatprep.subr.bf16.mxu1 %v19641_v49 }
 0x355   :  { %6263 = vmatpush1.bf16.msra.mxu0 %v19810_v51 }
 0x356   :  { %6264 = vmatprep.subr.bf16.mxu0 %v19818_v53  ;;  %v19884_v53 = vld [vmem:[#allocation4 + $0x1594] ss:$72 sps:$4 sm:$0xff]  }
 0x357   :  { %6179 = vmatpush1.bf16.msra.mxu1 %v19639_v54 }
 0x358   :  { %6180 = vmatprep.subr.bf16.mxu1 %v19644_v55  ;;  %v19693_v55 = vld [vmem:[#allocation4 + $0x398] ss:$72 sps:$4 sm:$0xff]  }
 0x359   :  { %6265 = vmatpush1.bf16.msra.mxu0 %v19816_v56  ;;  %v19701_v56 = vld [vmem:[#allocation4 + $0x42c] ss:$72 sps:$4 sm:$0xff]  }
 0x35a   :  { %6266 = vmatprep.subr.bf16.mxu0 %v19824_v58 }
 0x35b   :  { %6181 = vmatpush1.bf16.msra.mxu1 %v19642_v59  ;;  %v19882_v59 = vld [vmem:[#allocation4 + $0x1590] ss:$72 sps:$4 sm:$0xff]  }
 0x35c   :  { %6182 = vmatprep.subr.bf16.mxu1 %v19647_v60  ;;  %v19890_v60 = vld [vmem:[#allocation4 + $0x1624] ss:$72 sps:$4 sm:$0xff]  }
 0x35d   :  { %6267 = vmatpush1.bf16.msra.mxu0 %v19822_v61  ;;  %v19699_v61 = vld [vmem:[#allocation4 + $0x428] ss:$72 sps:$4 sm:$0xff]  }
 0x35e   :  { %6268 = vmatprep.subr.bf16.mxu0 %v19830_v0  ;;  %v19707_v0 = vld [vmem:[#allocation4 + $0x4bc] ss:$72 sps:$4 sm:$0xff]  }
 0x35f   :  { %6183 = vmatpush1.bf16.msra.mxu1 %v19645_v5  ;;  %v19888_v5 = vld [vmem:[#allocation4 + $0x1620] ss:$72 sps:$4 sm:$0xff]  }
 0x360   :  { %6184 = vmatprep.subr.bf16.mxu1 %v19650_v8  ;;  %v19896_v8 = vld [vmem:[#allocation4 + $0x16b4] ss:$72 sps:$4 sm:$0xff]  }
 0x361   :  { %6269 = vmatpush1.bf16.msra.mxu0 %v19828_v9  ;;  %v19705_v9 = vld [vmem:[#allocation4 + $0x4b8] ss:$72 sps:$4 sm:$0xff]  }
 0x362   :  { %6270 = vmatprep.subr.bf16.mxu0 %v19836_v10  ;;  %v19713_v10 = vld [vmem:[#allocation4 + $0x54c] ss:$72 sps:$4 sm:$0xff]  }
 0x363   :  { %6185 = vmatpush1.bf16.msra.mxu1 %v19648_v11  ;;  %v19894_v11 = vld [vmem:[#allocation4 + $0x16b0] ss:$72 sps:$4 sm:$0xff]  }
 0x364   :  { %6186 = vmatprep.subr.bf16.mxu1 %v19653_v12  ;;  %v19902_v12 = vld [vmem:[#allocation4 + $0x1744] ss:$72 sps:$4 sm:$0xff]  }
 0x365   :  { %6271 = vmatpush1.bf16.msra.mxu0 %v19834_v13  ;;  %v19711_v13 = vld [vmem:[#allocation4 + $0x548] ss:$72 sps:$4 sm:$0xff]  }
 0x366   :  { %6272 = vmatprep.subr.bf16.mxu0 %v19842_v15  ;;  %v19719_v15 = vld [vmem:[#allocation4 + $0x5dc] ss:$72 sps:$4 sm:$0xff]  }
 0x367   :  { %6187 = vmatpush1.bf16.msra.mxu1 %v19651_v16  ;;  %v19900_v16 = vld [vmem:[#allocation4 + $0x1740] ss:$72 sps:$4 sm:$0xff]  }
 0x368   :  { %6328 = vmatprep.subr.bf16.mxu1 %v19659_v18  ;;  %v19908_v18 = vld [vmem:[#allocation4 + $0x17d4] ss:$72 sps:$4 sm:$0xff]  }
 0x369   :  { %6273 = vmatpush1.bf16.msra.mxu0 %v19840_v19  ;;  %v19717_v19 = vld [vmem:[#allocation4 + $0x5d8] ss:$72 sps:$4 sm:$0xff]  }
 0x36a   :  { %6189 = vmatmul.mubr.bf16.vlgmr.msra.gmra.mrb[12].mxu1 %v22481_v25  ;;  %6285 = vmatprep.subr.bf16.mxu0 %v19848_v21  ;;  %v19725_v21 = vld [vmem:[#allocation4 + $0x66c] ss:$72 sps:$4 sm:$0xff]  }
 0x36b   :  { %6329 = vmatpush1.bf16.msra.mxu1 %v19657_v23  ;;  %6360 = vmatprep.mubr.bf16.mxu1 %v22435_v52  ;;  %v19906_v23 = vld [vmem:[#allocation4 + $0x17d0] ss:$72 sps:$4 sm:$0xff]  }
 0x36c   :  { %6330 = vmatprep.subr.bf16.mxu1 %v19665_v26  ;;  %6275 = vmatmul.mubr.bf16.vlgmr.msra.gmra.mrb[12].mxu0 %v22461_v17  ;;  %v19914_v26 = vld [vmem:[#allocation4 + $0x1864] ss:$72 sps:$4 sm:$0xff]  }
 0x36d   :  { %6286 = vmatpush1.bf16.msra.mxu0 %v19846_v27  ;;  %6317 = vmatprep.mubr.bf16.mxu0 %v22472_v46  ;;  %v19723_v27 = vld [vmem:[#allocation4 + $0x668] ss:$72 sps:$4 sm:$0xff]  }
 0x36e   :  { %6287 = vmatprep.subr.bf16.mxu0 %v19854_v28  ;;  %v19731_v28 = vld [vmem:[#allocation4 + $0x6fc] ss:$72 sps:$4 sm:$0xff]  }
 0x36f   :  { %6331 = vmatpush1.bf16.msra.mxu1 %v19663_v1  ;;  %v19912_v1 = vld [vmem:[#allocation4 + $0x1860] ss:$72 sps:$4 sm:$0xff]  }
 0x370   :  { %6332 = vmatprep.subr.bf16.mxu1 %v19671_v30  ;;  %v19920_v30 = vld [vmem:[#allocation4 + $0x18f4] ss:$72 sps:$4 sm:$0xff]  }
 0x371   :  { %6288 = vmatpush1.bf16.msra.mxu0 %v19852_v2  ;;  %v19729_v2 = vld [vmem:[#allocation4 + $0x6f8] ss:$72 sps:$4 sm:$0xff]  }
 0x372   :  { %6289 = vmatprep.subr.bf16.mxu0 %v19860_v31  ;;  %v19737_v31 = vld [vmem:[#allocation4 + $0x78c] ss:$72 sps:$4 sm:$0xff]  }
 0x373   :  { %6333 = vmatpush1.bf16.msra.mxu1 %v19669_v3  ;;  %v19918_v3 = vld [vmem:[#allocation4 + $0x18f0] ss:$72 sps:$4 sm:$0xff]  }
 0x374   :  { %6334 = vmatprep.subr.bf16.mxu1 %v19677_v32  ;;  %v19926_v32 = vld [vmem:[#allocation4 + $0x1984] ss:$72 sps:$4 sm:$0xff]  }
 0x375   :  { %6290 = vmatpush1.bf16.msra.mxu0 %v19858_v33  ;;  %v19735_v33 = vld [vmem:[#allocation4 + $0x788] ss:$72 sps:$4 sm:$0xff]  }
 0x376   :  { %6291 = vmatprep.subr.bf16.mxu0 %v19866_v34  ;;  %v19743_v34 = vld [vmem:[#allocation4 + $0x81c] ss:$72 sps:$4 sm:$0xff]  }
 0x377   :  { %6335 = vmatpush1.bf16.msra.mxu1 %v19675_v6  ;;  %v19924_v6 = vld [vmem:[#allocation4 + $0x1980] ss:$72 sps:$4 sm:$0xff]  }
 0x378   :  { %6336 = vmatprep.subr.bf16.mxu1 %v19683_v35  ;;  %v19932_v35 = vld [vmem:[#allocation4 + $0x1a14] ss:$72 sps:$4 sm:$0xff]  }
 0x379   :  { %6292 = vmatpush1.bf16.msra.mxu0 %v19864_v36  ;;  %v19741_v36 = vld [vmem:[#allocation4 + $0x818] ss:$72 sps:$4 sm:$0xff]  }
 0x37a   :  { %6293 = vmatprep.subr.bf16.mxu0 %v19872_v37  ;;  %v19749_v37 = vld [vmem:[#allocation4 + $0x8ac] ss:$72 sps:$4 sm:$0xff]  }
 0x37b   :  { %6337 = vmatpush1.bf16.msra.mxu1 %v19681_v38  ;;  %v19930_v38 = vld [vmem:[#allocation4 + $0x1a10] ss:$72 sps:$4 sm:$0xff]  }
 0x37c   :  { %6338 = vmatprep.subr.bf16.mxu1 %v19689_v39  ;;  %v19938_v39 = vld [vmem:[#allocation4 + $0x1aa4] ss:$72 sps:$4 sm:$0xff]  }
 0x37d   :  { %v22555_v49 = vpop.f32.mrb[8].mxu1  ;;  %6294 = vmatpush1.bf16.msra.mxu0 %v19870_v40  ;;  %v19747_v40 = vld [vmem:[#allocation4 + $0x8a8] ss:$72 sps:$4 sm:$0xff]  }
 0x37e   :  { %v22557_v51 = vpop.f32.mrb[9].mxu1  ;;  %6295 = vmatprep.subr.bf16.mxu0 %v19878_v41  ;;  %v19755_v41 = vld [vmem:[#allocation4 + $0x93c] ss:$72 sps:$4 sm:$0xff]  }
 0x37f   :  { %v22559_v54 = vpop.f32.mrb[10].mxu1  ;;  %6339 = vmatpush1.bf16.msra.mxu1 %v19687_v43  ;;  %v19936_v43 = vld [vmem:[#allocation4 + $0x1aa0] ss:$72 sps:$4 sm:$0xff]  }
 0x380   :  { %v22561_v58 = vpop.f32.mrb[11].mxu1  ;;  %6340 = vmatprep.subr.bf16.mxu1 %v19695_v44  ;;  %v19753_v44 = vld [vmem:[#allocation4 + $0x938] ss:$72 sps:$4 sm:$0xff]  }
 0x381   :  { %6296 = vmatpush1.bf16.msra.mxu0 %v19876_v48  ;;  %v19761_v48 = vld [vmem:[#allocation4 + $0x9cc] ss:$72 sps:$4 sm:$0xff]  }
 0x382   :  { %6297 = vmatprep.subr.bf16.mxu0 %v19884_v53  ;;  %v19759_v53 = vld [vmem:[#allocation4 + $0x9c8] ss:$72 sps:$4 sm:$0xff]  }
 0x383   :  { %6341 = vmatpush1.bf16.msra.mxu1 %v19693_v55  ;;  %v19767_v55 = vld [vmem:[#allocation4 + $0xa5c] ss:$72 sps:$4 sm:$0xff]  }
 0x384   :  { %6342 = vmatprep.subr.bf16.mxu1 %v19701_v56  ;;  %v19765_v56 = vld [vmem:[#allocation4 + $0xa58] ss:$72 sps:$4 sm:$0xff]  }
 0x385   :  { %6298 = vmatpush1.bf16.msra.mxu0 %v19882_v59  ;;  %v19773_v59 = vld [vmem:[#allocation4 + $0xaec] ss:$72 sps:$4 sm:$0xff]  }
 0x386   :  { %6299 = vmatprep.subr.bf16.mxu0 %v19890_v60  ;;  %v19771_v60 = vld [vmem:[#allocation4 + $0xae8] ss:$72 sps:$4 sm:$0xff]  }
 0x387   :  { %6343 = vmatpush1.bf16.msra.mxu1 %v19699_v61  ;;  %v19779_v61 = vld [vmem:[#allocation4 + $0xb7c] ss:$72 sps:$4 sm:$0xff]  }
 0x388   :  { %6344 = vmatprep.subr.bf16.mxu1 %v19707_v0  ;;  %v19777_v0 = vld [vmem:[#allocation4 + $0xb78] ss:$72 sps:$4 sm:$0xff]  }
 0x389   :  { %6300 = vmatpush1.bf16.msra.mxu0 %v19888_v5  ;;  %v19785_v5 = vld [vmem:[#allocation4 + $0xc0c] ss:$72 sps:$4 sm:$0xff]  }
 0x38a   :  { %6301 = vmatprep.subr.bf16.mxu0 %v19896_v8  ;;  %v19783_v8 = vld [vmem:[#allocation4 + $0xc08] ss:$72 sps:$4 sm:$0xff]  }
 0x38b   :  { %6345 = vmatpush1.bf16.msra.mxu1 %v19705_v9  ;;  %v19791_v9 = vld [vmem:[#allocation4 + $0xc9c] ss:$72 sps:$4 sm:$0xff]  }
 0x38c   :  { %6346 = vmatprep.subr.bf16.mxu1 %v19713_v10 }
 0x38d   :  { %6302 = vmatpush1.bf16.msra.mxu0 %v19894_v11  ;;  %v19789_v11 = vld [vmem:[#allocation4 + $0xc98] ss:$72 sps:$4 sm:$0xff]  }
 0x38e   :  { %6303 = vmatprep.subr.bf16.mxu0 %v19902_v12 }
 0x38f   :  { %6347 = vmatpush1.bf16.msra.mxu1 %v19711_v13 }
 0x390   :  { %6348 = vmatprep.subr.bf16.mxu1 %v19719_v15 }
 0x391   :  { %6304 = vmatpush1.bf16.msra.mxu0 %v19900_v16  ;;  %v19795_v16 = vld [vmem:[#allocation4 + $0xd28] ss:$72 sps:$4 sm:$0xff]  }
 0x392   :  { %6305 = vmatprep.subr.bf16.mxu0 %v19908_v18  ;;  %v19803_v18 = vld [vmem:[#allocation4 + $0xdbc] ss:$72 sps:$4 sm:$0xff]  }
 0x393   :  { %6349 = vmatpush1.bf16.msra.mxu1 %v19717_v19  ;;  %v19801_v19 = vld [vmem:[#allocation4 + $0xdb8] ss:$72 sps:$4 sm:$0xff]  }
 0x394   :  { %6350 = vmatprep.subr.bf16.mxu1 %v19725_v21  ;;  %v19809_v21 = vld [vmem:[#allocation4 + $0xe4c] ss:$72 sps:$4 sm:$0xff]  }
 0x395   :  { %6306 = vmatpush1.bf16.msra.mxu0 %v19906_v23  ;;  %v19944_v23 = vld [vmem:[#allocation4 + $0x44] ss:$72 sps:$4 sm:$0xff]  }
 0x396   :  { %6307 = vmatprep.subr.bf16.mxu0 %v19914_v26  ;;  %v19807_v26 = vld [vmem:[#allocation4 + $0xe48] ss:$72 sps:$4 sm:$0xff]  }
 0x397   :  { %6351 = vmatpush1.bf16.msra.mxu1 %v19723_v27  ;;  %v19942_v27 = vld [vmem:[#allocation4 + $0x40] ss:$72 sps:$4 sm:$0xff]  }
 0x398   :  { %6352 = vmatprep.subr.bf16.mxu1 %v19731_v28  ;;  %v19815_v28 = vld [vmem:[#allocation4 + $0xedc] ss:$72 sps:$4 sm:$0xff]  }
 0x399   :  { %6308 = vmatpush1.bf16.msra.mxu0 %v19912_v1  ;;  %v19813_v1 = vld [vmem:[#allocation4 + $0xed8] ss:$72 sps:$4 sm:$0xff]  }
 0x39a   :  { %6309 = vmatprep.subr.bf16.mxu0 %v19920_v30  ;;  %v19947_v30 = vld [vmem:[#allocation4 + $0xd4] ss:$72 sps:$4 sm:$0xff]  }
 0x39b   :  { %6353 = vmatpush1.bf16.msra.mxu1 %v19729_v2  ;;  %v19821_v2 = vld [vmem:[#allocation4 + $0xf6c] ss:$72 sps:$4 sm:$0xff]  }
 0x39c   :  { %6354 = vmatprep.subr.bf16.mxu1 %v19737_v31  ;;  %v19945_v31 = vld [vmem:[#allocation4 + $0xd0] ss:$72 sps:$4 sm:$0xff]  }
 0x39d   :  { %6310 = vmatpush1.bf16.msra.mxu0 %v19918_v3  ;;  %v19948_v3 = vld [vmem:[#allocation4 + $0x160] ss:$72 sps:$4 sm:$0xff]  }
 0x39e   :  { %6311 = vmatprep.subr.bf16.mxu0 %v19926_v32  ;;  %v19950_v32 = vld [vmem:[#allocation4 + $0x164] ss:$72 sps:$4 sm:$0xff]  }
 0x39f   :  { %6355 = vmatpush1.bf16.msra.mxu1 %v19735_v33  ;;  %v19819_v33 = vld [vmem:[#allocation4 + $0xf68] ss:$72 sps:$4 sm:$0xff]  }
 0x3a0   :  { %6356 = vmatprep.subr.bf16.mxu1 %v19743_v34  ;;  %v19827_v34 = vld [vmem:[#allocation4 + $0xffc] ss:$72 sps:$4 sm:$0xff]  }
 0x3a1   :  { %6312 = vmatpush1.bf16.msra.mxu0 %v19924_v6  ;;  %v19953_v6 = vld [vmem:[#allocation4 + $0x1f4] ss:$72 sps:$4 sm:$0xff]  }
 0x3a2   :  { %6313 = vmatprep.subr.bf16.mxu0 %v19932_v35  ;;  %v19951_v35 = vld [vmem:[#allocation4 + $0x1f0] ss:$72 sps:$4 sm:$0xff]  }
 0x3a3   :  { %6357 = vmatpush1.bf16.msra.mxu1 %v19741_v36  ;;  %v19825_v36 = vld [vmem:[#allocation4 + $0xff8] ss:$72 sps:$4 sm:$0xff]  }
 0x3a4   :  { %6358 = vmatprep.subr.bf16.mxu1 %v19749_v37  ;;  %v19956_v37 = vld [vmem:[#allocation4 + $0x284] ss:$72 sps:$4 sm:$0xff]  }
 0x3a5   :  { %6314 = vmatpush1.bf16.msra.mxu0 %v19930_v38  ;;  %v19833_v38 = vld [vmem:[#allocation4 + $0x108c] ss:$72 sps:$4 sm:$0xff]  }
 0x3a6   :  { %6315 = vmatprep.subr.bf16.mxu0 %v19938_v39  ;;  %v19954_v39 = vld [vmem:[#allocation4 + $0x280] ss:$72 sps:$4 sm:$0xff]  }
 0x3a7   :  { %6359 = vmatpush1.bf16.msra.mxu1 %v19747_v40  ;;  %v19959_v40 = vld [vmem:[#allocation4 + $0x314] ss:$72 sps:$4 sm:$0xff]  }
 0x3a8   :  { %6371 = vmatprep.subr.bf16.mxu1 %v19755_v41  ;;  %v19831_v41 = vld [vmem:[#allocation4 + $0x1088] ss:$72 sps:$4 sm:$0xff]  }
 0x3a9   :  { %6316 = vmatpush1.bf16.msra.mxu0 %v19936_v43  ;;  %v19839_v43 = vld [vmem:[#allocation4 + $0x111c] ss:$72 sps:$4 sm:$0xff]  }
 0x3aa   :  { %6361 = vmatmul.mubr.bf16.vlgmr.msra.gmra.mrb[16].mxu1 %v22459_v14  ;;  %6457 = vmatprep.subr.bf16.mxu0 %v19944_v23  ;;  %v19861_v23 = vld [vmem:[#allocation4 + $0x1358] ss:$72 sps:$4 sm:$0xff]  }
 0x3ab   :  { %6372 = vmatpush1.bf16.msra.mxu1 %v19753_v44  ;;  %6403 = vmatprep.mubr.bf16.mxu1 %v22443_v57  ;;  %v19957_v44 = vld [vmem:[#allocation4 + $0x310] ss:$72 sps:$4 sm:$0xff]  }
 0x3ac   :  { %6373 = vmatprep.subr.bf16.mxu1 %v19761_v48  ;;  %6318 = vmatmul.mubr.bf16.vlgmr.msra.gmra.mrb[12].mxu0 %v22481_v25  ;;  %v19962_v48 = vld [vmem:[#allocation4 + $0x3a4] ss:$72 sps:$4 sm:$0xff]  }
 0x3ad   :  { %6489 = vmatprep.mubr.bf16.mxu0 %v22435_v52  ;;  %v19797_v52 = vld [vmem:[#allocation4 + $0xd2c] ss:$72 sps:$4 sm:$0xff]   ;;  %6458 = vmatpush1.bf16.msra.mxu0 %v19942_v27  ;;  %v19972_v27 = vld [vmem:[#allocation4 + $0x5e0] ss:$72 sps:$4 sm:$0xff]  }
 0x3ae   :  { %6459 = vmatprep.subr.bf16.mxu0 %v19947_v30  ;;  %v19875_v30 = vld [vmem:[#allocation4 + $0x147c] ss:$72 sps:$4 sm:$0xff]  }
 0x3af   :  { %6374 = vmatpush1.bf16.msra.mxu1 %v19759_v53  ;;  %v19837_v53 = vld [vmem:[#allocation4 + $0x1118] ss:$72 sps:$4 sm:$0xff]  }
 0x3b0   :  { %6375 = vmatprep.subr.bf16.mxu1 %v19767_v55  ;;  %v19845_v55 = vld [vmem:[#allocation4 + $0x11ac] ss:$72 sps:$4 sm:$0xff]  }
 0x3b1   :  { %6460 = vmatpush1.bf16.msra.mxu0 %v19945_v31  ;;  %v19873_v31 = vld [vmem:[#allocation4 + $0x1478] ss:$72 sps:$4 sm:$0xff]  }
 0x3b2   :  { %6461 = vmatprep.subr.bf16.mxu0 %v19950_v32  ;;  %v19881_v32 = vld [vmem:[#allocation4 + $0x150c] ss:$72 sps:$4 sm:$0xff]  }
 0x3b3   :  { %6376 = vmatpush1.bf16.msra.mxu1 %v19765_v56  ;;  %v19960_v56 = vld [vmem:[#allocation4 + $0x3a0] ss:$72 sps:$4 sm:$0xff]  }
 0x3b4   :  { %6377 = vmatprep.subr.bf16.mxu1 %v19773_v59  ;;  %v19965_v59 = vld [vmem:[#allocation4 + $0x434] ss:$72 sps:$4 sm:$0xff]  }
 0x3b5   :  { %6462 = vmatpush1.bf16.msra.mxu0 %v19948_v3  ;;  %v19980_v3 = vld [vmem:[#allocation4 + $0x704] ss:$72 sps:$4 sm:$0xff]  }
 0x3b6   :  { %6463 = vmatprep.subr.bf16.mxu0 %v19953_v6  ;;  %v19879_v6 = vld [vmem:[#allocation4 + $0x1508] ss:$72 sps:$4 sm:$0xff]  }
 0x3b7   :  { %6378 = vmatpush1.bf16.msra.mxu1 %v19771_v60  ;;  %v19843_v60 = vld [vmem:[#allocation4 + $0x11a8] ss:$72 sps:$4 sm:$0xff]  }
 0x3b8   :  { %6379 = vmatprep.subr.bf16.mxu1 %v19779_v61  ;;  %v19851_v61 = vld [vmem:[#allocation4 + $0x123c] ss:$72 sps:$4 sm:$0xff]  }
 0x3b9   :  { %6464 = vmatpush1.bf16.msra.mxu0 %v19951_v35  ;;  %v19887_v35 = vld [vmem:[#allocation4 + $0x159c] ss:$72 sps:$4 sm:$0xff]  }
 0x3ba   :  { %6465 = vmatprep.subr.bf16.mxu0 %v19956_v37  ;;  %v19986_v37 = vld [vmem:[#allocation4 + $0x824] ss:$72 sps:$4 sm:$0xff]  }
 0x3bb   :  { %6380 = vmatpush1.bf16.msra.mxu1 %v19777_v0  ;;  %v19963_v0 = vld [vmem:[#allocation4 + $0x430] ss:$72 sps:$4 sm:$0xff]  }
 0x3bc   :  { %6381 = vmatprep.subr.bf16.mxu1 %v19785_v5  ;;  %v19968_v5 = vld [vmem:[#allocation4 + $0x4c4] ss:$72 sps:$4 sm:$0xff]  }
 0x3bd   :  { %6466 = vmatpush1.bf16.msra.mxu0 %v19954_v39  ;;  %v19893_v39 = vld [vmem:[#allocation4 + $0x162c] ss:$72 sps:$4 sm:$0xff]  }
 0x3be   :  { %v22567_v10 = vpop.f32.mrb[8].mxu0  ;;  %6467 = vmatprep.subr.bf16.mxu0 %v19959_v40  ;;  %v19984_v40 = vld [vmem:[#allocation4 + $0x820] ss:$72 sps:$4 sm:$0xff]  }
 0x3bf   :  { %v22569_v12 = vpop.f32.mrb[9].mxu0  ;;  %6382 = vmatpush1.bf16.msra.mxu1 %v19783_v8  ;;  %v19849_v8 = vld [vmem:[#allocation4 + $0x1238] ss:$72 sps:$4 sm:$0xff]  }
 0x3c0   :  { %v22571_v13 = vpop.f32.mrb[10].mxu0  ;;  %6383 = vmatprep.subr.bf16.mxu1 %v19791_v9  ;;  %v19857_v9 = vld [vmem:[#allocation4 + $0x12cc] ss:$72 sps:$4 sm:$0xff]  }
 0x3c1   :  { %v22573_v15 = vpop.f32.mrb[11].mxu0  ;;  %6468 = vmatpush1.bf16.msra.mxu0 %v19957_v44  ;;  %v19899_v44 = vld [vmem:[#allocation4 + $0x16bc] ss:$72 sps:$4 sm:$0xff]  }
 0x3c2   :  { %6469 = vmatprep.subr.bf16.mxu0 %v19962_v48  ;;  %v19987_v48 = vld [vmem:[#allocation4 + $0x8b0] ss:$72 sps:$4 sm:$0xff]  }
 0x3c3   :  { %6384 = vmatpush1.bf16.msra.mxu1 %v19789_v11  ;;  %v19966_v11 = vld [vmem:[#allocation4 + $0x4c0] ss:$72 sps:$4 sm:$0xff]  }
 0x3c4   :  { %6385 = vmatprep.subr.bf16.mxu1 %v19797_v52  ;;  %v19971_v52 = vld [vmem:[#allocation4 + $0x554] ss:$72 sps:$4 sm:$0xff]  }
 0x3c5   :  { %6470 = vmatpush1.bf16.msra.mxu0 %v19960_v56  ;;  %v19905_v56 = vld [vmem:[#allocation4 + $0x174c] ss:$72 sps:$4 sm:$0xff]  }
 0x3c6   :  { %6471 = vmatprep.subr.bf16.mxu0 %v19965_v59  ;;  %v19990_v59 = vld [vmem:[#allocation4 + $0x940] ss:$72 sps:$4 sm:$0xff]  }
 0x3c7   :  { %6386 = vmatpush1.bf16.msra.mxu1 %v19795_v16  ;;  %v19855_v16 = vld [vmem:[#allocation4 + $0x12c8] ss:$72 sps:$4 sm:$0xff]  }
 0x3c8   :  { %6387 = vmatprep.subr.bf16.mxu1 %v19803_v18  ;;  %v19863_v18 = vld [vmem:[#allocation4 + $0x135c] ss:$72 sps:$4 sm:$0xff]  }
 0x3c9   :  { %6472 = vmatpush1.bf16.msra.mxu0 %v19963_v0  ;;  %v19911_v0 = vld [vmem:[#allocation4 + $0x17dc] ss:$72 sps:$4 sm:$0xff]  }
 0x3ca   :  { %6473 = vmatprep.subr.bf16.mxu0 %v19968_v5  ;;  %v19993_v5 = vld [vmem:[#allocation4 + $0x9d0] ss:$72 sps:$4 sm:$0xff]  }
 0x3cb   :  { %6388 = vmatpush1.bf16.msra.mxu1 %v19801_v19  ;;  %v19969_v19 = vld [vmem:[#allocation4 + $0x550] ss:$72 sps:$4 sm:$0xff]  }
 0x3cc   :  { %6389 = vmatprep.subr.bf16.mxu1 %v19809_v21  ;;  %v19974_v21 = vld [vmem:[#allocation4 + $0x5e4] ss:$72 sps:$4 sm:$0xff]  }
 0x3cd   :  { %6474 = vmatpush1.bf16.msra.mxu0 %v19966_v11  ;;  %v19917_v11 = vld [vmem:[#allocation4 + $0x186c] ss:$72 sps:$4 sm:$0xff]  }
 0x3ce   :  { %6475 = vmatprep.subr.bf16.mxu0 %v19971_v52  ;;  %v19996_v52 = vld [vmem:[#allocation4 + $0xa60] ss:$72 sps:$4 sm:$0xff]  }
 0x3cf   :  { %6390 = vmatpush1.bf16.msra.mxu1 %v19807_v26  ;;  %v19869_v26 = vld [vmem:[#allocation4 + $0x13ec] ss:$72 sps:$4 sm:$0xff]  }
 0x3d0   :  { %6391 = vmatprep.subr.bf16.mxu1 %v19815_v28  ;;  %v19867_v28 = vld [vmem:[#allocation4 + $0x13e8] ss:$72 sps:$4 sm:$0xff]  }
 0x3d1   :  { %6476 = vmatpush1.bf16.msra.mxu0 %v19969_v19  ;;  %v19923_v19 = vld [vmem:[#allocation4 + $0x18fc] ss:$72 sps:$4 sm:$0xff]  }
 0x3d2   :  { %6477 = vmatprep.subr.bf16.mxu0 %v19974_v21  ;;  %v19999_v21 = vld [vmem:[#allocation4 + $0xaf0] ss:$72 sps:$4 sm:$0xff]  }
 0x3d3   :  { %6392 = vmatpush1.bf16.msra.mxu1 %v19813_v1  ;;  %v19977_v1 = vld [vmem:[#allocation4 + $0x674] ss:$72 sps:$4 sm:$0xff]  }
 0x3d4   :  { %6393 = vmatprep.subr.bf16.mxu1 %v19821_v2  ;;  %v19975_v2 = vld [vmem:[#allocation4 + $0x670] ss:$72 sps:$4 sm:$0xff]  }
 0x3d5   :  { %6478 = vmatpush1.bf16.msra.mxu0 %v19972_v27  ;;  %v20002_v27 = vld [vmem:[#allocation4 + $0xb80] ss:$72 sps:$4 sm:$0xff]  }
 0x3d6   :  { %6479 = vmatprep.subr.bf16.mxu0 %v19977_v1  ;;  %v19935_v1 = vld [vmem:[#allocation4 + $0x1a1c] ss:$72 sps:$4 sm:$0xff]  }
 0x3d7   :  { %6394 = vmatpush1.bf16.msra.mxu1 %v19819_v33  ;;  %v19978_v33 = vld [vmem:[#allocation4 + $0x700] ss:$72 sps:$4 sm:$0xff]  }
 0x3d8   :  { %6395 = vmatprep.subr.bf16.mxu1 %v19827_v34  ;;  %v19983_v34 = vld [vmem:[#allocation4 + $0x794] ss:$72 sps:$4 sm:$0xff]  }
 0x3d9   :  { %6480 = vmatpush1.bf16.msra.mxu0 %v19975_v2  ;;  %v20010_v2 = vld [vmem:[#allocation4 + $0xca4] ss:$72 sps:$4 sm:$0xff]  }
 0x3da   :  { %6481 = vmatprep.subr.bf16.mxu0 %v19980_v3  ;;  %v19941_v3 = vld [vmem:[#allocation4 + $0x1aac] ss:$72 sps:$4 sm:$0xff]  }
 0x3db   :  { %6396 = vmatpush1.bf16.msra.mxu1 %v19825_v36  ;;  %v19981_v36 = vld [vmem:[#allocation4 + $0x790] ss:$72 sps:$4 sm:$0xff]  }
 0x3dc   :  { %6397 = vmatprep.subr.bf16.mxu1 %v19833_v38  ;;  %v19885_v38 = vld [vmem:[#allocation4 + $0x1598] ss:$72 sps:$4 sm:$0xff]  }
 0x3dd   :  { %6482 = vmatpush1.bf16.msra.mxu0 %v19978_v33  ;;  %v20013_v33 = vld [vmem:[#allocation4 + $0xd34] ss:$72 sps:$4 sm:$0xff]  }
 0x3de   :  { %6483 = vmatprep.subr.bf16.mxu0 %v19983_v34  ;;  %v19939_v34 = vld [vmem:[#allocation4 + $0x1aa8] ss:$72 sps:$4 sm:$0xff]  }
 0x3df   :  { %6398 = vmatpush1.bf16.msra.mxu1 %v19831_v41  ;;  %v19989_v41 = vld [vmem:[#allocation4 + $0x8b4] ss:$72 sps:$4 sm:$0xff]  }
 0x3e0   :  { %6399 = vmatprep.subr.bf16.mxu1 %v19839_v43  ;;  %v19891_v43 = vld [vmem:[#allocation4 + $0x1628] ss:$72 sps:$4 sm:$0xff]  }
 0x3e1   :  { %6484 = vmatpush1.bf16.msra.mxu0 %v19981_v36  ;;  %v20014_v36 = vld [vmem:[#allocation4 + $0xdc0] ss:$72 sps:$4 sm:$0xff]  }
 0x3e2   :  { %6485 = vmatprep.subr.bf16.mxu0 %v19986_v37  ;;  %v20019_v37 = vld [vmem:[#allocation4 + $0xe54] ss:$72 sps:$4 sm:$0xff]  }
 0x3e3   :  { %6400 = vmatpush1.bf16.msra.mxu1 %v19837_v53  ;;  %v19992_v53 = vld [vmem:[#allocation4 + $0x944] ss:$72 sps:$4 sm:$0xff]  }
 0x3e4   :  { %6401 = vmatprep.subr.bf16.mxu1 %v19845_v55  ;;  %v19897_v55 = vld [vmem:[#allocation4 + $0x16b8] ss:$72 sps:$4 sm:$0xff]  }
 0x3e5   :  { %6486 = vmatpush1.bf16.msra.mxu0 %v19984_v40  ;;  %v20020_v40 = vld [vmem:[#allocation4 + $0xee0] ss:$72 sps:$4 sm:$0xff]  }
 0x3e6   :  { %6487 = vmatprep.subr.bf16.mxu0 %v19989_v41  ;;  %v20025_v41 = vld [vmem:[#allocation4 + $0xf74] ss:$72 sps:$4 sm:$0xff]  }
 0x3e7   :  { %6402 = vmatpush1.bf16.msra.mxu1 %v19843_v60  ;;  %v19995_v60 = vld [vmem:[#allocation4 + $0x9d4] ss:$72 sps:$4 sm:$0xff]  }
 0x3e8   :  { %6414 = vmatprep.subr.bf16.mxu1 %v19851_v61  ;;  %v19903_v61 = vld [vmem:[#allocation4 + $0x1748] ss:$72 sps:$4 sm:$0xff]  }
 0x3e9   :  { %6488 = vmatpush1.bf16.msra.mxu0 %v19987_v48 }
 0x3ea   :  { %6404 = vmatmul.mubr.bf16.vlgmr.msra.gmra.mrb[16].mxu1 %v22461_v17  ;;  %6500 = vmatprep.subr.bf16.mxu0 %v19992_v53 }
 0x3eb   :  { %6415 = vmatpush1.bf16.msra.mxu1 %v19849_v8  ;;  %6446 = vmatprep.mubr.bf16.mxu1 %v22472_v46  ;;  %v19998_v8 = vld [vmem:[#allocation4 + $0xa64] ss:$72 sps:$4 sm:$0xff]  }
 0x3ec   :  { %6416 = vmatprep.subr.bf16.mxu1 %v19857_v9  ;;  %6490 = vmatmul.mubr.bf16.vlgmr.msra.gmra.mrb[16].mxu0 %v22459_v14  ;;  %v19909_v9 = vld [vmem:[#allocation4 + $0x17d8] ss:$72 sps:$4 sm:$0xff]  }
 0x3ed   :  { %6501 = vmatpush1.bf16.msra.mxu0 %v19990_v59  ;;  %6532 = vmatprep.mubr.bf16.mxu0 %v22443_v57  ;;  %v19921_v14 = vld [vmem:[#allocation4 + $0x18f8] ss:$72 sps:$4 sm:$0xff]   ;;  %v20007_v57 = vld [vmem:[#allocation4 + $0xc14] ss:$72 sps:$4 sm:$0xff]   ;;  %v20058_v59 = vld [vmem:[#allocation4 + $0x15a4] ss:$72 sps:$4 sm:$0xff]  }
 0x3ee   :  { %6502 = vmatprep.subr.bf16.mxu0 %v19995_v60  ;;  %v20061_v60 = vld [vmem:[#allocation4 + $0x1634] ss:$72 sps:$4 sm:$0xff]  }
 0x3ef   :  { %6417 = vmatpush1.bf16.msra.mxu1 %v19855_v16  ;;  %v20001_v16 = vld [vmem:[#allocation4 + $0xaf4] ss:$72 sps:$4 sm:$0xff]  }
 0x3f0   :  { %6418 = vmatprep.subr.bf16.mxu1 %v19863_v18  ;;  %v19915_v18 = vld [vmem:[#allocation4 + $0x1868] ss:$72 sps:$4 sm:$0xff]  }
 0x3f1   :  { %6503 = vmatpush1.bf16.msra.mxu0 %v19993_v5  ;;  %v20067_v5 = vld [vmem:[#allocation4 + $0x1754] ss:$72 sps:$4 sm:$0xff]  }
 0x3f2   :  { %6504 = vmatprep.subr.bf16.mxu0 %v19998_v8  ;;  %v20070_v8 = vld [vmem:[#allocation4 + $0x17e4] ss:$72 sps:$4 sm:$0xff]  }
 0x3f3   :  { %6419 = vmatpush1.bf16.msra.mxu1 %v19861_v23  ;;  %v20004_v23 = vld [vmem:[#allocation4 + $0xb84] ss:$72 sps:$4 sm:$0xff]  }
 0x3f4   :  { %6420 = vmatprep.subr.bf16.mxu1 %v19869_v26  ;;  %v19929_v26 = vld [vmem:[#allocation4 + $0x198c] ss:$72 sps:$4 sm:$0xff]  }
 0x3f5   :  { %6505 = vmatpush1.bf16.msra.mxu0 %v19996_v52  ;;  %v20071_v52 = vld [vmem:[#allocation4 + $0x1870] ss:$72 sps:$4 sm:$0xff]  }
 0x3f6   :  { %6506 = vmatprep.subr.bf16.mxu0 %v20001_v16  ;;  %v20076_v16 = vld [vmem:[#allocation4 + $0x1904] ss:$72 sps:$4 sm:$0xff]  }
 0x3f7   :  { %6421 = vmatpush1.bf16.msra.mxu1 %v19867_v28  ;;  %v19927_v28 = vld [vmem:[#allocation4 + $0x1988] ss:$72 sps:$4 sm:$0xff]  }
 0x3f8   :  { %6422 = vmatprep.subr.bf16.mxu1 %v19875_v30  ;;  %v20005_v30 = vld [vmem:[#allocation4 + $0xc10] ss:$72 sps:$4 sm:$0xff]  }
 0x3f9   :  { %6507 = vmatpush1.bf16.msra.mxu0 %v19999_v21  ;;  %v20077_v21 = vld [vmem:[#allocation4 + $0x1990] ss:$72 sps:$4 sm:$0xff]  }
 0x3fa   :  { %6508 = vmatprep.subr.bf16.mxu0 %v20004_v23 }
 0x3fb   :  { %6423 = vmatpush1.bf16.msra.mxu1 %v19873_v31  ;;  %v19933_v31 = vld [vmem:[#allocation4 + $0x1a18] ss:$72 sps:$4 sm:$0xff]  }
 0x3fc   :  { %6424 = vmatprep.subr.bf16.mxu1 %v19881_v32  ;;  %v20008_v32 = vld [vmem:[#allocation4 + $0xca0] ss:$72 sps:$4 sm:$0xff]  }
 0x3fd   :  { %6509 = vmatpush1.bf16.msra.mxu0 %v20002_v27  ;;  %v20080_v27 = vld [vmem:[#allocation4 + $0x1a20] ss:$72 sps:$4 sm:$0xff]  }
 0x3fe   :  { %6510 = vmatprep.subr.bf16.mxu0 %v20007_v57  ;;  %v20085_v57 = vld [vmem:[#allocation4 + $0x1ab4] ss:$72 sps:$4 sm:$0xff]  }
 0x3ff   :  { %6425 = vmatpush1.bf16.msra.mxu1 %v19879_v6  ;;  %v20011_v6 = vld [vmem:[#allocation4 + $0xd30] ss:$72 sps:$4 sm:$0xff]  }
 0x400   :  { %6426 = vmatprep.subr.bf16.mxu1 %v19887_v35  ;;  %v20016_v35 = vld [vmem:[#allocation4 + $0xdc4] ss:$72 sps:$4 sm:$0xff]  }
 0x401   :  { %6511 = vmatpush1.bf16.msra.mxu0 %v20005_v30 }
 0x402   :  { %6512 = vmatprep.subr.bf16.mxu0 %v20010_v2 }
 0x403   :  { %6427 = vmatpush1.bf16.msra.mxu1 %v19885_v38  ;;  %v20017_v38 = vld [vmem:[#allocation4 + $0xe50] ss:$72 sps:$4 sm:$0xff]  }
 0x404   :  { %6428 = vmatprep.subr.bf16.mxu1 %v19893_v39  ;;  %v20022_v39 = vld [vmem:[#allocation4 + $0xee4] ss:$72 sps:$4 sm:$0xff]  }
 0x405   :  { %6513 = vmatpush1.bf16.msra.mxu0 %v20008_v32 }
 0x406   :  { %6514 = vmatprep.subr.bf16.mxu0 %v20013_v33  ;;  %v17402_v33 = vld [vmem:[%s23199_s27] ss:$0 sm:$0xff] }
 0x407   :  { %6429 = vmatpush1.bf16.msra.mxu1 %v19891_v43  ;;  %v20028_v43 = vld [vmem:[#allocation4 + $0x1004] ss:$72 sps:$4 sm:$0xff]  }
 0x408   :  { %6430 = vmatprep.subr.bf16.mxu1 %v19899_v44  ;;  %v20031_v44 = vld [vmem:[#allocation4 + $0x1094] ss:$72 sps:$4 sm:$0xff]  }
 0x409   :  { %6515 = vmatpush1.bf16.msra.mxu0 %v20011_v6 }
 0x40a   :  { %6516 = vmatprep.subr.bf16.mxu0 %v20016_v35 }
 0x40b   :  { %6431 = vmatpush1.bf16.msra.mxu1 %v19897_v55  ;;  %v20037_v55 = vld [vmem:[#allocation4 + $0x11b4] ss:$72 sps:$4 sm:$0xff]  }
 0x40c   :  { %6432 = vmatprep.subr.bf16.mxu1 %v19905_v56  ;;  %v20038_v56 = vld [vmem:[#allocation4 + $0x1240] ss:$72 sps:$4 sm:$0xff]  }
 0x40d   :  { %6517 = vmatpush1.bf16.msra.mxu0 %v20014_v36  ;;  %v17403_v36 = vld [vmem:[%s23199_s27 + $0x1] ss:$0 sm:$0xff] }
 0x40e   :  { %6518 = vmatprep.subr.bf16.mxu0 %v20019_v37 }
 0x40f   :  { %6433 = vmatpush1.bf16.msra.mxu1 %v19903_v61  ;;  %v20064_v61 = vld [vmem:[#allocation4 + $0x16c4] ss:$72 sps:$4 sm:$0xff]  }
 0x410   :  { %6434 = vmatprep.subr.bf16.mxu1 %v19911_v0  ;;  %v20062_v0 = vld [vmem:[#allocation4 + $0x16c0] ss:$72 sps:$4 sm:$0xff]  }
 0x411   :  { %6519 = vmatpush1.bf16.msra.mxu0 %v20017_v38 }
 0x412   :  { %6520 = vmatprep.subr.bf16.mxu0 %v20022_v39 }
 0x413   :  { %6435 = vmatpush1.bf16.msra.mxu1 %v19909_v9  ;;  %v20068_v9 = vld [vmem:[#allocation4 + $0x17e0] ss:$72 sps:$4 sm:$0xff]  }
 0x414   :  { %6436 = vmatprep.subr.bf16.mxu1 %v19917_v11  ;;  %v20073_v11 = vld [vmem:[#allocation4 + $0x1874] ss:$72 sps:$4 sm:$0xff]  }
 0x415   :  { %6521 = vmatpush1.bf16.msra.mxu0 %v20020_v40 }
 0x416   :  { %6522 = vmatprep.subr.bf16.mxu0 %v20025_v41 }
 0x417   :  { %6437 = vmatpush1.bf16.msra.mxu1 %v19915_v18  ;;  %v20074_v18 = vld [vmem:[#allocation4 + $0x1900] ss:$72 sps:$4 sm:$0xff]  }
 0x418   :  { %6438 = vmatprep.subr.bf16.mxu1 %v19923_v19  ;;  %v20079_v19 = vld [vmem:[#allocation4 + $0x1994] ss:$72 sps:$4 sm:$0xff]  }
 0x41b   :  { %6439 = vmatpush1.bf16.msra.mxu1 %v19921_v14 }
 0x41c   :  { %6440 = vmatprep.subr.bf16.mxu1 %v19929_v26  ;;  %v20082_v26 = vld [vmem:[#allocation4 + $0x1a24] ss:$72 sps:$4 sm:$0xff]  }
 0x41f   :  { %6441 = vmatpush1.bf16.msra.mxu1 %v19927_v28  ;;  %v20083_v28 = vld [vmem:[#allocation4 + $0x1ab0] ss:$72 sps:$4 sm:$0xff]  }
 0x420   :  { %6442 = vmatprep.subr.bf16.mxu1 %v19935_v1 }
 0x423   :  { %6443 = vmatpush1.bf16.msra.mxu1 %v19933_v31 }
 0x424   :  { %6444 = vmatprep.subr.bf16.mxu1 %v19941_v3 }
 0x427   :  { %6445 = vmatpush1.bf16.msra.mxu1 %v19939_v34 }
 0x428   :  { %6600 = vmatprep.subr.mxu1 %v22557_v51  ;;  %v20023_v51 = vld [vmem:[#allocation4 + $0xf70] ss:$72 sps:$4 sm:$0xff]  }
 0x429   :  { %6523 = vmatpush1.bf16.msra.mxu0 %v20023_v51 }
 0x42a   :  { %6447 = vmatmul.mubr.bf16.vlgmr.msra.gmra.mrb[16].mxu1 %v22481_v25  ;;  %6524 = vmatprep.subr.bf16.mxu0 %v20028_v43 }
 0x42b   :  { %6664 = vmatprep.mubr.f32.mxu1 %v22511_v22  ;;  %v20026_v22 = vld [vmem:[#allocation4 + $0x1000] ss:$72 sps:$4 sm:$0xff]  }
 0x42d   :  { %6525 = vmatpush1.bf16.msra.mxu0 %v20026_v22 }
 0x42e   :  { %6526 = vmatprep.subr.bf16.mxu0 %v20031_v44 }
 0x430   :  { %6601 = vmatpush1.xpose.msra.mxu1 %v22555_v49  ;;  %v20029_v49 = vld [vmem:[#allocation4 + $0x1090] ss:$72 sps:$4 sm:$0xff]  }
 0x431   :  { %6670 = vmatprep.subr.mxu1 %v22569_v12  ;;  %v20034_v12 = vld [vmem:[#allocation4 + $0x1124] ss:$72 sps:$4 sm:$0xff]   ;;  %6527 = vmatpush1.bf16.msra.mxu0 %v20029_v49 }
 0x432   :  { %6528 = vmatprep.subr.bf16.mxu0 %v20034_v12 }
 0x433   :  { %6665 = vmatmul.mubr.f32.vlgmr.msra.gmra.mrb[20].mxu1 %v22508_v20 }
 0x434   :  { %6671 = vmatpush1.xpose.msra.mxu1 %v22567_v10  ;;  %6734 = vmatprep.mubr.f32.mxu1 %v22529_v45  ;;  %v20032_v45 = vld [vmem:[#allocation4 + $0x1120] ss:$72 sps:$4 sm:$0xff]  }
 0x435   :  { %6529 = vmatpush1.bf16.msra.mxu0 %v20032_v45 }
 0x436   :  { %6530 = vmatprep.subr.bf16.mxu0 %v20037_v55 }
 0x43b   :  { %6735 = vmatmul.mubr.f32.vlgmr.msra.gmra.mrb[20].mxu1 %v22527_v42  ;;  %v20035_v42 = vld [vmem:[#allocation4 + $0x11b0] ss:$72 sps:$4 sm:$0xff]  }
 0x43c   :  { %6804 = vmatprep.mubr.f32.mxu1 %v22541_v63  ;;  %v20040_v63 = vld [vmem:[#allocation4 + $0x1244] ss:$72 sps:$4 sm:$0xff]   ;;  %6531 = vmatpush1.bf16.msra.mxu0 %v20035_v42 }
 0x43d   :  { %v6190_v48 = vpop.f32.mrb[12].mxu1  ;;  %6543 = vmatprep.subr.bf16.mxu0 %v20040_v63  ;;  %v22159_v63 = vmov 0.0  }
 0x43e   :  { %v6192_v20 = vpop.f32.mrb[13].mxu1 }
 0x43f   :  { %v6194_v10 = vpop.f32.mrb[14].mxu1  ;;  %6740 = vmatprep.subr.mxu1 %v6192_v20  ;;  %6533 = vmatmul.mubr.bf16.vlgmr.msra.gmra.mrb[16].mxu0 %v22461_v17  ;;  %v20050_v17 = vld [vmem:[#allocation4 + $0x1480] ss:$72 sps:$4 sm:$0xff]  }
 0x440   :  { %v6196_v53 = vpop.f32.mrb[15].mxu1  ;;  %6741 = vmatpush1.xpose.msra.mxu1 %v6190_v48  ;;  %6544 = vmatpush1.bf16.msra.mxu0 %v20038_v56  ;;  %v20089_v56 = vld [vmem:[#allocation6 + $0x8] ss:$24 sps:$4 sm:$0xff]  }
 0x441   :  { %6810 = vmatprep.subr.mxu1 %v22561_v58  ;;  %v20043_v58 = vld [vmem:[#allocation4 + $0x12d4] ss:$72 sps:$4 sm:$0xff]   ;;  %6575 = vmatprep.mubr.bf16.mxu0 %v22472_v46  ;;  %v20053_v46 = vld [vmem:[#allocation4 + $0x1510] ss:$72 sps:$4 sm:$0xff]  }
 0x442   :  { %6545 = vmatprep.subr.bf16.mxu0 %v20043_v58  ;;  %v20091_v58 = vld [vmem:[#allocation6 + $0xc] ss:$24 sps:$4 sm:$0xff]  }
 0x443   :  { %6805 = vmatmul.mubr.f32.vlgmr.msra.gmra.mrb[20].mxu1 %v22539_v62  ;;  %v20041_v62 = vld [vmem:[#allocation4 + $0x12d0] ss:$72 sps:$4 sm:$0xff]  }
 0x444   :  { %6811 = vmatpush1.xpose.msra.mxu1 %v22559_v54  ;;  %6874 = vmatprep.mubr.f32.mxu1 %v22517_v29  ;;  %v20046_v29 = vld [vmem:[#allocation4 + $0x1364] ss:$72 sps:$4 sm:$0xff]   ;;  %v20049_v54 = vld [vmem:[#allocation4 + $0x13f4] ss:$72 sps:$4 sm:$0xff]  }
 0x445   :  { %6880 = vmatprep.subr.mxu1 %v22573_v15  ;;  %6546 = vmatpush1.bf16.msra.mxu0 %v20041_v62  ;;  %v20055_v15 = vld [vmem:[#allocation4 + $0x1514] ss:$72 sps:$4 sm:$0xff]  }
 0x446   :  { %6547 = vmatprep.subr.bf16.mxu0 %v20046_v29  ;;  %v20097_v62 = vld [vmem:[#allocation6 + $0x3c] ss:$24 sps:$4 sm:$0xff]   ;;  %v20095_v29 = vld [vmem:[#allocation6 + $0x38] ss:$24 sps:$4 sm:$0xff]  }
 0x447   :  { %6875 = vmatmul.mubr.f32.vlgmr.msra.gmra.mrb[22].mxu1 %v22514_v24  ;;  %v20044_v24 = vld [vmem:[#allocation4 + $0x1360] ss:$72 sps:$4 sm:$0xff]  }
 0x448   :  { %6881 = vmatpush1.xpose.msra.mxu1 %v22571_v13  ;;  %6944 = vmatprep.mubr.f32.mxu1 %v22533_v50  ;;  %v20047_v50 = vld [vmem:[#allocation4 + $0x13f0] ss:$72 sps:$4 sm:$0xff]   ;;  %v20052_v13 = vld [vmem:[#allocation4 + $0x1484] ss:$72 sps:$4 sm:$0xff]  }
 0x449   :  { %6950 = vmatprep.subr.mxu1 %v6196_v53  ;;  %6548 = vmatpush1.bf16.msra.mxu0 %v20044_v24  ;;  %v20103_v24 = vld [vmem:[#allocation6 + $0x6c] ss:$24 sps:$4 sm:$0xff]  }
 0x44a   :  { %6549 = vmatprep.subr.bf16.mxu0 %v20049_v54  ;;  %v20101_v54 = vld [vmem:[#allocation6 + $0x68] ss:$24 sps:$4 sm:$0xff]  }
 0x44d   :  { %6550 = vmatpush1.bf16.msra.mxu0 %v20047_v50  ;;  %v20109_v50 = vld [vmem:[#allocation6 + $0x9c] ss:$24 sps:$4 sm:$0xff]  }
 0x44e   :  { %6551 = vmatprep.subr.bf16.mxu0 %v20052_v13  ;;  %v20107_v13 = vld [vmem:[#allocation6 + $0x98] ss:$24 sps:$4 sm:$0xff]  }
 0x44f   :  { %6945 = vmatmul.mubr.f32.vlgmr.msra.gmra.mrb[22].mxu1 %v22531_v47  ;;  %v20056_v47 = vld [vmem:[#allocation4 + $0x15a0] ss:$72 sps:$4 sm:$0xff]  }
 0x450   :  { %6951 = vmatpush1.xpose.msra.mxu1 %v6194_v10  ;;  %7014 = vmatprep.mubr.f32.mxu1 %v22545_v7  ;;  %v20059_v7 = vld [vmem:[#allocation4 + $0x1630] ss:$72 sps:$4 sm:$0xff]  }
 0x451   :  { %6552 = vmatpush1.bf16.msra.mxu0 %v20050_v17  ;;  %v20115_v17 = vld [vmem:[#allocation6 + $0xcc] ss:$24 sps:$4 sm:$0xff]  }
 0x452   :  { %6553 = vmatprep.subr.bf16.mxu0 %v20055_v15  ;;  %v20113_v15 = vld [vmem:[#allocation6 + $0xc8] ss:$24 sps:$4 sm:$0xff]  }
 0x455   :  { %6554 = vmatpush1.bf16.msra.mxu0 %v20053_v46  ;;  %v20121_v46 = vld [vmem:[#allocation6 + $0xfc] ss:$24 sps:$4 sm:$0xff]  }
 0x456   :  { %6555 = vmatprep.subr.bf16.mxu0 %v20058_v59  ;;  %v20119_v59 = vld [vmem:[#allocation6 + $0xf8] ss:$24 sps:$4 sm:$0xff]  }
 0x457   :  { %7015 = vmatmul.mubr.f32.vlgmr.msra.gmra.mrb[22].mxu1 %v22543_v4  ;;  %v20065_v4 = vld [vmem:[#allocation4 + $0x1750] ss:$72 sps:$4 sm:$0xff]  }
 0x458   :  { %7110 = vmatprep.mubr.f32.mxu1 %v22159_v63 }
 0x459   :  { %6556 = vmatpush1.bf16.msra.mxu0 %v20056_v47  ;;  %v20127_v47 = vld [vmem:[#allocation6 + $0x12c] ss:$24 sps:$4 sm:$0xff]  }
 0x45a   :  { %6557 = vmatprep.subr.bf16.mxu0 %v20061_v60  ;;  %v20125_v60 = vld [vmem:[#allocation6 + $0x128] ss:$24 sps:$4 sm:$0xff]  }
 0x45d   :  { %6558 = vmatpush1.bf16.msra.mxu0 %v20059_v7  ;;  %v20133_v7 = vld [vmem:[#allocation6 + $0x15c] ss:$24 sps:$4 sm:$0xff]  }
 0x45e   :  { %6559 = vmatprep.subr.bf16.mxu0 %v20064_v61  ;;  %v20131_v61 = vld [vmem:[#allocation6 + $0x158] ss:$24 sps:$4 sm:$0xff]  }
 0x461   :  { %6560 = vmatpush1.bf16.msra.mxu0 %v20062_v0  ;;  %v20139_v0 = vld [vmem:[#allocation6 + $0x18c] ss:$24 sps:$4 sm:$0xff]  }
 0x462   :  { %6561 = vmatprep.subr.bf16.mxu0 %v20067_v5  ;;  %v20137_v5 = vld [vmem:[#allocation6 + $0x188] ss:$24 sps:$4 sm:$0xff]  }
 0x465   :  { %6562 = vmatpush1.bf16.msra.mxu0 %v20065_v4  ;;  %v20145_v4 = vld [vmem:[#allocation6 + $0x1bc] ss:$24 sps:$4 sm:$0xff]  }
 0x466   :  { %6563 = vmatprep.subr.bf16.mxu0 %v20070_v8  ;;  %v20143_v8 = vld [vmem:[#allocation6 + $0x1b8] ss:$24 sps:$4 sm:$0xff]  }
 0x469   :  { %6564 = vmatpush1.bf16.msra.mxu0 %v20068_v9 }
 0x46a   :  { %6565 = vmatprep.subr.bf16.mxu0 %v20073_v11 }
 0x46d   :  { %6566 = vmatpush1.bf16.msra.mxu0 %v20071_v52 }
 0x46e   :  { %6567 = vmatprep.subr.bf16.mxu0 %v20076_v16 }
 0x471   :  { %6568 = vmatpush1.bf16.msra.mxu0 %v20074_v18 }
 0x472   :  { %6569 = vmatprep.subr.bf16.mxu0 %v20079_v19 }
 0x475   :  { %6570 = vmatpush1.bf16.msra.mxu0 %v20077_v21  ;;  %v20088_v21 = vld [vmem:[#allocation6 + $0x4] ss:$24 sps:$4 sm:$0xff]  }
 0x476   :  { %6571 = vmatprep.subr.bf16.mxu0 %v20082_v26  ;;  %v20092_v26 = vld [vmem:[#allocation6 + $0x30] ss:$24 sps:$4 sm:$0xff]  }
 0x479   :  { %6572 = vmatpush1.bf16.msra.mxu0 %v20080_v27  ;;  %v20100_v27 = vld [vmem:[#allocation6 + $0x64] ss:$24 sps:$4 sm:$0xff]  }
 0x47a   :  { %6573 = vmatprep.subr.bf16.mxu0 %v20085_v57  ;;  %v20098_v57 = vld [vmem:[#allocation6 + $0x60] ss:$24 sps:$4 sm:$0xff]  }
 0x47d   :  { %6574 = vmatpush1.bf16.msra.mxu0 %v20083_v28  ;;  %v20106_v28 = vld [vmem:[#allocation6 + $0x94] ss:$24 sps:$4 sm:$0xff]  }
 0x47e   :  { %9338 = vmatprep.subr.bf16.mxu0 %v20091_v58  ;;  %v20173_v58 = vld [vmem:[#allocation6 + $0x2a8] ss:$24 sps:$4 sm:$0xff]  }
 0x47f   :  { %v6319_v23 = vpop.f32.mrb[12].mxu0 }
 0x480   :  { %v6321_v14 = vpop.f32.mrb[13].mxu0  ;;  %6576 = vmatmul.mubr.bf16.vlgmr.msra.gmra.mrb[16].mxu0 %v22481_v25 }
 0x481   :  { %7046 = vmatprep.subr.mxu1 %v6321_v14  ;;  %v22603_v1 = vpop.f32.mrb[14].mxu0  ;;  %9339 = vmatpush1.bf16.msra.mxu0 %v20089_v56  ;;  %v20094_v14 = vld [vmem:[#allocation6 + $0x34] ss:$24 sps:$4 sm:$0xff]   ;;  %v20170_v56 = vld [vmem:[#allocation6 + $0x2a0] ss:$24 sps:$4 sm:$0xff]  }
 0x482   :  { %7047 = vmatpush1.msra.mxu1 %v6319_v23  ;;  %v22605_v30 = vpop.f32.mrb[15].mxu0  ;;  %9340 = vmatprep.subr.bf16.mxu0 %v20097_v62  ;;  %v20086_v23 = vld [vmem:[#allocation6] ss:$24 sps:$4 sm:$0xff]   ;;  %v20178_v62 = vld [vmem:[#allocation6 + $0x2d4] ss:$24 sps:$4 sm:$0xff]  }
 0x485   :  { %9341 = vmatpush1.bf16.msra.mxu0 %v20095_v29  ;;  %v20181_v29 = vld [vmem:[#allocation6 + $0x2dc] ss:$24 sps:$4 sm:$0xff]  }
 0x486   :  { %9342 = vmatprep.subr.bf16.mxu0 %v20103_v24  ;;  %v20176_v24 = vld [vmem:[#allocation6 + $0x2d0] ss:$24 sps:$4 sm:$0xff]  }
 0x489   :  { %9343 = vmatpush1.bf16.msra.mxu0 %v20101_v54  ;;  %v20179_v54 = vld [vmem:[#allocation6 + $0x2d8] ss:$24 sps:$4 sm:$0xff]  }
 0x48a   :  { %9344 = vmatprep.subr.bf16.mxu0 %v20109_v50  ;;  %v20184_v50 = vld [vmem:[#allocation6 + $0x304] ss:$24 sps:$4 sm:$0xff]  }
 0x48d   :  { %9345 = vmatpush1.bf16.msra.mxu0 %v20107_v13  ;;  %v20187_v13 = vld [vmem:[#allocation6 + $0x30c] ss:$24 sps:$4 sm:$0xff]  }
 0x48e   :  { %9346 = vmatprep.subr.bf16.mxu0 %v20115_v17 }
 0x491   :  { %9347 = vmatpush1.bf16.msra.mxu0 %v20113_v15 }
 0x492   :  { %9348 = vmatprep.subr.bf16.mxu0 %v20121_v46 }
 0x495   :  { %9349 = vmatpush1.bf16.msra.mxu0 %v20119_v59 }
 0x496   :  { %9350 = vmatprep.subr.bf16.mxu0 %v20127_v47 }
 0x499   :  { %9351 = vmatpush1.bf16.msra.mxu0 %v20125_v60 }
 0x49a   :  { %9352 = vmatprep.subr.bf16.mxu0 %v20133_v7 }
 0x49d   :  { %9353 = vmatpush1.bf16.msra.mxu0 %v20131_v61 }
 0x49e   :  { %9354 = vmatprep.subr.bf16.mxu0 %v20139_v0 }
 0x4a1   :  { %9355 = vmatpush1.bf16.msra.mxu0 %v20137_v5 }
 0x4a2   :  { %9356 = vmatprep.subr.bf16.mxu0 %v20145_v4  ;;  %v20182_v4 = vld [vmem:[#allocation6 + $0x300] ss:$24 sps:$4 sm:$0xff]  }
 0x4a5   :  { %9357 = vmatpush1.bf16.msra.mxu0 %v20143_v8  ;;  %v20185_v8 = vld [vmem:[#allocation6 + $0x308] ss:$24 sps:$4 sm:$0xff]  }
 0x4fd   :  { %v22607_v2 = vpop.f32.mrb[16].mxu1 }
 0x4fe   :  { %v6450_v31 = vpop.f32.mrb[17].mxu1 }
 0x4ff   :  { %v22609_v3 = vpop.f32.mrb[18].mxu1  ;;  %7117 = vmatprep.subr.mxu1 %v6450_v31  ;;  %v20118_v31 = vld [vmem:[#allocation6 + $0xf4] ss:$24 sps:$4 sm:$0xff]  }
 0x500   :  { %v22611_v32 = vpop.f32.mrb[19].mxu1 }
 0x516   :  { %v6806_v34 = vpop.f32.mrb[20].mxu1 }
 0x517   :  { %v18568_v6 = vadd.f32 %v17402_v33, %v6806_v34  ;;  %v6808_v25 = vpop.f32.mrb[21].mxu1  ;;  %v20122_v33 = vld [vmem:[#allocation6 + $0x120] ss:$24 sps:$4 sm:$0xff]   ;;  %v20130_v34 = vld [vmem:[#allocation6 + $0x154] ss:$24 sps:$4 sm:$0xff]  }
 0x518   :  { %v20136_v25 = vld [vmem:[#allocation6 + $0x184] ss:$24 sps:$4 sm:$0xff]  }
 0x519   :  { %v7021_v35 = vsel %vm7020_vm0, %v18568_v6, -inf }
 0x51a   :  { %7022 = vmax.xlane.f32.xlu0 %v7021_v35  ;;  %v20134_v35 = vld [vmem:[#allocation6 + $0x180] ss:$24 sps:$4 sm:$0xff]  }
 0x52a   :  { %v7016_v37 = vpop.f32.mrb[22].mxu1 }
 0x52b   :  { %v18569_v38 = vadd.f32 %v17403_v36, %v7016_v37  ;;  %v7018_v39 = vpop.f32.mrb[23].mxu1  ;;  %v20142_v36 = vld [vmem:[#allocation6 + $0x1b4] ss:$24 sps:$4 sm:$0xff]   ;;  %v20140_v37 = vld [vmem:[#allocation6 + $0x1b0] ss:$24 sps:$4 sm:$0xff]  }
 0x52c   :  { %v20151_v39 = vld [vmem:[#allocation6 + $0x1ec] ss:$24 sps:$4 sm:$0xff]  }
 0x52d   :  { %v7024_v40 = vsel %vm7020_vm0, %v18569_v38, -inf  ;;  %9358 = vmatprep.subr.bf16.mxu0 %v20151_v39  ;;  %v20215_v39 = vld [vmem:[#allocation6 + $0x3f8] ss:$24 sps:$4 sm:$0xff]  }
 0x52e   :  { %7025 = vmax.xlane.f32.xlu0 %v7024_v40  ;;  %v20146_v40 = vld [vmem:[#allocation6 + $0x1e0] ss:$24 sps:$4 sm:$0xff]  }
 0x553   :  { %v22621_v41 = vpop.f32.mrb[16].mxu0 }
 0x554   :  { %v22623_v51 = vpop.f32.mrb[17].mxu0 }
 0x555   :  { %v22625_v43 = vpop.f32.mrb[18].mxu0 }
 0x556   :  { %v22627_v22 = vpop.f32.mrb[19].mxu0 }
 0x5a7   :  { %v7023_v44 = vpop.xlane.xlu0 %7022 }
 0x5a8   :  { %v7027_v49 = vsub.f32 %v18568_v6, %v7023_v44  ;;  %v20128_v6 = vld [vmem:[#allocation6 + $0x150] ss:$24 sps:$4 sm:$0xff]  }
 0x5a9   :  { %v20155_v44 = vld [vmem:[#allocation6 + $0x218] ss:$24 sps:$4 sm:$0xff]  }
 0x5aa   :  { %v7029_v12 = vmul.f32 1.442695, %v7027_v49  ;;  %v20160_v49 = vld [vmem:[#allocation6 + $0x244] ss:$24 sps:$4 sm:$0xff]  }
 0x5ac   :  { %21814 = vpow2.f32 %v7029_v12  ;;  %v20163_v12 = vld [vmem:[#allocation6 + $0x24c] ss:$24 sps:$4 sm:$0xff]  }
 0x5b6   :  { %v21815_v48 = vpop.eup %21814 }
 0x5b7   :  { %v7033_v20 = vsel %vm7020_vm0, %v21815_v48, 0.0 }
 0x5b8   :  { %7034 = vadd.xlane.f32.xlu1 %v7033_v20  ;;  %v20161_v20 = vld [vmem:[#allocation6 + $0x248] ss:$24 sps:$4 sm:$0xff]  }
 0x5bb   :  { %v7026_v10 = vpop.xlane.xlu0 %7025 }
 0x5bc   :  { %v7028_v45 = vsub.f32 %v18569_v38, %v7026_v10  ;;  %v20148_v38 = vld [vmem:[#allocation6 + $0x1e4] ss:$24 sps:$4 sm:$0xff]   ;;  %v20166_v10 = vld [vmem:[#allocation6 + $0x274] ss:$24 sps:$4 sm:$0xff]  }
 0x5be   :  { %v7031_v53 = vmul.f32 1.442695, %v7028_v45  ;;  %v20164_v45 = vld [vmem:[#allocation6 + $0x270] ss:$24 sps:$4 sm:$0xff]  }
 0x5c0   :  { %21816 = vpow2.f32 %v7031_v53  ;;  %v20167_v53 = vld [vmem:[#allocation6 + $0x278] ss:$24 sps:$4 sm:$0xff]  }
 0x5ca   :  { %v22630_v55 = vpop.eup %21816 }
 0x5cb   :  { %v7036_v42 = vsel %vm7020_vm0, %v22630_v55, 0.0 }
 0x5cc   :  { %7037 = vadd.xlane.f32.xlu1 %v7036_v42  ;;  %v20172_v42 = vld [vmem:[#allocation6 + $0x2a4] ss:$24 sps:$4 sm:$0xff]  }
 0x645   :  { %v7035_v9 = vpop.xlane.xlu1 %7034 }
 0x646   :  { %21818 = vrcp.f32 %v7035_v9  ;;  %v20190_v9 = vld [vmem:[#allocation6 + $0x334] ss:$24 sps:$4 sm:$0xff]  }
 0x650   :  { %v21819_v11 = vpop.eup %21818 }
 0x651   :  { %v7041_v52 = vmul.f32 %v21819_v11, %v21815_v48  ;;  %v20158_v48 = vld [vmem:[#allocation6 + $0x240] ss:$24 sps:$4 sm:$0xff]   ;;  %v20193_v11 = vld [vmem:[#allocation6 + $0x33c] ss:$24 sps:$4 sm:$0xff]  }
 0x653   :  { %17404 = vmatmul.mubr.msk.f32.vlgmr.msra.gmra.mrb[24].mxu1 %vm7020_vm0, %v7041_v52 }
 0x654   :  { %7118 = vmatpush1.msra.mxu1 %v22607_v2  ;;  %7181 = vmatprep.mubr.f32.mxu1 %v22159_v63  ;;  %v20110_v2 = vld [vmem:[#allocation6 + $0xc0] ss:$24 sps:$4 sm:$0xff]  }
 0x655   :  { %7188 = vmatprep.subr.mxu1 %v22623_v51  ;;  %v20154_v51 = vld [vmem:[#allocation6 + $0x214] ss:$24 sps:$4 sm:$0xff]  }
 0x657   :  { %17405 = vmatmul.mubr.msk.f32.vlgmr.msra.gmra.mrb[26].mxu1 %vm7020_vm0, %v7041_v52 }
 0x658   :  { %7189 = vmatpush1.msra.mxu1 %v22621_v41  ;;  %7252 = vmatprep.mubr.f32.mxu1 %v22159_v63  ;;  %v20149_v41 = vld [vmem:[#allocation6 + $0x1e8] ss:$24 sps:$4 sm:$0xff]  }
 0x659   :  { %7262 = vmatprep.subr.mxu1 %v22605_v30  ;;  %v7038_v16 = vpop.xlane.xlu1 %7037  ;;  %v20112_v30 = vld [vmem:[#allocation6 + $0xc4] ss:$24 sps:$4 sm:$0xff]   ;;  %9359 = vmatpush1.bf16.msra.mxu0 %v20149_v41 }
 0x65a   :  { %21820 = vrcp.f32 %v7038_v16  ;;  %v20223_v41 = vld [vmem:[#allocation6 + $0x42c] ss:$24 sps:$4 sm:$0xff]  }
 0x65b   :  { %17406 = vmatmul.mubr.msk.f32.vlgmr.msra.gmra.mrb[28].mxu1 %vm7020_vm0, %v7041_v52 }
 0x65c   :  { %7263 = vmatpush1.msra.mxu1 %v22603_v1  ;;  %7326 = vmatprep.mubr.f32.mxu1 %v22159_v63  ;;  %v20104_v1 = vld [vmem:[#allocation6 + $0x90] ss:$24 sps:$4 sm:$0xff]  }
 0x65d   :  { %7333 = vmatprep.subr.mxu1 %v22611_v32  ;;  %v20124_v32 = vld [vmem:[#allocation6 + $0x124] ss:$24 sps:$4 sm:$0xff]  }
 0x664   :  { %v21821_v18 = vpop.eup %21820 }
 0x665   :  { %v7042_v19 = vmul.f32 %v21821_v18, %v22630_v55  ;;  %v20169_v55 = vld [vmem:[#allocation6 + $0x27c] ss:$24 sps:$4 sm:$0xff]  }
 0x667   :  { %17407 = vmatmul.mubr.msk.f32.vlgmr.msra.gmra.mrb[30].mxu1 %vm7020_vm0, %v7042_v19 }
 0x668   :  { %7334 = vmatpush1.msra.mxu1 %v22609_v3  ;;  %7397 = vmatprep.mubr.f32.mxu1 %v22159_v63  ;;  %v20116_v3 = vld [vmem:[#allocation6 + $0xf0] ss:$24 sps:$4 sm:$0xff]  }
 0x669   :  { %7404 = vmatprep.subr.mxu1 %v22627_v22  ;;  %v20152_v22 = vld [vmem:[#allocation6 + $0x210] ss:$24 sps:$4 sm:$0xff]  }
 0x66b   :  { %17408 = vmatmul.mubr.msk.f32.vlgmr.msra.gmra.mrb[32].mxu1 %vm7020_vm0, %v7042_v19 }
 0x66c   :  { %7405 = vmatpush1.msra.mxu1 %v22625_v43  ;;  %7468 = vmatprep.mubr.f32.mxu1 %v22159_v63  ;;  %v20157_v43 = vld [vmem:[#allocation6 + $0x21c] ss:$24 sps:$4 sm:$0xff]   ;;  %v20175_v63 = vld [vmem:[#allocation6 + $0x2ac] ss:$24 sps:$4 sm:$0xff]  }
 0x66d   :  { %9209 = vmatprep.subr.bf16.mxu1 %v20088_v21  ;;  %9360 = vmatprep.subr.bf16.mxu0 %v20157_v43  ;;  %v20188_v21 = vld [vmem:[#allocation6 + $0x330] ss:$24 sps:$4 sm:$0xff]  }
 0x66e   :  { %9361 = vmatpush1.bf16.msra.mxu0 %v20155_v44  ;;  %v20221_v43 = vld [vmem:[#allocation6 + $0x428] ss:$24 sps:$4 sm:$0xff]   ;;  %v20229_v44 = vld [vmem:[#allocation6 + $0x45c] ss:$24 sps:$4 sm:$0xff]  }
 0x66f   :  { %17409 = vmatmul.mubr.msk.f32.vlgmr.msra.gmra.mrb[34].mxu1 %vm7020_vm0, %v7042_v19  ;;  %9362 = vmatprep.subr.bf16.mxu0 %v20163_v12  ;;  %v20227_v12 = vld [vmem:[#allocation6 + $0x458] ss:$24 sps:$4 sm:$0xff]  }
 0x670   :  { %9210 = vmatpush1.bf16.msra.mxu1 %v20086_v23  ;;  %v20191_v23 = vld [vmem:[#allocation6 + $0x338] ss:$24 sps:$4 sm:$0xff]  }
 0x671   :  { %9211 = vmatprep.subr.bf16.mxu1 %v20094_v14  ;;  %v20196_v14 = vld [vmem:[#allocation6 + $0x364] ss:$24 sps:$4 sm:$0xff]  }
 0x672   :  { %9363 = vmatpush1.bf16.msra.mxu0 %v20161_v20  ;;  %v20235_v20 = vld [vmem:[#allocation6 + $0x48c] ss:$24 sps:$4 sm:$0xff]  }
 0x673   :  { %9364 = vmatprep.subr.bf16.mxu0 %v20169_v55  ;;  %v20241_v55 = vld [vmem:[#allocation6 + $0x4bc] ss:$24 sps:$4 sm:$0xff]  }
 0x674   :  { %9212 = vmatpush1.bf16.msra.mxu1 %v20092_v26  ;;  %v20199_v26 = vld [vmem:[#allocation6 + $0x36c] ss:$24 sps:$4 sm:$0xff]  }
 0x675   :  { %9213 = vmatprep.subr.bf16.mxu1 %v20100_v27 }
 0x676   :  { %9365 = vmatpush1.bf16.msra.mxu0 %v20167_v53  ;;  %v20238_v53 = vld [vmem:[#allocation6 + $0x4b4] ss:$24 sps:$4 sm:$0xff]  }
 0x677   :  { %9366 = vmatprep.subr.bf16.mxu0 %v20175_v63  ;;  %v20239_v63 = vld [vmem:[#allocation6 + $0x4b8] ss:$24 sps:$4 sm:$0xff]  }
 0x678   :  { %9214 = vmatpush1.bf16.msra.mxu1 %v20098_v57 }
 0x679   :  { %9215 = vmatprep.subr.bf16.mxu1 %v20106_v28 }
 0x67a   :  { %9367 = vmatpush1.bf16.msra.mxu0 %v20173_v58  ;;  %v20247_v58 = vld [vmem:[#allocation6 + $0x4ec] ss:$24 sps:$4 sm:$0xff]  }
 0x67b   :  { %9368 = vmatprep.subr.bf16.mxu0 %v20181_v29  ;;  %v20245_v29 = vld [vmem:[#allocation6 + $0x4e8] ss:$24 sps:$4 sm:$0xff]  }
 0x67c   :  { %9216 = vmatpush1.bf16.msra.mxu1 %v20104_v1 }
 0x67d   :  { %9217 = vmatprep.subr.bf16.mxu1 %v20112_v30  ;;  %v20194_v30 = vld [vmem:[#allocation6 + $0x360] ss:$24 sps:$4 sm:$0xff]  }
 0x67e   :  { %9369 = vmatpush1.bf16.msra.mxu0 %v20179_v54  ;;  %v20253_v54 = vld [vmem:[#allocation6 + $0x51c] ss:$24 sps:$4 sm:$0xff]  }
 0x67f   :  { %9381 = vmatprep.subr.bf16.mxu0 %v20187_v13  ;;  %v20251_v13 = vld [vmem:[#allocation6 + $0x518] ss:$24 sps:$4 sm:$0xff]  }
 0x680   :  { %9218 = vmatpush1.bf16.msra.mxu1 %v20110_v2  ;;  %v20197_v2 = vld [vmem:[#allocation6 + $0x368] ss:$24 sps:$4 sm:$0xff]  }
 0x681   :  { %9219 = vmatprep.subr.bf16.mxu1 %v20118_v31  ;;  %v20202_v31 = vld [vmem:[#allocation6 + $0x394] ss:$24 sps:$4 sm:$0xff]  }
 0x684   :  { %9220 = vmatpush1.bf16.msra.mxu1 %v20116_v3  ;;  %v20205_v3 = vld [vmem:[#allocation6 + $0x39c] ss:$24 sps:$4 sm:$0xff]  }
 0x685   :  { %9221 = vmatprep.subr.bf16.mxu1 %v20124_v32  ;;  %v20200_v32 = vld [vmem:[#allocation6 + $0x390] ss:$24 sps:$4 sm:$0xff]  }
 0x688   :  { %9222 = vmatpush1.bf16.msra.mxu1 %v20122_v33  ;;  %v20203_v33 = vld [vmem:[#allocation6 + $0x398] ss:$24 sps:$4 sm:$0xff]  }
 0x689   :  { %9223 = vmatprep.subr.bf16.mxu1 %v20130_v34  ;;  %v20208_v34 = vld [vmem:[#allocation6 + $0x3c4] ss:$24 sps:$4 sm:$0xff]  }
 0x68c   :  { %9224 = vmatpush1.bf16.msra.mxu1 %v20128_v6  ;;  %v20211_v6 = vld [vmem:[#allocation6 + $0x3cc] ss:$24 sps:$4 sm:$0xff]  }
 0x68d   :  { %9225 = vmatprep.subr.bf16.mxu1 %v20136_v25  ;;  %v20206_v25 = vld [vmem:[#allocation6 + $0x3c0] ss:$24 sps:$4 sm:$0xff]  }
 0x690   :  { %9226 = vmatpush1.bf16.msra.mxu1 %v20134_v35  ;;  %v20209_v35 = vld [vmem:[#allocation6 + $0x3c8] ss:$24 sps:$4 sm:$0xff]  }
 0x691   :  { %9227 = vmatprep.subr.bf16.mxu1 %v20142_v36  ;;  %v20214_v36 = vld [vmem:[#allocation6 + $0x3f4] ss:$24 sps:$4 sm:$0xff]  }
 0x694   :  { %9228 = vmatpush1.bf16.msra.mxu1 %v20140_v37  ;;  %v20217_v37 = vld [vmem:[#allocation6 + $0x3fc] ss:$24 sps:$4 sm:$0xff]  }
 0x695   :  { %9229 = vmatprep.subr.bf16.mxu1 %v20148_v38  ;;  %v20212_v38 = vld [vmem:[#allocation6 + $0x3f0] ss:$24 sps:$4 sm:$0xff]  }
 0x698   :  { %9230 = vmatpush1.bf16.msra.mxu1 %v20146_v40  ;;  %v20220_v40 = vld [vmem:[#allocation6 + $0x424] ss:$24 sps:$4 sm:$0xff]  }
 0x699   :  { %9231 = vmatprep.subr.bf16.mxu1 %v20154_v51  ;;  %v20218_v51 = vld [vmem:[#allocation6 + $0x420] ss:$24 sps:$4 sm:$0xff]  }
 0x69c   :  { %9232 = vmatpush1.bf16.msra.mxu1 %v20152_v22  ;;  %v20226_v22 = vld [vmem:[#allocation6 + $0x454] ss:$24 sps:$4 sm:$0xff]  }
 0x69d   :  { %9233 = vmatprep.subr.bf16.mxu1 %v20160_v49  ;;  %v20224_v49 = vld [vmem:[#allocation6 + $0x450] ss:$24 sps:$4 sm:$0xff]  }
 0x6a0   :  { %9234 = vmatpush1.bf16.msra.mxu1 %v20158_v48  ;;  %v20232_v48 = vld [vmem:[#allocation6 + $0x484] ss:$24 sps:$4 sm:$0xff]  }
 0x6a1   :  { %9235 = vmatprep.subr.bf16.mxu1 %v20166_v10  ;;  %v20230_v10 = vld [vmem:[#allocation6 + $0x480] ss:$24 sps:$4 sm:$0xff]  }
 0x6a4   :  { %9236 = vmatpush1.bf16.msra.mxu1 %v20164_v45  ;;  %v20233_v45 = vld [vmem:[#allocation6 + $0x488] ss:$24 sps:$4 sm:$0xff]  }
 0x6a5   :  { %9237 = vmatprep.subr.bf16.mxu1 %v20172_v42  ;;  %v20236_v42 = vld [vmem:[#allocation6 + $0x4b0] ss:$24 sps:$4 sm:$0xff]  }
 0x6a8   :  { %9238 = vmatpush1.bf16.msra.mxu1 %v20170_v56  ;;  %v20244_v56 = vld [vmem:[#allocation6 + $0x4e4] ss:$24 sps:$4 sm:$0xff]  }
 0x6a9   :  { %9239 = vmatprep.subr.bf16.mxu1 %v20178_v62  ;;  %v20242_v62 = vld [vmem:[#allocation6 + $0x4e0] ss:$24 sps:$4 sm:$0xff]  }
 0x6ac   :  { %9240 = vmatpush1.bf16.msra.mxu1 %v20176_v24  ;;  %v20250_v24 = vld [vmem:[#allocation6 + $0x514] ss:$24 sps:$4 sm:$0xff]  }
 0x6ad   :  { %9252 = vmatprep.subr.bf16.mxu1 %v20184_v50  ;;  %v20248_v50 = vld [vmem:[#allocation6 + $0x510] ss:$24 sps:$4 sm:$0xff]  }
 0x726   :  { %v7112_v17 = vpop.f32.mrb[24].mxu1 }
 0x727   :  { %v7114_v15 = vpop.f32.mrb[25].mxu1 }
 0x72a   :  { %v7183_v46 = vpop.f32.mrb[26].mxu1 }
 0x72b   :  { %v7185_v59 = vpop.f32.mrb[27].mxu1 }
 0x72e   :  { %v7254_v47 = vpop.f32.mrb[28].mxu1 }
 0x72f   :  { %v7256_v60 = vpop.f32.mrb[29].mxu1 }
 0x73a   :  { %v7328_v7 = vpop.f32.mrb[30].mxu1 }
 0x73b   :  { %v22656_v61 = vpack.c.bf16 %v7328_v7, %v7112_v17  ;;  %v7330_v0 = vpop.f32.mrb[31].mxu1  ;;  %v20256_v17 = vld [vmem:[#allocation6 + $0x544] ss:$24 sps:$4 sm:$0xff]   ;;  %v20260_v7 = vld [vmem:[#allocation6 + $0x570] ss:$24 sps:$4 sm:$0xff]  }
 0x73c   :  { %v22658_v5 = vpack.c.bf16 %v7330_v0, %v7114_v15  ;;  %v20259_v15 = vld [vmem:[#allocation6 + $0x54c] ss:$24 sps:$4 sm:$0xff]   ;;  %v20263_v0 = vld [vmem:[#allocation6 + $0x578] ss:$24 sps:$4 sm:$0xff]  }
 0x73e   :  { %v7399_v52 = vpop.f32.mrb[32].mxu1  ;;  %9241 = vmatprep.mubr.bf16.mxu1 %v22658_v5  ;;  %9370 = vmatprep.mubr.bf16.mxu0 %v22658_v5 }
 0x73f   :  { %v22662_v16 = vpack.c.bf16 %v7399_v52, %v7183_v46  ;;  %v7401_v18 = vpop.f32.mrb[33].mxu1  ;;  %9242 = vmatmul.mubr.bf16.vlgmr.msra.gmra.mrb[36].mxu1 %v22656_v61  ;;  %9371 = vmatmul.mubr.bf16.vlgmr.msra.gmra.mrb[20].mxu0 %v22656_v61  ;;  %v20254_v46 = vld [vmem:[#allocation6 + $0x540] ss:$24 sps:$4 sm:$0xff]   ;;  %v20274_v52 = vld [vmem:[#allocation6 + $0x5d4] ss:$24 sps:$4 sm:$0xff]  }
 0x740   :  { %v22666_v19 = vpack.c.bf16 %v7401_v18, %v7185_v59  ;;  %9253 = vmatpush1.bf16.msra.mxu1 %v20182_v4  ;;  %9382 = vmatpush1.bf16.msra.mxu0 %v20185_v8  ;;  %v20257_v59 = vld [vmem:[#allocation6 + $0x548] ss:$24 sps:$4 sm:$0xff]   ;;  %v20268_v4 = vld [vmem:[#allocation6 + $0x5a4] ss:$24 sps:$4 sm:$0xff]  }
 0x741   :  { %9254 = vmatprep.subr.bf16.mxu1 %v20190_v9  ;;  %9383 = vmatprep.subr.bf16.mxu0 %v20193_v11  ;;  %v20271_v8 = vld [vmem:[#allocation6 + $0x5ac] ss:$24 sps:$4 sm:$0xff]   ;;  %v20266_v9 = vld [vmem:[#allocation6 + $0x5a0] ss:$24 sps:$4 sm:$0xff]   ;;  %v20277_v18 = vld [vmem:[#allocation6 + $0x5dc] ss:$24 sps:$4 sm:$0xff]  }
 0x742   :  { %v7470_v27 = vpop.f32.mrb[34].mxu1  ;;  %9284 = vmatprep.mubr.bf16.mxu1 %v22666_v19  ;;  %9413 = vmatprep.mubr.bf16.mxu0 %v22666_v19  ;;  %v20269_v11 = vld [vmem:[#allocation6 + $0x5a8] ss:$24 sps:$4 sm:$0xff]  }
 0x743   :  { %v22670_v57 = vpack.c.bf16 %v7470_v27, %v7254_v47  ;;  %v7472_v28 = vpop.f32.mrb[35].mxu1  ;;  %v20262_v47 = vld [vmem:[#allocation6 + $0x574] ss:$24 sps:$4 sm:$0xff]   ;;  %v20278_v27 = vld [vmem:[#allocation6 + $0x600] ss:$24 sps:$4 sm:$0xff]  }
 0x744   :  { %v22672_v1 = vpack.c.bf16 %v7472_v28, %v7256_v60  ;;  %9255 = vmatpush1.bf16.msra.mxu1 %v20188_v21  ;;  %9384 = vmatpush1.bf16.msra.mxu0 %v20191_v23  ;;  %v20265_v60 = vld [vmem:[#allocation6 + $0x57c] ss:$24 sps:$4 sm:$0xff]   ;;  %v20272_v21 = vld [vmem:[#allocation6 + $0x5d0] ss:$24 sps:$4 sm:$0xff]  }
 0x745   :  { %9256 = vmatprep.subr.bf16.mxu1 %v20196_v14  ;;  %9385 = vmatprep.subr.bf16.mxu0 %v20199_v26  ;;  %v20275_v23 = vld [vmem:[#allocation6 + $0x5d8] ss:$24 sps:$4 sm:$0xff]   ;;  %v20280_v14 = vld [vmem:[#allocation6 + $0x604] ss:$24 sps:$4 sm:$0xff]   ;;  %v20281_v28 = vld [vmem:[#allocation6 + $0x608] ss:$24 sps:$4 sm:$0xff]  }
 0x746   :  { %v20283_v26 = vld [vmem:[#allocation6 + $0x60c] ss:$24 sps:$4 sm:$0xff]  }
 0x748   :  { %9257 = vmatpush1.bf16.msra.mxu1 %v20194_v30  ;;  %9386 = vmatpush1.bf16.msra.mxu0 %v20197_v2  ;;  %v20286_v30 = vld [vmem:[#allocation6 + $0x634] ss:$24 sps:$4 sm:$0xff]  }
 0x749   :  { %9258 = vmatprep.subr.bf16.mxu1 %v20202_v31  ;;  %9387 = vmatprep.subr.bf16.mxu0 %v20205_v3  ;;  %v20289_v2 = vld [vmem:[#allocation6 + $0x63c] ss:$24 sps:$4 sm:$0xff]   ;;  %v20284_v31 = vld [vmem:[#allocation6 + $0x630] ss:$24 sps:$4 sm:$0xff]  }
 0x74a   :  { %v20287_v3 = vld [vmem:[#allocation6 + $0x638] ss:$24 sps:$4 sm:$0xff]  }
 0x74c   :  { %9259 = vmatpush1.bf16.msra.mxu1 %v20200_v32  ;;  %9388 = vmatpush1.bf16.msra.mxu0 %v20203_v33  ;;  %v20292_v32 = vld [vmem:[#allocation6 + $0x664] ss:$24 sps:$4 sm:$0xff]  }
 0x74d   :  { %9260 = vmatprep.subr.bf16.mxu1 %v20208_v34  ;;  %9389 = vmatprep.subr.bf16.mxu0 %v20211_v6  ;;  %v20295_v33 = vld [vmem:[#allocation6 + $0x66c] ss:$24 sps:$4 sm:$0xff]   ;;  %v20290_v34 = vld [vmem:[#allocation6 + $0x660] ss:$24 sps:$4 sm:$0xff]  }
 0x74e   :  { %v20293_v6 = vld [vmem:[#allocation6 + $0x668] ss:$24 sps:$4 sm:$0xff]  }
 0x750   :  { %9261 = vmatpush1.bf16.msra.mxu1 %v20206_v25  ;;  %9390 = vmatpush1.bf16.msra.mxu0 %v20209_v35  ;;  %v20298_v25 = vld [vmem:[#allocation6 + $0x694] ss:$24 sps:$4 sm:$0xff]  }
 0x751   :  { %9262 = vmatprep.subr.bf16.mxu1 %v20214_v36  ;;  %9391 = vmatprep.subr.bf16.mxu0 %v20217_v37  ;;  %v20301_v35 = vld [vmem:[#allocation6 + $0x69c] ss:$24 sps:$4 sm:$0xff]   ;;  %v20296_v36 = vld [vmem:[#allocation6 + $0x690] ss:$24 sps:$4 sm:$0xff]  }
 0x752   :  { %v20299_v37 = vld [vmem:[#allocation6 + $0x698] ss:$24 sps:$4 sm:$0xff]  }
 0x754   :  { %9263 = vmatpush1.bf16.msra.mxu1 %v20212_v38  ;;  %9392 = vmatpush1.bf16.msra.mxu0 %v20215_v39  ;;  %v20304_v38 = vld [vmem:[#allocation6 + $0x6c4] ss:$24 sps:$4 sm:$0xff]  }
 0x755   :  { %9264 = vmatprep.subr.bf16.mxu1 %v20220_v40  ;;  %9393 = vmatprep.subr.bf16.mxu0 %v20223_v41  ;;  %v20307_v39 = vld [vmem:[#allocation6 + $0x6cc] ss:$24 sps:$4 sm:$0xff]   ;;  %v20302_v40 = vld [vmem:[#allocation6 + $0x6c0] ss:$24 sps:$4 sm:$0xff]  }
 0x756   :  { %v20305_v41 = vld [vmem:[#allocation6 + $0x6c8] ss:$24 sps:$4 sm:$0xff]  }
 0x758   :  { %9265 = vmatpush1.bf16.msra.mxu1 %v20218_v51  ;;  %9394 = vmatpush1.bf16.msra.mxu0 %v20221_v43  ;;  %v20310_v51 = vld [vmem:[#allocation6 + $0x6f4] ss:$24 sps:$4 sm:$0xff]  }
 0x759   :  { %9266 = vmatprep.subr.bf16.mxu1 %v20226_v22  ;;  %9395 = vmatprep.subr.bf16.mxu0 %v20229_v44  ;;  %v20313_v43 = vld [vmem:[#allocation6 + $0x6fc] ss:$24 sps:$4 sm:$0xff]   ;;  %v20308_v22 = vld [vmem:[#allocation6 + $0x6f0] ss:$24 sps:$4 sm:$0xff]  }
 0x75a   :  { %v20311_v44 = vld [vmem:[#allocation6 + $0x6f8] ss:$24 sps:$4 sm:$0xff]  }
 0x75c   :  { %9267 = vmatpush1.bf16.msra.mxu1 %v20224_v49  ;;  %9396 = vmatpush1.bf16.msra.mxu0 %v20227_v12  ;;  %v20316_v49 = vld [vmem:[#allocation6 + $0x724] ss:$24 sps:$4 sm:$0xff]  }
 0x75d   :  { %9268 = vmatprep.subr.bf16.mxu1 %v20232_v48  ;;  %9397 = vmatprep.subr.bf16.mxu0 %v20235_v20  ;;  %v20319_v12 = vld [vmem:[#allocation6 + $0x72c] ss:$24 sps:$4 sm:$0xff]   ;;  %v20314_v48 = vld [vmem:[#allocation6 + $0x720] ss:$24 sps:$4 sm:$0xff]  }
 0x75e   :  { %v20317_v20 = vld [vmem:[#allocation6 + $0x728] ss:$24 sps:$4 sm:$0xff]  }
 0x760   :  { %9269 = vmatpush1.bf16.msra.mxu1 %v20230_v10  ;;  %9398 = vmatpush1.bf16.msra.mxu0 %v20233_v45  ;;  %v20322_v10 = vld [vmem:[#allocation6 + $0x754] ss:$24 sps:$4 sm:$0xff]  }
 0x761   :  { %9270 = vmatprep.subr.bf16.mxu1 %v20238_v53  ;;  %9399 = vmatprep.subr.bf16.mxu0 %v20241_v55  ;;  %v20325_v45 = vld [vmem:[#allocation6 + $0x75c] ss:$24 sps:$4 sm:$0xff]   ;;  %v20320_v53 = vld [vmem:[#allocation6 + $0x750] ss:$24 sps:$4 sm:$0xff]  }
 0x762   :  { %v20323_v55 = vld [vmem:[#allocation6 + $0x758] ss:$24 sps:$4 sm:$0xff]  }
 0x764   :  { %9271 = vmatpush1.bf16.msra.mxu1 %v20236_v42  ;;  %9400 = vmatpush1.bf16.msra.mxu0 %v20239_v63  ;;  %v20328_v42 = vld [vmem:[#allocation6 + $0x784] ss:$24 sps:$4 sm:$0xff]  }
 0x765   :  { %9272 = vmatprep.subr.bf16.mxu1 %v20244_v56  ;;  %9401 = vmatprep.subr.bf16.mxu0 %v20247_v58  ;;  %v20331_v63 = vld [vmem:[#allocation6 + $0x78c] ss:$24 sps:$4 sm:$0xff]   ;;  %v20326_v56 = vld [vmem:[#allocation6 + $0x780] ss:$24 sps:$4 sm:$0xff]  }
 0x766   :  { %v20329_v58 = vld [vmem:[#allocation6 + $0x788] ss:$24 sps:$4 sm:$0xff]  }
 0x768   :  { %9273 = vmatpush1.bf16.msra.mxu1 %v20242_v62  ;;  %9402 = vmatpush1.bf16.msra.mxu0 %v20245_v29  ;;  %v20334_v62 = vld [vmem:[#allocation6 + $0x7b4] ss:$24 sps:$4 sm:$0xff]  }
 0x769   :  { %9274 = vmatprep.subr.bf16.mxu1 %v20250_v24  ;;  %9403 = vmatprep.subr.bf16.mxu0 %v20253_v54  ;;  %v20337_v29 = vld [vmem:[#allocation6 + $0x7bc] ss:$24 sps:$4 sm:$0xff]   ;;  %v20332_v24 = vld [vmem:[#allocation6 + $0x7b0] ss:$24 sps:$4 sm:$0xff]  }
 0x76a   :  { %v20335_v54 = vld [vmem:[#allocation6 + $0x7b8] ss:$24 sps:$4 sm:$0xff]  }
 0x76c   :  { %9275 = vmatpush1.bf16.msra.mxu1 %v20248_v50  ;;  %9404 = vmatpush1.bf16.msra.mxu0 %v20251_v13  ;;  %v20340_v50 = vld [vmem:[#allocation6 + $0x7e4] ss:$24 sps:$4 sm:$0xff]  }
 0x76d   :  { %9276 = vmatprep.subr.bf16.mxu1 %v20256_v17  ;;  %9405 = vmatprep.subr.bf16.mxu0 %v20259_v15  ;;  %v20343_v13 = vld [vmem:[#allocation6 + $0x7ec] ss:$24 sps:$4 sm:$0xff]   ;;  %v20338_v17 = vld [vmem:[#allocation6 + $0x7e0] ss:$24 sps:$4 sm:$0xff]  }
 0x76e   :  { %v20341_v15 = vld [vmem:[#allocation6 + $0x7e8] ss:$24 sps:$4 sm:$0xff]  }
 0x770   :  { %9277 = vmatpush1.bf16.msra.mxu1 %v20254_v46  ;;  %9406 = vmatpush1.bf16.msra.mxu0 %v20257_v59  ;;  %v20346_v46 = vld [vmem:[#allocation6 + $0x814] ss:$24 sps:$4 sm:$0xff]  }
 0x771   :  { %9278 = vmatprep.subr.bf16.mxu1 %v20262_v47  ;;  %9407 = vmatprep.subr.bf16.mxu0 %v20265_v60  ;;  %v20349_v59 = vld [vmem:[#allocation6 + $0x81c] ss:$24 sps:$4 sm:$0xff]   ;;  %v20344_v47 = vld [vmem:[#allocation6 + $0x810] ss:$24 sps:$4 sm:$0xff]  }
 0x772   :  { %v20347_v60 = vld [vmem:[#allocation6 + $0x818] ss:$24 sps:$4 sm:$0xff]  }
 0x774   :  { %9279 = vmatpush1.bf16.msra.mxu1 %v20260_v7  ;;  %9408 = vmatpush1.bf16.msra.mxu0 %v20263_v0  ;;  %v20352_v7 = vld [vmem:[#allocation6 + $0x844] ss:$24 sps:$4 sm:$0xff]  }
 0x775   :  { %9280 = vmatprep.subr.bf16.mxu1 %v20268_v4  ;;  %9409 = vmatprep.subr.bf16.mxu0 %v20271_v8  ;;  %v20355_v0 = vld [vmem:[#allocation6 + $0x84c] ss:$24 sps:$4 sm:$0xff]   ;;  %v20350_v4 = vld [vmem:[#allocation6 + $0x840] ss:$24 sps:$4 sm:$0xff]  }
 0x776   :  { %v20353_v8 = vld [vmem:[#allocation6 + $0x848] ss:$24 sps:$4 sm:$0xff]  }
 0x778   :  { %9281 = vmatpush1.bf16.msra.mxu1 %v20266_v9  ;;  %9410 = vmatpush1.bf16.msra.mxu0 %v20269_v11  ;;  %v20358_v9 = vld [vmem:[#allocation6 + $0x874] ss:$24 sps:$4 sm:$0xff]  }
 0x779   :  { %9282 = vmatprep.subr.bf16.mxu1 %v20274_v52  ;;  %9411 = vmatprep.subr.bf16.mxu0 %v20277_v18  ;;  %v20361_v11 = vld [vmem:[#allocation6 + $0x87c] ss:$24 sps:$4 sm:$0xff]   ;;  %v20356_v52 = vld [vmem:[#allocation6 + $0x870] ss:$24 sps:$4 sm:$0xff]  }
 0x77a   :  { %v20359_v18 = vld [vmem:[#allocation6 + $0x878] ss:$24 sps:$4 sm:$0xff]  }
 0x77c   :  { %9283 = vmatpush1.bf16.msra.mxu1 %v20272_v21  ;;  %9412 = vmatpush1.bf16.msra.mxu0 %v20275_v23  ;;  %v20364_v21 = vld [vmem:[#allocation6 + $0x8a4] ss:$24 sps:$4 sm:$0xff]  }
 0x77d   :  { %9295 = vmatprep.subr.bf16.mxu1 %v20280_v14  ;;  %9424 = vmatprep.subr.bf16.mxu0 %v20283_v26  ;;  %v20367_v23 = vld [vmem:[#allocation6 + $0x8ac] ss:$24 sps:$4 sm:$0xff]   ;;  %v20362_v14 = vld [vmem:[#allocation6 + $0x8a0] ss:$24 sps:$4 sm:$0xff]  }
 0x77e   :  { %v20365_v26 = vld [vmem:[#allocation6 + $0x8a8] ss:$24 sps:$4 sm:$0xff]  }
 0x77f   :  { %9285 = vmatmul.mubr.bf16.vlgmr.msra.gmra.mrb[36].mxu1 %v22662_v16  ;;  %9414 = vmatmul.mubr.bf16.vlgmr.msra.gmra.mrb[20].mxu0 %v22662_v16 }
 0x780   :  { %9296 = vmatpush1.bf16.msra.mxu1 %v20278_v27  ;;  %9327 = vmatprep.mubr.bf16.mxu1 %v22672_v1  ;;  %v20370_v27 = vld [vmem:[#allocation6 + $0x8d4] ss:$24 sps:$4 sm:$0xff]  }
 0x781   :  { %9425 = vmatpush1.bf16.msra.mxu0 %v20281_v28  ;;  %9456 = vmatprep.mubr.bf16.mxu0 %v22672_v1  ;;  %v20373_v28 = vld [vmem:[#allocation6 + $0x8dc] ss:$24 sps:$4 sm:$0xff]  }
 0x782   :  { %9297 = vmatprep.subr.bf16.mxu1 %v20286_v30  ;;  %9426 = vmatprep.subr.bf16.mxu0 %v20289_v2  ;;  %v20368_v30 = vld [vmem:[#allocation6 + $0x8d0] ss:$24 sps:$4 sm:$0xff]  }
 0x783   :  { %v20371_v2 = vld [vmem:[#allocation6 + $0x8d8] ss:$24 sps:$4 sm:$0xff]  }
 0x784   :  { %9298 = vmatpush1.bf16.msra.mxu1 %v20284_v31  ;;  %v20376_v31 = vld [vmem:[#allocation6 + $0x14] ss:$24 sps:$4 sm:$0xff]  }
 0x785   :  { %9427 = vmatpush1.bf16.msra.mxu0 %v20287_v3  ;;  %9299 = vmatprep.subr.bf16.mxu1 %v20292_v32  ;;  %v20374_v3 = vld [vmem:[#allocation6 + $0x10] ss:$24 sps:$4 sm:$0xff]   ;;  %v20379_v32 = vld [vmem:[#allocation6 + $0x44] ss:$24 sps:$4 sm:$0xff]  }
 0x786   :  { %9428 = vmatprep.subr.bf16.mxu0 %v20295_v33  ;;  %v20377_v33 = vld [vmem:[#allocation6 + $0x40] ss:$24 sps:$4 sm:$0xff]  }
 0x788   :  { %9300 = vmatpush1.bf16.msra.mxu1 %v20290_v34  ;;  %v20382_v34 = vld [vmem:[#allocation6 + $0x74] ss:$24 sps:$4 sm:$0xff]  }
 0x789   :  { %9429 = vmatpush1.bf16.msra.mxu0 %v20293_v6  ;;  %9301 = vmatprep.subr.bf16.mxu1 %v20298_v25  ;;  %v20380_v6 = vld [vmem:[#allocation6 + $0x70] ss:$24 sps:$4 sm:$0xff]   ;;  %v20385_v25 = vld [vmem:[#allocation6 + $0xa4] ss:$24 sps:$4 sm:$0xff]  }
 0x78a   :  { %9430 = vmatprep.subr.bf16.mxu0 %v20301_v35  ;;  %v20383_v35 = vld [vmem:[#allocation6 + $0xa0] ss:$24 sps:$4 sm:$0xff]  }
 0x78c   :  { %9302 = vmatpush1.bf16.msra.mxu1 %v20296_v36  ;;  %v20388_v36 = vld [vmem:[#allocation6 + $0xd4] ss:$24 sps:$4 sm:$0xff]  }
 0x78d   :  { %9431 = vmatpush1.bf16.msra.mxu0 %v20299_v37  ;;  %9303 = vmatprep.subr.bf16.mxu1 %v20304_v38  ;;  %v20386_v37 = vld [vmem:[#allocation6 + $0xd0] ss:$24 sps:$4 sm:$0xff]   ;;  %v20391_v38 = vld [vmem:[#allocation6 + $0x104] ss:$24 sps:$4 sm:$0xff]  }
 0x78e   :  { %9432 = vmatprep.subr.bf16.mxu0 %v20307_v39  ;;  %v20389_v39 = vld [vmem:[#allocation6 + $0x100] ss:$24 sps:$4 sm:$0xff]  }
 0x790   :  { %9304 = vmatpush1.bf16.msra.mxu1 %v20302_v40  ;;  %v20394_v40 = vld [vmem:[#allocation6 + $0x134] ss:$24 sps:$4 sm:$0xff]  }
 0x791   :  { %9433 = vmatpush1.bf16.msra.mxu0 %v20305_v41  ;;  %9305 = vmatprep.subr.bf16.mxu1 %v20310_v51  ;;  %v20397_v41 = vld [vmem:[#allocation6 + $0x164] ss:$24 sps:$4 sm:$0xff]   ;;  %v20395_v51 = vld [vmem:[#allocation6 + $0x160] ss:$24 sps:$4 sm:$0xff]  }
 0x792   :  { %9434 = vmatprep.subr.bf16.mxu0 %v20313_v43  ;;  %v20400_v43 = vld [vmem:[#allocation6 + $0x194] ss:$24 sps:$4 sm:$0xff]  }
 0x794   :  { %9306 = vmatpush1.bf16.msra.mxu1 %v20308_v22  ;;  %v20398_v22 = vld [vmem:[#allocation6 + $0x190] ss:$24 sps:$4 sm:$0xff]  }
 0x795   :  { %9435 = vmatpush1.bf16.msra.mxu0 %v20311_v44  ;;  %9307 = vmatprep.subr.bf16.mxu1 %v20316_v49  ;;  %v20403_v44 = vld [vmem:[#allocation6 + $0x1c4] ss:$24 sps:$4 sm:$0xff]   ;;  %v20401_v49 = vld [vmem:[#allocation6 + $0x1c0] ss:$24 sps:$4 sm:$0xff]  }
 0x796   :  { %9436 = vmatprep.subr.bf16.mxu0 %v20319_v12  ;;  %v20406_v12 = vld [vmem:[#allocation6 + $0x1f4] ss:$24 sps:$4 sm:$0xff]  }
 0x798   :  { %9308 = vmatpush1.bf16.msra.mxu1 %v20314_v48  ;;  %v20404_v48 = vld [vmem:[#allocation6 + $0x1f0] ss:$24 sps:$4 sm:$0xff]  }
 0x799   :  { %9437 = vmatpush1.bf16.msra.mxu0 %v20317_v20  ;;  %9309 = vmatprep.subr.bf16.mxu1 %v20322_v10  ;;  %v20409_v20 = vld [vmem:[#allocation6 + $0x224] ss:$24 sps:$4 sm:$0xff]   ;;  %v20407_v10 = vld [vmem:[#allocation6 + $0x220] ss:$24 sps:$4 sm:$0xff]  }
 0x79a   :  { %9438 = vmatprep.subr.bf16.mxu0 %v20325_v45  ;;  %v20412_v45 = vld [vmem:[#allocation6 + $0x254] ss:$24 sps:$4 sm:$0xff]  }
 0x79c   :  { %9310 = vmatpush1.bf16.msra.mxu1 %v20320_v53  ;;  %v20410_v53 = vld [vmem:[#allocation6 + $0x250] ss:$24 sps:$4 sm:$0xff]  }
 0x79d   :  { %9439 = vmatpush1.bf16.msra.mxu0 %v20323_v55  ;;  %9311 = vmatprep.subr.bf16.mxu1 %v20328_v42  ;;  %v20415_v55 = vld [vmem:[#allocation6 + $0x284] ss:$24 sps:$4 sm:$0xff]   ;;  %v20413_v42 = vld [vmem:[#allocation6 + $0x280] ss:$24 sps:$4 sm:$0xff]  }
 0x79e   :  { %9440 = vmatprep.subr.bf16.mxu0 %v20331_v63  ;;  %v20418_v63 = vld [vmem:[#allocation6 + $0x2b4] ss:$24 sps:$4 sm:$0xff]  }
 0x7a0   :  { %9312 = vmatpush1.bf16.msra.mxu1 %v20326_v56  ;;  %v20416_v56 = vld [vmem:[#allocation6 + $0x2b0] ss:$24 sps:$4 sm:$0xff]  }
 0x7a1   :  { %9441 = vmatpush1.bf16.msra.mxu0 %v20329_v58  ;;  %9313 = vmatprep.subr.bf16.mxu1 %v20334_v62  ;;  %v20421_v58 = vld [vmem:[#allocation6 + $0x2e4] ss:$24 sps:$4 sm:$0xff]   ;;  %v20419_v62 = vld [vmem:[#allocation6 + $0x2e0] ss:$24 sps:$4 sm:$0xff]  }
 0x7a2   :  { %9442 = vmatprep.subr.bf16.mxu0 %v20337_v29  ;;  %v20424_v29 = vld [vmem:[#allocation6 + $0x314] ss:$24 sps:$4 sm:$0xff]  }
 0x7a4   :  { %9314 = vmatpush1.bf16.msra.mxu1 %v20332_v24  ;;  %v20422_v24 = vld [vmem:[#allocation6 + $0x310] ss:$24 sps:$4 sm:$0xff]  }
 0x7a5   :  { %9443 = vmatpush1.bf16.msra.mxu0 %v20335_v54  ;;  %9315 = vmatprep.subr.bf16.mxu1 %v20340_v50  ;;  %v20427_v54 = vld [vmem:[#allocation6 + $0x344] ss:$24 sps:$4 sm:$0xff]   ;;  %v20425_v50 = vld [vmem:[#allocation6 + $0x340] ss:$24 sps:$4 sm:$0xff]  }
 0x7a6   :  { %9444 = vmatprep.subr.bf16.mxu0 %v20343_v13  ;;  %v20430_v13 = vld [vmem:[#allocation6 + $0x374] ss:$24 sps:$4 sm:$0xff]  }
 0x7a8   :  { %9316 = vmatpush1.bf16.msra.mxu1 %v20338_v17  ;;  %v20428_v17 = vld [vmem:[#allocation6 + $0x370] ss:$24 sps:$4 sm:$0xff]  }
 0x7a9   :  { %9445 = vmatpush1.bf16.msra.mxu0 %v20341_v15  ;;  %9317 = vmatprep.subr.bf16.mxu1 %v20346_v46  ;;  %v20433_v15 = vld [vmem:[#allocation6 + $0x3a4] ss:$24 sps:$4 sm:$0xff]   ;;  %v20431_v46 = vld [vmem:[#allocation6 + $0x3a0] ss:$24 sps:$4 sm:$0xff]  }
 0x7aa   :  { %9446 = vmatprep.subr.bf16.mxu0 %v20349_v59  ;;  %v20436_v59 = vld [vmem:[#allocation6 + $0x3d4] ss:$24 sps:$4 sm:$0xff]  }
 0x7ac   :  { %9318 = vmatpush1.bf16.msra.mxu1 %v20344_v47  ;;  %v20434_v47 = vld [vmem:[#allocation6 + $0x3d0] ss:$24 sps:$4 sm:$0xff]  }
 0x7ad   :  { %9447 = vmatpush1.bf16.msra.mxu0 %v20347_v60  ;;  %9319 = vmatprep.subr.bf16.mxu1 %v20352_v7  ;;  %v20439_v60 = vld [vmem:[#allocation6 + $0x404] ss:$24 sps:$4 sm:$0xff]   ;;  %v20442_v7 = vld [vmem:[#allocation6 + $0x434] ss:$24 sps:$4 sm:$0xff]  }
 0x7ae   :  { %9448 = vmatprep.subr.bf16.mxu0 %v20355_v0  ;;  %v20445_v0 = vld [vmem:[#allocation6 + $0x464] ss:$24 sps:$4 sm:$0xff]  }
 0x7b0   :  { %9320 = vmatpush1.bf16.msra.mxu1 %v20350_v4  ;;  %v20443_v4 = vld [vmem:[#allocation6 + $0x460] ss:$24 sps:$4 sm:$0xff]  }
 0x7b1   :  { %9449 = vmatpush1.bf16.msra.mxu0 %v20353_v8  ;;  %9321 = vmatprep.subr.bf16.mxu1 %v20358_v9  ;;  %v20448_v8 = vld [vmem:[#allocation6 + $0x494] ss:$24 sps:$4 sm:$0xff]   ;;  %v20446_v9 = vld [vmem:[#allocation6 + $0x490] ss:$24 sps:$4 sm:$0xff]  }
 0x7b2   :  { %9450 = vmatprep.subr.bf16.mxu0 %v20361_v11  ;;  %v20451_v11 = vld [vmem:[#allocation6 + $0x4c4] ss:$24 sps:$4 sm:$0xff]  }
 0x7b4   :  { %9322 = vmatpush1.bf16.msra.mxu1 %v20356_v52  ;;  %v20449_v52 = vld [vmem:[#allocation6 + $0x4c0] ss:$24 sps:$4 sm:$0xff]  }
 0x7b5   :  { %9451 = vmatpush1.bf16.msra.mxu0 %v20359_v18  ;;  %9323 = vmatprep.subr.bf16.mxu1 %v20364_v21  ;;  %v20454_v18 = vld [vmem:[#allocation6 + $0x4f4] ss:$24 sps:$4 sm:$0xff]   ;;  %v20452_v21 = vld [vmem:[#allocation6 + $0x4f0] ss:$24 sps:$4 sm:$0xff]  }
 0x7b6   :  { %9452 = vmatprep.subr.bf16.mxu0 %v20367_v23  ;;  %v20457_v23 = vld [vmem:[#allocation6 + $0x524] ss:$24 sps:$4 sm:$0xff]  }
 0x7b8   :  { %9324 = vmatpush1.bf16.msra.mxu1 %v20362_v14  ;;  %v20455_v14 = vld [vmem:[#allocation6 + $0x520] ss:$24 sps:$4 sm:$0xff]  }
 0x7b9   :  { %9453 = vmatpush1.bf16.msra.mxu0 %v20365_v26  ;;  %9325 = vmatprep.subr.bf16.mxu1 %v20370_v27  ;;  %v20460_v26 = vld [vmem:[#allocation6 + $0x554] ss:$24 sps:$4 sm:$0xff]   ;;  %v20458_v27 = vld [vmem:[#allocation6 + $0x550] ss:$24 sps:$4 sm:$0xff]  }
 0x7ba   :  { %9454 = vmatprep.subr.bf16.mxu0 %v20373_v28  ;;  %v20463_v28 = vld [vmem:[#allocation6 + $0x584] ss:$24 sps:$4 sm:$0xff]  }
 0x7bc   :  { %9326 = vmatpush1.bf16.msra.mxu1 %v20368_v30  ;;  %v20461_v30 = vld [vmem:[#allocation6 + $0x580] ss:$24 sps:$4 sm:$0xff]  }
 0x7bd   :  { %9455 = vmatpush1.bf16.msra.mxu0 %v20371_v2  ;;  %9467 = vmatprep.subr.bf16.mxu1 %v20376_v31  ;;  %v20466_v2 = vld [vmem:[#allocation6 + $0x5b4] ss:$24 sps:$4 sm:$0xff]   ;;  %v20464_v31 = vld [vmem:[#allocation6 + $0x5b0] ss:$24 sps:$4 sm:$0xff]  }
 0x7bf   :  { %9328 = vmatmul.mubr.bf16.vlgmr.msra.gmra.mrb[36].mxu1 %v22670_v57 }
 0x7c0   :  { %9457 = vmatmul.mubr.bf16.vlgmr.msra.gmra.mrb[20].mxu0 %v22670_v57  ;;  %9468 = vmatpush1.bf16.msra.mxu1 %v20374_v3  ;;  %v20469_v3 = vld [vmem:[#allocation6 + $0x5e4] ss:$24 sps:$4 sm:$0xff]  }
 0x7c1   :  { %9499 = vmatprep.mubr.bf16.mxu1 %v22658_v5  ;;  %9469 = vmatprep.subr.bf16.mxu1 %v20379_v32  ;;  %v20392_v5 = vld [vmem:[#allocation6 + $0x130] ss:$24 sps:$4 sm:$0xff]   ;;  %v20467_v32 = vld [vmem:[#allocation6 + $0x5e0] ss:$24 sps:$4 sm:$0xff]  }
 0x7c4   :  { %9470 = vmatpush1.bf16.msra.mxu1 %v20377_v33  ;;  %v20472_v33 = vld [vmem:[#allocation6 + $0x614] ss:$24 sps:$4 sm:$0xff]  }
 0x7c5   :  { %9471 = vmatprep.subr.bf16.mxu1 %v20382_v34  ;;  %v20470_v34 = vld [vmem:[#allocation6 + $0x610] ss:$24 sps:$4 sm:$0xff]  }
 0x7c8   :  { %9472 = vmatpush1.bf16.msra.mxu1 %v20380_v6  ;;  %v20475_v6 = vld [vmem:[#allocation6 + $0x644] ss:$24 sps:$4 sm:$0xff]  }
 0x7c9   :  { %9473 = vmatprep.subr.bf16.mxu1 %v20385_v25  ;;  %v20473_v25 = vld [vmem:[#allocation6 + $0x640] ss:$24 sps:$4 sm:$0xff]  }
 0x7cc   :  { %9474 = vmatpush1.bf16.msra.mxu1 %v20383_v35  ;;  %v20478_v35 = vld [vmem:[#allocation6 + $0x674] ss:$24 sps:$4 sm:$0xff]  }
 0x7cd   :  { %9475 = vmatprep.subr.bf16.mxu1 %v20388_v36  ;;  %v20476_v36 = vld [vmem:[#allocation6 + $0x670] ss:$24 sps:$4 sm:$0xff]  }
 0x7d0   :  { %9476 = vmatpush1.bf16.msra.mxu1 %v20386_v37  ;;  %v20481_v37 = vld [vmem:[#allocation6 + $0x6a4] ss:$24 sps:$4 sm:$0xff]  }
 0x7d1   :  { %9477 = vmatprep.subr.bf16.mxu1 %v20391_v38  ;;  %v20479_v38 = vld [vmem:[#allocation6 + $0x6a0] ss:$24 sps:$4 sm:$0xff]  }
 0x7d4   :  { %9478 = vmatpush1.bf16.msra.mxu1 %v20389_v39  ;;  %v20484_v39 = vld [vmem:[#allocation6 + $0x6d4] ss:$24 sps:$4 sm:$0xff]  }
 0x7d5   :  { %9479 = vmatprep.subr.bf16.mxu1 %v20394_v40  ;;  %v20482_v40 = vld [vmem:[#allocation6 + $0x6d0] ss:$24 sps:$4 sm:$0xff]  }
 0x7d8   :  { %9480 = vmatpush1.bf16.msra.mxu1 %v20392_v5  ;;  %v20487_v5 = vld [vmem:[#allocation6 + $0x704] ss:$24 sps:$4 sm:$0xff]  }
 0x7d9   :  { %9481 = vmatprep.subr.bf16.mxu1 %v20397_v41  ;;  %v20490_v41 = vld [vmem:[#allocation6 + $0x734] ss:$24 sps:$4 sm:$0xff]  }
 0x7dc   :  { %9482 = vmatpush1.bf16.msra.mxu1 %v20395_v51  ;;  %v20493_v51 = vld [vmem:[#allocation6 + $0x764] ss:$24 sps:$4 sm:$0xff]  }
 0x7dd   :  { %9483 = vmatprep.subr.bf16.mxu1 %v20400_v43  ;;  %v20491_v43 = vld [vmem:[#allocation6 + $0x760] ss:$24 sps:$4 sm:$0xff]  }
 0x7e0   :  { %9484 = vmatpush1.bf16.msra.mxu1 %v20398_v22  ;;  %v20496_v22 = vld [vmem:[#allocation6 + $0x794] ss:$24 sps:$4 sm:$0xff]  }
 0x7e1   :  { %9485 = vmatprep.subr.bf16.mxu1 %v20403_v44  ;;  %v20494_v44 = vld [vmem:[#allocation6 + $0x790] ss:$24 sps:$4 sm:$0xff]  }
 0x7e4   :  { %9486 = vmatpush1.bf16.msra.mxu1 %v20401_v49  ;;  %v20499_v49 = vld [vmem:[#allocation6 + $0x7c4] ss:$24 sps:$4 sm:$0xff]  }
 0x7e5   :  { %9487 = vmatprep.subr.bf16.mxu1 %v20406_v12  ;;  %v20497_v12 = vld [vmem:[#allocation6 + $0x7c0] ss:$24 sps:$4 sm:$0xff]  }
 0x7e8   :  { %9488 = vmatpush1.bf16.msra.mxu1 %v20404_v48  ;;  %v20502_v48 = vld [vmem:[#allocation6 + $0x7f4] ss:$24 sps:$4 sm:$0xff]  }
 0x7e9   :  { %9489 = vmatprep.subr.bf16.mxu1 %v20409_v20  ;;  %v20500_v20 = vld [vmem:[#allocation6 + $0x7f0] ss:$24 sps:$4 sm:$0xff]  }
 0x7ec   :  { %9490 = vmatpush1.bf16.msra.mxu1 %v20407_v10  ;;  %v20505_v10 = vld [vmem:[#allocation6 + $0x824] ss:$24 sps:$4 sm:$0xff]  }
 0x7ed   :  { %9491 = vmatprep.subr.bf16.mxu1 %v20412_v45  ;;  %v20503_v45 = vld [vmem:[#allocation6 + $0x820] ss:$24 sps:$4 sm:$0xff]  }
 0x7f0   :  { %9492 = vmatpush1.bf16.msra.mxu1 %v20410_v53  ;;  %v20508_v53 = vld [vmem:[#allocation6 + $0x854] ss:$24 sps:$4 sm:$0xff]  }
 0x7f1   :  { %9493 = vmatprep.subr.bf16.mxu1 %v20415_v55  ;;  %v20506_v55 = vld [vmem:[#allocation6 + $0x850] ss:$24 sps:$4 sm:$0xff]  }
 0x7f4   :  { %9494 = vmatpush1.bf16.msra.mxu1 %v20413_v42  ;;  %v20511_v42 = vld [vmem:[#allocation6 + $0x884] ss:$24 sps:$4 sm:$0xff]  }
 0x7f5   :  { %9495 = vmatprep.subr.bf16.mxu1 %v20418_v63  ;;  %v20509_v63 = vld [vmem:[#allocation6 + $0x880] ss:$24 sps:$4 sm:$0xff]  }
 0x7f8   :  { %9496 = vmatpush1.bf16.msra.mxu1 %v20416_v56  ;;  %v20514_v56 = vld [vmem:[#allocation6 + $0x8b4] ss:$24 sps:$4 sm:$0xff]  }
 0x7f9   :  { %9497 = vmatprep.subr.bf16.mxu1 %v20421_v58  ;;  %v20512_v58 = vld [vmem:[#allocation6 + $0x8b0] ss:$24 sps:$4 sm:$0xff]  }
 0x7fc   :  { %9498 = vmatpush1.bf16.msra.mxu1 %v20419_v62  ;;  %v20517_v62 = vld [vmem:[#allocation6 + $0x8e4] ss:$24 sps:$4 sm:$0xff]  }
 0x7fd   :  { %9510 = vmatprep.subr.bf16.mxu1 %v20424_v29  ;;  %v20515_v29 = vld [vmem:[#allocation6 + $0x8e0] ss:$24 sps:$4 sm:$0xff]  }
 0x7ff   :  { %9500 = vmatmul.mubr.bf16.vlgmr.msra.gmra.mrb[40].mxu1 %v22656_v61  ;;  %v20437_v61 = vld [vmem:[#allocation6 + $0x400] ss:$24 sps:$4 sm:$0xff]  }
 0x800   :  { %9511 = vmatpush1.bf16.msra.mxu1 %v20422_v24  ;;  %9542 = vmatprep.mubr.bf16.mxu1 %v22666_v19  ;;  %v20440_v19 = vld [vmem:[#allocation6 + $0x430] ss:$24 sps:$4 sm:$0xff]  }
 0x801   :  { %9512 = vmatprep.subr.bf16.mxu1 %v20427_v54 }
 0x804   :  { %9513 = vmatpush1.bf16.msra.mxu1 %v20425_v50 }
 0x805   :  { %9514 = vmatprep.subr.bf16.mxu1 %v20430_v13 }
 0x808   :  { %9515 = vmatpush1.bf16.msra.mxu1 %v20428_v17 }
 0x809   :  { %9516 = vmatprep.subr.bf16.mxu1 %v20433_v15 }
 0x80c   :  { %9517 = vmatpush1.bf16.msra.mxu1 %v20431_v46 }
 0x80d   :  { %9518 = vmatprep.subr.bf16.mxu1 %v20436_v59 }
 0x810   :  { %9519 = vmatpush1.bf16.msra.mxu1 %v20434_v47  ;;  %v21830_v47 = vld [vmem:[%s23198_s1] sm:$0xff] }
 0x811   :  { %9520 = vmatprep.subr.bf16.mxu1 %v20439_v60 }
 0x814   :  { %9521 = vmatpush1.bf16.msra.mxu1 %v20437_v61  ;;  %v21831_v61 = vld [vmem:[%s23198_s1 + $0x8] sm:$0xff] }
 0x815   :  { %9522 = vmatprep.subr.bf16.mxu1 %v20442_v7 }
 0x818   :  { %9523 = vmatpush1.bf16.msra.mxu1 %v20440_v19 }
 0x819   :  { %9524 = vmatprep.subr.bf16.mxu1 %v20445_v0  ;;  %v21833_v0 = vld [vmem:[%s23198_s1 + $0x38] sm:$0xff] }
 0x81c   :  { %9525 = vmatpush1.bf16.msra.mxu1 %v20443_v4 }
 0x81d   :  { %9526 = vmatprep.subr.bf16.mxu1 %v20448_v8 }
 0x820   :  { %9527 = vmatpush1.bf16.msra.mxu1 %v20446_v9  ;;  %v21834_v9 = vld [vmem:[%s23198_s1 + $0x10] sm:$0xff] }
 0x821   :  { %9528 = vmatprep.subr.bf16.mxu1 %v20451_v11 }
 0x824   :  { %9529 = vmatpush1.bf16.msra.mxu1 %v20449_v52 }
 0x825   :  { %9530 = vmatprep.subr.bf16.mxu1 %v20454_v18 }
 0x828   :  { %9531 = vmatpush1.bf16.msra.mxu1 %v20452_v21  ;;  %v21835_v21 = vld [vmem:[%s23198_s1 + $0x40] sm:$0xff] }
 0x829   :  { %9532 = vmatprep.subr.bf16.mxu1 %v20457_v23 }
 0x82c   :  { %9533 = vmatpush1.bf16.msra.mxu1 %v20455_v14  ;;  %v21836_v14 = vld [vmem:[%s23198_s1 + $0x18] sm:$0xff] }
 0x82d   :  { %9534 = vmatprep.subr.bf16.mxu1 %v20460_v26 }
 0x830   :  { %9535 = vmatpush1.bf16.msra.mxu1 %v20458_v27 }
 0x831   :  { %9536 = vmatprep.subr.bf16.mxu1 %v20463_v28 }
 0x834   :  { %9537 = vmatpush1.bf16.msra.mxu1 %v20461_v30 }
 0x835   :  { %9538 = vmatprep.subr.bf16.mxu1 %v20466_v2  ;;  %v21837_v2 = vld [vmem:[%s23198_s1 + $0x48] sm:$0xff] }
 0x838   :  { %9539 = vmatpush1.bf16.msra.mxu1 %v20464_v31 }
 0x839   :  { %9540 = vmatprep.subr.bf16.mxu1 %v20469_v3  ;;  %v21838_v3 = vld [vmem:[%s23198_s1 + $0x20] sm:$0xff] }
 0x83c   :  { %9541 = vmatpush1.bf16.msra.mxu1 %v20467_v32 }
 0x83d   :  { %9553 = vmatprep.subr.bf16.mxu1 %v20472_v33 }
 0x83f   :  { %9543 = vmatmul.mubr.bf16.vlgmr.msra.gmra.mrb[40].mxu1 %v22662_v16  ;;  %v20485_v16 = vld [vmem:[#allocation6 + $0x700] ss:$24 sps:$4 sm:$0xff]  }
 0x840   :  { %9554 = vmatpush1.bf16.msra.mxu1 %v20470_v34  ;;  %9585 = vmatprep.mubr.bf16.mxu1 %v22672_v1  ;;  %v20488_v1 = vld [vmem:[#allocation6 + $0x730] ss:$24 sps:$4 sm:$0xff]  }
 0x841   :  { %9555 = vmatprep.subr.bf16.mxu1 %v20475_v6  ;;  %v21839_v34 = vld [vmem:[%s23198_s1 + $0x28] sm:$0xff] }
 0x844   :  { %9556 = vmatpush1.bf16.msra.mxu1 %v20473_v25 }
 0x845   :  { %9557 = vmatprep.subr.bf16.mxu1 %v20478_v35 }
 0x848   :  { %9558 = vmatpush1.bf16.msra.mxu1 %v20476_v36 }
 0x849   :  { %9559 = vmatprep.subr.bf16.mxu1 %v20481_v37  ;;  %v21840_v37 = vld [vmem:[%s23198_s1 + $0x50] sm:$0xff] }
 0x84c   :  { %9560 = vmatpush1.bf16.msra.mxu1 %v20479_v38 }
 0x84d   :  { %9561 = vmatprep.subr.bf16.mxu1 %v20484_v39 }
 0x850   :  { %9562 = vmatpush1.bf16.msra.mxu1 %v20482_v40  ;;  %v21841_v40 = vld [vmem:[%s23198_s1 + $0x58] sm:$0xff] }
 0x851   :  { %9563 = vmatprep.subr.bf16.mxu1 %v20487_v5 }
 0x854   :  { %9564 = vmatpush1.bf16.msra.mxu1 %v20485_v16 }
 0x855   :  { %9565 = vmatprep.subr.bf16.mxu1 %v20490_v41 }
 0x858   :  { %9566 = vmatpush1.bf16.msra.mxu1 %v20488_v1 }
 0x859   :  { %9567 = vmatprep.subr.bf16.mxu1 %v20493_v51  ;;  %v20518_v51 = vld [vmem:[#allocation8] ss:$24 sps:$4 sm:$0xff]  }
 0x85c   :  { %9568 = vmatpush1.bf16.msra.mxu1 %v20491_v43  ;;  %v20520_v43 = vld [vmem:[#allocation8 + $0x4] ss:$24 sps:$4 sm:$0xff]  }
 0x85d   :  { %9569 = vmatprep.subr.bf16.mxu1 %v20496_v22  ;;  %v20521_v22 = vld [vmem:[#allocation8 + $0x8] ss:$24 sps:$4 sm:$0xff]   ;;  %11535 = vmatprep.subr.bf16.mxu0 %v20520_v43 }
 0x85e   :  { %11536 = vmatpush1.bf16.msra.mxu0 %v20518_v51 }
 0x860   :  { %9570 = vmatpush1.bf16.msra.mxu1 %v20494_v44  ;;  %v20523_v44 = vld [vmem:[#allocation8 + $0xc] ss:$24 sps:$4 sm:$0xff]  }
 0x861   :  { %9571 = vmatprep.subr.bf16.mxu1 %v20499_v49  ;;  %v20526_v49 = vld [vmem:[#allocation8 + $0x34] ss:$24 sps:$4 sm:$0xff]  }
 0x862   :  { %11537 = vmatprep.subr.bf16.mxu0 %v20526_v49 }
 0x864   :  { %9572 = vmatpush1.bf16.msra.mxu1 %v20497_v12  ;;  %v20529_v12 = vld [vmem:[#allocation8 + $0x3c] ss:$24 sps:$4 sm:$0xff]  }
 0x865   :  { %9573 = vmatprep.subr.bf16.mxu1 %v20502_v48  ;;  %v20524_v48 = vld [vmem:[#allocation8 + $0x30] ss:$24 sps:$4 sm:$0xff]  }
 0x866   :  { %11538 = vmatpush1.bf16.msra.mxu0 %v20524_v48 }
 0x868   :  { %9574 = vmatpush1.bf16.msra.mxu1 %v20500_v20  ;;  %v20527_v20 = vld [vmem:[#allocation8 + $0x38] ss:$24 sps:$4 sm:$0xff]  }
 0x869   :  { %9575 = vmatprep.subr.bf16.mxu1 %v20505_v10  ;;  %v20532_v10 = vld [vmem:[#allocation8 + $0x64] ss:$24 sps:$4 sm:$0xff]  }
 0x86a   :  { %11539 = vmatprep.subr.bf16.mxu0 %v20532_v10 }
 0x86c   :  { %9576 = vmatpush1.bf16.msra.mxu1 %v20503_v45  ;;  %v20535_v45 = vld [vmem:[#allocation8 + $0x6c] ss:$24 sps:$4 sm:$0xff]  }
 0x86d   :  { %9577 = vmatprep.subr.bf16.mxu1 %v20508_v53  ;;  %v20530_v53 = vld [vmem:[#allocation8 + $0x60] ss:$24 sps:$4 sm:$0xff]  }
 0x86e   :  { %11540 = vmatpush1.bf16.msra.mxu0 %v20530_v53 }
 0x870   :  { %9578 = vmatpush1.bf16.msra.mxu1 %v20506_v55  ;;  %v20533_v55 = vld [vmem:[#allocation8 + $0x68] ss:$24 sps:$4 sm:$0xff]  }
 0x871   :  { %9579 = vmatprep.subr.bf16.mxu1 %v20511_v42  ;;  %v20538_v42 = vld [vmem:[#allocation8 + $0x94] ss:$24 sps:$4 sm:$0xff]  }
 0x872   :  { %11541 = vmatprep.subr.bf16.mxu0 %v20538_v42 }
 0x874   :  { %9580 = vmatpush1.bf16.msra.mxu1 %v20509_v63  ;;  %v20541_v63 = vld [vmem:[#allocation8 + $0x9c] ss:$24 sps:$4 sm:$0xff]  }
 0x875   :  { %9581 = vmatprep.subr.bf16.mxu1 %v20514_v56  ;;  %v20536_v56 = vld [vmem:[#allocation8 + $0x90] ss:$24 sps:$4 sm:$0xff]  }
 0x876   :  { %11542 = vmatpush1.bf16.msra.mxu0 %v20536_v56  ;;  %v20580_v56 = vld [vmem:[#allocation8 + $0x1e4] ss:$24 sps:$4 sm:$0xff]  }
 0x878   :  { %9582 = vmatpush1.bf16.msra.mxu1 %v20512_v58  ;;  %v20539_v58 = vld [vmem:[#allocation8 + $0x98] ss:$24 sps:$4 sm:$0xff]  }
 0x879   :  { %9583 = vmatprep.subr.bf16.mxu1 %v20517_v62  ;;  %v20544_v62 = vld [vmem:[#allocation8 + $0xc4] ss:$24 sps:$4 sm:$0xff]  }
 0x87a   :  { %11543 = vmatprep.subr.bf16.mxu0 %v20544_v62  ;;  %v20578_v62 = vld [vmem:[#allocation8 + $0x1e0] ss:$24 sps:$4 sm:$0xff]  }
 0x87c   :  { %9584 = vmatpush1.bf16.msra.mxu1 %v20515_v29  ;;  %v20547_v29 = vld [vmem:[#allocation8 + $0xcc] ss:$24 sps:$4 sm:$0xff]  }
 0x87d   :  { %11664 = vmatprep.subr.bf16.mxu1 %v20523_v44 }
 0x87f   :  { %9586 = vmatmul.mubr.bf16.vlgmr.msra.gmra.mrb[40].mxu1 %v22670_v57  ;;  %v21832_v57 = vld [vmem:[%s23198_s1 + $0x30] sm:$0xff] }
 0x880   :  { %11665 = vmatpush1.bf16.msra.mxu1 %v20521_v22 }
 0x881   :  { %11666 = vmatprep.subr.bf16.mxu1 %v20529_v12 }
 0x884   :  { %11667 = vmatpush1.bf16.msra.mxu1 %v20527_v20 }
 0x885   :  { %11668 = vmatprep.subr.bf16.mxu1 %v20535_v45 }
 0x888   :  { %11669 = vmatpush1.bf16.msra.mxu1 %v20533_v55 }
 0x889   :  { %11670 = vmatprep.subr.bf16.mxu1 %v20541_v63 }
 0x88c   :  { %11671 = vmatpush1.bf16.msra.mxu1 %v20539_v58  ;;  %v20583_v58 = vld [vmem:[#allocation8 + $0x1ec] ss:$24 sps:$4 sm:$0xff]  }
 0x88d   :  { %11672 = vmatprep.subr.bf16.mxu1 %v20547_v29  ;;  %v20581_v29 = vld [vmem:[#allocation8 + $0x1e8] ss:$24 sps:$4 sm:$0xff]  }
 0x892   :  { %v9329_v24 = vpop.f32.mrb[36].mxu1 }
 0x893   :  { %v9458_v54 = vpop.f32.mrb[20].mxu0  ;;  %v9331_v50 = vpop.f32.mrb[37].mxu1  ;;  %v22689_v60 = vadd.f32 %v21830_v47, %v9329_v24  ;;  %v20542_v24 = vld [vmem:[#allocation8 + $0xc0] ss:$24 sps:$4 sm:$0xff]  }
 0x894   :  { %v9460_v13 = vpop.f32.mrb[21].mxu0  ;;  %v9333_v17 = vpop.f32.mrb[38].mxu1  ;;  %v22694_v7 = vadd.f32 %v21831_v61, %v9331_v50  ;;  %v22711_v11 = vadd.f32 %v21834_v9, %v9458_v54  ;;  %v20545_v54 = vld [vmem:[#allocation8 + $0xc8] ss:$24 sps:$4 sm:$0xff]   ;;  %v20550_v50 = vld [vmem:[#allocation8 + $0xf4] ss:$24 sps:$4 sm:$0xff]   ;;  %11544 = vmatpush1.bf16.msra.mxu0 %v20542_v24 }
 0x895   :  { %v9462_v15 = vpop.f32.mrb[22].mxu0  ;;  %v9335_v46 = vpop.f32.mrb[39].mxu1  ;;  %v22699_v19 = vadd.f32 %v21832_v57, %v9333_v17  ;;  %v22724_v26 = vadd.f32 %v21836_v14, %v9460_v13  ;;  %v20553_v13 = vld [vmem:[#allocation8 + $0xfc] ss:$24 sps:$4 sm:$0xff]   ;;  %v20548_v17 = vld [vmem:[#allocation8 + $0xf0] ss:$24 sps:$4 sm:$0xff]   ;;  %11673 = vmatpush1.bf16.msra.mxu1 %v20545_v54  ;;  %11545 = vmatprep.subr.bf16.mxu0 %v20550_v50 }
 0x896   :  { %v9464_v59 = vpop.f32.mrb[23].mxu0  ;;  %v22704_v4 = vadd.f32 %v21833_v0, %v9335_v46  ;;  %v9610_v8 = vadd.f32 %v22694_v7, %v22689_v60  ;;  %v22719_v23 = vadd.f32 %v21835_v21, %v9462_v15  ;;  %v20551_v15 = vld [vmem:[#allocation8 + $0xf8] ss:$24 sps:$4 sm:$0xff]   ;;  %v20556_v46 = vld [vmem:[#allocation8 + $0x124] ss:$24 sps:$4 sm:$0xff]   ;;  %11674 = vmatprep.subr.bf16.mxu1 %v20553_v13 }
 0x897   :  { %v22731_v31 = vadd.f32 %v21837_v2, %v9464_v59  ;;  %v20559_v59 = vld [vmem:[#allocation8 + $0x12c] ss:$24 sps:$4 sm:$0xff]   ;;  %v20554_v47 = vld [vmem:[#allocation8 + $0x120] ss:$24 sps:$4 sm:$0xff]   ;;  %v20565_v0 = vld [vmem:[#allocation8 + $0x15c] ss:$24 sps:$4 sm:$0xff]  }
 0x898   :  { %v9617_v52 = vadd.f32 %v22704_v4, %v22699_v19  ;;  %v9611_v18 = vadd.f32 %v9610_v8, %v22711_v11  ;;  %11546 = vmatpush1.bf16.msra.mxu0 %v20548_v17  ;;  %v20557_v61 = vld [vmem:[#allocation8 + $0x128] ss:$24 sps:$4 sm:$0xff]   ;;  %v20562_v57 = vld [vmem:[#allocation8 + $0x154] ss:$24 sps:$4 sm:$0xff]   ;;  %v20563_v9 = vld [vmem:[#allocation8 + $0x158] ss:$24 sps:$4 sm:$0xff]  }
 0x899   :  { %11675 = vmatpush1.bf16.msra.mxu1 %v20551_v15  ;;  %11547 = vmatprep.subr.bf16.mxu0 %v20556_v46  ;;  %v20560_v8 = vld [vmem:[#allocation8 + $0x150] ss:$24 sps:$4 sm:$0xff]   ;;  %v20566_v21 = vld [vmem:[#allocation8 + $0x180] ss:$24 sps:$4 sm:$0xff]   ;;  %v20586_v24 = vld [vmem:[#allocation8 + $0x214] ss:$24 sps:$4 sm:$0xff]  }
 0x89a   :  { %v9618_v27 = vadd.f32 %v9617_v52, %v22719_v23  ;;  %v9612_v30 = vadd.f32 %v9611_v18, %v22724_v26  ;;  %11676 = vmatprep.subr.bf16.mxu1 %v20559_v59  ;;  %v20568_v52 = vld [vmem:[#allocation8 + $0x184] ss:$24 sps:$4 sm:$0xff]   ;;  %v20569_v14 = vld [vmem:[#allocation8 + $0x188] ss:$24 sps:$4 sm:$0xff]   ;;  %v20575_v2 = vld [vmem:[#allocation8 + $0x1b8] ss:$24 sps:$4 sm:$0xff]  }
 0x89b   :  { %v20571_v18 = vld [vmem:[#allocation8 + $0x18c] ss:$24 sps:$4 sm:$0xff]   ;;  %v20589_v54 = vld [vmem:[#allocation8 + $0x21c] ss:$24 sps:$4 sm:$0xff]   ;;  %v20584_v50 = vld [vmem:[#allocation8 + $0x210] ss:$24 sps:$4 sm:$0xff]  }
 0x89c   :  { %v9619_v35 = vadd.f32 %v9618_v27, %v22731_v31  ;;  %11548 = vmatpush1.bf16.msra.mxu0 %v20554_v47  ;;  %v20574_v27 = vld [vmem:[#allocation8 + $0x1b4] ss:$24 sps:$4 sm:$0xff]   ;;  %v20587_v13 = vld [vmem:[#allocation8 + $0x218] ss:$24 sps:$4 sm:$0xff]   ;;  %v20592_v17 = vld [vmem:[#allocation8 + $0x244] ss:$24 sps:$4 sm:$0xff]  }
 0x89d   :  { %11677 = vmatpush1.bf16.msra.mxu1 %v20557_v61  ;;  %11549 = vmatprep.subr.bf16.mxu0 %v20562_v57  ;;  %v20595_v15 = vld [vmem:[#allocation8 + $0x24c] ss:$24 sps:$4 sm:$0xff]   ;;  %v20590_v46 = vld [vmem:[#allocation8 + $0x240] ss:$24 sps:$4 sm:$0xff]   ;;  %v20601_v61 = vld [vmem:[#allocation8 + $0x27c] ss:$24 sps:$4 sm:$0xff]  }
 0x89e   :  { %11678 = vmatprep.subr.bf16.mxu1 %v20565_v0  ;;  %v20593_v59 = vld [vmem:[#allocation8 + $0x248] ss:$24 sps:$4 sm:$0xff]   ;;  %v20598_v47 = vld [vmem:[#allocation8 + $0x274] ss:$24 sps:$4 sm:$0xff]   ;;  %v20599_v0 = vld [vmem:[#allocation8 + $0x278] ss:$24 sps:$4 sm:$0xff]  }
 0x89f   :  { %v20596_v57 = vld [vmem:[#allocation8 + $0x270] ss:$24 sps:$4 sm:$0xff]  }
 0x8a0   :  { %11550 = vmatpush1.bf16.msra.mxu0 %v20560_v8  ;;  %v20604_v8 = vld [vmem:[#allocation8 + $0x2a4] ss:$24 sps:$4 sm:$0xff]  }
 0x8a1   :  { %11679 = vmatpush1.bf16.msra.mxu1 %v20563_v9  ;;  %11551 = vmatprep.subr.bf16.mxu0 %v20568_v52  ;;  %v20607_v9 = vld [vmem:[#allocation8 + $0x2ac] ss:$24 sps:$4 sm:$0xff]   ;;  %v20602_v52 = vld [vmem:[#allocation8 + $0x2a0] ss:$24 sps:$4 sm:$0xff]  }
 0x8a2   :  { %11680 = vmatprep.subr.bf16.mxu1 %v20571_v18  ;;  %v20605_v18 = vld [vmem:[#allocation8 + $0x2a8] ss:$24 sps:$4 sm:$0xff]  }
 0x8a4   :  { %11552 = vmatpush1.bf16.msra.mxu0 %v20566_v21  ;;  %v20610_v21 = vld [vmem:[#allocation8 + $0x2d4] ss:$24 sps:$4 sm:$0xff]  }
 0x8a5   :  { %11681 = vmatpush1.bf16.msra.mxu1 %v20569_v14  ;;  %11553 = vmatprep.subr.bf16.mxu0 %v20574_v27  ;;  %v20613_v14 = vld [vmem:[#allocation8 + $0x2dc] ss:$24 sps:$4 sm:$0xff]   ;;  %v20608_v27 = vld [vmem:[#allocation8 + $0x2d0] ss:$24 sps:$4 sm:$0xff]  }
 0x952   :  { %v9587_v28 = vpop.f32.mrb[40].mxu1 }
 0x953   :  { %v22736_v32 = vadd.f32 %v21838_v3, %v9587_v28  ;;  %v9589_v33 = vpop.f32.mrb[41].mxu1  ;;  %v20577_v28 = vld [vmem:[#allocation8 + $0x1bc] ss:$24 sps:$4 sm:$0xff]  }
 0x954   :  { %v22741_v6 = vadd.f32 %v21839_v34, %v9589_v33  ;;  %v9591_v25 = vpop.f32.mrb[42].mxu1  ;;  %11682 = vmatprep.subr.bf16.mxu1 %v20577_v28  ;;  %v20611_v28 = vld [vmem:[#allocation8 + $0x2d8] ss:$24 sps:$4 sm:$0xff]  }
 0x955   :  { %v9613_v36 = vadd.f32 %v9612_v30, %v22736_v32  ;;  %v22748_v38 = vadd.f32 %v21840_v37, %v9591_v25  ;;  %v9593_v39 = vpop.f32.mrb[43].mxu1  ;;  %v20572_v30 = vld [vmem:[#allocation8 + $0x1b0] ss:$24 sps:$4 sm:$0xff]   ;;  %11683 = vmatpush1.bf16.msra.mxu1 %v20575_v2  ;;  %v20619_v2 = vld [vmem:[#allocation8 + $0x30c] ss:$24 sps:$4 sm:$0xff]  }
 0x956   :  { %v22753_v5 = vadd.f32 %v21841_v40, %v9593_v39  ;;  %11554 = vmatpush1.bf16.msra.mxu0 %v20572_v30  ;;  %11684 = vmatprep.subr.bf16.mxu1 %v20583_v58  ;;  %v20616_v30 = vld [vmem:[#allocation8 + $0x304] ss:$24 sps:$4 sm:$0xff]  }
 0x957   :  { %v9620_v16 = vadd.f32 %v9619_v35, %v22748_v38  ;;  %v9614_v41 = vadd.f32 %v9613_v36, %v22741_v6  ;;  %11555 = vmatprep.subr.bf16.mxu0 %v20580_v56 }
 0x959   :  { %9615 = vadd.xlane.f32.xlu0 %v9614_v41  ;;  %v9621_v1 = vadd.f32 %v9620_v16, %v22753_v5  ;;  %11685 = vmatpush1.bf16.msra.mxu1 %v20581_v29 }
 0x95a   :  { %11556 = vmatpush1.bf16.msra.mxu0 %v20578_v62  ;;  %11686 = vmatprep.subr.bf16.mxu1 %v20589_v54 }
 0x95b   :  { %9622 = vadd.xlane.f32.xlu1 %v9621_v1  ;;  %11557 = vmatprep.subr.bf16.mxu0 %v20586_v24 }
 0x95d   :  { %11687 = vmatpush1.bf16.msra.mxu1 %v20587_v13 }
 0x95e   :  { %11558 = vmatpush1.bf16.msra.mxu0 %v20584_v50  ;;  %11688 = vmatprep.subr.bf16.mxu1 %v20595_v15 }
 0x95f   :  { %11559 = vmatprep.subr.bf16.mxu0 %v20592_v17 }
 0x961   :  { %11689 = vmatpush1.bf16.msra.mxu1 %v20593_v59 }
 0x962   :  { %11560 = vmatpush1.bf16.msra.mxu0 %v20590_v46  ;;  %11690 = vmatprep.subr.bf16.mxu1 %v20601_v61 }
 0x963   :  { %11561 = vmatprep.subr.bf16.mxu0 %v20598_v47 }
 0x965   :  { %11691 = vmatpush1.bf16.msra.mxu1 %v20599_v0 }
 0x966   :  { %11562 = vmatpush1.bf16.msra.mxu0 %v20596_v57  ;;  %11692 = vmatprep.subr.bf16.mxu1 %v20607_v9 }
 0x967   :  { %11563 = vmatprep.subr.bf16.mxu0 %v20604_v8 }
 0x969   :  { %11693 = vmatpush1.bf16.msra.mxu1 %v20605_v18 }
 0x96a   :  { %11564 = vmatpush1.bf16.msra.mxu0 %v20602_v52  ;;  %11694 = vmatprep.subr.bf16.mxu1 %v20613_v14 }
 0x96b   :  { %11565 = vmatprep.subr.bf16.mxu0 %v20610_v21 }
 0x96d   :  { %11695 = vmatpush1.bf16.msra.mxu1 %v20611_v28 }
 0x96e   :  { %11566 = vmatpush1.bf16.msra.mxu0 %v20608_v27  ;;  %11707 = vmatprep.subr.bf16.mxu1 %v20619_v2 }
 0x96f   :  { %11578 = vmatprep.subr.bf16.mxu0 %v20616_v30 }
 0x9e6   :  { %v9616_v3 = vpop.xlane.xlu0 %9615 }
 0x9e7   :  { %v9625_v33 = vmul.f32 0.0013020834, %v9616_v3 }
 0x9e8   :  { %v9623_v34 = vpop.xlane.xlu1 %9622 }
 0x9e9   :  { %v9626_v25 = vmul.f32 0.0013020834, %v9623_v34  ;;  %v22759_v35 = vsub.f32 %v22689_v60, %v9625_v33  ;;  %v22762_v36 = vsub.f32 %v22694_v7, %v9625_v33  ;;  %v22765_v37 = vsub.f32 %v22711_v11, %v9625_v33 }
 0x9ea   :  { %v22768_v39 = vsub.f32 %v22724_v26, %v9625_v33  ;;  %v22781_v7 = vsub.f32 %v22736_v32, %v9625_v33  ;;  %v22796_v43 = vsub.f32 %v22741_v6, %v9625_v33  ;;  %v9684_v34 = vlaneseq }
 0x9eb   :  { %v9639_v40 = vmul.f32 %v22759_v35, %v22759_v35  ;;  %v9640_v16 = vmul.f32 %v22762_v36, %v22762_v36  ;;  %v22775_v41 = vsub.f32 %v22699_v19, %v9626_v25  ;;  %v22778_v60 = vsub.f32 %v22704_v4, %v9626_v25 }
 0x9ec   :  { %v9641_v11 = vmul.f32 %v22765_v37, %v22765_v37  ;;  %v22786_v1 = vsub.f32 %v22719_v23, %v9626_v25  ;;  %v22789_v51 = vsub.f32 %v22731_v31, %v9626_v25  ;;  %v9642_v32 = vmul.f32 %v22768_v39, %v22768_v39 }
 0x9ed   :  { %v9651_v26 = vadd.f32 %v9640_v16, %v9639_v40  ;;  %v9645_v19 = vmul.f32 %v22775_v41, %v22775_v41  ;;  %v9646_v4 = vmul.f32 %v22778_v60, %v22778_v60  ;;  %v22801_v44 = vsub.f32 %v22748_v38, %v9626_v25 }
 0x9ee   :  { %v9647_v23 = vmul.f32 %v22786_v1, %v22786_v1  ;;  %v9643_v49 = vmul.f32 %v22781_v7, %v22781_v7  ;;  %v22808_v48 = vsub.f32 %v22753_v5, %v9626_v25  ;;  %v9648_v6 = vmul.f32 %v22789_v51, %v22789_v51 }
 0x9ef   :  { %v9652_v22 = vadd.f32 %v9651_v26, %v9641_v11  ;;  %v9658_v31 = vadd.f32 %v9646_v4, %v9645_v19  ;;  %v9644_v10 = vmul.f32 %v22796_v43, %v22796_v43  ;;  %v9649_v45 = vmul.f32 %v22801_v44, %v22801_v44  ;;  %v9608_v4 = vld [vmem:[#allocation14] sm:$0x3f] }
 0x9f0   :  { %v9650_v42 = vmul.f32 %v22808_v48, %v22808_v48  ;;  %v9685_v11 = vshrl.u32 %v9684_v34, 7 }
 0x9f1   :  { %v9653_v12 = vadd.f32 %v9652_v22, %v9642_v32  ;;  %v9659_v20 = vadd.f32 %v9658_v31, %v9647_v23 }
 0x9f2   :  { %v22818_v19 = vsub.s32 1, %v9685_v11  ;;  %v22820_v32 = vsub.s32 0, %v9685_v11  ;;  %v22822_v22 = vsub.s32 3, %v9685_v11  ;;  %v22824_v23 = vsub.s32 2, %v9685_v11 }
 0x9f3   :  { %v9654_v38 = vadd.f32 %v9653_v12, %v9643_v49  ;;  %v9660_v53 = vadd.f32 %v9659_v20, %v9648_v6  ;;  %v22826_v31 = vsub.s32 5, %v9685_v11  ;;  %v22828_v49 = vsub.s32 4, %v9685_v11  ;;  %v9609_v12 = vld [vmem:[#allocation15] sm:$0x3f] }
 0x9f4   :  { %v9691_v6 = vrot.slane %v9608_v4, %v22818_v19  ;;  %v9687_v20 = vrot.slane %v9608_v4, %v22820_v32  ;;  %v9742_v24 = vrot.slane %v9609_v12, %v22822_v22  ;;  %v20622_v11 = vld [vmem:[#allocation8 + $0x334] ss:$24 sps:$4 sm:$0xff]  }
 0x9f5   :  { %v9655_v55 = vadd.f32 %v9654_v38, %v9644_v10  ;;  %v9661_v63 = vadd.f32 %v9660_v53, %v9649_v45  ;;  %v9699_v10 = vrot.slane %v9608_v4, %v22822_v22  ;;  %v9695_v38 = vrot.slane %v9608_v4, %v22824_v23 }
 0x9f6   :  { %v9707_v45 = vrot.slane %v9608_v4, %v22826_v31  ;;  %v9750_v50 = vrot.slane %v9609_v12, %v22826_v31  ;;  %v9746_v13 = vrot.slane %v9609_v12, %v22828_v49 }
 0x9f7   :  { %9656 = vadd.xlane.f32.xlu0 %v9655_v55  ;;  %v9662_v5 = vadd.f32 %v9661_v63, %v9650_v42  ;;  %v9734_v55 = vrot.slane %v9609_v12, %v22818_v19  ;;  %v9730_v42 = vrot.slane %v9609_v12, %v22820_v32  ;;  %v9738_v63 = vrot.slane %v9609_v12, %v22824_v23  ;;  %v20620_v12 = vld [vmem:[#allocation8 + $0x330] ss:$24 sps:$4 sm:$0xff]  }
 0x9f9   :  { %9663 = vadd.xlane.f32.xlu1 %v9662_v5  ;;  %v9703_v5 = vrot.slane %v9608_v4, %v22828_v49 }
 0xa84   :  { %v9657_v3 = vpop.xlane.xlu0 %9656 }
 0xa85   :  { %v9665_v33 = vmul.f32 0.0013020834, %v9657_v3 }
 0xa86   :  { %v9664_v40 = vpop.xlane.xlu1 %9663 }
 0xa87   :  { %v9667_v25 = vadd.f32 1e-12, %v9665_v33  ;;  %v9666_v16 = vmul.f32 0.0013020834, %v9664_v40  ;;  %v20617_v33 = vld [vmem:[#allocation8 + $0x308] ss:$24 sps:$4 sm:$0xff]  }
 0xa89   :  { %21822 = vrsqrt.f32 %v9667_v25  ;;  %v9668_v26 = vadd.f32 1e-12, %v9666_v16 }
 0xa8b   :  { %21824 = vrsqrt.f32 %v9668_v26  ;;  %v20625_v26 = vld [vmem:[#allocation8 + $0x33c] ss:$24 sps:$4 sm:$0xff]  }
 0xa93   :  { %v21823_v53 = vpop.eup %21822 }
 0xa94   :  { %v9672_v56 = vmul.f32 %v21823_v53, %v22762_v36  ;;  %v9671_v58 = vmul.f32 %v21823_v53, %v22759_v35  ;;  %v9674_v62 = vmul.f32 %v21823_v53, %v22768_v39  ;;  %v9673_v29 = vmul.f32 %v21823_v53, %v22765_v37 }
 0xa95   :  { %v9676_v54 = vmul.f32 %v21823_v53, %v22796_v43  ;;  %v21825_v17 = vpop.eup %21824  ;;  %v9675_v36 = vmul.f32 %v21823_v53, %v22781_v7  ;;  %v20634_v53 = vld [vmem:[#allocation8 + $0x394] ss:$24 sps:$4 sm:$0xff]  }
 0xa96   :  { %v9715_v15 = vmul.f32 %v9691_v6, %v9672_v56  ;;  %v9714_v46 = vmul.f32 %v9687_v20, %v9671_v58  ;;  %v9716_v59 = vmul.f32 %v9695_v38, %v9673_v29  ;;  %v9678_v35 = vmul.f32 %v21825_v17, %v22778_v60  ;;  %v20643_v56 = vld [vmem:[#allocation8 + $0x3cc] ss:$24 sps:$4 sm:$0xff]   ;;  %v20638_v58 = vld [vmem:[#allocation8 + $0x3c0] ss:$24 sps:$4 sm:$0xff]  }
 0xa97   :  { %v9677_v39 = vmul.f32 %v21825_v17, %v22775_v41  ;;  %v9680_v37 = vmul.f32 %v21825_v17, %v22789_v51  ;;  %v9679_v47 = vmul.f32 %v21825_v17, %v22786_v1  ;;  %v9717_v57 = vmul.f32 %v9699_v10, %v9674_v62  ;;  %v20641_v62 = vld [vmem:[#allocation8 + $0x3c8] ss:$24 sps:$4 sm:$0xff]   ;;  %v20646_v29 = vld [vmem:[#allocation8 + $0x3f4] ss:$24 sps:$4 sm:$0xff]  }
 0xa98   :  { %v22852_v61 = vadd.f32 %v9734_v55, %v9715_v15  ;;  %v22854_v43 = vadd.f32 %v9730_v42, %v9714_v46  ;;  %v22856_v0 = vadd.f32 %v9738_v63, %v9716_v59  ;;  %v9721_v8 = vmul.f32 %v9691_v6, %v9678_v35  ;;  %v20623_v6 = vld [vmem:[#allocation8 + $0x338] ss:$24 sps:$4 sm:$0xff]   ;;  %v20653_v46 = vld [vmem:[#allocation8 + $0x428] ss:$24 sps:$4 sm:$0xff]   ;;  %v20658_v59 = vld [vmem:[#allocation8 + $0x454] ss:$24 sps:$4 sm:$0xff]  }
 0xa99   :  { %v9720_v9 = vmul.f32 %v9687_v20, %v9677_v39  ;;  %v9723_v52 = vmul.f32 %v9699_v10, %v9680_v37  ;;  %v9722_v18 = vmul.f32 %v9695_v38, %v9679_v47  ;;  %v9682_v7 = vmul.f32 %v21825_v17, %v22808_v48  ;;  %v20628_v20 = vld [vmem:[#allocation8 + $0x364] ss:$24 sps:$4 sm:$0xff]   ;;  %v20626_v38 = vld [vmem:[#allocation8 + $0x360] ss:$24 sps:$4 sm:$0xff]   ;;  %v20656_v35 = vld [vmem:[#allocation8 + $0x450] ss:$24 sps:$4 sm:$0xff]  }
 0xa9a   :  { %v9719_v60 = vmul.f32 %v9707_v45, %v9676_v54  ;;  %v9681_v41 = vmul.f32 %v21825_v17, %v22801_v44  ;;  %v9718_v21 = vmul.f32 %v9703_v5, %v9675_v36  ;;  %v22860_v51 = vadd.f32 %v9734_v55, %v9721_v8  ;;  %v20614_v44 = vld [vmem:[#allocation8 + $0x300] ss:$24 sps:$4 sm:$0xff]   ;;  %v20631_v10 = vld [vmem:[#allocation8 + $0x36c] ss:$24 sps:$4 sm:$0xff]   ;;  %v20637_v55 = vld [vmem:[#allocation8 + $0x39c] ss:$24 sps:$4 sm:$0xff]  }
 0xa9b   :  { %v22862_v1 = vadd.f32 %v9730_v42, %v9720_v9  ;;  %v22864_v14 = vadd.f32 %v9742_v24, %v9723_v52  ;;  %v22866_v27 = vadd.f32 %v9738_v63, %v9722_v18  ;;  %v9725_v28 = vmul.f32 %v9707_v45, %v9682_v7  ;;  %v20629_v45 = vld [vmem:[#allocation8 + $0x368] ss:$24 sps:$4 sm:$0xff]   ;;  %v20635_v63 = vld [vmem:[#allocation8 + $0x398] ss:$24 sps:$4 sm:$0xff]   ;;  %v20655_v17 = vld [vmem:[#allocation8 + $0x42c] ss:$24 sps:$4 sm:$0xff]  }
 0xa9c   :  { %v22868_v30 = vadd.f32 %v9750_v50, %v9719_v60  ;;  %v9724_v2 = vmul.f32 %v9703_v5, %v9681_v41  ;;  %v22870_v3 = vadd.f32 %v9746_v13, %v9718_v21  ;;  %v22874_v48 = vpack.c.bf16 %v22860_v51, %v22852_v61  ;;  %v20632_v42 = vld [vmem:[#allocation8 + $0x390] ss:$24 sps:$4 sm:$0xff]   ;;  %v20640_v5 = vld [vmem:[#allocation8 + $0x3c4] ss:$24 sps:$4 sm:$0xff]   ;;  %v20650_v15 = vld [vmem:[#allocation8 + $0x420] ss:$24 sps:$4 sm:$0xff]  }
 0xa9d   :  { %v22878_v34 = vpack.c.bf16 %v22862_v1, %v22854_v43  ;;  %v22880_v25 = vadd.f32 %v9742_v24, %v9717_v57  ;;  %v22882_v40 = vadd.f32 %v9750_v50, %v9725_v28  ;;  %v20649_v24 = vld [vmem:[#allocation8 + $0x3fc] ss:$24 sps:$4 sm:$0xff]   ;;  %v20644_v54 = vld [vmem:[#allocation8 + $0x3f0] ss:$24 sps:$4 sm:$0xff]   ;;  %v20667_v47 = vld [vmem:[#allocation8 + $0x48c] ss:$24 sps:$4 sm:$0xff]  }
 0xa9e   :  { %v22884_v16 = vadd.f32 %v9746_v13, %v9724_v2  ;;  %11567 = vmatprep.mubr.bf16.mxu0 %v22874_v48  ;;  %11696 = vmatprep.mubr.bf16.mxu1 %v22874_v48  ;;  %v20647_v50 = vld [vmem:[#allocation8 + $0x3f8] ss:$24 sps:$4 sm:$0xff]   ;;  %v20652_v13 = vld [vmem:[#allocation8 + $0x424] ss:$24 sps:$4 sm:$0xff]   ;;  %v20665_v8 = vld [vmem:[#allocation8 + $0x488] ss:$24 sps:$4 sm:$0xff]  }
 0xa9f   :  { %11568 = vmatmul.mubr.bf16.vlgmr.msra.gmra.mrb[24].mxu0 %v22878_v34  ;;  %11697 = vmatmul.mubr.bf16.vlgmr.msra.gmra.mrb[44].mxu1 %v22878_v34  ;;  %v22892_v4 = vpack.c.bf16 %v22864_v14, %v22880_v25  ;;  %v20661_v36 = vld [vmem:[#allocation8 + $0x45c] ss:$24 sps:$4 sm:$0xff]   ;;  %v20659_v39 = vld [vmem:[#allocation8 + $0x458] ss:$24 sps:$4 sm:$0xff]   ;;  %v20679_v41 = vld [vmem:[#allocation8 + $0x4ec] ss:$24 sps:$4 sm:$0xff]  }
 0xaa0   :  { %11579 = vmatpush1.bf16.msra.mxu0 %v20614_v44  ;;  %11708 = vmatpush1.bf16.msra.mxu1 %v20617_v33  ;;  %v20664_v37 = vld [vmem:[#allocation8 + $0x484] ss:$24 sps:$4 sm:$0xff]   ;;  %v20662_v57 = vld [vmem:[#allocation8 + $0x480] ss:$24 sps:$4 sm:$0xff]   ;;  %v20670_v9 = vld [vmem:[#allocation8 + $0x4b4] ss:$24 sps:$4 sm:$0xff]  }
 0xaa1   :  { %11610 = vmatprep.mubr.bf16.mxu0 %v22892_v4  ;;  %11739 = vmatprep.mubr.bf16.mxu1 %v22892_v4  ;;  %v20673_v52 = vld [vmem:[#allocation8 + $0x4bc] ss:$24 sps:$4 sm:$0xff]   ;;  %v20668_v18 = vld [vmem:[#allocation8 + $0x4b0] ss:$24 sps:$4 sm:$0xff]   ;;  %v20674_v21 = vld [vmem:[#allocation8 + $0x4e0] ss:$24 sps:$4 sm:$0xff]  }
 0xaa2   :  { %11580 = vmatprep.subr.bf16.mxu0 %v20622_v11  ;;  %11709 = vmatprep.subr.bf16.mxu1 %v20625_v26  ;;  %v20671_v7 = vld [vmem:[#allocation8 + $0x4b8] ss:$24 sps:$4 sm:$0xff]   ;;  %v20676_v60 = vld [vmem:[#allocation8 + $0x4e4] ss:$24 sps:$4 sm:$0xff]   ;;  %v20677_v28 = vld [vmem:[#allocation8 + $0x4e8] ss:$24 sps:$4 sm:$0xff]  }
 0xaa3   :  { %v20682_v2 = vld [vmem:[#allocation8 + $0x514] ss:$24 sps:$4 sm:$0xff]   ;;  %v20680_v33 = vld [vmem:[#allocation8 + $0x510] ss:$24 sps:$4 sm:$0xff]   ;;  %v20688_v26 = vld [vmem:[#allocation8 + $0x544] ss:$24 sps:$4 sm:$0xff]  }
 0xaa4   :  { %11581 = vmatpush1.bf16.msra.mxu0 %v20620_v12  ;;  %11710 = vmatpush1.bf16.msra.mxu1 %v20623_v6  ;;  %v20685_v44 = vld [vmem:[#allocation8 + $0x51c] ss:$24 sps:$4 sm:$0xff]   ;;  %v20683_v11 = vld [vmem:[#allocation8 + $0x518] ss:$24 sps:$4 sm:$0xff]   ;;  %v20691_v12 = vld [vmem:[#allocation8 + $0x54c] ss:$24 sps:$4 sm:$0xff]  }
 0xaa5   :  { %11582 = vmatprep.subr.bf16.mxu0 %v20628_v20  ;;  %11711 = vmatprep.subr.bf16.mxu1 %v20631_v10  ;;  %v20686_v6 = vld [vmem:[#allocation8 + $0x540] ss:$24 sps:$4 sm:$0xff]   ;;  %v20694_v10 = vld [vmem:[#allocation8 + $0x574] ss:$24 sps:$4 sm:$0xff]  }
 0xaa6   :  { %v20689_v20 = vld [vmem:[#allocation8 + $0x548] ss:$24 sps:$4 sm:$0xff]  }
 0xaa8   :  { %11583 = vmatpush1.bf16.msra.mxu0 %v20626_v38  ;;  %11712 = vmatpush1.bf16.msra.mxu1 %v20629_v45  ;;  %v20697_v38 = vld [vmem:[#allocation8 + $0x57c] ss:$24 sps:$4 sm:$0xff]   ;;  %v20692_v45 = vld [vmem:[#allocation8 + $0x570] ss:$24 sps:$4 sm:$0xff]  }
 0xaa9   :  { %11584 = vmatprep.subr.bf16.mxu0 %v20634_v53  ;;  %11713 = vmatprep.subr.bf16.mxu1 %v20637_v55  ;;  %v20695_v53 = vld [vmem:[#allocation8 + $0x578] ss:$24 sps:$4 sm:$0xff]   ;;  %v20700_v55 = vld [vmem:[#allocation8 + $0x5a4] ss:$24 sps:$4 sm:$0xff]  }
 0xaac   :  { %11585 = vmatpush1.bf16.msra.mxu0 %v20632_v42  ;;  %11714 = vmatpush1.bf16.msra.mxu1 %v20635_v63  ;;  %v20703_v42 = vld [vmem:[#allocation8 + $0x5ac] ss:$24 sps:$4 sm:$0xff]   ;;  %v20698_v63 = vld [vmem:[#allocation8 + $0x5a0] ss:$24 sps:$4 sm:$0xff]  }
 0xaad   :  { %11586 = vmatprep.subr.bf16.mxu0 %v20640_v5  ;;  %11715 = vmatprep.subr.bf16.mxu1 %v20643_v56  ;;  %v20701_v5 = vld [vmem:[#allocation8 + $0x5a8] ss:$24 sps:$4 sm:$0xff]   ;;  %v20706_v56 = vld [vmem:[#allocation8 + $0x5d4] ss:$24 sps:$4 sm:$0xff]  }
 0xab0   :  { %11587 = vmatpush1.bf16.msra.mxu0 %v20638_v58  ;;  %11716 = vmatpush1.bf16.msra.mxu1 %v20641_v62  ;;  %v20709_v58 = vld [vmem:[#allocation8 + $0x5dc] ss:$24 sps:$4 sm:$0xff]   ;;  %v20704_v62 = vld [vmem:[#allocation8 + $0x5d0] ss:$24 sps:$4 sm:$0xff]  }
 0xab1   :  { %11588 = vmatprep.subr.bf16.mxu0 %v20646_v29  ;;  %11717 = vmatprep.subr.bf16.mxu1 %v20649_v24  ;;  %v20707_v29 = vld [vmem:[#allocation8 + $0x5d8] ss:$24 sps:$4 sm:$0xff]   ;;  %v20712_v24 = vld [vmem:[#allocation8 + $0x604] ss:$24 sps:$4 sm:$0xff]  }
 0xab4   :  { %11589 = vmatpush1.bf16.msra.mxu0 %v20644_v54  ;;  %11718 = vmatpush1.bf16.msra.mxu1 %v20647_v50  ;;  %v20715_v54 = vld [vmem:[#allocation8 + $0x60c] ss:$24 sps:$4 sm:$0xff]   ;;  %v20710_v50 = vld [vmem:[#allocation8 + $0x600] ss:$24 sps:$4 sm:$0xff]  }
 0xab5   :  { %11590 = vmatprep.subr.bf16.mxu0 %v20652_v13  ;;  %11719 = vmatprep.subr.bf16.mxu1 %v20655_v17  ;;  %v22898_v13 = vpack.c.bf16 %v22866_v27, %v22856_v0  ;;  %v20713_v17 = vld [vmem:[#allocation8 + $0x608] ss:$24 sps:$4 sm:$0xff]  }
 0xab8   :  { %11591 = vmatpush1.bf16.msra.mxu0 %v20650_v15  ;;  %11720 = vmatpush1.bf16.msra.mxu1 %v20653_v46  ;;  %v22902_v15 = vpack.c.bf16 %v22882_v40, %v22868_v30  ;;  %v20718_v46 = vld [vmem:[#allocation8 + $0x634] ss:$24 sps:$4 sm:$0xff]  }
 0xab9   :  { %11592 = vmatprep.subr.bf16.mxu0 %v20658_v59  ;;  %11721 = vmatprep.subr.bf16.mxu1 %v20661_v36  ;;  %v20721_v59 = vld [vmem:[#allocation8 + $0x63c] ss:$24 sps:$4 sm:$0xff]   ;;  %v20716_v36 = vld [vmem:[#allocation8 + $0x630] ss:$24 sps:$4 sm:$0xff]  }
 0xabc   :  { %11593 = vmatpush1.bf16.msra.mxu0 %v20656_v35  ;;  %11722 = vmatpush1.bf16.msra.mxu1 %v20659_v39  ;;  %v20719_v35 = vld [vmem:[#allocation8 + $0x638] ss:$24 sps:$4 sm:$0xff]   ;;  %v20724_v39 = vld [vmem:[#allocation8 + $0x664] ss:$24 sps:$4 sm:$0xff]  }
 0xabd   :  { %11594 = vmatprep.subr.bf16.mxu0 %v20664_v37  ;;  %11723 = vmatprep.subr.bf16.mxu1 %v20667_v47  ;;  %v20727_v37 = vld [vmem:[#allocation8 + $0x66c] ss:$24 sps:$4 sm:$0xff]   ;;  %v20722_v47 = vld [vmem:[#allocation8 + $0x660] ss:$24 sps:$4 sm:$0xff]  }
 0xac0   :  { %11595 = vmatpush1.bf16.msra.mxu0 %v20662_v57  ;;  %11724 = vmatpush1.bf16.msra.mxu1 %v20665_v8  ;;  %v20725_v57 = vld [vmem:[#allocation8 + $0x668] ss:$24 sps:$4 sm:$0xff]   ;;  %v20730_v8 = vld [vmem:[#allocation8 + $0x694] ss:$24 sps:$4 sm:$0xff]  }
 0xac1   :  { %11596 = vmatprep.subr.bf16.mxu0 %v20670_v9  ;;  %11725 = vmatprep.subr.bf16.mxu1 %v20673_v52  ;;  %v20733_v9 = vld [vmem:[#allocation8 + $0x69c] ss:$24 sps:$4 sm:$0xff]   ;;  %v20728_v52 = vld [vmem:[#allocation8 + $0x690] ss:$24 sps:$4 sm:$0xff]  }
 0xac4   :  { %11597 = vmatpush1.bf16.msra.mxu0 %v20668_v18  ;;  %11726 = vmatpush1.bf16.msra.mxu1 %v20671_v7  ;;  %v20731_v18 = vld [vmem:[#allocation8 + $0x698] ss:$24 sps:$4 sm:$0xff]   ;;  %v20736_v7 = vld [vmem:[#allocation8 + $0x6c4] ss:$24 sps:$4 sm:$0xff]  }
 0xac5   :  { %11598 = vmatprep.subr.bf16.mxu0 %v20676_v60  ;;  %11727 = vmatprep.subr.bf16.mxu1 %v20679_v41  ;;  %v20739_v60 = vld [vmem:[#allocation8 + $0x6cc] ss:$24 sps:$4 sm:$0xff]   ;;  %v20734_v41 = vld [vmem:[#allocation8 + $0x6c0] ss:$24 sps:$4 sm:$0xff]  }
 0xac8   :  { %11599 = vmatpush1.bf16.msra.mxu0 %v20674_v21  ;;  %11728 = vmatpush1.bf16.msra.mxu1 %v20677_v28  ;;  %v20737_v21 = vld [vmem:[#allocation8 + $0x6c8] ss:$24 sps:$4 sm:$0xff]   ;;  %v20742_v28 = vld [vmem:[#allocation8 + $0x6f4] ss:$24 sps:$4 sm:$0xff]  }
 0xac9   :  { %11600 = vmatprep.subr.bf16.mxu0 %v20682_v2  ;;  %11729 = vmatprep.subr.bf16.mxu1 %v20685_v44  ;;  %v20745_v2 = vld [vmem:[#allocation8 + $0x6fc] ss:$24 sps:$4 sm:$0xff]   ;;  %v20740_v44 = vld [vmem:[#allocation8 + $0x6f0] ss:$24 sps:$4 sm:$0xff]  }
 0xacc   :  { %11601 = vmatpush1.bf16.msra.mxu0 %v20680_v33  ;;  %11730 = vmatpush1.bf16.msra.mxu1 %v20683_v11  ;;  %v20743_v33 = vld [vmem:[#allocation8 + $0x6f8] ss:$24 sps:$4 sm:$0xff]   ;;  %v20748_v11 = vld [vmem:[#allocation8 + $0x724] ss:$24 sps:$4 sm:$0xff]  }
 0xacd   :  { %11602 = vmatprep.subr.bf16.mxu0 %v20688_v26  ;;  %11731 = vmatprep.subr.bf16.mxu1 %v20691_v12  ;;  %v20751_v26 = vld [vmem:[#allocation8 + $0x72c] ss:$24 sps:$4 sm:$0xff]   ;;  %v20746_v12 = vld [vmem:[#allocation8 + $0x720] ss:$24 sps:$4 sm:$0xff]  }
 0xad0   :  { %11603 = vmatpush1.bf16.msra.mxu0 %v20686_v6  ;;  %11732 = vmatpush1.bf16.msra.mxu1 %v20689_v20  ;;  %v20749_v6 = vld [vmem:[#allocation8 + $0x728] ss:$24 sps:$4 sm:$0xff]   ;;  %v20754_v20 = vld [vmem:[#allocation8 + $0x754] ss:$24 sps:$4 sm:$0xff]  }
 0xad1   :  { %11604 = vmatprep.subr.bf16.mxu0 %v20694_v10  ;;  %11733 = vmatprep.subr.bf16.mxu1 %v20697_v38  ;;  %v20757_v10 = vld [vmem:[#allocation8 + $0x75c] ss:$24 sps:$4 sm:$0xff]   ;;  %v20752_v38 = vld [vmem:[#allocation8 + $0x750] ss:$24 sps:$4 sm:$0xff]  }
 0xad4   :  { %11605 = vmatpush1.bf16.msra.mxu0 %v20692_v45  ;;  %11734 = vmatpush1.bf16.msra.mxu1 %v20695_v53  ;;  %v20755_v45 = vld [vmem:[#allocation8 + $0x758] ss:$24 sps:$4 sm:$0xff]   ;;  %v20760_v53 = vld [vmem:[#allocation8 + $0x784] ss:$24 sps:$4 sm:$0xff]  }
 0xad5   :  { %11606 = vmatprep.subr.bf16.mxu0 %v20700_v55  ;;  %11735 = vmatprep.subr.bf16.mxu1 %v20703_v42  ;;  %v20763_v55 = vld [vmem:[#allocation8 + $0x78c] ss:$24 sps:$4 sm:$0xff]   ;;  %v20758_v42 = vld [vmem:[#allocation8 + $0x780] ss:$24 sps:$4 sm:$0xff]  }
 0xad8   :  { %11607 = vmatpush1.bf16.msra.mxu0 %v20698_v63  ;;  %11736 = vmatpush1.bf16.msra.mxu1 %v20701_v5  ;;  %v20761_v63 = vld [vmem:[#allocation8 + $0x788] ss:$24 sps:$4 sm:$0xff]   ;;  %v20766_v5 = vld [vmem:[#allocation8 + $0x7b4] ss:$24 sps:$4 sm:$0xff]  }
 0xad9   :  { %11608 = vmatprep.subr.bf16.mxu0 %v20706_v56  ;;  %11737 = vmatprep.subr.bf16.mxu1 %v20709_v58  ;;  %v20769_v56 = vld [vmem:[#allocation8 + $0x7bc] ss:$24 sps:$4 sm:$0xff]   ;;  %v20764_v58 = vld [vmem:[#allocation8 + $0x7b0] ss:$24 sps:$4 sm:$0xff]  }
 0xadc   :  { %11609 = vmatpush1.bf16.msra.mxu0 %v20704_v62  ;;  %11738 = vmatpush1.bf16.msra.mxu1 %v20707_v29  ;;  %v20767_v62 = vld [vmem:[#allocation8 + $0x7b8] ss:$24 sps:$4 sm:$0xff]   ;;  %v20772_v29 = vld [vmem:[#allocation8 + $0x7e4] ss:$24 sps:$4 sm:$0xff]  }
 0xadd   :  { %11621 = vmatprep.subr.bf16.mxu0 %v20712_v24  ;;  %11750 = vmatprep.subr.bf16.mxu1 %v20715_v54  ;;  %v20775_v24 = vld [vmem:[#allocation8 + $0x7ec] ss:$24 sps:$4 sm:$0xff]   ;;  %v20770_v54 = vld [vmem:[#allocation8 + $0x7e0] ss:$24 sps:$4 sm:$0xff]  }
 0xadf   :  { %11611 = vmatmul.mubr.bf16.vlgmr.msra.gmra.mrb[24].mxu0 %v22898_v13  ;;  %11740 = vmatmul.mubr.bf16.vlgmr.msra.gmra.mrb[44].mxu1 %v22898_v13 }
 0xae0   :  { %11622 = vmatpush1.bf16.msra.mxu0 %v20710_v50  ;;  %11653 = vmatprep.mubr.bf16.mxu0 %v22902_v15  ;;  %v20773_v50 = vld [vmem:[#allocation8 + $0x7e8] ss:$24 sps:$4 sm:$0xff]  }
 0xae1   :  { %11751 = vmatpush1.bf16.msra.mxu1 %v20713_v17  ;;  %11782 = vmatprep.mubr.bf16.mxu1 %v22902_v15  ;;  %v20778_v17 = vld [vmem:[#allocation8 + $0x814] ss:$24 sps:$4 sm:$0xff]  }
 0xae2   :  { %11623 = vmatprep.subr.bf16.mxu0 %v20718_v46  ;;  %11752 = vmatprep.subr.bf16.mxu1 %v20721_v59  ;;  %v20781_v46 = vld [vmem:[#allocation8 + $0x81c] ss:$24 sps:$4 sm:$0xff]   ;;  %v20776_v59 = vld [vmem:[#allocation8 + $0x810] ss:$24 sps:$4 sm:$0xff]  }
 0xae4   :  { %11624 = vmatpush1.bf16.msra.mxu0 %v20716_v36  ;;  %v20779_v36 = vld [vmem:[#allocation8 + $0x818] ss:$24 sps:$4 sm:$0xff]  }
 0xae5   :  { %11753 = vmatpush1.bf16.msra.mxu1 %v20719_v35  ;;  %11625 = vmatprep.subr.bf16.mxu0 %v20724_v39  ;;  %v20784_v35 = vld [vmem:[#allocation8 + $0x844] ss:$24 sps:$4 sm:$0xff]  }
 0xae6   :  { %11754 = vmatprep.subr.bf16.mxu1 %v20727_v37  ;;  %v20787_v39 = vld [vmem:[#allocation8 + $0x84c] ss:$24 sps:$4 sm:$0xff]   ;;  %v20782_v37 = vld [vmem:[#allocation8 + $0x840] ss:$24 sps:$4 sm:$0xff]  }
 0xae8   :  { %11626 = vmatpush1.bf16.msra.mxu0 %v20722_v47  ;;  %v20785_v47 = vld [vmem:[#allocation8 + $0x848] ss:$24 sps:$4 sm:$0xff]  }
 0xae9   :  { %11755 = vmatpush1.bf16.msra.mxu1 %v20725_v57  ;;  %11627 = vmatprep.subr.bf16.mxu0 %v20730_v8  ;;  %v20790_v57 = vld [vmem:[#allocation8 + $0x874] ss:$24 sps:$4 sm:$0xff]  }
 0xaea   :  { %11756 = vmatprep.subr.bf16.mxu1 %v20733_v9  ;;  %v20793_v8 = vld [vmem:[#allocation8 + $0x87c] ss:$24 sps:$4 sm:$0xff]   ;;  %v20788_v9 = vld [vmem:[#allocation8 + $0x870] ss:$24 sps:$4 sm:$0xff]  }
 0xaec   :  { %11628 = vmatpush1.bf16.msra.mxu0 %v20728_v52  ;;  %v20791_v52 = vld [vmem:[#allocation8 + $0x878] ss:$24 sps:$4 sm:$0xff]  }
 0xaed   :  { %11757 = vmatpush1.bf16.msra.mxu1 %v20731_v18  ;;  %11629 = vmatprep.subr.bf16.mxu0 %v20736_v7  ;;  %v20796_v18 = vld [vmem:[#allocation8 + $0x8a4] ss:$24 sps:$4 sm:$0xff]  }
 0xaee   :  { %11758 = vmatprep.subr.bf16.mxu1 %v20739_v60  ;;  %v20799_v7 = vld [vmem:[#allocation8 + $0x8ac] ss:$24 sps:$4 sm:$0xff]   ;;  %v20794_v60 = vld [vmem:[#allocation8 + $0x8a0] ss:$24 sps:$4 sm:$0xff]  }
 0xaf0   :  { %11630 = vmatpush1.bf16.msra.mxu0 %v20734_v41  ;;  %v20797_v41 = vld [vmem:[#allocation8 + $0x8a8] ss:$24 sps:$4 sm:$0xff]  }
 0xaf1   :  { %11759 = vmatpush1.bf16.msra.mxu1 %v20737_v21  ;;  %11631 = vmatprep.subr.bf16.mxu0 %v20742_v28  ;;  %v20802_v21 = vld [vmem:[#allocation8 + $0x8d4] ss:$24 sps:$4 sm:$0xff]  }
 0xaf2   :  { %11760 = vmatprep.subr.bf16.mxu1 %v20745_v2  ;;  %v20805_v28 = vld [vmem:[#allocation8 + $0x8dc] ss:$24 sps:$4 sm:$0xff]   ;;  %v20800_v2 = vld [vmem:[#allocation8 + $0x8d0] ss:$24 sps:$4 sm:$0xff]  }
 0xaf4   :  { %11632 = vmatpush1.bf16.msra.mxu0 %v20740_v44  ;;  %v20803_v44 = vld [vmem:[#allocation8 + $0x8d8] ss:$24 sps:$4 sm:$0xff]  }
 0xaf5   :  { %11761 = vmatpush1.bf16.msra.mxu1 %v20743_v33  ;;  %11633 = vmatprep.subr.bf16.mxu0 %v20748_v11  ;;  %v20808_v33 = vld [vmem:[#allocation8 + $0x14] ss:$24 sps:$4 sm:$0xff]   ;;  %v20806_v11 = vld [vmem:[#allocation8 + $0x10] ss:$24 sps:$4 sm:$0xff]  }
 0xaf6   :  { %11762 = vmatprep.subr.bf16.mxu1 %v20751_v26  ;;  %v22910_v26 = vpack.c.bf16 %v22884_v16, %v22870_v3 }
 0xaf8   :  { %11634 = vmatpush1.bf16.msra.mxu0 %v20746_v12  ;;  %v20811_v12 = vld [vmem:[#allocation8 + $0x44] ss:$24 sps:$4 sm:$0xff]  }
 0xaf9   :  { %11763 = vmatpush1.bf16.msra.mxu1 %v20749_v6  ;;  %11635 = vmatprep.subr.bf16.mxu0 %v20754_v20  ;;  %v20809_v6 = vld [vmem:[#allocation8 + $0x40] ss:$24 sps:$4 sm:$0xff]   ;;  %v20814_v20 = vld [vmem:[#allocation8 + $0x74] ss:$24 sps:$4 sm:$0xff]  }
 0xafa   :  { %11764 = vmatprep.subr.bf16.mxu1 %v20757_v10  ;;  %v20812_v10 = vld [vmem:[#allocation8 + $0x70] ss:$24 sps:$4 sm:$0xff]  }
 0xafc   :  { %11636 = vmatpush1.bf16.msra.mxu0 %v20752_v38  ;;  %v20817_v38 = vld [vmem:[#allocation8 + $0xa4] ss:$24 sps:$4 sm:$0xff]  }
 0xafd   :  { %11765 = vmatpush1.bf16.msra.mxu1 %v20755_v45  ;;  %11637 = vmatprep.subr.bf16.mxu0 %v20760_v53  ;;  %v20815_v45 = vld [vmem:[#allocation8 + $0xa0] ss:$24 sps:$4 sm:$0xff]   ;;  %v20820_v53 = vld [vmem:[#allocation8 + $0xd4] ss:$24 sps:$4 sm:$0xff]  }
 0xafe   :  { %11766 = vmatprep.subr.bf16.mxu1 %v20763_v55  ;;  %v20818_v55 = vld [vmem:[#allocation8 + $0xd0] ss:$24 sps:$4 sm:$0xff]  }
 0xb00   :  { %11638 = vmatpush1.bf16.msra.mxu0 %v20758_v42  ;;  %v20823_v42 = vld [vmem:[#allocation8 + $0x104] ss:$24 sps:$4 sm:$0xff]  }
 0xb01   :  { %11767 = vmatpush1.bf16.msra.mxu1 %v20761_v63  ;;  %11639 = vmatprep.subr.bf16.mxu0 %v20766_v5  ;;  %v20821_v63 = vld [vmem:[#allocation8 + $0x100] ss:$24 sps:$4 sm:$0xff]   ;;  %v20826_v5 = vld [vmem:[#allocation8 + $0x134] ss:$24 sps:$4 sm:$0xff]  }
 0xb02   :  { %11768 = vmatprep.subr.bf16.mxu1 %v20769_v56  ;;  %v20829_v56 = vld [vmem:[#allocation8 + $0x164] ss:$24 sps:$4 sm:$0xff]  }
 0xb04   :  { %11640 = vmatpush1.bf16.msra.mxu0 %v20764_v58  ;;  %v20827_v58 = vld [vmem:[#allocation8 + $0x160] ss:$24 sps:$4 sm:$0xff]  }
 0xb05   :  { %11769 = vmatpush1.bf16.msra.mxu1 %v20767_v62  ;;  %11641 = vmatprep.subr.bf16.mxu0 %v20772_v29  ;;  %v20832_v62 = vld [vmem:[#allocation8 + $0x194] ss:$24 sps:$4 sm:$0xff]   ;;  %v20830_v29 = vld [vmem:[#allocation8 + $0x190] ss:$24 sps:$4 sm:$0xff]  }
 0xb06   :  { %11770 = vmatprep.subr.bf16.mxu1 %v20775_v24  ;;  %v20926_v24 = vld [vmem:[#allocation11] ss:$24 sps:$4 sm:$0xff]  }
 0xb08   :  { %11642 = vmatpush1.bf16.msra.mxu0 %v20770_v54  ;;  %v20928_v54 = vld [vmem:[#allocation11 + $0x4] ss:$24 sps:$4 sm:$0xff]  }
 0xb09   :  { %11771 = vmatpush1.bf16.msra.mxu1 %v20773_v50  ;;  %11643 = vmatprep.subr.bf16.mxu0 %v20778_v17  ;;  %v20835_v50 = vld [vmem:[#allocation8 + $0x1c4] ss:$24 sps:$4 sm:$0xff]   ;;  %v20833_v17 = vld [vmem:[#allocation8 + $0x1c0] ss:$24 sps:$4 sm:$0xff]  }
 0xb0a   :  { %11772 = vmatprep.subr.bf16.mxu1 %v20781_v46  ;;  %v20932_v46 = vld [vmem:[#allocation11 + $0x30] ss:$24 sps:$4 sm:$0xff]  }
 0xb0c   :  { %11644 = vmatpush1.bf16.msra.mxu0 %v20776_v59  ;;  %v20934_v59 = vld [vmem:[#allocation11 + $0x34] ss:$24 sps:$4 sm:$0xff]  }
 0xb0d   :  { %11773 = vmatpush1.bf16.msra.mxu1 %v20779_v36  ;;  %11645 = vmatprep.subr.bf16.mxu0 %v20784_v35  ;;  %v20838_v36 = vld [vmem:[#allocation8 + $0x1f4] ss:$24 sps:$4 sm:$0xff]   ;;  %v20836_v35 = vld [vmem:[#allocation8 + $0x1f0] ss:$24 sps:$4 sm:$0xff]  }
 0xb0e   :  { %11774 = vmatprep.subr.bf16.mxu1 %v20787_v39  ;;  %v20938_v39 = vld [vmem:[#allocation11 + $0x60] ss:$24 sps:$4 sm:$0xff]  }
 0xb10   :  { %11646 = vmatpush1.bf16.msra.mxu0 %v20782_v37  ;;  %v20940_v37 = vld [vmem:[#allocation11 + $0x64] ss:$24 sps:$4 sm:$0xff]  }
 0xb11   :  { %11775 = vmatpush1.bf16.msra.mxu1 %v20785_v47  ;;  %11647 = vmatprep.subr.bf16.mxu0 %v20790_v57  ;;  %v20841_v47 = vld [vmem:[#allocation8 + $0x224] ss:$24 sps:$4 sm:$0xff]   ;;  %v20839_v57 = vld [vmem:[#allocation8 + $0x220] ss:$24 sps:$4 sm:$0xff]  }
 0xb12   :  { %11776 = vmatprep.subr.bf16.mxu1 %v20793_v8  ;;  %v20944_v8 = vld [vmem:[#allocation11 + $0x90] ss:$24 sps:$4 sm:$0xff]  }
 0xb14   :  { %11648 = vmatpush1.bf16.msra.mxu0 %v20788_v9  ;;  %v20946_v9 = vld [vmem:[#allocation11 + $0x94] ss:$24 sps:$4 sm:$0xff]  }
 0xb15   :  { %11777 = vmatpush1.bf16.msra.mxu1 %v20791_v52  ;;  %11649 = vmatprep.subr.bf16.mxu0 %v20796_v18  ;;  %v20844_v52 = vld [vmem:[#allocation8 + $0x254] ss:$24 sps:$4 sm:$0xff]   ;;  %v20842_v18 = vld [vmem:[#allocation8 + $0x250] ss:$24 sps:$4 sm:$0xff]  }
 0xb16   :  { %11778 = vmatprep.subr.bf16.mxu1 %v20799_v7  ;;  %v20950_v7 = vld [vmem:[#allocation11 + $0xc0] ss:$24 sps:$4 sm:$0xff]  }
 0xb18   :  { %11650 = vmatpush1.bf16.msra.mxu0 %v20794_v60  ;;  %v20952_v60 = vld [vmem:[#allocation11 + $0xc4] ss:$24 sps:$4 sm:$0xff]  }
 0xb19   :  { %11779 = vmatpush1.bf16.msra.mxu1 %v20797_v41  ;;  %11651 = vmatprep.subr.bf16.mxu0 %v20802_v21  ;;  %v20847_v41 = vld [vmem:[#allocation8 + $0x284] ss:$24 sps:$4 sm:$0xff]   ;;  %v20845_v21 = vld [vmem:[#allocation8 + $0x280] ss:$24 sps:$4 sm:$0xff]  }
 0xb1a   :  { %11780 = vmatprep.subr.bf16.mxu1 %v20805_v28  ;;  %v20956_v28 = vld [vmem:[#allocation11 + $0xf0] ss:$24 sps:$4 sm:$0xff]  }
 0xb1c   :  { %11652 = vmatpush1.bf16.msra.mxu0 %v20800_v2  ;;  %v20958_v2 = vld [vmem:[#allocation11 + $0xf4] ss:$24 sps:$4 sm:$0xff]  }
 0xb1d   :  { %11781 = vmatpush1.bf16.msra.mxu1 %v20803_v44  ;;  %11793 = vmatprep.subr.bf16.mxu0 %v20808_v33  ;;  %v20850_v44 = vld [vmem:[#allocation8 + $0x2b4] ss:$24 sps:$4 sm:$0xff]   ;;  %v20848_v33 = vld [vmem:[#allocation8 + $0x2b0] ss:$24 sps:$4 sm:$0xff]  }
 0xb1e   :  { %13700 = vmatprep.subr.bf16.mxu1 %v20928_v54  ;;  %v20865_v54 = vld [vmem:[#allocation8 + $0x3a4] ss:$24 sps:$4 sm:$0xff]  }
 0xb1f   :  { %11654 = vmatmul.mubr.bf16.vlgmr.msra.gmra.mrb[24].mxu0 %v22910_v26 }
 0xb20   :  { %11783 = vmatmul.mubr.bf16.vlgmr.msra.gmra.mrb[44].mxu1 %v22910_v26  ;;  %11794 = vmatpush1.bf16.msra.mxu0 %v20806_v11  ;;  %v20962_v11 = vld [vmem:[#allocation11 + $0x120] ss:$24 sps:$4 sm:$0xff]  }
 0xb21   :  { %11825 = vmatprep.mubr.bf16.mxu0 %v22874_v48  ;;  %11795 = vmatprep.subr.bf16.mxu0 %v20811_v12  ;;  %v20824_v48 = vld [vmem:[#allocation8 + $0x130] ss:$24 sps:$4 sm:$0xff]  }
 0xb22   :  { %13701 = vmatpush1.bf16.msra.mxu1 %v20926_v24  ;;  %v20964_v12 = vld [vmem:[#allocation11 + $0x124] ss:$24 sps:$4 sm:$0xff]  }
 0xb23   :  { %13702 = vmatprep.subr.bf16.mxu1 %v20934_v59  ;;  %v20860_v24 = vld [vmem:[#allocation8 + $0x370] ss:$24 sps:$4 sm:$0xff]  }
 0xb24   :  { %11796 = vmatpush1.bf16.msra.mxu0 %v20809_v6  ;;  %v20853_v6 = vld [vmem:[#allocation8 + $0x2e4] ss:$24 sps:$4 sm:$0xff]  }
 0xb25   :  { %11797 = vmatprep.subr.bf16.mxu0 %v20814_v20  ;;  %v20851_v20 = vld [vmem:[#allocation8 + $0x2e0] ss:$24 sps:$4 sm:$0xff]  }
 0xb26   :  { %13703 = vmatpush1.bf16.msra.mxu1 %v20932_v46  ;;  %v21000_v46 = vld [vmem:[#allocation11 + $0x244] ss:$24 sps:$4 sm:$0xff]   ;;  %v20998_v59 = vld [vmem:[#allocation11 + $0x240] ss:$24 sps:$4 sm:$0xff]  }
 0xb27   :  { %13704 = vmatprep.subr.bf16.mxu1 %v20940_v37  ;;  %v21004_v37 = vld [vmem:[#allocation11 + $0x270] ss:$24 sps:$4 sm:$0xff]  }
 0xb28   :  { %11798 = vmatpush1.bf16.msra.mxu0 %v20812_v10  ;;  %v20968_v10 = vld [vmem:[#allocation11 + $0x150] ss:$24 sps:$4 sm:$0xff]  }
 0xb29   :  { %11799 = vmatprep.subr.bf16.mxu0 %v20817_v38  ;;  %v20970_v38 = vld [vmem:[#allocation11 + $0x154] ss:$24 sps:$4 sm:$0xff]  }
 0xb2a   :  { %13705 = vmatpush1.bf16.msra.mxu1 %v20938_v39  ;;  %v21006_v39 = vld [vmem:[#allocation11 + $0x274] ss:$24 sps:$4 sm:$0xff]  }
 0xb2b   :  { %13706 = vmatprep.subr.bf16.mxu1 %v20946_v9  ;;  %v21012_v9 = vld [vmem:[#allocation11 + $0x2a4] ss:$24 sps:$4 sm:$0xff]  }
 0xb2c   :  { %11800 = vmatpush1.bf16.msra.mxu0 %v20815_v45  ;;  %v20856_v45 = vld [vmem:[#allocation8 + $0x314] ss:$24 sps:$4 sm:$0xff]  }
 0xb2d   :  { %11801 = vmatprep.subr.bf16.mxu0 %v20820_v53  ;;  %v20854_v53 = vld [vmem:[#allocation8 + $0x310] ss:$24 sps:$4 sm:$0xff]  }
 0xb2e   :  { %13707 = vmatpush1.bf16.msra.mxu1 %v20944_v8  ;;  %v20872_v8 = vld [vmem:[#allocation8 + $0x430] ss:$24 sps:$4 sm:$0xff]  }
 0xb2f   :  { %13708 = vmatprep.subr.bf16.mxu1 %v20952_v60  ;;  %v21018_v60 = vld [vmem:[#allocation11 + $0x2d4] ss:$24 sps:$4 sm:$0xff]  }
 0xb30   :  { %11802 = vmatpush1.bf16.msra.mxu0 %v20818_v55  ;;  %v20974_v55 = vld [vmem:[#allocation11 + $0x180] ss:$24 sps:$4 sm:$0xff]  }
 0xb31   :  { %11803 = vmatprep.subr.bf16.mxu0 %v20823_v42  ;;  %v20976_v42 = vld [vmem:[#allocation11 + $0x184] ss:$24 sps:$4 sm:$0xff]  }
 0xb32   :  { %13709 = vmatpush1.bf16.msra.mxu1 %v20950_v7  ;;  %v20875_v7 = vld [vmem:[#allocation8 + $0x460] ss:$24 sps:$4 sm:$0xff]  }
 0xb33   :  { %13710 = vmatprep.subr.bf16.mxu1 %v20958_v2  ;;  %v21024_v2 = vld [vmem:[#allocation11 + $0x304] ss:$24 sps:$4 sm:$0xff]  }
 0xb34   :  { %11804 = vmatpush1.bf16.msra.mxu0 %v20821_v63  ;;  %v20859_v63 = vld [vmem:[#allocation8 + $0x344] ss:$24 sps:$4 sm:$0xff]  }
 0xb35   :  { %11805 = vmatprep.subr.bf16.mxu0 %v20826_v5  ;;  %v20980_v5 = vld [vmem:[#allocation11 + $0x1b0] ss:$24 sps:$4 sm:$0xff]  }
 0xb36   :  { %13711 = vmatpush1.bf16.msra.mxu1 %v20956_v28  ;;  %v20878_v28 = vld [vmem:[#allocation8 + $0x490] ss:$24 sps:$4 sm:$0xff]  }
 0xb37   :  { %13712 = vmatprep.subr.bf16.mxu1 %v20964_v12  ;;  %v20884_v12 = vld [vmem:[#allocation8 + $0x4f0] ss:$24 sps:$4 sm:$0xff]  }
 0xb38   :  { %11806 = vmatpush1.bf16.msra.mxu0 %v20824_v48  ;;  %v20857_v48 = vld [vmem:[#allocation8 + $0x340] ss:$24 sps:$4 sm:$0xff]  }
 0xb39   :  { %11807 = vmatprep.subr.bf16.mxu0 %v20829_v56  ;;  %v20982_v56 = vld [vmem:[#allocation11 + $0x1b4] ss:$24 sps:$4 sm:$0xff]  }
 0xb3a   :  { %13713 = vmatpush1.bf16.msra.mxu1 %v20962_v11  ;;  %v20886_v11 = vld [vmem:[#allocation8 + $0x4f4] ss:$24 sps:$4 sm:$0xff]  }
 0xb3b   :  { %13714 = vmatprep.subr.bf16.mxu1 %v20970_v38  ;;  %v20890_v38 = vld [vmem:[#allocation8 + $0x550] ss:$24 sps:$4 sm:$0xff]  }
 0xb3c   :  { %11808 = vmatpush1.bf16.msra.mxu0 %v20827_v58  ;;  %v20862_v58 = vld [vmem:[#allocation8 + $0x374] ss:$24 sps:$4 sm:$0xff]  }
 0xb3d   :  { %11809 = vmatprep.subr.bf16.mxu0 %v20832_v62  ;;  %v20988_v62 = vld [vmem:[#allocation11 + $0x1e4] ss:$24 sps:$4 sm:$0xff]  }
 0xb3e   :  { %13715 = vmatpush1.bf16.msra.mxu1 %v20968_v10  ;;  %v20892_v10 = vld [vmem:[#allocation8 + $0x554] ss:$24 sps:$4 sm:$0xff]  }
 0xb3f   :  { %13716 = vmatprep.subr.bf16.mxu1 %v20976_v42  ;;  %v20896_v42 = vld [vmem:[#allocation8 + $0x5b0] ss:$24 sps:$4 sm:$0xff]  }
 0xb40   :  { %11810 = vmatpush1.bf16.msra.mxu0 %v20830_v29  ;;  %v20986_v29 = vld [vmem:[#allocation11 + $0x1e0] ss:$24 sps:$4 sm:$0xff]  }
 0xb41   :  { %11811 = vmatprep.subr.bf16.mxu0 %v20835_v50  ;;  %v20994_v50 = vld [vmem:[#allocation11 + $0x214] ss:$24 sps:$4 sm:$0xff]  }
 0xb42   :  { %13717 = vmatpush1.bf16.msra.mxu1 %v20974_v55  ;;  %v20898_v55 = vld [vmem:[#allocation8 + $0x5b4] ss:$24 sps:$4 sm:$0xff]  }
 0xb43   :  { %13718 = vmatprep.subr.bf16.mxu1 %v20982_v56  ;;  %v20902_v56 = vld [vmem:[#allocation8 + $0x610] ss:$24 sps:$4 sm:$0xff]  }
 0xb44   :  { %11812 = vmatpush1.bf16.msra.mxu0 %v20833_v17  ;;  %v20863_v17 = vld [vmem:[#allocation8 + $0x3a0] ss:$24 sps:$4 sm:$0xff]  }
 0xb45   :  { %11813 = vmatprep.subr.bf16.mxu0 %v20838_v36  ;;  %v20866_v36 = vld [vmem:[#allocation8 + $0x3d0] ss:$24 sps:$4 sm:$0xff]  }
 0xb46   :  { %13719 = vmatpush1.bf16.msra.mxu1 %v20980_v5  ;;  %v20899_v5 = vld [vmem:[#allocation8 + $0x5e0] ss:$24 sps:$4 sm:$0xff]  }
 0xb47   :  { %13720 = vmatprep.subr.bf16.mxu1 %v20988_v62  ;;  %v20905_v62 = vld [vmem:[#allocation8 + $0x640] ss:$24 sps:$4 sm:$0xff]  }
 0xb48   :  { %11814 = vmatpush1.bf16.msra.mxu0 %v20836_v35  ;;  %v20871_v35 = vld [vmem:[#allocation8 + $0x404] ss:$24 sps:$4 sm:$0xff]  }
 0xb49   :  { %11815 = vmatprep.subr.bf16.mxu0 %v20841_v47  ;;  %v20869_v47 = vld [vmem:[#allocation8 + $0x400] ss:$24 sps:$4 sm:$0xff]  }
 0xb4a   :  { %13721 = vmatpush1.bf16.msra.mxu1 %v20986_v29  ;;  %v20910_v29 = vld [vmem:[#allocation8 + $0x674] ss:$24 sps:$4 sm:$0xff]  }
 0xb4b   :  { %13722 = vmatprep.subr.bf16.mxu1 %v20994_v50  ;;  %v20911_v50 = vld [vmem:[#allocation8 + $0x6a0] ss:$24 sps:$4 sm:$0xff]  }
 0xb4c   :  { %11816 = vmatpush1.bf16.msra.mxu0 %v20839_v57  ;;  %v20874_v57 = vld [vmem:[#allocation8 + $0x434] ss:$24 sps:$4 sm:$0xff]  }
 0xb4d   :  { %11817 = vmatprep.subr.bf16.mxu0 %v20844_v52  ;;  %v20877_v52 = vld [vmem:[#allocation8 + $0x464] ss:$24 sps:$4 sm:$0xff]  }
 0xb50   :  { %11818 = vmatpush1.bf16.msra.mxu0 %v20842_v18  ;;  %v21010_v18 = vld [vmem:[#allocation11 + $0x2a0] ss:$24 sps:$4 sm:$0xff]  }
 0xb51   :  { %11819 = vmatprep.subr.bf16.mxu0 %v20847_v41  ;;  %v20880_v41 = vld [vmem:[#allocation8 + $0x494] ss:$24 sps:$4 sm:$0xff]  }
 0xb54   :  { %11820 = vmatpush1.bf16.msra.mxu0 %v20845_v21  ;;  %v21016_v21 = vld [vmem:[#allocation11 + $0x2d0] ss:$24 sps:$4 sm:$0xff]  }
 0xb55   :  { %11821 = vmatprep.subr.bf16.mxu0 %v20850_v44  ;;  %v20883_v44 = vld [vmem:[#allocation8 + $0x4c4] ss:$24 sps:$4 sm:$0xff]  }
 0xb58   :  { %11822 = vmatpush1.bf16.msra.mxu0 %v20848_v33  ;;  %v20881_v33 = vld [vmem:[#allocation8 + $0x4c0] ss:$24 sps:$4 sm:$0xff]  }
 0xb59   :  { %11823 = vmatprep.subr.bf16.mxu0 %v20853_v6  ;;  %v20889_v6 = vld [vmem:[#allocation8 + $0x524] ss:$24 sps:$4 sm:$0xff]  }
 0xb5c   :  { %11824 = vmatpush1.bf16.msra.mxu0 %v20851_v20  ;;  %v20887_v20 = vld [vmem:[#allocation8 + $0x520] ss:$24 sps:$4 sm:$0xff]  }
 0xb5d   :  { %11836 = vmatprep.subr.bf16.mxu0 %v20856_v45  ;;  %v20895_v45 = vld [vmem:[#allocation8 + $0x584] ss:$24 sps:$4 sm:$0xff]  }
 0xb5f   :  { %11826 = vmatmul.mubr.bf16.vlgmr.msra.gmra.mrb[28].mxu0 %v22878_v34  ;;  %v20992_v34 = vld [vmem:[#allocation11 + $0x210] ss:$24 sps:$4 sm:$0xff]  }
 0xb60   :  { %11837 = vmatpush1.bf16.msra.mxu0 %v20854_v53  ;;  %11868 = vmatprep.mubr.bf16.mxu0 %v22892_v4  ;;  %v20868_v4 = vld [vmem:[#allocation8 + $0x3d4] ss:$24 sps:$4 sm:$0xff]   ;;  %v20893_v53 = vld [vmem:[#allocation8 + $0x580] ss:$24 sps:$4 sm:$0xff]  }
 0xb61   :  { %11838 = vmatprep.subr.bf16.mxu0 %v20859_v63  ;;  %13723 = vmatpush1.bf16.msra.mxu1 %v20992_v34  ;;  %v20901_v63 = vld [vmem:[#allocation8 + $0x5e4] ss:$24 sps:$4 sm:$0xff]   ;;  %v20916_v34 = vld [vmem:[#allocation8 + $0x6d4] ss:$24 sps:$4 sm:$0xff]  }
 0xb62   :  { %13724 = vmatprep.subr.bf16.mxu1 %v21000_v46  ;;  %v20922_v46 = vld [vmem:[#allocation8 + $0x734] ss:$24 sps:$4 sm:$0xff]  }
 0xb64   :  { %11839 = vmatpush1.bf16.msra.mxu0 %v20857_v48  ;;  %v20904_v48 = vld [vmem:[#allocation8 + $0x614] ss:$24 sps:$4 sm:$0xff]  }
 0xb65   :  { %11840 = vmatprep.subr.bf16.mxu0 %v20862_v58  ;;  %13725 = vmatpush1.bf16.msra.mxu1 %v20998_v59  ;;  %v20907_v58 = vld [vmem:[#allocation8 + $0x644] ss:$24 sps:$4 sm:$0xff]  }
 0xb66   :  { %13726 = vmatprep.subr.bf16.mxu1 %v21006_v39  ;;  %v20925_v59 = vld [vmem:[#allocation8 + $0x764] ss:$24 sps:$4 sm:$0xff]   ;;  %v20929_v39 = vld [vmem:[#allocation8 + $0x790] ss:$24 sps:$4 sm:$0xff]  }
 0xb68   :  { %11841 = vmatpush1.bf16.msra.mxu0 %v20860_v24  ;;  %v20908_v24 = vld [vmem:[#allocation8 + $0x670] ss:$24 sps:$4 sm:$0xff]  }
 0xb69   :  { %11842 = vmatprep.subr.bf16.mxu0 %v20865_v54  ;;  %13727 = vmatpush1.bf16.msra.mxu1 %v21004_v37  ;;  %v20913_v54 = vld [vmem:[#allocation8 + $0x6a4] ss:$24 sps:$4 sm:$0xff]  }
 0xb6a   :  { %13728 = vmatprep.subr.bf16.mxu1 %v21012_v9  ;;  %v20937_v37 = vld [vmem:[#allocation8 + $0x7c4] ss:$24 sps:$4 sm:$0xff]  }
 0xb6b   :  { %v20949_v9 = vld [vmem:[#allocation8 + $0x824] ss:$24 sps:$4 sm:$0xff]  }
 0xb6c   :  { %11843 = vmatpush1.bf16.msra.mxu0 %v20863_v17  ;;  %v20914_v17 = vld [vmem:[#allocation8 + $0x6d0] ss:$24 sps:$4 sm:$0xff]  }
 0xb6d   :  { %11844 = vmatprep.subr.bf16.mxu0 %v20868_v4  ;;  %13729 = vmatpush1.bf16.msra.mxu1 %v21010_v18  ;;  %v20919_v4 = vld [vmem:[#allocation8 + $0x704] ss:$24 sps:$4 sm:$0xff]   ;;  %v20955_v18 = vld [vmem:[#allocation8 + $0x854] ss:$24 sps:$4 sm:$0xff]  }
 0xb6e   :  { %13730 = vmatprep.subr.bf16.mxu1 %v21018_v60  ;;  %v20961_v60 = vld [vmem:[#allocation8 + $0x884] ss:$24 sps:$4 sm:$0xff]  }
 0xb70   :  { %11845 = vmatpush1.bf16.msra.mxu0 %v20866_v36  ;;  %v20923_v36 = vld [vmem:[#allocation8 + $0x760] ss:$24 sps:$4 sm:$0xff]  }
 0xb71   :  { %11846 = vmatprep.subr.bf16.mxu0 %v20871_v35  ;;  %13731 = vmatpush1.bf16.msra.mxu1 %v21016_v21  ;;  %v20931_v35 = vld [vmem:[#allocation8 + $0x794] ss:$24 sps:$4 sm:$0xff]  }
 0xb72   :  { %13743 = vmatprep.subr.bf16.mxu1 %v21024_v2  ;;  %v20967_v21 = vld [vmem:[#allocation8 + $0x8b4] ss:$24 sps:$4 sm:$0xff]   ;;  %v20973_v2 = vld [vmem:[#allocation8 + $0x8e4] ss:$24 sps:$4 sm:$0xff]  }
 0xb74   :  { %11847 = vmatpush1.bf16.msra.mxu0 %v20869_v47  ;;  %v20935_v47 = vld [vmem:[#allocation8 + $0x7c0] ss:$24 sps:$4 sm:$0xff]  }
 0xb75   :  { %11848 = vmatprep.subr.bf16.mxu0 %v20874_v57  ;;  %v20943_v57 = vld [vmem:[#allocation8 + $0x7f4] ss:$24 sps:$4 sm:$0xff]  }
 0xb78   :  { %11849 = vmatpush1.bf16.msra.mxu0 %v20872_v8  ;;  %v20941_v8 = vld [vmem:[#allocation8 + $0x7f0] ss:$24 sps:$4 sm:$0xff]  }
 0xb79   :  { %11850 = vmatprep.subr.bf16.mxu0 %v20877_v52  ;;  %v20947_v52 = vld [vmem:[#allocation8 + $0x820] ss:$24 sps:$4 sm:$0xff]  }
 0xb7c   :  { %11851 = vmatpush1.bf16.msra.mxu0 %v20875_v7  ;;  %v20953_v7 = vld [vmem:[#allocation8 + $0x850] ss:$24 sps:$4 sm:$0xff]  }
 0xb7d   :  { %11852 = vmatprep.subr.bf16.mxu0 %v20880_v41  ;;  %v20959_v41 = vld [vmem:[#allocation8 + $0x880] ss:$24 sps:$4 sm:$0xff]  }
 0xb80   :  { %11853 = vmatpush1.bf16.msra.mxu0 %v20878_v28  ;;  %v20965_v28 = vld [vmem:[#allocation8 + $0x8b0] ss:$24 sps:$4 sm:$0xff]  }
 0xb81   :  { %11854 = vmatprep.subr.bf16.mxu0 %v20883_v44  ;;  %v20971_v44 = vld [vmem:[#allocation8 + $0x8e0] ss:$24 sps:$4 sm:$0xff]  }
 0xb84   :  { %11855 = vmatpush1.bf16.msra.mxu0 %v20881_v33  ;;  %v20979_v33 = vld [vmem:[#allocation11 + $0xc] ss:$24 sps:$4 sm:$0xff]  }
 0xb85   :  { %11856 = vmatprep.subr.bf16.mxu0 %v20886_v11  ;;  %v20977_v11 = vld [vmem:[#allocation11 + $0x8] ss:$24 sps:$4 sm:$0xff]  }
 0xb88   :  { %11857 = vmatpush1.bf16.msra.mxu0 %v20884_v12  ;;  %v20985_v12 = vld [vmem:[#allocation11 + $0x3c] ss:$24 sps:$4 sm:$0xff]  }
 0xb89   :  { %11858 = vmatprep.subr.bf16.mxu0 %v20889_v6  ;;  %v20983_v6 = vld [vmem:[#allocation11 + $0x38] ss:$24 sps:$4 sm:$0xff]  }
 0xb8c   :  { %11859 = vmatpush1.bf16.msra.mxu0 %v20887_v20  ;;  %v20991_v20 = vld [vmem:[#allocation11 + $0x6c] ss:$24 sps:$4 sm:$0xff]  }
 0xb8d   :  { %11860 = vmatprep.subr.bf16.mxu0 %v20892_v10  ;;  %v20989_v10 = vld [vmem:[#allocation11 + $0x68] ss:$24 sps:$4 sm:$0xff]  }
 0xb90   :  { %11861 = vmatpush1.bf16.msra.mxu0 %v20890_v38  ;;  %v20997_v38 = vld [vmem:[#allocation11 + $0x9c] ss:$24 sps:$4 sm:$0xff]  }
 0xb91   :  { %11862 = vmatprep.subr.bf16.mxu0 %v20895_v45  ;;  %v20995_v45 = vld [vmem:[#allocation11 + $0x98] ss:$24 sps:$4 sm:$0xff]  }
 0xb94   :  { %11863 = vmatpush1.bf16.msra.mxu0 %v20893_v53  ;;  %v21003_v53 = vld [vmem:[#allocation11 + $0xcc] ss:$24 sps:$4 sm:$0xff]  }
 0xb95   :  { %11864 = vmatprep.subr.bf16.mxu0 %v20898_v55  ;;  %v21001_v55 = vld [vmem:[#allocation11 + $0xc8] ss:$24 sps:$4 sm:$0xff]  }
 0xb98   :  { %11865 = vmatpush1.bf16.msra.mxu0 %v20896_v42  ;;  %v22920_v42 = vld [vmem:[#allocation9] sm:$0x3f] }
 0xb99   :  { %11866 = vmatprep.subr.bf16.mxu0 %v20901_v63  ;;  %v21009_v63 = vld [vmem:[#allocation11 + $0xfc] ss:$24 sps:$4 sm:$0xff]  }
 0xb9c   :  { %11867 = vmatpush1.bf16.msra.mxu0 %v20899_v5  ;;  %v10076_v5 = vrot.slane %v22920_v42, %v22824_v23 }
 0xb9d   :  { %11879 = vmatprep.subr.bf16.mxu0 %v20904_v48  ;;  %v10072_v48 = vrot.slane %v22920_v42, %v22818_v19 }
 0xb9f   :  { %11869 = vmatmul.mubr.bf16.vlgmr.msra.gmra.mrb[28].mxu0 %v22898_v13  ;;  %v20917_v13 = vld [vmem:[#allocation8 + $0x700] ss:$24 sps:$4 sm:$0xff]  }
 0xba0   :  { %11880 = vmatpush1.bf16.msra.mxu0 %v20902_v56  ;;  %11911 = vmatprep.mubr.bf16.mxu0 %v22902_v15  ;;  %v20920_v15 = vld [vmem:[#allocation8 + $0x730] ss:$24 sps:$4 sm:$0xff]   ;;  %v21007_v56 = vld [vmem:[#allocation11 + $0xf8] ss:$24 sps:$4 sm:$0xff]  }
 0xba1   :  { %11881 = vmatprep.subr.bf16.mxu0 %v20907_v58  ;;  %v10080_v58 = vrot.slane %v22920_v42, %v22822_v22 }
 0xba4   :  { %11882 = vmatpush1.bf16.msra.mxu0 %v20905_v62  ;;  %v21015_v62 = vld [vmem:[#allocation11 + $0x12c] ss:$24 sps:$4 sm:$0xff]  }
 0xba5   :  { %11883 = vmatprep.subr.bf16.mxu0 %v20910_v29 }
 0xba8   :  { %11884 = vmatpush1.bf16.msra.mxu0 %v20908_v24 }
 0xba9   :  { %11885 = vmatprep.subr.bf16.mxu0 %v20913_v54 }
 0xbac   :  { %11886 = vmatpush1.bf16.msra.mxu0 %v20911_v50 }
 0xbad   :  { %11887 = vmatprep.subr.bf16.mxu0 %v20916_v34 }
 0xbb0   :  { %11888 = vmatpush1.bf16.msra.mxu0 %v20914_v17 }
 0xbb1   :  { %11889 = vmatprep.subr.bf16.mxu0 %v20919_v4 }
 0xbb4   :  { %11890 = vmatpush1.bf16.msra.mxu0 %v20917_v13 }
 0xbb5   :  { %11891 = vmatprep.subr.bf16.mxu0 %v20922_v46  ;;  %v21013_v46 = vld [vmem:[#allocation11 + $0x128] ss:$24 sps:$4 sm:$0xff]  }
 0xbb8   :  { %11892 = vmatpush1.bf16.msra.mxu0 %v20920_v15 }
 0xbb9   :  { %11893 = vmatprep.subr.bf16.mxu0 %v20925_v59 }
 0xbbc   :  { %11894 = vmatpush1.bf16.msra.mxu0 %v20923_v36 }
 0xbbd   :  { %11895 = vmatprep.subr.bf16.mxu0 %v20931_v35 }
 0xbc0   :  { %11896 = vmatpush1.bf16.msra.mxu0 %v20929_v39  ;;  %v21021_v39 = vld [vmem:[#allocation11 + $0x15c] ss:$24 sps:$4 sm:$0xff]  }
 0xbc1   :  { %11897 = vmatprep.subr.bf16.mxu0 %v20937_v37 }
 0xbc4   :  { %11898 = vmatpush1.bf16.msra.mxu0 %v20935_v47 }
 0xbc5   :  { %11899 = vmatprep.subr.bf16.mxu0 %v20943_v57 }
 0xbc8   :  { %11900 = vmatpush1.bf16.msra.mxu0 %v20941_v8 }
 0xbc9   :  { %11901 = vmatprep.subr.bf16.mxu0 %v20949_v9 }
 0xbcc   :  { %11902 = vmatpush1.bf16.msra.mxu0 %v20947_v52 }
 0xbcd   :  { %11903 = vmatprep.subr.bf16.mxu0 %v20955_v18 }
 0xbd0   :  { %11904 = vmatpush1.bf16.msra.mxu0 %v20953_v7 }
 0xbd1   :  { %11905 = vmatprep.subr.bf16.mxu0 %v20961_v60 }
 0xbd4   :  { %11906 = vmatpush1.bf16.msra.mxu0 %v20959_v41 }
 0xbd5   :  { %11907 = vmatprep.subr.bf16.mxu0 %v20967_v21  ;;  %v21019_v21 = vld [vmem:[#allocation11 + $0x158] ss:$24 sps:$4 sm:$0xff]  }
 0xbd8   :  { %11908 = vmatpush1.bf16.msra.mxu0 %v20965_v28 }
 0xbd9   :  { %11909 = vmatprep.subr.bf16.mxu0 %v20973_v2 }
 0xbdc   :  { %11910 = vmatpush1.bf16.msra.mxu0 %v20971_v44 }
 0xbdd   :  { %13829 = vmatprep.subr.bf16.mxu0 %v20979_v33 }
 0xbdf   :  { %11912 = vmatmul.mubr.bf16.vlgmr.msra.gmra.mrb[28].mxu0 %v22910_v26  ;;  %v10068_v26 = vrot.slane %v22920_v42, %v22820_v32 }
 0xbe0   :  { %13830 = vmatpush1.bf16.msra.mxu0 %v20977_v11 }
 0xbe1   :  { %13831 = vmatprep.subr.bf16.mxu0 %v20985_v12  ;;  %v21022_v12 = vld [vmem:[#allocation11 + $0x300] ss:$24 sps:$4 sm:$0xff]  }
 0xbe4   :  { %13832 = vmatpush1.bf16.msra.mxu0 %v20983_v6 }
 0xbe5   :  { %13833 = vmatprep.subr.bf16.mxu0 %v20991_v20  ;;  %v21027_v20 = vld [vmem:[#allocation11 + $0x18c] ss:$24 sps:$4 sm:$0xff]  }
 0xbe8   :  { %13834 = vmatpush1.bf16.msra.mxu0 %v20989_v10  ;;  %v21030_v10 = vld [vmem:[#allocation11 + $0x334] ss:$24 sps:$4 sm:$0xff]  }
 0xbe9   :  { %13835 = vmatprep.subr.bf16.mxu0 %v20997_v38  ;;  %v21025_v38 = vld [vmem:[#allocation11 + $0x188] ss:$24 sps:$4 sm:$0xff]  }
 0xbec   :  { %13836 = vmatpush1.bf16.msra.mxu0 %v20995_v45  ;;  %v21033_v45 = vld [vmem:[#allocation11 + $0x1bc] ss:$24 sps:$4 sm:$0xff]  }
 0xbed   :  { %13837 = vmatprep.subr.bf16.mxu0 %v21003_v53  ;;  %v21028_v53 = vld [vmem:[#allocation11 + $0x330] ss:$24 sps:$4 sm:$0xff]  }
 0xbf0   :  { %13838 = vmatpush1.bf16.msra.mxu0 %v21001_v55  ;;  %v21036_v55 = vld [vmem:[#allocation11 + $0x364] ss:$24 sps:$4 sm:$0xff]  }
 0xbf1   :  { %13839 = vmatprep.subr.bf16.mxu0 %v21009_v63  ;;  %v21031_v63 = vld [vmem:[#allocation11 + $0x1b8] ss:$24 sps:$4 sm:$0xff]  }
 0xbf2   :  { %v11655_v29 = vpop.f32.mrb[24].mxu0 }
 0xbf3   :  { %v18570_v24 = vadd.f32 %v11655_v29, %v10068_v26  ;;  %v11784_v54 = vpop.f32.mrb[44].mxu1  ;;  %v11657_v50 = vpop.f32.mrb[25].mxu0  ;;  %v21048_v29 = vld [vmem:[#allocation11 + $0x3c4] ss:$24 sps:$4 sm:$0xff]  }
 0xbf4   :  { %v18574_v34 = vadd.f32 %v11784_v54, %v10076_v5  ;;  %v18571_v17 = vadd.f32 %v11657_v50, %v10072_v48  ;;  %v11786_v4 = vpop.f32.mrb[45].mxu1  ;;  %v11659_v13 = vpop.f32.mrb[26].mxu0  ;;  %13840 = vmatpush1.bf16.msra.mxu0 %v21007_v56  ;;  %v21037_v56 = vld [vmem:[#allocation11 + $0x1e8] ss:$24 sps:$4 sm:$0xff]   ;;  %v21051_v54 = vld [vmem:[#allocation11 + $0x24c] ss:$24 sps:$4 sm:$0xff]  }
 0xbf5   :  { %v18575_v15 = vadd.f32 %v11786_v4, %v10080_v58  ;;  %v18572_v59 = vadd.f32 %v11659_v13, %v10068_v26  ;;  %v11788_v36 = vpop.f32.mrb[46].mxu1  ;;  %v11661_v35 = vpop.f32.mrb[27].mxu0  ;;  %13841 = vmatprep.subr.bf16.mxu0 %v21015_v62  ;;  %v11922_v8 = vmax.f32 %v18570_v24, 0.0  ;;  %v21039_v26 = vld [vmem:[#allocation11 + $0x1ec] ss:$24 sps:$4 sm:$0xff]  }
 0xbf6   :  { %v18576_v37 = vadd.f32 %v11788_v36, %v10076_v5  ;;  %v18573_v47 = vadd.f32 %v11661_v35, %v10072_v48  ;;  %v11790_v57 = vpop.f32.mrb[47].mxu1  ;;  %v11924_v18 = vmax.f32 %v18574_v34, 0.0  ;;  %v11923_v7 = vmax.f32 %v18571_v17, 0.0  ;;  %v21034_v5 = vld [vmem:[#allocation11 + $0x360] ss:$24 sps:$4 sm:$0xff]  }
 0xbf7   :  { %v11928_v9 = vmax.f32 %v18572_v59, 0.0  ;;  %v18577_v52 = vadd.f32 %v11790_v57, %v10080_v58  ;;  %v11925_v28 = vmax.f32 %v18575_v15, 0.0  ;;  %v21042_v48 = vld [vmem:[#allocation11 + $0x394] ss:$24 sps:$4 sm:$0xff]   ;;  %v21040_v62 = vld [vmem:[#allocation11 + $0x390] ss:$24 sps:$4 sm:$0xff]  }
 0xbf8   :  { %v11930_v60 = vmax.f32 %v18576_v37, 0.0  ;;  %v11929_v41 = vmax.f32 %v18573_v47, 0.0  ;;  %13842 = vmatpush1.bf16.msra.mxu0 %v21013_v46  ;;  %v21045_v58 = vld [vmem:[#allocation11 + $0x21c] ss:$24 sps:$4 sm:$0xff]   ;;  %v21043_v24 = vld [vmem:[#allocation11 + $0x218] ss:$24 sps:$4 sm:$0xff]  }
 0xbf9   :  { %v22930_v2 = vpack.c.bf16 %v11928_v9, %v11922_v8  ;;  %v11931_v44 = vmax.f32 %v18577_v52, 0.0  ;;  %13843 = vmatprep.subr.bf16.mxu0 %v21021_v39  ;;  %v21046_v50 = vld [vmem:[#allocation11 + $0x3c0] ss:$24 sps:$4 sm:$0xff]   ;;  %v21054_v34 = vld [vmem:[#allocation11 + $0x3f4] ss:$24 sps:$4 sm:$0xff]  }
 0xbfa   :  { %v22932_v33 = vpack.c.bf16 %v11930_v60, %v11924_v18  ;;  %v22934_v11 = vpack.c.bf16 %v11929_v41, %v11923_v7  ;;  %v21049_v17 = vld [vmem:[#allocation11 + $0x248] ss:$24 sps:$4 sm:$0xff]   ;;  %v21057_v4 = vld [vmem:[#allocation11 + $0x27c] ss:$24 sps:$4 sm:$0xff]   ;;  %v21055_v15 = vld [vmem:[#allocation11 + $0x278] ss:$24 sps:$4 sm:$0xff]  }
 0xbfb   :  { %v22936_v6 = vpack.c.bf16 %v11931_v44, %v11925_v28  ;;  %v21052_v13 = vld [vmem:[#allocation11 + $0x3f0] ss:$24 sps:$4 sm:$0xff]   ;;  %v21060_v46 = vld [vmem:[#allocation11 + $0x424] ss:$24 sps:$4 sm:$0xff]   ;;  %v21058_v36 = vld [vmem:[#allocation11 + $0x420] ss:$24 sps:$4 sm:$0xff]  }
 0xbfc   :  { %13732 = vmatprep.mubr.bf16.mxu1 %v22934_v11  ;;  %13844 = vmatpush1.bf16.msra.mxu0 %v21019_v21  ;;  %v21063_v59 = vld [vmem:[#allocation11 + $0x2ac] ss:$24 sps:$4 sm:$0xff]   ;;  %v21061_v39 = vld [vmem:[#allocation11 + $0x2a8] ss:$24 sps:$4 sm:$0xff]   ;;  %v21069_v37 = vld [vmem:[#allocation11 + $0x2dc] ss:$24 sps:$4 sm:$0xff]  }
 0xbfd   :  { %13861 = vmatprep.mubr.bf16.mxu0 %v22934_v11  ;;  %13733 = vmatmul.mubr.bf16.vlgmr.msra.gmra.mrb[48].mxu1 %v22930_v2  ;;  %v21066_v35 = vld [vmem:[#allocation11 + $0x454] ss:$24 sps:$4 sm:$0xff]   ;;  %v21064_v47 = vld [vmem:[#allocation11 + $0x450] ss:$24 sps:$4 sm:$0xff]   ;;  %v21072_v57 = vld [vmem:[#allocation11 + $0x484] ss:$24 sps:$4 sm:$0xff]  }
 0xbfe   :  { %13744 = vmatpush1.bf16.msra.mxu1 %v21022_v12  ;;  %13775 = vmatprep.mubr.bf16.mxu1 %v22936_v6  ;;  %v21067_v8 = vld [vmem:[#allocation11 + $0x2d8] ss:$24 sps:$4 sm:$0xff]   ;;  %v21075_v9 = vld [vmem:[#allocation11 + $0x30c] ss:$24 sps:$4 sm:$0xff]   ;;  %v21073_v7 = vld [vmem:[#allocation11 + $0x308] ss:$24 sps:$4 sm:$0xff]  }
 0xbff   :  { %13845 = vmatprep.subr.bf16.mxu0 %v21027_v20  ;;  %13745 = vmatprep.subr.bf16.mxu1 %v21030_v10  ;;  %v21070_v52 = vld [vmem:[#allocation11 + $0x480] ss:$24 sps:$4 sm:$0xff]   ;;  %v21078_v18 = vld [vmem:[#allocation11 + $0x4b4] ss:$24 sps:$4 sm:$0xff]   ;;  %v21076_v41 = vld [vmem:[#allocation11 + $0x4b0] ss:$24 sps:$4 sm:$0xff]  }
 0xc00   :  { %13846 = vmatpush1.bf16.msra.mxu0 %v21025_v38  ;;  %v21081_v60 = vld [vmem:[#allocation11 + $0x33c] ss:$24 sps:$4 sm:$0xff]   ;;  %v21079_v28 = vld [vmem:[#allocation11 + $0x338] ss:$24 sps:$4 sm:$0xff]   ;;  %v21087_v44 = vld [vmem:[#allocation11 + $0x36c] ss:$24 sps:$4 sm:$0xff]  }
 0xc01   :  { %13847 = vmatprep.subr.bf16.mxu0 %v21033_v45  ;;  %v21084_v21 = vld [vmem:[#allocation11 + $0x4e4] ss:$24 sps:$4 sm:$0xff]   ;;  %v21082_v12 = vld [vmem:[#allocation11 + $0x4e0] ss:$24 sps:$4 sm:$0xff]   ;;  %v21090_v20 = vld [vmem:[#allocation11 + $0x514] ss:$24 sps:$4 sm:$0xff]  }
 0xc02   :  { %13746 = vmatpush1.bf16.msra.mxu1 %v21028_v53  ;;  %v21085_v10 = vld [vmem:[#allocation11 + $0x368] ss:$24 sps:$4 sm:$0xff]   ;;  %v21093_v38 = vld [vmem:[#allocation11 + $0x39c] ss:$24 sps:$4 sm:$0xff]  }
 0xc03   :  { %13747 = vmatprep.subr.bf16.mxu1 %v21036_v55  ;;  %v21088_v45 = vld [vmem:[#allocation11 + $0x510] ss:$24 sps:$4 sm:$0xff]   ;;  %v21096_v53 = vld [vmem:[#allocation11 + $0x544] ss:$24 sps:$4 sm:$0xff]  }
 0xc04   :  { %13848 = vmatpush1.bf16.msra.mxu0 %v21031_v63  ;;  %v21091_v55 = vld [vmem:[#allocation11 + $0x398] ss:$24 sps:$4 sm:$0xff]   ;;  %v21099_v63 = vld [vmem:[#allocation11 + $0x3cc] ss:$24 sps:$4 sm:$0xff]  }
 0xc05   :  { %13849 = vmatprep.subr.bf16.mxu0 %v21039_v26  ;;  %v21094_v26 = vld [vmem:[#allocation11 + $0x540] ss:$24 sps:$4 sm:$0xff]  }
 0xc06   :  { %13748 = vmatpush1.bf16.msra.mxu1 %v21034_v5  ;;  %v21102_v5 = vld [vmem:[#allocation11 + $0x574] ss:$24 sps:$4 sm:$0xff]  }
 0xc07   :  { %13749 = vmatprep.subr.bf16.mxu1 %v21042_v48  ;;  %v21097_v48 = vld [vmem:[#allocation11 + $0x3c8] ss:$24 sps:$4 sm:$0xff]  }
 0xc08   :  { %13850 = vmatpush1.bf16.msra.mxu0 %v21037_v56  ;;  %v21105_v56 = vld [vmem:[#allocation11 + $0x3fc] ss:$24 sps:$4 sm:$0xff]  }
 0xc09   :  { %13851 = vmatprep.subr.bf16.mxu0 %v21045_v58  ;;  %v21100_v58 = vld [vmem:[#allocation11 + $0x570] ss:$24 sps:$4 sm:$0xff]  }
 0xc0a   :  { %13750 = vmatpush1.bf16.msra.mxu1 %v21040_v62  ;;  %v21108_v62 = vld [vmem:[#allocation11 + $0x5a4] ss:$24 sps:$4 sm:$0xff]  }
 0xc0b   :  { %13751 = vmatprep.subr.bf16.mxu1 %v21048_v29  ;;  %v21103_v29 = vld [vmem:[#allocation11 + $0x3f8] ss:$24 sps:$4 sm:$0xff]  }
 0xc0c   :  { %13852 = vmatpush1.bf16.msra.mxu0 %v21043_v24  ;;  %v21111_v24 = vld [vmem:[#allocation11 + $0x42c] ss:$24 sps:$4 sm:$0xff]  }
 0xc0d   :  { %13853 = vmatprep.subr.bf16.mxu0 %v21051_v54  ;;  %v21106_v54 = vld [vmem:[#allocation11 + $0x5a0] ss:$24 sps:$4 sm:$0xff]  }
 0xc0e   :  { %13752 = vmatpush1.bf16.msra.mxu1 %v21046_v50  ;;  %v21114_v50 = vld [vmem:[#allocation11 + $0x5d4] ss:$24 sps:$4 sm:$0xff]  }
 0xc0f   :  { %13753 = vmatprep.subr.bf16.mxu1 %v21054_v34  ;;  %v21109_v34 = vld [vmem:[#allocation11 + $0x428] ss:$24 sps:$4 sm:$0xff]  }
 0xc10   :  { %13854 = vmatpush1.bf16.msra.mxu0 %v21049_v17  ;;  %v21117_v17 = vld [vmem:[#allocation11 + $0x45c] ss:$24 sps:$4 sm:$0xff]  }
 0xc11   :  { %13855 = vmatprep.subr.bf16.mxu0 %v21057_v4  ;;  %v21112_v4 = vld [vmem:[#allocation11 + $0x5d0] ss:$24 sps:$4 sm:$0xff]  }
 0xc12   :  { %13754 = vmatpush1.bf16.msra.mxu1 %v21052_v13  ;;  %v21144_v13 = vld [vmem:[#allocation11 + $0x604] ss:$24 sps:$4 sm:$0xff]  }
 0xc13   :  { %13755 = vmatprep.subr.bf16.mxu1 %v21060_v46  ;;  %v21115_v46 = vld [vmem:[#allocation11 + $0x458] ss:$24 sps:$4 sm:$0xff]  }
 0xc14   :  { %13856 = vmatpush1.bf16.msra.mxu0 %v21055_v15  ;;  %v21120_v15 = vld [vmem:[#allocation11 + $0x48c] ss:$24 sps:$4 sm:$0xff]  }
 0xc15   :  { %13857 = vmatprep.subr.bf16.mxu0 %v21063_v59  ;;  %v21142_v59 = vld [vmem:[#allocation11 + $0x600] ss:$24 sps:$4 sm:$0xff]  }
 0xc16   :  { %13756 = vmatpush1.bf16.msra.mxu1 %v21058_v36  ;;  %v21150_v36 = vld [vmem:[#allocation11 + $0x634] ss:$24 sps:$4 sm:$0xff]  }
 0xc17   :  { %13757 = vmatprep.subr.bf16.mxu1 %v21066_v35  ;;  %v21118_v35 = vld [vmem:[#allocation11 + $0x488] ss:$24 sps:$4 sm:$0xff]  }
 0xc18   :  { %13858 = vmatpush1.bf16.msra.mxu0 %v21061_v39  ;;  %v21123_v39 = vld [vmem:[#allocation11 + $0x4bc] ss:$24 sps:$4 sm:$0xff]  }
 0xc19   :  { %13859 = vmatprep.subr.bf16.mxu0 %v21069_v37  ;;  %v21148_v37 = vld [vmem:[#allocation11 + $0x630] ss:$24 sps:$4 sm:$0xff]  }
 0xc1a   :  { %13758 = vmatpush1.bf16.msra.mxu1 %v21064_v47  ;;  %v21156_v47 = vld [vmem:[#allocation11 + $0x664] ss:$24 sps:$4 sm:$0xff]  }
 0xc1b   :  { %13759 = vmatprep.subr.bf16.mxu1 %v21072_v57  ;;  %v21121_v57 = vld [vmem:[#allocation11 + $0x4b8] ss:$24 sps:$4 sm:$0xff]  }
 0xc1c   :  { %13860 = vmatpush1.bf16.msra.mxu0 %v21067_v8  ;;  %v21126_v8 = vld [vmem:[#allocation11 + $0x4ec] ss:$24 sps:$4 sm:$0xff]  }
 0xc1d   :  { %13872 = vmatprep.subr.bf16.mxu0 %v21075_v9  ;;  %v21154_v9 = vld [vmem:[#allocation11 + $0x660] ss:$24 sps:$4 sm:$0xff]  }
 0xc1e   :  { %13760 = vmatpush1.bf16.msra.mxu1 %v21070_v52  ;;  %v21162_v52 = vld [vmem:[#allocation11 + $0x694] ss:$24 sps:$4 sm:$0xff]  }
 0xc1f   :  { %13862 = vmatmul.mubr.bf16.vlgmr.msra.gmra.mrb[32].mxu0 %v22930_v2  ;;  %13761 = vmatprep.subr.bf16.mxu1 %v21078_v18  ;;  %v21124_v18 = vld [vmem:[#allocation11 + $0x4e8] ss:$24 sps:$4 sm:$0xff]  }
 0xc20   :  { %13873 = vmatpush1.bf16.msra.mxu0 %v21073_v7  ;;  %13904 = vmatprep.mubr.bf16.mxu0 %v22936_v6  ;;  %v21129_v7 = vld [vmem:[#allocation11 + $0x51c] ss:$24 sps:$4 sm:$0xff]  }
 0xc21   :  { %13874 = vmatprep.subr.bf16.mxu0 %v21081_v60  ;;  %v21160_v60 = vld [vmem:[#allocation11 + $0x690] ss:$24 sps:$4 sm:$0xff]  }
 0xc22   :  { %13762 = vmatpush1.bf16.msra.mxu1 %v21076_v41  ;;  %v21168_v41 = vld [vmem:[#allocation11 + $0x6c4] ss:$24 sps:$4 sm:$0xff]  }
 0xc23   :  { %13763 = vmatprep.subr.bf16.mxu1 %v21084_v21  ;;  %v21127_v21 = vld [vmem:[#allocation11 + $0x518] ss:$24 sps:$4 sm:$0xff]  }
 0xc24   :  { %13875 = vmatpush1.bf16.msra.mxu0 %v21079_v28  ;;  %v21132_v28 = vld [vmem:[#allocation11 + $0x54c] ss:$24 sps:$4 sm:$0xff]  }
 0xc25   :  { %13876 = vmatprep.subr.bf16.mxu0 %v21087_v44  ;;  %v21166_v44 = vld [vmem:[#allocation11 + $0x6c0] ss:$24 sps:$4 sm:$0xff]  }
 0xc26   :  { %13764 = vmatpush1.bf16.msra.mxu1 %v21082_v12  ;;  %v21174_v12 = vld [vmem:[#allocation11 + $0x6f4] ss:$24 sps:$4 sm:$0xff]  }
 0xc27   :  { %13765 = vmatprep.subr.bf16.mxu1 %v21090_v20  ;;  %v21130_v20 = vld [vmem:[#allocation11 + $0x548] ss:$24 sps:$4 sm:$0xff]  }
 0xc28   :  { %13877 = vmatpush1.bf16.msra.mxu0 %v21085_v10  ;;  %v21135_v10 = vld [vmem:[#allocation11 + $0x57c] ss:$24 sps:$4 sm:$0xff]  }
 0xc29   :  { %13878 = vmatprep.subr.bf16.mxu0 %v21093_v38  ;;  %v21172_v38 = vld [vmem:[#allocation11 + $0x6f0] ss:$24 sps:$4 sm:$0xff]  }
 0xc2a   :  { %13766 = vmatpush1.bf16.msra.mxu1 %v21088_v45  ;;  %v21180_v45 = vld [vmem:[#allocation11 + $0x724] ss:$24 sps:$4 sm:$0xff]  }
 0xc2b   :  { %13767 = vmatprep.subr.bf16.mxu1 %v21096_v53  ;;  %v21133_v53 = vld [vmem:[#allocation11 + $0x578] ss:$24 sps:$4 sm:$0xff]  }
 0xc2c   :  { %13879 = vmatpush1.bf16.msra.mxu0 %v21091_v55  ;;  %v21138_v55 = vld [vmem:[#allocation11 + $0x5ac] ss:$24 sps:$4 sm:$0xff]  }
 0xc2d   :  { %13880 = vmatprep.subr.bf16.mxu0 %v21099_v63  ;;  %v21178_v63 = vld [vmem:[#allocation11 + $0x720] ss:$24 sps:$4 sm:$0xff]  }
 0xc2e   :  { %13768 = vmatpush1.bf16.msra.mxu1 %v21094_v26  ;;  %v21186_v26 = vld [vmem:[#allocation11 + $0x754] ss:$24 sps:$4 sm:$0xff]  }
 0xc2f   :  { %13769 = vmatprep.subr.bf16.mxu1 %v21102_v5  ;;  %v21136_v5 = vld [vmem:[#allocation11 + $0x5a8] ss:$24 sps:$4 sm:$0xff]  }
 0xc30   :  { %13881 = vmatpush1.bf16.msra.mxu0 %v21097_v48  ;;  %v21141_v48 = vld [vmem:[#allocation11 + $0x5dc] ss:$24 sps:$4 sm:$0xff]  }
 0xc31   :  { %13882 = vmatprep.subr.bf16.mxu0 %v21105_v56  ;;  %v21184_v56 = vld [vmem:[#allocation11 + $0x750] ss:$24 sps:$4 sm:$0xff]  }
 0xc32   :  { %13770 = vmatpush1.bf16.msra.mxu1 %v21100_v58  ;;  %v21192_v58 = vld [vmem:[#allocation11 + $0x784] ss:$24 sps:$4 sm:$0xff]  }
 0xc33   :  { %13771 = vmatprep.subr.bf16.mxu1 %v21108_v62  ;;  %v21139_v62 = vld [vmem:[#allocation11 + $0x5d8] ss:$24 sps:$4 sm:$0xff]  }
 0xc34   :  { %13883 = vmatpush1.bf16.msra.mxu0 %v21103_v29  ;;  %v21147_v29 = vld [vmem:[#allocation11 + $0x60c] ss:$24 sps:$4 sm:$0xff]  }
 0xc35   :  { %13884 = vmatprep.subr.bf16.mxu0 %v21111_v24  ;;  %v21190_v24 = vld [vmem:[#allocation11 + $0x780] ss:$24 sps:$4 sm:$0xff]  }
 0xc36   :  { %13772 = vmatpush1.bf16.msra.mxu1 %v21106_v54  ;;  %v21198_v54 = vld [vmem:[#allocation11 + $0x7b4] ss:$24 sps:$4 sm:$0xff]  }
 0xc37   :  { %13773 = vmatprep.subr.bf16.mxu1 %v21114_v50  ;;  %v21145_v50 = vld [vmem:[#allocation11 + $0x608] ss:$24 sps:$4 sm:$0xff]  }
 0xc38   :  { %13885 = vmatpush1.bf16.msra.mxu0 %v21109_v34  ;;  %v21153_v34 = vld [vmem:[#allocation11 + $0x63c] ss:$24 sps:$4 sm:$0xff]  }
 0xc39   :  { %13886 = vmatprep.subr.bf16.mxu0 %v21117_v17  ;;  %v21196_v17 = vld [vmem:[#allocation11 + $0x7b0] ss:$24 sps:$4 sm:$0xff]  }
 0xc3a   :  { %13774 = vmatpush1.bf16.msra.mxu1 %v21112_v4  ;;  %v21204_v4 = vld [vmem:[#allocation11 + $0x7e4] ss:$24 sps:$4 sm:$0xff]  }
 0xc3b   :  { %13786 = vmatprep.subr.bf16.mxu1 %v21144_v13  ;;  %v21151_v13 = vld [vmem:[#allocation11 + $0x638] ss:$24 sps:$4 sm:$0xff]  }
 0xc3c   :  { %13887 = vmatpush1.bf16.msra.mxu0 %v21115_v46  ;;  %v21159_v46 = vld [vmem:[#allocation11 + $0x66c] ss:$24 sps:$4 sm:$0xff]  }
 0xc3d   :  { %13776 = vmatmul.mubr.bf16.vlgmr.msra.gmra.mrb[48].mxu1 %v22932_v33  ;;  %13888 = vmatprep.subr.bf16.mxu0 %v21120_v15  ;;  %v21202_v15 = vld [vmem:[#allocation11 + $0x7e0] ss:$24 sps:$4 sm:$0xff]  }
 0xc3e   :  { %13787 = vmatpush1.bf16.msra.mxu1 %v21142_v59  ;;  %v21210_v59 = vld [vmem:[#allocation11 + $0x814] ss:$24 sps:$4 sm:$0xff]  }
 0xc3f   :  { %13788 = vmatprep.subr.bf16.mxu1 %v21150_v36  ;;  %v21157_v36 = vld [vmem:[#allocation11 + $0x668] ss:$24 sps:$4 sm:$0xff]  }
 0xc40   :  { %13889 = vmatpush1.bf16.msra.mxu0 %v21118_v35  ;;  %v21165_v35 = vld [vmem:[#allocation11 + $0x69c] ss:$24 sps:$4 sm:$0xff]  }
 0xc41   :  { %13890 = vmatprep.subr.bf16.mxu0 %v21123_v39  ;;  %v21208_v39 = vld [vmem:[#allocation11 + $0x810] ss:$24 sps:$4 sm:$0xff]  }
 0xc42   :  { %13789 = vmatpush1.bf16.msra.mxu1 %v21148_v37  ;;  %v21216_v37 = vld [vmem:[#allocation11 + $0x844] ss:$24 sps:$4 sm:$0xff]  }
 0xc43   :  { %13790 = vmatprep.subr.bf16.mxu1 %v21156_v47  ;;  %v21163_v47 = vld [vmem:[#allocation11 + $0x698] ss:$24 sps:$4 sm:$0xff]  }
 0xc44   :  { %13891 = vmatpush1.bf16.msra.mxu0 %v21121_v57  ;;  %v21171_v57 = vld [vmem:[#allocation11 + $0x6cc] ss:$24 sps:$4 sm:$0xff]  }
 0xc45   :  { %13892 = vmatprep.subr.bf16.mxu0 %v21126_v8  ;;  %v21214_v8 = vld [vmem:[#allocation11 + $0x840] ss:$24 sps:$4 sm:$0xff]  }
 0xc46   :  { %13791 = vmatpush1.bf16.msra.mxu1 %v21154_v9  ;;  %v21222_v9 = vld [vmem:[#allocation11 + $0x874] ss:$24 sps:$4 sm:$0xff]  }
 0xc47   :  { %13792 = vmatprep.subr.bf16.mxu1 %v21162_v52  ;;  %v21169_v52 = vld [vmem:[#allocation11 + $0x6c8] ss:$24 sps:$4 sm:$0xff]  }
 0xc48   :  { %13893 = vmatpush1.bf16.msra.mxu0 %v21124_v18  ;;  %v21177_v18 = vld [vmem:[#allocation11 + $0x6fc] ss:$24 sps:$4 sm:$0xff]  }
 0xc49   :  { %13894 = vmatprep.subr.bf16.mxu0 %v21129_v7  ;;  %v21220_v7 = vld [vmem:[#allocation11 + $0x870] ss:$24 sps:$4 sm:$0xff]  }
 0xc4a   :  { %13793 = vmatpush1.bf16.msra.mxu1 %v21160_v60  ;;  %v21228_v60 = vld [vmem:[#allocation11 + $0x8a4] ss:$24 sps:$4 sm:$0xff]  }
 0xc4b   :  { %13794 = vmatprep.subr.bf16.mxu1 %v21168_v41  ;;  %v21175_v41 = vld [vmem:[#allocation11 + $0x6f8] ss:$24 sps:$4 sm:$0xff]  }
 0xc4c   :  { %13895 = vmatpush1.bf16.msra.mxu0 %v21127_v21  ;;  %v21183_v21 = vld [vmem:[#allocation11 + $0x72c] ss:$24 sps:$4 sm:$0xff]  }
 0xc4d   :  { %13896 = vmatprep.subr.bf16.mxu0 %v21132_v28  ;;  %v21226_v28 = vld [vmem:[#allocation11 + $0x8a0] ss:$24 sps:$4 sm:$0xff]  }
 0xc4e   :  { %13795 = vmatpush1.bf16.msra.mxu1 %v21166_v44  ;;  %v21234_v44 = vld [vmem:[#allocation11 + $0x8d4] ss:$24 sps:$4 sm:$0xff]  }
 0xc4f   :  { %13796 = vmatprep.subr.bf16.mxu1 %v21174_v12  ;;  %v21181_v12 = vld [vmem:[#allocation11 + $0x728] ss:$24 sps:$4 sm:$0xff]  }
 0xc50   :  { %13897 = vmatpush1.bf16.msra.mxu0 %v21130_v20  ;;  %v21189_v20 = vld [vmem:[#allocation11 + $0x75c] ss:$24 sps:$4 sm:$0xff]  }
 0xc51   :  { %13898 = vmatprep.subr.bf16.mxu0 %v21135_v10  ;;  %v21232_v10 = vld [vmem:[#allocation11 + $0x8d0] ss:$24 sps:$4 sm:$0xff]  }
 0xc52   :  { %13797 = vmatpush1.bf16.msra.mxu1 %v21172_v38  ;;  %v21240_v38 = vld [vmem:[#allocation11 + $0x14] ss:$24 sps:$4 sm:$0xff]  }
 0xc53   :  { %13798 = vmatprep.subr.bf16.mxu1 %v21180_v45  ;;  %v21187_v45 = vld [vmem:[#allocation11 + $0x758] ss:$24 sps:$4 sm:$0xff]  }
 0xc54   :  { %13899 = vmatpush1.bf16.msra.mxu0 %v21133_v53  ;;  %v21195_v53 = vld [vmem:[#allocation11 + $0x78c] ss:$24 sps:$4 sm:$0xff]  }
 0xc55   :  { %13900 = vmatprep.subr.bf16.mxu0 %v21138_v55  ;;  %v21193_v55 = vld [vmem:[#allocation11 + $0x788] ss:$24 sps:$4 sm:$0xff]  }
 0xc56   :  { %13799 = vmatpush1.bf16.msra.mxu1 %v21178_v63  ;;  %v21201_v63 = vld [vmem:[#allocation11 + $0x7bc] ss:$24 sps:$4 sm:$0xff]  }
 0xc57   :  { %13800 = vmatprep.subr.bf16.mxu1 %v21186_v26  ;;  %v21199_v26 = vld [vmem:[#allocation11 + $0x7b8] ss:$24 sps:$4 sm:$0xff]  }
 0xc58   :  { %13901 = vmatpush1.bf16.msra.mxu0 %v21136_v5  ;;  %v21207_v5 = vld [vmem:[#allocation11 + $0x7ec] ss:$24 sps:$4 sm:$0xff]  }
 0xc59   :  { %13902 = vmatprep.subr.bf16.mxu0 %v21141_v48  ;;  %v21205_v48 = vld [vmem:[#allocation11 + $0x7e8] ss:$24 sps:$4 sm:$0xff]  }
 0xc5a   :  { %13801 = vmatpush1.bf16.msra.mxu1 %v21184_v56  ;;  %v21213_v56 = vld [vmem:[#allocation11 + $0x81c] ss:$24 sps:$4 sm:$0xff]  }
 0xc5b   :  { %13802 = vmatprep.subr.bf16.mxu1 %v21192_v58  ;;  %v21211_v58 = vld [vmem:[#allocation11 + $0x818] ss:$24 sps:$4 sm:$0xff]  }
 0xc5c   :  { %13903 = vmatpush1.bf16.msra.mxu0 %v21139_v62  ;;  %v21219_v62 = vld [vmem:[#allocation11 + $0x84c] ss:$24 sps:$4 sm:$0xff]  }
 0xc5d   :  { %13915 = vmatprep.subr.bf16.mxu0 %v21147_v29  ;;  %v21217_v29 = vld [vmem:[#allocation11 + $0x848] ss:$24 sps:$4 sm:$0xff]  }
 0xc5e   :  { %13803 = vmatpush1.bf16.msra.mxu1 %v21190_v24  ;;  %v21225_v24 = vld [vmem:[#allocation11 + $0x87c] ss:$24 sps:$4 sm:$0xff]  }
 0xc5f   :  { %13905 = vmatmul.mubr.bf16.vlgmr.msra.gmra.mrb[32].mxu0 %v22932_v33  ;;  %13804 = vmatprep.subr.bf16.mxu1 %v21198_v54  ;;  %v21223_v54 = vld [vmem:[#allocation11 + $0x878] ss:$24 sps:$4 sm:$0xff]  }
 0xc60   :  { %13916 = vmatpush1.bf16.msra.mxu0 %v21145_v50  ;;  %v21231_v50 = vld [vmem:[#allocation11 + $0x8ac] ss:$24 sps:$4 sm:$0xff]  }
 0xc61   :  { %13917 = vmatprep.subr.bf16.mxu0 %v21153_v34  ;;  %v21229_v34 = vld [vmem:[#allocation11 + $0x8a8] ss:$24 sps:$4 sm:$0xff]  }
 0xc62   :  { %13805 = vmatpush1.bf16.msra.mxu1 %v21196_v17  ;;  %v21237_v17 = vld [vmem:[#allocation11 + $0x8dc] ss:$24 sps:$4 sm:$0xff]  }
 0xc63   :  { %13806 = vmatprep.subr.bf16.mxu1 %v21204_v4  ;;  %v21235_v4 = vld [vmem:[#allocation11 + $0x8d8] ss:$24 sps:$4 sm:$0xff]  }
 0xc64   :  { %13918 = vmatpush1.bf16.msra.mxu0 %v21151_v13  ;;  %v10084_v13 = vrot.slane %v22920_v42, %v22828_v49 }
 0xc65   :  { %13919 = vmatprep.subr.bf16.mxu0 %v21159_v46  ;;  %v10088_v46 = vrot.slane %v22920_v42, %v22826_v31  ;;  %v21241_v42 = vld [vmem:[#allocation11 + $0x40] ss:$24 sps:$4 sm:$0xff]  }
 0xc66   :  { %13807 = vmatpush1.bf16.msra.mxu1 %v21202_v15 }
 0xc67   :  { %13808 = vmatprep.subr.bf16.mxu1 %v21210_v59 }
 0xc68   :  { %13920 = vmatpush1.bf16.msra.mxu0 %v21157_v36 }
 0xc69   :  { %13921 = vmatprep.subr.bf16.mxu0 %v21165_v35 }
 0xc6a   :  { %13809 = vmatpush1.bf16.msra.mxu1 %v21208_v39 }
 0xc6b   :  { %13810 = vmatprep.subr.bf16.mxu1 %v21216_v37 }
 0xc6c   :  { %13922 = vmatpush1.bf16.msra.mxu0 %v21163_v47 }
 0xc6d   :  { %13923 = vmatprep.subr.bf16.mxu0 %v21171_v57 }
 0xc6e   :  { %13811 = vmatpush1.bf16.msra.mxu1 %v21214_v8 }
 0xc6f   :  { %13812 = vmatprep.subr.bf16.mxu1 %v21222_v9 }
 0xc70   :  { %13924 = vmatpush1.bf16.msra.mxu0 %v21169_v52 }
 0xc71   :  { %13925 = vmatprep.subr.bf16.mxu0 %v21177_v18 }
 0xc72   :  { %13813 = vmatpush1.bf16.msra.mxu1 %v21220_v7 }
 0xc73   :  { %13814 = vmatprep.subr.bf16.mxu1 %v21228_v60 }
 0xc74   :  { %13926 = vmatpush1.bf16.msra.mxu0 %v21175_v41  ;;  %v21238_v41 = vld [vmem:[#allocation11 + $0x10] ss:$24 sps:$4 sm:$0xff]  }
 0xc75   :  { %13927 = vmatprep.subr.bf16.mxu0 %v21183_v21  ;;  %v21243_v21 = vld [vmem:[#allocation11 + $0x44] ss:$24 sps:$4 sm:$0xff]  }
 0xc76   :  { %13815 = vmatpush1.bf16.msra.mxu1 %v21226_v28  ;;  %v21246_v28 = vld [vmem:[#allocation11 + $0x74] ss:$24 sps:$4 sm:$0xff]  }
 0xc77   :  { %13816 = vmatprep.subr.bf16.mxu1 %v21234_v44  ;;  %v21244_v44 = vld [vmem:[#allocation11 + $0x70] ss:$24 sps:$4 sm:$0xff]  }
 0xc78   :  { %13928 = vmatpush1.bf16.msra.mxu0 %v21181_v12  ;;  %v21249_v12 = vld [vmem:[#allocation11 + $0xa4] ss:$24 sps:$4 sm:$0xff]  }
 0xc79   :  { %13929 = vmatprep.subr.bf16.mxu0 %v21189_v20  ;;  %v21247_v20 = vld [vmem:[#allocation11 + $0xa0] ss:$24 sps:$4 sm:$0xff]  }
 0xc7a   :  { %13817 = vmatpush1.bf16.msra.mxu1 %v21232_v10  ;;  %v21252_v10 = vld [vmem:[#allocation11 + $0xd4] ss:$24 sps:$4 sm:$0xff]  }
 0xc7b   :  { %13958 = vmatprep.subr.bf16.mxu1 %v21240_v38  ;;  %v21250_v38 = vld [vmem:[#allocation11 + $0xd0] ss:$24 sps:$4 sm:$0xff]  }
 0xc7c   :  { %13930 = vmatpush1.bf16.msra.mxu0 %v21187_v45  ;;  %v21255_v45 = vld [vmem:[#allocation11 + $0x104] ss:$24 sps:$4 sm:$0xff]  }
 0xc7d   :  { %13931 = vmatprep.subr.bf16.mxu0 %v21195_v53  ;;  %v21253_v53 = vld [vmem:[#allocation11 + $0x100] ss:$24 sps:$4 sm:$0xff]  }
 0xc80   :  { %13932 = vmatpush1.bf16.msra.mxu0 %v21193_v55  ;;  %v21258_v55 = vld [vmem:[#allocation11 + $0x134] ss:$24 sps:$4 sm:$0xff]  }
 0xc81   :  { %13933 = vmatprep.subr.bf16.mxu0 %v21201_v63  ;;  %v21261_v63 = vld [vmem:[#allocation11 + $0x164] ss:$24 sps:$4 sm:$0xff]  }
 0xc84   :  { %13934 = vmatpush1.bf16.msra.mxu0 %v21199_v26  ;;  %v21259_v26 = vld [vmem:[#allocation11 + $0x160] ss:$24 sps:$4 sm:$0xff]  }
 0xc85   :  { %13935 = vmatprep.subr.bf16.mxu0 %v21207_v5  ;;  %v21264_v5 = vld [vmem:[#allocation11 + $0x194] ss:$24 sps:$4 sm:$0xff]  }
 0xc88   :  { %13936 = vmatpush1.bf16.msra.mxu0 %v21205_v48  ;;  %v21262_v48 = vld [vmem:[#allocation11 + $0x190] ss:$24 sps:$4 sm:$0xff]  }
 0xc89   :  { %13937 = vmatprep.subr.bf16.mxu0 %v21213_v56  ;;  %v21267_v56 = vld [vmem:[#allocation11 + $0x1c4] ss:$24 sps:$4 sm:$0xff]  }
 0xc8c   :  { %13938 = vmatpush1.bf16.msra.mxu0 %v21211_v58  ;;  %v21265_v58 = vld [vmem:[#allocation11 + $0x1c0] ss:$24 sps:$4 sm:$0xff]  }
 0xc8d   :  { %13939 = vmatprep.subr.bf16.mxu0 %v21219_v62  ;;  %v21270_v62 = vld [vmem:[#allocation11 + $0x1f4] ss:$24 sps:$4 sm:$0xff]  }
 0xc90   :  { %13940 = vmatpush1.bf16.msra.mxu0 %v21217_v29  ;;  %v21268_v29 = vld [vmem:[#allocation11 + $0x1f0] ss:$24 sps:$4 sm:$0xff]  }
 0xc91   :  { %13941 = vmatprep.subr.bf16.mxu0 %v21225_v24  ;;  %v21273_v24 = vld [vmem:[#allocation11 + $0x224] ss:$24 sps:$4 sm:$0xff]  }
 0xc94   :  { %13942 = vmatpush1.bf16.msra.mxu0 %v21223_v54  ;;  %v21271_v54 = vld [vmem:[#allocation11 + $0x220] ss:$24 sps:$4 sm:$0xff]  }
 0xc95   :  { %13943 = vmatprep.subr.bf16.mxu0 %v21231_v50  ;;  %v21276_v50 = vld [vmem:[#allocation11 + $0x254] ss:$24 sps:$4 sm:$0xff]  }
 0xc98   :  { %13944 = vmatpush1.bf16.msra.mxu0 %v21229_v34  ;;  %v21274_v34 = vld [vmem:[#allocation11 + $0x250] ss:$24 sps:$4 sm:$0xff]  }
 0xc99   :  { %13945 = vmatprep.subr.bf16.mxu0 %v21237_v17  ;;  %v21279_v17 = vld [vmem:[#allocation11 + $0x284] ss:$24 sps:$4 sm:$0xff]  }
 0xc9c   :  { %13946 = vmatpush1.bf16.msra.mxu0 %v21235_v4  ;;  %v21277_v4 = vld [vmem:[#allocation11 + $0x280] ss:$24 sps:$4 sm:$0xff]  }
 0xcb2   :  { %v11913_v15 = vpop.f32.mrb[28].mxu0 }
 0xcb3   :  { %v18578_v59 = vadd.f32 %v11913_v15, %v10084_v13  ;;  %v11915_v36 = vpop.f32.mrb[29].mxu0  ;;  %v21285_v15 = vld [vmem:[#allocation11 + $0x2e4] ss:$24 sps:$4 sm:$0xff]  }
 0xcb4   :  { %v18579_v35 = vadd.f32 %v11915_v36, %v10088_v46  ;;  %v11917_v39 = vpop.f32.mrb[30].mxu0  ;;  %v21288_v36 = vld [vmem:[#allocation11 + $0x314] ss:$24 sps:$4 sm:$0xff]  }
 0xcb5   :  { %v18580_v37 = vadd.f32 %v11917_v39, %v10084_v13  ;;  %v11919_v47 = vpop.f32.mrb[31].mxu0  ;;  %v11926_v8 = vmax.f32 %v18578_v59, 0.0  ;;  %v21282_v13 = vld [vmem:[#allocation11 + $0x2b4] ss:$24 sps:$4 sm:$0xff]   ;;  %v21283_v59 = vld [vmem:[#allocation11 + $0x2e0] ss:$24 sps:$4 sm:$0xff]  }
 0xcb6   :  { %v18581_v57 = vadd.f32 %v11919_v47, %v10088_v46  ;;  %v11927_v52 = vmax.f32 %v18579_v35, 0.0  ;;  %v21280_v46 = vld [vmem:[#allocation11 + $0x2b0] ss:$24 sps:$4 sm:$0xff]   ;;  %v21291_v39 = vld [vmem:[#allocation11 + $0x344] ss:$24 sps:$4 sm:$0xff]  }
 0xcb7   :  { %v11932_v9 = vmax.f32 %v18580_v37, 0.0  ;;  %v21286_v35 = vld [vmem:[#allocation11 + $0x310] ss:$24 sps:$4 sm:$0xff]   ;;  %v21289_v37 = vld [vmem:[#allocation11 + $0x340] ss:$24 sps:$4 sm:$0xff]  }
 0xcb8   :  { %v11933_v18 = vmax.f32 %v18581_v57, 0.0  ;;  %v21294_v47 = vld [vmem:[#allocation11 + $0x374] ss:$24 sps:$4 sm:$0xff]   ;;  %v21292_v57 = vld [vmem:[#allocation11 + $0x370] ss:$24 sps:$4 sm:$0xff]  }
 0xcb9   :  { %v22950_v7 = vpack.c.bf16 %v11932_v9, %v11926_v8  ;;  %v21297_v8 = vld [vmem:[#allocation11 + $0x3a4] ss:$24 sps:$4 sm:$0xff]   ;;  %v21295_v9 = vld [vmem:[#allocation11 + $0x3a0] ss:$24 sps:$4 sm:$0xff]  }
 0xcba   :  { %v22952_v60 = vpack.c.bf16 %v11933_v18, %v11927_v52  ;;  %v21300_v52 = vld [vmem:[#allocation11 + $0x3d4] ss:$24 sps:$4 sm:$0xff]   ;;  %v21298_v18 = vld [vmem:[#allocation11 + $0x3d0] ss:$24 sps:$4 sm:$0xff]  }
 0xcbc   :  { %13818 = vmatprep.mubr.bf16.mxu1 %v22952_v60  ;;  %13947 = vmatprep.mubr.bf16.mxu0 %v22952_v60 }
 0xcbd   :  { %13819 = vmatmul.mubr.bf16.vlgmr.msra.gmra.mrb[48].mxu1 %v22950_v7  ;;  %13948 = vmatmul.mubr.bf16.vlgmr.msra.gmra.mrb[32].mxu0 %v22950_v7 }
 0xcbe   :  { %13959 = vmatpush1.bf16.msra.mxu1 %v21238_v41  ;;  %13990 = vmatprep.mubr.bf16.mxu1 %v22934_v11  ;;  %v21256_v11 = vld [vmem:[#allocation11 + $0x130] ss:$24 sps:$4 sm:$0xff]   ;;  %v21303_v41 = vld [vmem:[#allocation11 + $0x404] ss:$24 sps:$4 sm:$0xff]  }
 0xcbf   :  { %13960 = vmatprep.subr.bf16.mxu1 %v21243_v21  ;;  %v21306_v21 = vld [vmem:[#allocation11 + $0x434] ss:$24 sps:$4 sm:$0xff]  }
 0xcc2   :  { %13961 = vmatpush1.bf16.msra.mxu1 %v21241_v42  ;;  %v21309_v42 = vld [vmem:[#allocation11 + $0x464] ss:$24 sps:$4 sm:$0xff]  }
 0xcc3   :  { %13962 = vmatprep.subr.bf16.mxu1 %v21246_v28  ;;  %v21307_v28 = vld [vmem:[#allocation11 + $0x460] ss:$24 sps:$4 sm:$0xff]  }
 0xcc6   :  { %13963 = vmatpush1.bf16.msra.mxu1 %v21244_v44  ;;  %v21312_v44 = vld [vmem:[#allocation11 + $0x494] ss:$24 sps:$4 sm:$0xff]  }
 0xcc7   :  { %13964 = vmatprep.subr.bf16.mxu1 %v21249_v12  ;;  %v21310_v12 = vld [vmem:[#allocation11 + $0x490] ss:$24 sps:$4 sm:$0xff]  }
 0xcca   :  { %13965 = vmatpush1.bf16.msra.mxu1 %v21247_v20  ;;  %v21315_v20 = vld [vmem:[#allocation11 + $0x4c4] ss:$24 sps:$4 sm:$0xff]  }
 0xccb   :  { %13966 = vmatprep.subr.bf16.mxu1 %v21252_v10  ;;  %v21313_v10 = vld [vmem:[#allocation11 + $0x4c0] ss:$24 sps:$4 sm:$0xff]  }
 0xcce   :  { %13967 = vmatpush1.bf16.msra.mxu1 %v21250_v38  ;;  %v21318_v38 = vld [vmem:[#allocation11 + $0x4f4] ss:$24 sps:$4 sm:$0xff]  }
 0xccf   :  { %13968 = vmatprep.subr.bf16.mxu1 %v21255_v45  ;;  %v21316_v45 = vld [vmem:[#allocation11 + $0x4f0] ss:$24 sps:$4 sm:$0xff]  }
 0xcd2   :  { %13969 = vmatpush1.bf16.msra.mxu1 %v21253_v53  ;;  %v21321_v53 = vld [vmem:[#allocation11 + $0x524] ss:$24 sps:$4 sm:$0xff]  }
 0xcd3   :  { %13970 = vmatprep.subr.bf16.mxu1 %v21258_v55  ;;  %v21319_v55 = vld [vmem:[#allocation11 + $0x520] ss:$24 sps:$4 sm:$0xff]  }
 0xcd6   :  { %13971 = vmatpush1.bf16.msra.mxu1 %v21256_v11  ;;  %v21324_v11 = vld [vmem:[#allocation11 + $0x554] ss:$24 sps:$4 sm:$0xff]  }
 0xcd7   :  { %13972 = vmatprep.subr.bf16.mxu1 %v21261_v63  ;;  %v21322_v63 = vld [vmem:[#allocation11 + $0x550] ss:$24 sps:$4 sm:$0xff]  }
 0xcda   :  { %13973 = vmatpush1.bf16.msra.mxu1 %v21259_v26  ;;  %v21327_v26 = vld [vmem:[#allocation11 + $0x584] ss:$24 sps:$4 sm:$0xff]  }
 0xcdb   :  { %13974 = vmatprep.subr.bf16.mxu1 %v21264_v5  ;;  %v21325_v5 = vld [vmem:[#allocation11 + $0x580] ss:$24 sps:$4 sm:$0xff]  }
 0xcde   :  { %13975 = vmatpush1.bf16.msra.mxu1 %v21262_v48  ;;  %v21330_v48 = vld [vmem:[#allocation11 + $0x5b4] ss:$24 sps:$4 sm:$0xff]  }
 0xcdf   :  { %13976 = vmatprep.subr.bf16.mxu1 %v21267_v56  ;;  %v21328_v56 = vld [vmem:[#allocation11 + $0x5b0] ss:$24 sps:$4 sm:$0xff]  }
 0xce2   :  { %13977 = vmatpush1.bf16.msra.mxu1 %v21265_v58  ;;  %v21333_v58 = vld [vmem:[#allocation11 + $0x5e4] ss:$24 sps:$4 sm:$0xff]  }
 0xce3   :  { %13978 = vmatprep.subr.bf16.mxu1 %v21270_v62  ;;  %v21331_v62 = vld [vmem:[#allocation11 + $0x5e0] ss:$24 sps:$4 sm:$0xff]  }
 0xce6   :  { %13979 = vmatpush1.bf16.msra.mxu1 %v21268_v29  ;;  %v21336_v29 = vld [vmem:[#allocation11 + $0x614] ss:$24 sps:$4 sm:$0xff]  }
 0xce7   :  { %13980 = vmatprep.subr.bf16.mxu1 %v21273_v24  ;;  %v21334_v24 = vld [vmem:[#allocation11 + $0x610] ss:$24 sps:$4 sm:$0xff]  }
 0xcea   :  { %13981 = vmatpush1.bf16.msra.mxu1 %v21271_v54  ;;  %v21339_v54 = vld [vmem:[#allocation11 + $0x644] ss:$24 sps:$4 sm:$0xff]  }
 0xceb   :  { %13982 = vmatprep.subr.bf16.mxu1 %v21276_v50  ;;  %v21337_v50 = vld [vmem:[#allocation11 + $0x640] ss:$24 sps:$4 sm:$0xff]  }
 0xcee   :  { %13983 = vmatpush1.bf16.msra.mxu1 %v21274_v34  ;;  %v21342_v34 = vld [vmem:[#allocation11 + $0x674] ss:$24 sps:$4 sm:$0xff]  }
 0xcef   :  { %13984 = vmatprep.subr.bf16.mxu1 %v21279_v17  ;;  %v21340_v17 = vld [vmem:[#allocation11 + $0x670] ss:$24 sps:$4 sm:$0xff]  }
 0xcf2   :  { %13985 = vmatpush1.bf16.msra.mxu1 %v21277_v4  ;;  %v21345_v4 = vld [vmem:[#allocation11 + $0x6a4] ss:$24 sps:$4 sm:$0xff]  }
 0xcf3   :  { %13986 = vmatprep.subr.bf16.mxu1 %v21282_v13  ;;  %v21343_v13 = vld [vmem:[#allocation11 + $0x6a0] ss:$24 sps:$4 sm:$0xff]  }
 0xcf6   :  { %13987 = vmatpush1.bf16.msra.mxu1 %v21280_v46  ;;  %v21348_v46 = vld [vmem:[#allocation11 + $0x6d4] ss:$24 sps:$4 sm:$0xff]  }
 0xcf7   :  { %13988 = vmatprep.subr.bf16.mxu1 %v21285_v15  ;;  %v21346_v15 = vld [vmem:[#allocation11 + $0x6d0] ss:$24 sps:$4 sm:$0xff]  }
 0xcfa   :  { %13989 = vmatpush1.bf16.msra.mxu1 %v21283_v59  ;;  %v21351_v59 = vld [vmem:[#allocation11 + $0x704] ss:$24 sps:$4 sm:$0xff]  }
 0xcfb   :  { %14001 = vmatprep.subr.bf16.mxu1 %v21288_v36  ;;  %v21354_v36 = vld [vmem:[#allocation11 + $0x734] ss:$24 sps:$4 sm:$0xff]  }
 0xcfd   :  { %13991 = vmatmul.mubr.bf16.vlgmr.msra.gmra.mrb[52].mxu1 %v22930_v2  ;;  %v21301_v2 = vld [vmem:[#allocation11 + $0x400] ss:$24 sps:$4 sm:$0xff]  }
 0xcfe   :  { %14002 = vmatpush1.bf16.msra.mxu1 %v21286_v35  ;;  %14033 = vmatprep.mubr.bf16.mxu1 %v22936_v6  ;;  %v21304_v6 = vld [vmem:[#allocation11 + $0x430] ss:$24 sps:$4 sm:$0xff]   ;;  %v21357_v35 = vld [vmem:[#allocation11 + $0x764] ss:$24 sps:$4 sm:$0xff]  }
 0xcff   :  { %14003 = vmatprep.subr.bf16.mxu1 %v21291_v39  ;;  %v21355_v39 = vld [vmem:[#allocation11 + $0x760] ss:$24 sps:$4 sm:$0xff]  }
 0xd02   :  { %14004 = vmatpush1.bf16.msra.mxu1 %v21289_v37  ;;  %v21360_v37 = vld [vmem:[#allocation11 + $0x794] ss:$24 sps:$4 sm:$0xff]  }
 0xd03   :  { %14005 = vmatprep.subr.bf16.mxu1 %v21294_v47  ;;  %v21358_v47 = vld [vmem:[#allocation11 + $0x790] ss:$24 sps:$4 sm:$0xff]  }
 0xd06   :  { %14006 = vmatpush1.bf16.msra.mxu1 %v21292_v57  ;;  %v21363_v57 = vld [vmem:[#allocation11 + $0x7c4] ss:$24 sps:$4 sm:$0xff]  }
 0xd07   :  { %14007 = vmatprep.subr.bf16.mxu1 %v21297_v8  ;;  %v21361_v8 = vld [vmem:[#allocation11 + $0x7c0] ss:$24 sps:$4 sm:$0xff]  }
 0xd0a   :  { %14008 = vmatpush1.bf16.msra.mxu1 %v21295_v9  ;;  %v21366_v9 = vld [vmem:[#allocation11 + $0x7f4] ss:$24 sps:$4 sm:$0xff]  }
 0xd0b   :  { %14009 = vmatprep.subr.bf16.mxu1 %v21300_v52  ;;  %v21364_v52 = vld [vmem:[#allocation11 + $0x7f0] ss:$24 sps:$4 sm:$0xff]  }
 0xd0e   :  { %14010 = vmatpush1.bf16.msra.mxu1 %v21298_v18  ;;  %v21369_v18 = vld [vmem:[#allocation11 + $0x824] ss:$24 sps:$4 sm:$0xff]  }
 0xd0f   :  { %14011 = vmatprep.subr.bf16.mxu1 %v21303_v41  ;;  %v21367_v41 = vld [vmem:[#allocation11 + $0x820] ss:$24 sps:$4 sm:$0xff]  }
 0xd12   :  { %14012 = vmatpush1.bf16.msra.mxu1 %v21301_v2  ;;  %v21372_v2 = vld [vmem:[#allocation11 + $0x854] ss:$24 sps:$4 sm:$0xff]  }
 0xd13   :  { %14013 = vmatprep.subr.bf16.mxu1 %v21306_v21  ;;  %v21370_v21 = vld [vmem:[#allocation11 + $0x850] ss:$24 sps:$4 sm:$0xff]  }
 0xd16   :  { %14014 = vmatpush1.bf16.msra.mxu1 %v21304_v6  ;;  %v21375_v6 = vld [vmem:[#allocation11 + $0x884] ss:$24 sps:$4 sm:$0xff]  }
 0xd17   :  { %14015 = vmatprep.subr.bf16.mxu1 %v21309_v42  ;;  %v21373_v42 = vld [vmem:[#allocation11 + $0x880] ss:$24 sps:$4 sm:$0xff]  }
 0xd1a   :  { %14016 = vmatpush1.bf16.msra.mxu1 %v21307_v28  ;;  %v21378_v28 = vld [vmem:[#allocation11 + $0x8b4] ss:$24 sps:$4 sm:$0xff]  }
 0xd1b   :  { %14017 = vmatprep.subr.bf16.mxu1 %v21312_v44  ;;  %v21376_v44 = vld [vmem:[#allocation11 + $0x8b0] ss:$24 sps:$4 sm:$0xff]  }
 0xd1e   :  { %14018 = vmatpush1.bf16.msra.mxu1 %v21310_v12  ;;  %v21381_v12 = vld [vmem:[#allocation11 + $0x8e4] ss:$24 sps:$4 sm:$0xff]  }
 0xd1f   :  { %14019 = vmatprep.subr.bf16.mxu1 %v21315_v20  ;;  %v21379_v20 = vld [vmem:[#allocation11 + $0x8e0] ss:$24 sps:$4 sm:$0xff]  }
 0xd22   :  { %14020 = vmatpush1.bf16.msra.mxu1 %v21313_v10 }
 0xd23   :  { %14021 = vmatprep.subr.bf16.mxu1 %v21318_v38 }
 0xd26   :  { %14022 = vmatpush1.bf16.msra.mxu1 %v21316_v45 }
 0xd27   :  { %14023 = vmatprep.subr.bf16.mxu1 %v21321_v53 }
 0xd2a   :  { %14024 = vmatpush1.bf16.msra.mxu1 %v21319_v55 }
 0xd2b   :  { %14025 = vmatprep.subr.bf16.mxu1 %v21324_v11 }
 0xd2e   :  { %14026 = vmatpush1.bf16.msra.mxu1 %v21322_v63 }
 0xd2f   :  { %14027 = vmatprep.subr.bf16.mxu1 %v21327_v26 }
 0xd32   :  { %14028 = vmatpush1.bf16.msra.mxu1 %v21325_v5  ;;  %v12228_v5 = vld [vmem:[#allocation12] sm:$0x3f] }
 0xd33   :  { %14029 = vmatprep.subr.bf16.mxu1 %v21330_v48  ;;  %v12233_v48 = vrot.slane %v12228_v5, %v22820_v32 }
 0xd36   :  { %14030 = vmatpush1.bf16.msra.mxu1 %v21328_v56  ;;  %v12237_v56 = vrot.slane %v12228_v5, %v22818_v19 }
 0xd37   :  { %14031 = vmatprep.subr.bf16.mxu1 %v21333_v58 }
 0xd3a   :  { %14032 = vmatpush1.bf16.msra.mxu1 %v21331_v62 }
 0xd3b   :  { %14044 = vmatprep.subr.bf16.mxu1 %v21336_v29  ;;  %v12241_v29 = vrot.slane %v12228_v5, %v22824_v23 }
 0xd3d   :  { %14034 = vmatmul.mubr.bf16.vlgmr.msra.gmra.mrb[52].mxu1 %v22932_v33  ;;  %v21349_v33 = vld [vmem:[#allocation11 + $0x700] ss:$24 sps:$4 sm:$0xff]  }
 0xd3e   :  { %14045 = vmatpush1.bf16.msra.mxu1 %v21334_v24  ;;  %14076 = vmatprep.mubr.bf16.mxu1 %v22952_v60  ;;  %v21352_v60 = vld [vmem:[#allocation11 + $0x730] ss:$24 sps:$4 sm:$0xff]  }
 0xd3f   :  { %14046 = vmatprep.subr.bf16.mxu1 %v21339_v54 }
 0xd42   :  { %14047 = vmatpush1.bf16.msra.mxu1 %v21337_v50 }
 0xd43   :  { %14048 = vmatprep.subr.bf16.mxu1 %v21342_v34 }
 0xd46   :  { %14049 = vmatpush1.bf16.msra.mxu1 %v21340_v17  ;;  %v12245_v17 = vrot.slane %v12228_v5, %v22822_v22 }
 0xd47   :  { %14050 = vmatprep.subr.bf16.mxu1 %v21345_v4 }
 0xd4a   :  { %14051 = vmatpush1.bf16.msra.mxu1 %v21343_v13 }
 0xd4b   :  { %14052 = vmatprep.subr.bf16.mxu1 %v21348_v46 }
 0xd4e   :  { %14053 = vmatpush1.bf16.msra.mxu1 %v21346_v15 }
 0xd4f   :  { %14054 = vmatprep.subr.bf16.mxu1 %v21351_v59 }
 0xd52   :  { %14055 = vmatpush1.bf16.msra.mxu1 %v21349_v33  ;;  %v12249_v33 = vrot.slane %v12228_v5, %v22828_v49 }
 0xd53   :  { %14056 = vmatprep.subr.bf16.mxu1 %v21354_v36  ;;  %v12253_v36 = vrot.slane %v12228_v5, %v22826_v31  ;;  %v21405_v5 = vld [vmem:[#allocation20 + $0x9c] ss:$24 sps:$4 sm:$0xff]  }
 0xd56   :  { %14057 = vmatpush1.bf16.msra.mxu1 %v21352_v60 }
 0xd57   :  { %14058 = vmatprep.subr.bf16.mxu1 %v21357_v35 }
 0xd5a   :  { %14059 = vmatpush1.bf16.msra.mxu1 %v21355_v39 }
 0xd5b   :  { %14060 = vmatprep.subr.bf16.mxu1 %v21360_v37 }
 0xd5e   :  { %14061 = vmatpush1.bf16.msra.mxu1 %v21358_v47 }
 0xd5f   :  { %14062 = vmatprep.subr.bf16.mxu1 %v21363_v57 }
 0xd62   :  { %14063 = vmatpush1.bf16.msra.mxu1 %v21361_v8 }
 0xd63   :  { %14064 = vmatprep.subr.bf16.mxu1 %v21366_v9 }
 0xd66   :  { %14065 = vmatpush1.bf16.msra.mxu1 %v21364_v52 }
 0xd67   :  { %14066 = vmatprep.subr.bf16.mxu1 %v21369_v18 }
 0xd6a   :  { %14067 = vmatpush1.bf16.msra.mxu1 %v21367_v41 }
 0xd6b   :  { %14068 = vmatprep.subr.bf16.mxu1 %v21372_v2 }
 0xd6e   :  { %14069 = vmatpush1.bf16.msra.mxu1 %v21370_v21 }
 0xd6f   :  { %14070 = vmatprep.subr.bf16.mxu1 %v21375_v6 }
 0xd72   :  { %14071 = vmatpush1.bf16.msra.mxu1 %v21373_v42 }
 0xd73   :  { %14072 = vmatprep.subr.bf16.mxu1 %v21378_v28 }
 0xd76   :  { %14073 = vmatpush1.bf16.msra.mxu1 %v21376_v44 }
 0xd77   :  { %14074 = vmatprep.subr.bf16.mxu1 %v21381_v12  ;;  %v21384_v12 = vld [vmem:[#allocation20 + $0x4] ss:$24 sps:$4 sm:$0xff]  }
 0xd78   :  { %16080 = vmatprep.subr.bf16.mxu0 %v21384_v12 }
 0xd7a   :  { %14075 = vmatpush1.bf16.msra.mxu1 %v21379_v20  ;;  %v21385_v20 = vld [vmem:[#allocation20 + $0x8] ss:$24 sps:$4 sm:$0xff]  }
 0xd7d   :  { %14077 = vmatmul.mubr.bf16.vlgmr.msra.gmra.mrb[52].mxu1 %v22950_v7 }
 0xd90   :  { %v13820_v10 = vpop.f32.mrb[48].mxu1  ;;  %v13949_v38 = vpop.f32.mrb[32].mxu0 }
 0xd91   :  { %v13822_v45 = vpop.f32.mrb[49].mxu1  ;;  %v13951_v53 = vpop.f32.mrb[33].mxu0  ;;  %v18582_v58 = vadd.f32 %v13820_v10, %v12233_v48  ;;  %v18586_v34 = vadd.f32 %v13949_v38, %v12241_v29  ;;  %v21387_v10 = vld [vmem:[#allocation20 + $0xc] ss:$24 sps:$4 sm:$0xff]  }
 0xd92   :  { %v13824_v55 = vpop.f32.mrb[50].mxu1  ;;  %v13953_v11 = vpop.f32.mrb[34].mxu0  ;;  %v18583_v62 = vadd.f32 %v13822_v45, %v12237_v56  ;;  %v21390_v38 = vld [vmem:[#allocation20 + $0x34] ss:$24 sps:$4 sm:$0xff]   ;;  %16203 = vmatprep.subr.bf16.mxu1 %v21387_v10  ;;  %v21388_v45 = vld [vmem:[#allocation20 + $0x30] ss:$24 sps:$4 sm:$0xff]  }
 0xd93   :  { %v13826_v63 = vpop.f32.mrb[51].mxu1  ;;  %v13955_v26 = vpop.f32.mrb[35].mxu0  ;;  %v18584_v24 = vadd.f32 %v13824_v55, %v12233_v48  ;;  %v22968_v7 = vadd.f32 %v18582_v58, %v22854_v43  ;;  %v18588_v15 = vadd.f32 %v13953_v11, %v12241_v29  ;;  %v22983_v59 = vadd.f32 %v18586_v34, %v22856_v0  ;;  %16204 = vmatpush1.bf16.msra.mxu1 %v21385_v20  ;;  %v21399_v55 = vld [vmem:[#allocation20 + $0x6c] ss:$24 sps:$4 sm:$0xff]   ;;  %v21394_v11 = vld [vmem:[#allocation20 + $0x60] ss:$24 sps:$4 sm:$0xff]  }
 0xd94   :  { %v18585_v54 = vadd.f32 %v13826_v63, %v12237_v56  ;;  %v22971_v50 = vadd.f32 %v18583_v62, %v22852_v61  ;;  %v18587_v43 = vadd.f32 %v13951_v53, %v12245_v17  ;;  %v18589_v60 = vadd.f32 %v13955_v26, %v12245_v17  ;;  %v21396_v53 = vld [vmem:[#allocation20 + $0x64] ss:$24 sps:$4 sm:$0xff]   ;;  %v21397_v63 = vld [vmem:[#allocation20 + $0x68] ss:$24 sps:$4 sm:$0xff]   ;;  %v21402_v26 = vld [vmem:[#allocation20 + $0x94] ss:$24 sps:$4 sm:$0xff]  }
 0xd95   :  { %v22975_v4 = vadd.f32 %v18584_v24, %v22862_v1  ;;  %v21400_v48 = vld [vmem:[#allocation20 + $0x90] ss:$24 sps:$4 sm:$0xff]   ;;  %v21408_v58 = vld [vmem:[#allocation20 + $0xc4] ss:$24 sps:$4 sm:$0xff]   ;;  %v21406_v29 = vld [vmem:[#allocation20 + $0xc0] ss:$24 sps:$4 sm:$0xff]  }
 0xd96   :  { %v22978_v13 = vadd.f32 %v18585_v54, %v22860_v51  ;;  %v14101_v46 = vadd.f32 %v22971_v50, %v22968_v7  ;;  %v22991_v51 = vadd.f32 %v18588_v15, %v22866_v27  ;;  %v22994_v39 = vadd.f32 %v18587_v43, %v22880_v25  ;;  %v21403_v56 = vld [vmem:[#allocation20 + $0x98] ss:$24 sps:$4 sm:$0xff]   ;;  %v21411_v62 = vld [vmem:[#allocation20 + $0xcc] ss:$24 sps:$4 sm:$0xff]   ;;  %v21409_v24 = vld [vmem:[#allocation20 + $0xc8] ss:$24 sps:$4 sm:$0xff]  }
 0xd97   :  { %v22999_v52 = vadd.f32 %v18589_v60, %v22864_v14  ;;  %v21414_v54 = vld [vmem:[#allocation20 + $0xf4] ss:$24 sps:$4 sm:$0xff]   ;;  %v21412_v17 = vld [vmem:[#allocation20 + $0xf0] ss:$24 sps:$4 sm:$0xff]   ;;  %v21420_v15 = vld [vmem:[#allocation20 + $0x124] ss:$24 sps:$4 sm:$0xff]  }
 0xd98   :  { %v14108_v61 = vadd.f32 %v22978_v13, %v22975_v4  ;;  %v14102_v1 = vadd.f32 %v14101_v46, %v22983_v59  ;;  %v21417_v34 = vld [vmem:[#allocation20 + $0xfc] ss:$24 sps:$4 sm:$0xff]   ;;  %v21415_v46 = vld [vmem:[#allocation20 + $0xf8] ss:$24 sps:$4 sm:$0xff]   ;;  %v21423_v43 = vld [vmem:[#allocation20 + $0x12c] ss:$24 sps:$4 sm:$0xff]  }
 0xd99   :  { %v21424_v60 = vld [vmem:[#allocation20 + $0x150] ss:$24 sps:$4 sm:$0xff]  }
 0xd9a   :  { %v14109_v0 = vadd.f32 %v14108_v61, %v22991_v51  ;;  %v14103_v9 = vadd.f32 %v14102_v1, %v22994_v39  ;;  %v21418_v61 = vld [vmem:[#allocation20 + $0x120] ss:$24 sps:$4 sm:$0xff]   ;;  %v21429_v1 = vld [vmem:[#allocation20 + $0x15c] ss:$24 sps:$4 sm:$0xff]  }
 0xd9c   :  { %v14110_v21 = vadd.f32 %v14109_v0, %v22999_v52 }
 0xe50   :  { %v14078_v35 = vpop.f32.mrb[52].mxu1 }
 0xe51   :  { %v18590_v37 = vadd.f32 %v14078_v35, %v12249_v33  ;;  %v14080_v47 = vpop.f32.mrb[53].mxu1  ;;  %v21427_v35 = vld [vmem:[#allocation20 + $0x158] ss:$24 sps:$4 sm:$0xff]  }
 0xe52   :  { %v18591_v57 = vadd.f32 %v14080_v47, %v12253_v36  ;;  %v14082_v8 = vpop.f32.mrb[54].mxu1 }
 0xe53   :  { %v23002_v18 = vadd.f32 %v18590_v37, %v22870_v3  ;;  %v18592_v27 = vadd.f32 %v14082_v8, %v12249_v33  ;;  %v14084_v41 = vpop.f32.mrb[55].mxu1  ;;  %v21421_v33 = vld [vmem:[#allocation20 + $0x128] ss:$24 sps:$4 sm:$0xff]  }
 0xe54   :  { %v23005_v2 = vadd.f32 %v18591_v57, %v22868_v30  ;;  %v18593_v25 = vadd.f32 %v14084_v41, %v12253_v36  ;;  %v21382_v30 = vld [vmem:[#allocation20] ss:$24 sps:$4 sm:$0xff]   ;;  %v21426_v36 = vld [vmem:[#allocation20 + $0x154] ss:$24 sps:$4 sm:$0xff]  }
 0xe55   :  { %v23009_v6 = vadd.f32 %v18592_v27, %v22884_v16  ;;  %v14104_v42 = vadd.f32 %v14103_v9, %v23002_v18  ;;  %v21393_v16 = vld [vmem:[#allocation20 + $0x3c] ss:$24 sps:$4 sm:$0xff]   ;;  %16081 = vmatpush1.bf16.msra.mxu0 %v21382_v30 }
 0xe56   :  { %v23013_v28 = vadd.f32 %v18593_v25, %v22882_v40  ;;  %16082 = vmatprep.subr.bf16.mxu0 %v21390_v38  ;;  %v21391_v40 = vld [vmem:[#allocation20 + $0x38] ss:$24 sps:$4 sm:$0xff]   ;;  %16205 = vmatprep.subr.bf16.mxu1 %v21393_v16 }
 0xe57   :  { %v14105_v14 = vadd.f32 %v14104_v42, %v23005_v2  ;;  %v14111_v3 = vadd.f32 %v14110_v21, %v23009_v6  ;;  %16206 = vmatpush1.bf16.msra.mxu1 %v21391_v40 }
 0xe58   :  { %16207 = vmatprep.subr.bf16.mxu1 %v21399_v55 }
 0xe59   :  { %14106 = vadd.xlane.f32.xlu1 %v14105_v14  ;;  %v14112_v44 = vadd.f32 %v14111_v3, %v23013_v28  ;;  %16083 = vmatpush1.bf16.msra.mxu0 %v21388_v45 }
 0xe5a   :  { %16084 = vmatprep.subr.bf16.mxu0 %v21396_v53 }
 0xe5b   :  { %14113 = vadd.xlane.f32.xlu0 %v14112_v44  ;;  %16208 = vmatpush1.bf16.msra.mxu1 %v21397_v63 }
 0xe5c   :  { %16209 = vmatprep.subr.bf16.mxu1 %v21405_v5  ;;  %v21435_v5 = vld [vmem:[#allocation20 + $0x18c] ss:$24 sps:$4 sm:$0xff]  }
 0xe5d   :  { %16085 = vmatpush1.bf16.msra.mxu0 %v21394_v11 }
 0xe5e   :  { %16086 = vmatprep.subr.bf16.mxu0 %v21402_v26  ;;  %v21432_v26 = vld [vmem:[#allocation20 + $0x184] ss:$24 sps:$4 sm:$0xff]  }
 0xe5f   :  { %16210 = vmatpush1.bf16.msra.mxu1 %v21403_v56  ;;  %v21433_v56 = vld [vmem:[#allocation20 + $0x188] ss:$24 sps:$4 sm:$0xff]  }
 0xe60   :  { %16211 = vmatprep.subr.bf16.mxu1 %v21411_v62  ;;  %v21441_v62 = vld [vmem:[#allocation20 + $0x1bc] ss:$24 sps:$4 sm:$0xff]  }
 0xe61   :  { %16087 = vmatpush1.bf16.msra.mxu0 %v21400_v48  ;;  %v21430_v48 = vld [vmem:[#allocation20 + $0x180] ss:$24 sps:$4 sm:$0xff]  }
 0xe62   :  { %16088 = vmatprep.subr.bf16.mxu0 %v21408_v58  ;;  %v21438_v58 = vld [vmem:[#allocation20 + $0x1b4] ss:$24 sps:$4 sm:$0xff]  }
 0xe63   :  { %16212 = vmatpush1.bf16.msra.mxu1 %v21409_v24  ;;  %v21439_v24 = vld [vmem:[#allocation20 + $0x1b8] ss:$24 sps:$4 sm:$0xff]  }
 0xe64   :  { %16213 = vmatprep.subr.bf16.mxu1 %v21417_v34  ;;  %v21442_v34 = vld [vmem:[#allocation20 + $0x1e0] ss:$24 sps:$4 sm:$0xff]  }
 0xe65   :  { %16089 = vmatpush1.bf16.msra.mxu0 %v21406_v29  ;;  %v21436_v29 = vld [vmem:[#allocation20 + $0x1b0] ss:$24 sps:$4 sm:$0xff]  }
 0xe66   :  { %16090 = vmatprep.subr.bf16.mxu0 %v21414_v54  ;;  %v21444_v54 = vld [vmem:[#allocation20 + $0x1e4] ss:$24 sps:$4 sm:$0xff]  }
 0xe67   :  { %16214 = vmatpush1.bf16.msra.mxu1 %v21415_v46  ;;  %v21447_v46 = vld [vmem:[#allocation20 + $0x1ec] ss:$24 sps:$4 sm:$0xff]  }
 0xe68   :  { %16215 = vmatprep.subr.bf16.mxu1 %v21423_v43  ;;  %v21453_v43 = vld [vmem:[#allocation20 + $0x21c] ss:$24 sps:$4 sm:$0xff]  }
 0xe69   :  { %16091 = vmatpush1.bf16.msra.mxu0 %v21412_v17  ;;  %v21445_v17 = vld [vmem:[#allocation20 + $0x1e8] ss:$24 sps:$4 sm:$0xff]  }
 0xe6a   :  { %16092 = vmatprep.subr.bf16.mxu0 %v21420_v15  ;;  %v21450_v15 = vld [vmem:[#allocation20 + $0x214] ss:$24 sps:$4 sm:$0xff]  }
 0xe6b   :  { %16216 = vmatpush1.bf16.msra.mxu1 %v21421_v33  ;;  %v21451_v33 = vld [vmem:[#allocation20 + $0x218] ss:$24 sps:$4 sm:$0xff]  }
 0xe6c   :  { %16217 = vmatprep.subr.bf16.mxu1 %v21429_v1  ;;  %v21459_v1 = vld [vmem:[#allocation20 + $0x24c] ss:$24 sps:$4 sm:$0xff]  }
 0xe6d   :  { %16093 = vmatpush1.bf16.msra.mxu0 %v21418_v61  ;;  %v21448_v61 = vld [vmem:[#allocation20 + $0x210] ss:$24 sps:$4 sm:$0xff]  }
 0xe6e   :  { %16094 = vmatprep.subr.bf16.mxu0 %v21426_v36  ;;  %v21456_v36 = vld [vmem:[#allocation20 + $0x244] ss:$24 sps:$4 sm:$0xff]  }
 0xe6f   :  { %16218 = vmatpush1.bf16.msra.mxu1 %v21427_v35  ;;  %v21457_v35 = vld [vmem:[#allocation20 + $0x248] ss:$24 sps:$4 sm:$0xff]  }
 0xe70   :  { %16219 = vmatprep.subr.bf16.mxu1 %v21435_v5 }
 0xe71   :  { %16095 = vmatpush1.bf16.msra.mxu0 %v21424_v60  ;;  %v21454_v60 = vld [vmem:[#allocation20 + $0x240] ss:$24 sps:$4 sm:$0xff]  }
 0xe72   :  { %16096 = vmatprep.subr.bf16.mxu0 %v21432_v26 }
 0xe73   :  { %16220 = vmatpush1.bf16.msra.mxu1 %v21433_v56 }
 0xe74   :  { %16221 = vmatprep.subr.bf16.mxu1 %v21441_v62 }
 0xe75   :  { %16097 = vmatpush1.bf16.msra.mxu0 %v21430_v48 }
 0xe76   :  { %16098 = vmatprep.subr.bf16.mxu0 %v21438_v58 }
 0xe77   :  { %16222 = vmatpush1.bf16.msra.mxu1 %v21439_v24 }
 0xe78   :  { %16223 = vmatprep.subr.bf16.mxu1 %v21447_v46 }
 0xe79   :  { %16099 = vmatpush1.bf16.msra.mxu0 %v21436_v29 }
 0xe7a   :  { %16100 = vmatprep.subr.bf16.mxu0 %v21444_v54 }
 0xe7b   :  { %16224 = vmatpush1.bf16.msra.mxu1 %v21445_v17 }
 0xe7c   :  { %16225 = vmatprep.subr.bf16.mxu1 %v21453_v43 }
 0xe7d   :  { %16101 = vmatpush1.bf16.msra.mxu0 %v21442_v34 }
 0xe7e   :  { %16102 = vmatprep.subr.bf16.mxu0 %v21450_v15 }
 0xe7f   :  { %16226 = vmatpush1.bf16.msra.mxu1 %v21451_v33 }
 0xe80   :  { %16227 = vmatprep.subr.bf16.mxu1 %v21459_v1 }
 0xe81   :  { %16103 = vmatpush1.bf16.msra.mxu0 %v21448_v61 }
 0xe82   :  { %16104 = vmatprep.subr.bf16.mxu0 %v21456_v36 }
 0xe83   :  { %16228 = vmatpush1.bf16.msra.mxu1 %v21457_v35 }
 0xe85   :  { %16105 = vmatpush1.bf16.msra.mxu0 %v21454_v60 }
 0xee6   :  { %v14107_v0 = vpop.xlane.xlu1 %14106 }
 0xee7   :  { %v14115_v37 = vmul.f32 0.0013020834, %v14107_v0  ;;  %v21462_v0 = vld [vmem:[#allocation20 + $0x274] ss:$24 sps:$4 sm:$0xff]  }
 0xee8   :  { %v14114_v47 = vpop.xlane.xlu0 %14113  ;;  %16106 = vmatprep.subr.bf16.mxu0 %v21462_v0 }
 0xee9   :  { %v14116_v57 = vmul.f32 0.0013020834, %v14114_v47  ;;  %v23019_v8 = vsub.f32 %v22968_v7, %v14115_v37  ;;  %v23022_v9 = vsub.f32 %v22971_v50, %v14115_v37  ;;  %v23025_v27 = vsub.f32 %v22983_v59, %v14115_v37  ;;  %v21460_v47 = vld [vmem:[#allocation20 + $0x270] ss:$24 sps:$4 sm:$0xff]  }
 0xeea   :  { %v23028_v41 = vsub.f32 %v22994_v39, %v14115_v37  ;;  %v23041_v50 = vsub.f32 %v23002_v18, %v14115_v37  ;;  %v23056_v44 = vsub.f32 %v23005_v2, %v14115_v37  ;;  %v21465_v37 = vld [vmem:[#allocation20 + $0x27c] ss:$24 sps:$4 sm:$0xff]   ;;  %16107 = vmatpush1.bf16.msra.mxu0 %v21460_v47 }
 0xeeb   :  { %v14129_v25 = vmul.f32 %v23019_v8, %v23019_v8  ;;  %v14130_v21 = vmul.f32 %v23022_v9, %v23022_v9  ;;  %v23035_v42 = vsub.f32 %v22975_v4, %v14116_v57  ;;  %v23038_v7 = vsub.f32 %v22978_v13, %v14116_v57  ;;  %16229 = vmatprep.subr.bf16.mxu1 %v21465_v37 }
 0xeec   :  { %v14131_v59 = vmul.f32 %v23025_v27, %v23025_v27  ;;  %v23046_v14 = vsub.f32 %v22991_v51, %v14116_v57  ;;  %v23049_v3 = vsub.f32 %v22999_v52, %v14116_v57  ;;  %v14132_v18 = vmul.f32 %v23028_v41, %v23028_v41 }
 0xeed   :  { %v14141_v39 = vadd.f32 %v14130_v21, %v14129_v25  ;;  %v14135_v4 = vmul.f32 %v23035_v42, %v23035_v42  ;;  %v14136_v13 = vmul.f32 %v23038_v7, %v23038_v7  ;;  %v23061_v12 = vsub.f32 %v23009_v6, %v14116_v57  ;;  %v21468_v25 = vld [vmem:[#allocation20 + $0x2a4] ss:$24 sps:$4 sm:$0xff]  }
 0xeee   :  { %v14137_v51 = vmul.f32 %v23046_v14, %v23046_v14  ;;  %v14133_v20 = vmul.f32 %v23041_v50, %v23041_v50  ;;  %v23068_v38 = vsub.f32 %v23013_v28, %v14116_v57  ;;  %v14138_v2 = vmul.f32 %v23049_v3, %v23049_v3  ;;  %v21463_v57 = vld [vmem:[#allocation20 + $0x278] ss:$24 sps:$4 sm:$0xff]   ;;  %v21471_v21 = vld [vmem:[#allocation20 + $0x2ac] ss:$24 sps:$4 sm:$0xff]   ;;  %16108 = vmatprep.subr.bf16.mxu0 %v21468_v25 }
 0xeef   :  { %v14142_v30 = vadd.f32 %v14141_v39, %v14131_v59  ;;  %v14148_v52 = vadd.f32 %v14136_v13, %v14135_v4  ;;  %v14134_v45 = vmul.f32 %v23056_v44, %v23056_v44  ;;  %v14139_v40 = vmul.f32 %v23061_v12, %v23061_v12  ;;  %16230 = vmatpush1.bf16.msra.mxu1 %v21463_v57  ;;  %v21466_v59 = vld [vmem:[#allocation20 + $0x2a0] ss:$24 sps:$4 sm:$0xff]   ;;  %v21474_v4 = vld [vmem:[#allocation20 + $0x2d4] ss:$24 sps:$4 sm:$0xff]  }
 0xef0   :  { %v14140_v11 = vmul.f32 %v23068_v38, %v23068_v38  ;;  %v21469_v39 = vld [vmem:[#allocation20 + $0x2a8] ss:$24 sps:$4 sm:$0xff]   ;;  %16231 = vmatprep.subr.bf16.mxu1 %v21471_v21  ;;  %v21477_v13 = vld [vmem:[#allocation20 + $0x2dc] ss:$24 sps:$4 sm:$0xff]   ;;  %16109 = vmatpush1.bf16.msra.mxu0 %v21466_v59 }
 0xef1   :  { %v14143_v10 = vadd.f32 %v14142_v30, %v14132_v18  ;;  %v14149_v16 = vadd.f32 %v14148_v52, %v14137_v51  ;;  %v21472_v18 = vld [vmem:[#allocation20 + $0x2d0] ss:$24 sps:$4 sm:$0xff]   ;;  %16110 = vmatprep.subr.bf16.mxu0 %v21474_v4  ;;  %v21480_v51 = vld [vmem:[#allocation20 + $0x304] ss:$24 sps:$4 sm:$0xff]  }
 0xef2   :  { %v21475_v30 = vld [vmem:[#allocation20 + $0x2d8] ss:$24 sps:$4 sm:$0xff]   ;;  %v21483_v52 = vld [vmem:[#allocation20 + $0x30c] ss:$24 sps:$4 sm:$0xff]  }
 0xef3   :  { %v14144_v6 = vadd.f32 %v14143_v10, %v14133_v20  ;;  %v14150_v53 = vadd.f32 %v14149_v16, %v14138_v2  ;;  %16232 = vmatpush1.bf16.msra.mxu1 %v21469_v39 }
 0xef4   :  { %16233 = vmatprep.subr.bf16.mxu1 %v21477_v13  ;;  %16111 = vmatpush1.bf16.msra.mxu0 %v21472_v18 }
 0xef5   :  { %v14145_v55 = vadd.f32 %v14144_v6, %v14134_v45  ;;  %v14151_v63 = vadd.f32 %v14150_v53, %v14139_v40  ;;  %16121 = vmatprep.subr.bf16.mxu0 %v21480_v51  ;;  %v14099_v40 = vld [vmem:[#allocation17] sm:$0x3f]  ;;  %v14100_v53 = vld [vmem:[#allocation18] sm:$0x3f] }
 0xef6   :  { %v14185_v26 = vrot.slane %v14099_v40, %v22824_v23  ;;  %v14220_v48 = vrot.slane %v14100_v53, %v22820_v32  ;;  %v14232_v56 = vrot.slane %v14100_v53, %v22822_v22  ;;  %v14228_v58 = vrot.slane %v14100_v53, %v22824_v23 }
 0xef7   :  { %14146 = vadd.xlane.f32.xlu1 %v14145_v55  ;;  %v14152_v28 = vadd.f32 %v14151_v63, %v14140_v11  ;;  %16234 = vmatpush1.bf16.msra.mxu1 %v21475_v30  ;;  %v14181_v55 = vrot.slane %v14099_v40, %v22818_v19  ;;  %v14224_v11 = vrot.slane %v14100_v53, %v22818_v19 }
 0xef8   :  { %16244 = vmatprep.subr.bf16.mxu1 %v21483_v52  ;;  %v14177_v63 = vrot.slane %v14099_v40, %v22820_v32  ;;  %v14197_v62 = vrot.slane %v14099_v40, %v22826_v31  ;;  %v14240_v46 = vrot.slane %v14100_v53, %v22826_v31  ;;  %v14193_v15 = vrot.slane %v14099_v40, %v22828_v49 }
 0xef9   :  { %14153 = vadd.xlane.f32.xlu0 %v14152_v28  ;;  %v14189_v28 = vrot.slane %v14099_v40, %v22822_v22  ;;  %v14236_v43 = vrot.slane %v14100_v53, %v22828_v49 }
 0xf84   :  { %v14147_v20 = vpop.xlane.xlu1 %14146 }
 0xf85   :  { %v14155_v10 = vmul.f32 0.0013020834, %v14147_v20 }
 0xf86   :  { %v14154_v16 = vpop.xlane.xlu0 %14153 }
 0xf87   :  { %v14157_v2 = vadd.f32 1e-12, %v14155_v10  ;;  %v14156_v45 = vmul.f32 0.0013020834, %v14154_v16 }
 0xf89   :  { %21826 = vrsqrt.f32 %v14157_v2  ;;  %v14158_v6 = vadd.f32 1e-12, %v14156_v45 }
 0xf8b   :  { %21828 = vrsqrt.f32 %v14158_v6 }
 0xf93   :  { %v21827_v5 = vpop.eup %21826 }
 0xf94   :  { %v14162_v29 = vmul.f32 %v21827_v5, %v23022_v9  ;;  %v14161_v24 = vmul.f32 %v21827_v5, %v23019_v8  ;;  %v14164_v54 = vmul.f32 %v21827_v5, %v23028_v41  ;;  %v14163_v34 = vmul.f32 %v21827_v5, %v23025_v27 }
 0xf95   :  { %v14166_v17 = vmul.f32 %v21827_v5, %v23056_v44  ;;  %v21829_v61 = vpop.eup %21828 }
 0xf96   :  { %v14205_v33 = vmul.f32 %v14181_v55, %v14162_v29  ;;  %v14204_v36 = vmul.f32 %v14177_v63, %v14161_v24  ;;  %v14207_v1 = vmul.f32 %v14189_v28, %v14164_v54  ;;  %v14206_v60 = vmul.f32 %v14185_v26, %v14163_v34 }
 0xf97   :  { %v14168_v9 = vmul.f32 %v21829_v61, %v23038_v7  ;;  %v14167_v8 = vmul.f32 %v21829_v61, %v23035_v42  ;;  %v14170_v41 = vmul.f32 %v21829_v61, %v23049_v3  ;;  %v14169_v27 = vmul.f32 %v21829_v61, %v23046_v14 }
 0xf98   :  { %v14248_v44 = vadd.f32 %v14224_v11, %v14205_v33  ;;  %v14247_v35 = vadd.f32 %v14220_v48, %v14204_v36  ;;  %v14250_v0 = vadd.f32 %v14232_v56, %v14207_v1  ;;  %v14249_v37 = vadd.f32 %v14228_v58, %v14206_v60  ;;  %v21481_v36 = vld [vmem:[#allocation20 + $0x308] ss:$24 sps:$4 sm:$0xff]  }
 0xf99   :  { %v14211_v47 = vmul.f32 %v14181_v55, %v14168_v9  ;;  %v14210_v57 = vmul.f32 %v14177_v63, %v14167_v8  ;;  %v14213_v25 = vmul.f32 %v14189_v28, %v14170_v41  ;;  %v14212_v21 = vmul.f32 %v14185_v26, %v14169_v27  ;;  %v21489_v41 = vld [vmem:[#allocation20 + $0x33c] ss:$24 sps:$4 sm:$0xff]  }
 0xf9a   :  { %v14260_v59 = vpack.c.bf16 %v14248_v44, %v14248_v44  ;;  %v14259_v39 = vpack.c.bf16 %v14247_v35, %v14247_v35  ;;  %v14261_v4 = vpack.c.bf16 %v14249_v37, %v14249_v37  ;;  %v14165_v7 = vmul.f32 %v21827_v5, %v23041_v50  ;;  %v21487_v37 = vld [vmem:[#allocation20 + $0x338] ss:$24 sps:$4 sm:$0xff]  }
 0xf9b   :  { %v14254_v13 = vadd.f32 %v14224_v11, %v14211_v47  ;;  %v14253_v42 = vadd.f32 %v14220_v48, %v14210_v57  ;;  %v14256_v18 = vadd.f32 %v14232_v56, %v14213_v25  ;;  %v14255_v3 = vadd.f32 %v14228_v58, %v14212_v21  ;;  %v21492_v47 = vld [vmem:[#allocation20 + $0x364] ss:$24 sps:$4 sm:$0xff]  }
 0xf9c   :  { %v14604_v30 = vunpack.c.l.b16 %v14260_v59  ;;  %v14603_v14 = vunpack.c.l.b16 %v14259_v39  ;;  %v14262_v51 = vpack.c.bf16 %v14250_v0, %v14250_v0  ;;  %v14605_v52 = vunpack.c.l.b16 %v14261_v4  ;;  %v21484_v0 = vld [vmem:[#allocation20 + $0x330] ss:$24 sps:$4 sm:$0xff]   ;;  %v21495_v57 = vld [vmem:[#allocation20 + $0x36c] ss:$24 sps:$4 sm:$0xff]  }
 0xf9d   :  { %v14266_v20 = vpack.c.bf16 %v14254_v13, %v14254_v13  ;;  %v14265_v10 = vpack.c.bf16 %v14253_v42, %v14253_v42  ;;  %v14268_v2 = vpack.c.bf16 %v14256_v18, %v14256_v18  ;;  %v14267_v16 = vpack.c.bf16 %v14255_v3, %v14255_v3  ;;  %v21490_v13 = vld [vmem:[#allocation20 + $0x360] ss:$24 sps:$4 sm:$0xff]   ;;  %v21498_v18 = vld [vmem:[#allocation20 + $0x394] ss:$24 sps:$4 sm:$0xff]  }
 0xf9e   :  { %v14172_v45 = vmul.f32 %v21829_v61, %v23068_v38  ;;  %v14209_v6 = vmul.f32 %v14197_v62, %v14166_v17  ;;  %v14171_v40 = vmul.f32 %v21829_v61, %v23061_v12  ;;  %v14208_v53 = vmul.f32 %v14193_v15, %v14165_v7  ;;  %v21493_v42 = vld [vmem:[#allocation20 + $0x368] ss:$24 sps:$4 sm:$0xff]   ;;  %v21501_v3 = vld [vmem:[#allocation20 + $0x39c] ss:$24 sps:$4 sm:$0xff]  }
 0xf9f   :  { %v14610_v55 = vunpack.c.l.b16 %v14266_v20  ;;  %v14609_v50 = vunpack.c.l.b16 %v14265_v10  ;;  %v14612_v11 = vunpack.c.l.b16 %v14268_v2  ;;  %v14611_v63 = vunpack.c.l.b16 %v14267_v16  ;;  %v21502_v20 = vld [vmem:[#allocation20 + $0x3c0] ss:$24 sps:$4 sm:$0xff]   ;;  %v21510_v2 = vld [vmem:[#allocation20 + $0x3f4] ss:$24 sps:$4 sm:$0xff]  }
 0xfa0   :  { %v14215_v28 = vmul.f32 %v14197_v62, %v14172_v45  ;;  %v14252_v26 = vadd.f32 %v14240_v46, %v14209_v6  ;;  %v14214_v5 = vmul.f32 %v14193_v15, %v14171_v40  ;;  %v14251_v48 = vadd.f32 %v14236_v43, %v14208_v53  ;;  %v21478_v62 = vld [vmem:[#allocation20 + $0x300] ss:$24 sps:$4 sm:$0xff]   ;;  %v21513_v16 = vld [vmem:[#allocation20 + $0x3fc] ss:$24 sps:$4 sm:$0xff]   ;;  %v21508_v45 = vld [vmem:[#allocation20 + $0x3f0] ss:$24 sps:$4 sm:$0xff]  }
 0xfa1   :  { %v14618_v56 = vrot.slane %v14610_v55, 7  ;;  %v14615_v58 = vrot.slane %v14609_v50, 7  ;;  %v14622_v29 = vrot.slane %v14612_v11, 7  ;;  %v14620_v24 = vrot.slane %v14611_v63, 7  ;;  %v21505_v10 = vld [vmem:[#allocation20 + $0x3c8] ss:$24 sps:$4 sm:$0xff]  }
 0xfa2   :  { %v14606_v54 = vunpack.c.l.b16 %v14262_v51  ;;  %v14258_v34 = vadd.f32 %v14240_v46, %v14215_v28  ;;  %v14257_v33 = vadd.f32 %v14236_v43, %v14214_v5  ;;  %v14264_v60 = vpack.c.bf16 %v14252_v26, %v14252_v26  ;;  %v21486_v43 = vld [vmem:[#allocation20 + $0x334] ss:$24 sps:$4 sm:$0xff]   ;;  %v21504_v51 = vld [vmem:[#allocation20 + $0x3c4] ss:$24 sps:$4 sm:$0xff]   ;;  %v21511_v6 = vld [vmem:[#allocation20 + $0x3f8] ss:$24 sps:$4 sm:$0xff]  }
 0xfa3   :  { %v14619_v38 = vsel %vm14616_vm1, %v14618_v56, %v14604_v30  ;;  %v14617_v12 = vsel %vm14616_vm1, %v14615_v58, %v14603_v14  ;;  %v23105_v17 = vsel %vm14616_vm1, %v14620_v24, %v14605_v52  ;;  %v14263_v8 = vpack.c.bf16 %v14251_v48, %v14251_v48  ;;  %v21496_v30 = vld [vmem:[#allocation20 + $0x390] ss:$24 sps:$4 sm:$0xff]   ;;  %v21507_v52 = vld [vmem:[#allocation20 + $0x3cc] ss:$24 sps:$4 sm:$0xff]   ;;  %v21514_v55 = vld [vmem:[#allocation20 + $0x420] ss:$24 sps:$4 sm:$0xff]  }
 0xfa4   :  { %v23107_v61 = vpack.c.b16 %v14619_v38, %v14619_v38  ;;  %v23109_v15 = vpack.c.b16 %v14617_v12, %v14617_v12  ;;  %v14623_v1 = vsel %vm14616_vm1, %v14622_v29, %v14606_v54  ;;  %v14270_v9 = vpack.c.bf16 %v14258_v34, %v14258_v34  ;;  %v21499_v14 = vld [vmem:[#allocation20 + $0x398] ss:$24 sps:$4 sm:$0xff]   ;;  %v21516_v40 = vld [vmem:[#allocation20 + $0x424] ss:$24 sps:$4 sm:$0xff]   ;;  %v21517_v50 = vld [vmem:[#allocation20 + $0x428] ss:$24 sps:$4 sm:$0xff]  }
 0xfa5   :  { %v14269_v46 = vpack.c.bf16 %v14257_v33, %v14257_v33  ;;  %v23116_v27 = vpack.c.b16 %v14623_v1, %v14623_v1  ;;  %v14608_v25 = vunpack.c.l.b16 %v14264_v60  ;;  %v14607_v59 = vunpack.c.l.b16 %v14263_v8  ;;  %v21519_v53 = vld [vmem:[#allocation20 + $0x42c] ss:$24 sps:$4 sm:$0xff]   ;;  %v21525_v63 = vld [vmem:[#allocation20 + $0x45c] ss:$24 sps:$4 sm:$0xff]   ;;  %v21520_v28 = vld [vmem:[#allocation20 + $0x450] ss:$24 sps:$4 sm:$0xff]  }
 0xfa6   :  { %16112 = vmatprep.mubr.bf16.mxu0 %v23107_v61  ;;  %16235 = vmatprep.mubr.bf16.mxu1 %v23107_v61  ;;  %v14614_v44 = vunpack.c.l.b16 %v14270_v9  ;;  %v21522_v11 = vld [vmem:[#allocation20 + $0x454] ss:$24 sps:$4 sm:$0xff]   ;;  %v21523_v26 = vld [vmem:[#allocation20 + $0x458] ss:$24 sps:$4 sm:$0xff]   ;;  %v21528_v5 = vld [vmem:[#allocation20 + $0x484] ss:$24 sps:$4 sm:$0xff]  }
 0xfa7   :  { %16113 = vmatmul.mubr.bf16.vlgmr.msra.gmra.mrb[36].mxu0 %v23109_v15  ;;  %16236 = vmatmul.mubr.bf16.vlgmr.msra.gmra.mrb[56].mxu1 %v23109_v15  ;;  %v14613_v35 = vunpack.c.l.b16 %v14269_v46  ;;  %v21531_v48 = vld [vmem:[#allocation20 + $0x48c] ss:$24 sps:$4 sm:$0xff]   ;;  %v21526_v56 = vld [vmem:[#allocation20 + $0x480] ss:$24 sps:$4 sm:$0xff]   ;;  %v21537_v24 = vld [vmem:[#allocation20 + $0x4bc] ss:$24 sps:$4 sm:$0xff]  }
 0xfa8   :  { %16122 = vmatpush1.bf16.msra.mxu0 %v21478_v62  ;;  %16245 = vmatpush1.bf16.msra.mxu1 %v21481_v36  ;;  %v14626_v21 = vrot.slane %v14614_v44, 7  ;;  %v21529_v58 = vld [vmem:[#allocation20 + $0x488] ss:$24 sps:$4 sm:$0xff]   ;;  %v21534_v29 = vld [vmem:[#allocation20 + $0x4b4] ss:$24 sps:$4 sm:$0xff]  }
 0xfa9   :  { %16153 = vmatprep.mubr.bf16.mxu0 %v23116_v27  ;;  %16276 = vmatprep.mubr.bf16.mxu1 %v23116_v27  ;;  %v14624_v39 = vrot.slane %v14613_v35, 7  ;;  %v21532_v54 = vld [vmem:[#allocation20 + $0x4b0] ss:$24 sps:$4 sm:$0xff]   ;;  %v21540_v33 = vld [vmem:[#allocation20 + $0x4e4] ss:$24 sps:$4 sm:$0xff]  }
 0xfaa   :  { %16123 = vmatprep.subr.bf16.mxu0 %v21486_v43  ;;  %16246 = vmatprep.subr.bf16.mxu1 %v21489_v41  ;;  %v23121_v4 = vsel %vm14616_vm1, %v14626_v21, %v14608_v25  ;;  %v21535_v34 = vld [vmem:[#allocation20 + $0x4b8] ss:$24 sps:$4 sm:$0xff]   ;;  %v21543_v38 = vld [vmem:[#allocation20 + $0x4ec] ss:$24 sps:$4 sm:$0xff]   ;;  %v21541_v62 = vld [vmem:[#allocation20 + $0x4e8] ss:$24 sps:$4 sm:$0xff]  }
 0xfab   :  { %v23124_v7 = vsel %vm14616_vm1, %v14624_v39, %v14607_v59  ;;  %v21538_v12 = vld [vmem:[#allocation20 + $0x4e0] ss:$24 sps:$4 sm:$0xff]   ;;  %v21546_v36 = vld [vmem:[#allocation20 + $0x514] ss:$24 sps:$4 sm:$0xff]   ;;  %v21544_v60 = vld [vmem:[#allocation20 + $0x510] ss:$24 sps:$4 sm:$0xff]  }
 0xfac   :  { %16124 = vmatpush1.bf16.msra.mxu0 %v21484_v0  ;;  %16247 = vmatpush1.bf16.msra.mxu1 %v21487_v37  ;;  %v21549_v1 = vld [vmem:[#allocation20 + $0x51c] ss:$24 sps:$4 sm:$0xff]   ;;  %v21547_v9 = vld [vmem:[#allocation20 + $0x518] ss:$24 sps:$4 sm:$0xff]   ;;  %v21555_v46 = vld [vmem:[#allocation20 + $0x54c] ss:$24 sps:$4 sm:$0xff]  }
 0xfad   :  { %16125 = vmatprep.subr.bf16.mxu0 %v21492_v47  ;;  %16248 = vmatprep.subr.bf16.mxu1 %v21495_v57  ;;  %v21552_v8 = vld [vmem:[#allocation20 + $0x544] ss:$24 sps:$4 sm:$0xff]   ;;  %v21550_v43 = vld [vmem:[#allocation20 + $0x540] ss:$24 sps:$4 sm:$0xff]   ;;  %v21558_v44 = vld [vmem:[#allocation20 + $0x574] ss:$24 sps:$4 sm:$0xff]  }
 0xfae   :  { %v21553_v41 = vld [vmem:[#allocation20 + $0x548] ss:$24 sps:$4 sm:$0xff]   ;;  %v21561_v35 = vld [vmem:[#allocation20 + $0x57c] ss:$24 sps:$4 sm:$0xff]   ;;  %v21559_v37 = vld [vmem:[#allocation20 + $0x578] ss:$24 sps:$4 sm:$0xff]  }
 0xfaf   :  { %v21556_v0 = vld [vmem:[#allocation20 + $0x570] ss:$24 sps:$4 sm:$0xff]   ;;  %v21564_v47 = vld [vmem:[#allocation20 + $0x5a4] ss:$24 sps:$4 sm:$0xff]   ;;  %v21562_v25 = vld [vmem:[#allocation20 + $0x5a0] ss:$24 sps:$4 sm:$0xff]  }
 0xfb0   :  { %16126 = vmatpush1.bf16.msra.mxu0 %v21490_v13  ;;  %16249 = vmatpush1.bf16.msra.mxu1 %v21493_v42  ;;  %v21567_v57 = vld [vmem:[#allocation20 + $0x5ac] ss:$24 sps:$4 sm:$0xff]   ;;  %v21565_v21 = vld [vmem:[#allocation20 + $0x5a8] ss:$24 sps:$4 sm:$0xff]   ;;  %v21573_v39 = vld [vmem:[#allocation20 + $0x5dc] ss:$24 sps:$4 sm:$0xff]  }
 0xfb1   :  { %16127 = vmatprep.subr.bf16.mxu0 %v21498_v18  ;;  %16250 = vmatprep.subr.bf16.mxu1 %v21501_v3  ;;  %v21570_v59 = vld [vmem:[#allocation20 + $0x5d4] ss:$24 sps:$4 sm:$0xff]   ;;  %v21568_v13 = vld [vmem:[#allocation20 + $0x5d0] ss:$24 sps:$4 sm:$0xff]   ;;  %v21576_v18 = vld [vmem:[#allocation20 + $0x604] ss:$24 sps:$4 sm:$0xff]  }
 0xfb2   :  { %v21571_v42 = vld [vmem:[#allocation20 + $0x5d8] ss:$24 sps:$4 sm:$0xff]   ;;  %v21579_v3 = vld [vmem:[#allocation20 + $0x60c] ss:$24 sps:$4 sm:$0xff]  }
 0xfb4   :  { %16128 = vmatpush1.bf16.msra.mxu0 %v21496_v30  ;;  %16251 = vmatpush1.bf16.msra.mxu1 %v21499_v14  ;;  %v21574_v30 = vld [vmem:[#allocation20 + $0x600] ss:$24 sps:$4 sm:$0xff]   ;;  %v23128_v14 = vpack.c.b16 %v23105_v17, %v23105_v17 }
 0xfb5   :  { %16129 = vmatprep.subr.bf16.mxu0 %v21504_v51  ;;  %16252 = vmatprep.subr.bf16.mxu1 %v21507_v52  ;;  %v21577_v51 = vld [vmem:[#allocation20 + $0x608] ss:$24 sps:$4 sm:$0xff]   ;;  %v23132_v52 = vpack.c.b16 %v23121_v4, %v23121_v4  ;;  %v21583_v17 = vld [vmem:[#allocation20 + $0x638] ss:$24 sps:$4 sm:$0xff]  }
 0xfb6   :  { %v21586_v4 = vld [vmem:[#allocation20 + $0x660] ss:$24 sps:$4 sm:$0xff]  }
 0xfb8   :  { %16130 = vmatpush1.bf16.msra.mxu0 %v21502_v20  ;;  %16253 = vmatpush1.bf16.msra.mxu1 %v21505_v10  ;;  %v21582_v20 = vld [vmem:[#allocation20 + $0x634] ss:$24 sps:$4 sm:$0xff]  }
 0xfb9   :  { %16131 = vmatprep.subr.bf16.mxu0 %v21510_v2  ;;  %16254 = vmatprep.subr.bf16.mxu1 %v21513_v16  ;;  %v21585_v10 = vld [vmem:[#allocation20 + $0x63c] ss:$24 sps:$4 sm:$0xff]   ;;  %v21580_v2 = vld [vmem:[#allocation20 + $0x630] ss:$24 sps:$4 sm:$0xff]  }
 0xfba   :  { %v21588_v16 = vld [vmem:[#allocation20 + $0x664] ss:$24 sps:$4 sm:$0xff]  }
 0xfbc   :  { %16132 = vmatpush1.bf16.msra.mxu0 %v21508_v45  ;;  %16255 = vmatpush1.bf16.msra.mxu1 %v21511_v6  ;;  %v21591_v45 = vld [vmem:[#allocation20 + $0x66c] ss:$24 sps:$4 sm:$0xff]   ;;  %v21589_v6 = vld [vmem:[#allocation20 + $0x668] ss:$24 sps:$4 sm:$0xff]  }
 0xfbd   :  { %16133 = vmatprep.subr.bf16.mxu0 %v21516_v40  ;;  %16256 = vmatprep.subr.bf16.mxu1 %v21519_v53  ;;  %v21594_v40 = vld [vmem:[#allocation20 + $0x694] ss:$24 sps:$4 sm:$0xff]  }
 0xfbe   :  { %v21597_v53 = vld [vmem:[#allocation20 + $0x69c] ss:$24 sps:$4 sm:$0xff]  }
 0xfc0   :  { %16134 = vmatpush1.bf16.msra.mxu0 %v21514_v55  ;;  %16257 = vmatpush1.bf16.msra.mxu1 %v21517_v50  ;;  %v21592_v55 = vld [vmem:[#allocation20 + $0x690] ss:$24 sps:$4 sm:$0xff]  }
 0xfc1   :  { %16135 = vmatprep.subr.bf16.mxu0 %v21522_v11  ;;  %16258 = vmatprep.subr.bf16.mxu1 %v21525_v63  ;;  %v21595_v50 = vld [vmem:[#allocation20 + $0x698] ss:$24 sps:$4 sm:$0xff]   ;;  %v21600_v11 = vld [vmem:[#allocation20 + $0x6c4] ss:$24 sps:$4 sm:$0xff]  }
 0xfc2   :  { %v21603_v63 = vld [vmem:[#allocation20 + $0x6cc] ss:$24 sps:$4 sm:$0xff]  }
 0xfc4   :  { %16136 = vmatpush1.bf16.msra.mxu0 %v21520_v28  ;;  %16259 = vmatpush1.bf16.msra.mxu1 %v21523_v26  ;;  %v21598_v28 = vld [vmem:[#allocation20 + $0x6c0] ss:$24 sps:$4 sm:$0xff]  }
 0xfc5   :  { %16137 = vmatprep.subr.bf16.mxu0 %v21528_v5  ;;  %16260 = vmatprep.subr.bf16.mxu1 %v21531_v48  ;;  %v21601_v26 = vld [vmem:[#allocation20 + $0x6c8] ss:$24 sps:$4 sm:$0xff]   ;;  %v21606_v5 = vld [vmem:[#allocation20 + $0x6f4] ss:$24 sps:$4 sm:$0xff]  }
 0xfc6   :  { %v21609_v48 = vld [vmem:[#allocation20 + $0x6fc] ss:$24 sps:$4 sm:$0xff]  }
 0xfc8   :  { %16138 = vmatpush1.bf16.msra.mxu0 %v21526_v56  ;;  %16261 = vmatpush1.bf16.msra.mxu1 %v21529_v58  ;;  %v21604_v56 = vld [vmem:[#allocation20 + $0x6f0] ss:$24 sps:$4 sm:$0xff]  }
 0xfc9   :  { %16139 = vmatprep.subr.bf16.mxu0 %v21534_v29  ;;  %16262 = vmatprep.subr.bf16.mxu1 %v21537_v24  ;;  %v21607_v58 = vld [vmem:[#allocation20 + $0x6f8] ss:$24 sps:$4 sm:$0xff]   ;;  %v21612_v29 = vld [vmem:[#allocation20 + $0x724] ss:$24 sps:$4 sm:$0xff]  }
 0xfca   :  { %v21615_v24 = vld [vmem:[#allocation20 + $0x72c] ss:$24 sps:$4 sm:$0xff]  }
 0xfcc   :  { %16140 = vmatpush1.bf16.msra.mxu0 %v21532_v54  ;;  %16263 = vmatpush1.bf16.msra.mxu1 %v21535_v34  ;;  %v21610_v54 = vld [vmem:[#allocation20 + $0x720] ss:$24 sps:$4 sm:$0xff]  }
 0xfcd   :  { %16141 = vmatprep.subr.bf16.mxu0 %v21540_v33  ;;  %16264 = vmatprep.subr.bf16.mxu1 %v21543_v38  ;;  %v21613_v34 = vld [vmem:[#allocation20 + $0x728] ss:$24 sps:$4 sm:$0xff]   ;;  %v21618_v33 = vld [vmem:[#allocation20 + $0x754] ss:$24 sps:$4 sm:$0xff]  }
 0xfce   :  { %v21621_v38 = vld [vmem:[#allocation20 + $0x75c] ss:$24 sps:$4 sm:$0xff]  }
 0xfd0   :  { %16142 = vmatpush1.bf16.msra.mxu0 %v21538_v12  ;;  %16265 = vmatpush1.bf16.msra.mxu1 %v21541_v62  ;;  %v21616_v12 = vld [vmem:[#allocation20 + $0x750] ss:$24 sps:$4 sm:$0xff]  }
 0xfd1   :  { %16143 = vmatprep.subr.bf16.mxu0 %v21546_v36  ;;  %16266 = vmatprep.subr.bf16.mxu1 %v21549_v1  ;;  %v21619_v62 = vld [vmem:[#allocation20 + $0x758] ss:$24 sps:$4 sm:$0xff]   ;;  %v21624_v36 = vld [vmem:[#allocation20 + $0x784] ss:$24 sps:$4 sm:$0xff]  }
 0xfd2   :  { %v21627_v1 = vld [vmem:[#allocation20 + $0x78c] ss:$24 sps:$4 sm:$0xff]  }
 0xfd4   :  { %16144 = vmatpush1.bf16.msra.mxu0 %v21544_v60  ;;  %16267 = vmatpush1.bf16.msra.mxu1 %v21547_v9  ;;  %v21622_v60 = vld [vmem:[#allocation20 + $0x780] ss:$24 sps:$4 sm:$0xff]  }
 0xfd5   :  { %16145 = vmatprep.subr.bf16.mxu0 %v21552_v8  ;;  %16268 = vmatprep.subr.bf16.mxu1 %v21555_v46  ;;  %v21625_v9 = vld [vmem:[#allocation20 + $0x788] ss:$24 sps:$4 sm:$0xff]   ;;  %v21630_v8 = vld [vmem:[#allocation20 + $0x7b4] ss:$24 sps:$4 sm:$0xff]  }
 0xfd6   :  { %v21633_v46 = vld [vmem:[#allocation20 + $0x7bc] ss:$24 sps:$4 sm:$0xff]  }
 0xfd8   :  { %16146 = vmatpush1.bf16.msra.mxu0 %v21550_v43  ;;  %16269 = vmatpush1.bf16.msra.mxu1 %v21553_v41  ;;  %v21628_v43 = vld [vmem:[#allocation20 + $0x7b0] ss:$24 sps:$4 sm:$0xff]  }
 0xfd9   :  { %16147 = vmatprep.subr.bf16.mxu0 %v21558_v44  ;;  %16270 = vmatprep.subr.bf16.mxu1 %v21561_v35  ;;  %v21631_v41 = vld [vmem:[#allocation20 + $0x7b8] ss:$24 sps:$4 sm:$0xff]   ;;  %v21636_v44 = vld [vmem:[#allocation20 + $0x7e4] ss:$24 sps:$4 sm:$0xff]  }
 0xfda   :  { %v21639_v35 = vld [vmem:[#allocation20 + $0x7ec] ss:$24 sps:$4 sm:$0xff]  }
 0xfdc   :  { %16148 = vmatpush1.bf16.msra.mxu0 %v21556_v0  ;;  %16271 = vmatpush1.bf16.msra.mxu1 %v21559_v37  ;;  %v21634_v0 = vld [vmem:[#allocation20 + $0x7e0] ss:$24 sps:$4 sm:$0xff]  }
 0xfdd   :  { %16149 = vmatprep.subr.bf16.mxu0 %v21564_v47  ;;  %16272 = vmatprep.subr.bf16.mxu1 %v21567_v57  ;;  %v21637_v37 = vld [vmem:[#allocation20 + $0x7e8] ss:$24 sps:$4 sm:$0xff]   ;;  %v21642_v47 = vld [vmem:[#allocation20 + $0x814] ss:$24 sps:$4 sm:$0xff]  }
 0xfde   :  { %v21645_v57 = vld [vmem:[#allocation20 + $0x81c] ss:$24 sps:$4 sm:$0xff]  }
 0xfe0   :  { %16150 = vmatpush1.bf16.msra.mxu0 %v21562_v25  ;;  %16273 = vmatpush1.bf16.msra.mxu1 %v21565_v21  ;;  %v21640_v25 = vld [vmem:[#allocation20 + $0x810] ss:$24 sps:$4 sm:$0xff]  }
 0xfe1   :  { %16151 = vmatprep.subr.bf16.mxu0 %v21570_v59  ;;  %16274 = vmatprep.subr.bf16.mxu1 %v21573_v39  ;;  %v21643_v21 = vld [vmem:[#allocation20 + $0x818] ss:$24 sps:$4 sm:$0xff]   ;;  %v21648_v59 = vld [vmem:[#allocation20 + $0x844] ss:$24 sps:$4 sm:$0xff]  }
 0xfe2   :  { %v21651_v39 = vld [vmem:[#allocation20 + $0x84c] ss:$24 sps:$4 sm:$0xff]  }
 0xfe4   :  { %16152 = vmatpush1.bf16.msra.mxu0 %v21568_v13  ;;  %16275 = vmatpush1.bf16.msra.mxu1 %v21571_v42  ;;  %v21646_v13 = vld [vmem:[#allocation20 + $0x840] ss:$24 sps:$4 sm:$0xff]  }
 0xfe5   :  { %16162 = vmatprep.subr.bf16.mxu0 %v21576_v18  ;;  %16285 = vmatprep.subr.bf16.mxu1 %v21579_v3  ;;  %v21649_v42 = vld [vmem:[#allocation20 + $0x848] ss:$24 sps:$4 sm:$0xff]   ;;  %v21654_v18 = vld [vmem:[#allocation20 + $0x874] ss:$24 sps:$4 sm:$0xff]  }
 0xfe6   :  { %v21657_v3 = vld [vmem:[#allocation20 + $0x87c] ss:$24 sps:$4 sm:$0xff]  }
 0xfe7   :  { %16154 = vmatmul.mubr.bf16.vlgmr.msra.gmra.mrb[36].mxu0 %v23128_v14  ;;  %16277 = vmatmul.mubr.bf16.vlgmr.msra.gmra.mrb[56].mxu1 %v23128_v14 }
 0xfe8   :  { %16163 = vmatpush1.bf16.msra.mxu0 %v21574_v30  ;;  %16194 = vmatprep.mubr.bf16.mxu0 %v23132_v52  ;;  %v21652_v30 = vld [vmem:[#allocation20 + $0x870] ss:$24 sps:$4 sm:$0xff]  }
 0xfe9   :  { %16286 = vmatpush1.bf16.msra.mxu1 %v21577_v51  ;;  %16317 = vmatprep.mubr.bf16.mxu1 %v23132_v52  ;;  %v21655_v51 = vld [vmem:[#allocation20 + $0x878] ss:$24 sps:$4 sm:$0xff]  }
 0xfea   :  { %16164 = vmatprep.subr.bf16.mxu0 %v21582_v20  ;;  %16287 = vmatprep.subr.bf16.mxu1 %v21585_v10  ;;  %v21660_v20 = vld [vmem:[#allocation20 + $0x8a4] ss:$24 sps:$4 sm:$0xff]  }
 0xfeb   :  { %v21663_v10 = vld [vmem:[#allocation20 + $0x8ac] ss:$24 sps:$4 sm:$0xff]  }
 0xfec   :  { %16165 = vmatpush1.bf16.msra.mxu0 %v21580_v2  ;;  %v21658_v2 = vld [vmem:[#allocation20 + $0x8a0] ss:$24 sps:$4 sm:$0xff]  }
 0xfed   :  { %16288 = vmatpush1.bf16.msra.mxu1 %v21583_v17  ;;  %16166 = vmatprep.subr.bf16.mxu0 %v21588_v16  ;;  %v21661_v17 = vld [vmem:[#allocation20 + $0x8a8] ss:$24 sps:$4 sm:$0xff]   ;;  %v21666_v16 = vld [vmem:[#allocation20 + $0x8d4] ss:$24 sps:$4 sm:$0xff]  }
 0xfee   :  { %16289 = vmatprep.subr.bf16.mxu1 %v21591_v45  ;;  %v21669_v45 = vld [vmem:[#allocation20 + $0x8dc] ss:$24 sps:$4 sm:$0xff]  }
 0xff0   :  { %16167 = vmatpush1.bf16.msra.mxu0 %v21586_v4  ;;  %v21664_v4 = vld [vmem:[#allocation20 + $0x8d0] ss:$24 sps:$4 sm:$0xff]  }
 0xff1   :  { %16290 = vmatpush1.bf16.msra.mxu1 %v21589_v6  ;;  %16168 = vmatprep.subr.bf16.mxu0 %v21594_v40  ;;  %v21667_v6 = vld [vmem:[#allocation20 + $0x8d8] ss:$24 sps:$4 sm:$0xff]   ;;  %v21672_v40 = vld [vmem:[#allocation20 + $0x14] ss:$24 sps:$4 sm:$0xff]  }
 0xff2   :  { %16291 = vmatprep.subr.bf16.mxu1 %v21597_v53  ;;  %v21670_v53 = vld [vmem:[#allocation20 + $0x10] ss:$24 sps:$4 sm:$0xff]  }
 0xff4   :  { %16169 = vmatpush1.bf16.msra.mxu0 %v21592_v55  ;;  %v23140_v55 = vpack.c.b16 %v23124_v7, %v23124_v7  ;;  %v21684_v7 = vld [vmem:[#allocation20 + $0xd4] ss:$24 sps:$4 sm:$0xff]  }
 0xff5   :  { %16292 = vmatpush1.bf16.msra.mxu1 %v21595_v50  ;;  %16170 = vmatprep.subr.bf16.mxu0 %v21600_v11  ;;  %v21675_v50 = vld [vmem:[#allocation20 + $0x44] ss:$24 sps:$4 sm:$0xff]   ;;  %v21673_v11 = vld [vmem:[#allocation20 + $0x40] ss:$24 sps:$4 sm:$0xff]  }
 0xff6   :  { %16293 = vmatprep.subr.bf16.mxu1 %v21603_v63  ;;  %v21678_v63 = vld [vmem:[#allocation20 + $0x74] ss:$24 sps:$4 sm:$0xff]  }
 0xff8   :  { %16171 = vmatpush1.bf16.msra.mxu0 %v21598_v28  ;;  %v21676_v28 = vld [vmem:[#allocation20 + $0x70] ss:$24 sps:$4 sm:$0xff]  }
 0xff9   :  { %16294 = vmatpush1.bf16.msra.mxu1 %v21601_v26  ;;  %16172 = vmatprep.subr.bf16.mxu0 %v21606_v5  ;;  %v21681_v26 = vld [vmem:[#allocation20 + $0xa4] ss:$24 sps:$4 sm:$0xff]   ;;  %v21679_v5 = vld [vmem:[#allocation20 + $0xa0] ss:$24 sps:$4 sm:$0xff]  }
 0xffa   :  { %16295 = vmatprep.subr.bf16.mxu1 %v21609_v48  ;;  %v21682_v48 = vld [vmem:[#allocation20 + $0xd0] ss:$24 sps:$4 sm:$0xff]  }
 0xffc   :  { %16173 = vmatpush1.bf16.msra.mxu0 %v21604_v56  ;;  %v21687_v56 = vld [vmem:[#allocation20 + $0x104] ss:$24 sps:$4 sm:$0xff]  }
 0xffd   :  { %16296 = vmatpush1.bf16.msra.mxu1 %v21607_v58  ;;  %16174 = vmatprep.subr.bf16.mxu0 %v21612_v29  ;;  %v21685_v58 = vld [vmem:[#allocation20 + $0x100] ss:$24 sps:$4 sm:$0xff]   ;;  %v21690_v29 = vld [vmem:[#allocation20 + $0x134] ss:$24 sps:$4 sm:$0xff]  }
 0xffe   :  { %16297 = vmatprep.subr.bf16.mxu1 %v21615_v24  ;;  %v21693_v24 = vld [vmem:[#allocation20 + $0x164] ss:$24 sps:$4 sm:$0xff]  }
0x1000   :  { %16175 = vmatpush1.bf16.msra.mxu0 %v21610_v54  ;;  %v21691_v54 = vld [vmem:[#allocation20 + $0x160] ss:$24 sps:$4 sm:$0xff]  }
0x1001   :  { %16298 = vmatpush1.bf16.msra.mxu1 %v21613_v34  ;;  %16176 = vmatprep.subr.bf16.mxu0 %v21618_v33  ;;  %v21696_v34 = vld [vmem:[#allocation20 + $0x194] ss:$24 sps:$4 sm:$0xff]   ;;  %v21694_v33 = vld [vmem:[#allocation20 + $0x190] ss:$24 sps:$4 sm:$0xff]  }
0x1002   :  { %16299 = vmatprep.subr.bf16.mxu1 %v21621_v38  ;;  %v21699_v38 = vld [vmem:[#allocation20 + $0x1c4] ss:$24 sps:$4 sm:$0xff]  }
0x1004   :  { %16177 = vmatpush1.bf16.msra.mxu0 %v21616_v12  ;;  %v21697_v12 = vld [vmem:[#allocation20 + $0x1c0] ss:$24 sps:$4 sm:$0xff]  }
0x1005   :  { %16300 = vmatpush1.bf16.msra.mxu1 %v21619_v62  ;;  %16178 = vmatprep.subr.bf16.mxu0 %v21624_v36  ;;  %v21702_v62 = vld [vmem:[#allocation20 + $0x1f4] ss:$24 sps:$4 sm:$0xff]   ;;  %v21700_v36 = vld [vmem:[#allocation20 + $0x1f0] ss:$24 sps:$4 sm:$0xff]  }
0x1006   :  { %16301 = vmatprep.subr.bf16.mxu1 %v21627_v1  ;;  %v21705_v1 = vld [vmem:[#allocation20 + $0x224] ss:$24 sps:$4 sm:$0xff]  }
0x1008   :  { %16179 = vmatpush1.bf16.msra.mxu0 %v21622_v60  ;;  %v21703_v60 = vld [vmem:[#allocation20 + $0x220] ss:$24 sps:$4 sm:$0xff]  }
0x1009   :  { %16302 = vmatpush1.bf16.msra.mxu1 %v21625_v9  ;;  %16180 = vmatprep.subr.bf16.mxu0 %v21630_v8  ;;  %v21708_v9 = vld [vmem:[#allocation20 + $0x254] ss:$24 sps:$4 sm:$0xff]   ;;  %v21706_v8 = vld [vmem:[#allocation20 + $0x250] ss:$24 sps:$4 sm:$0xff]  }
0x100a   :  { %16303 = vmatprep.subr.bf16.mxu1 %v21633_v46  ;;  %v21711_v46 = vld [vmem:[#allocation20 + $0x284] ss:$24 sps:$4 sm:$0xff]  }
0x100c   :  { %16181 = vmatpush1.bf16.msra.mxu0 %v21628_v43  ;;  %v21709_v43 = vld [vmem:[#allocation20 + $0x280] ss:$24 sps:$4 sm:$0xff]  }
0x100d   :  { %16304 = vmatpush1.bf16.msra.mxu1 %v21631_v41  ;;  %16182 = vmatprep.subr.bf16.mxu0 %v21636_v44  ;;  %v21714_v41 = vld [vmem:[#allocation20 + $0x2b4] ss:$24 sps:$4 sm:$0xff]   ;;  %v21712_v44 = vld [vmem:[#allocation20 + $0x2b0] ss:$24 sps:$4 sm:$0xff]  }
0x100e   :  { %16305 = vmatprep.subr.bf16.mxu1 %v21639_v35  ;;  %v21717_v35 = vld [vmem:[#allocation20 + $0x2e4] ss:$24 sps:$4 sm:$0xff]  }
0x1010   :  { %16183 = vmatpush1.bf16.msra.mxu0 %v21634_v0  ;;  %v21715_v0 = vld [vmem:[#allocation20 + $0x2e0] ss:$24 sps:$4 sm:$0xff]  }
0x1011   :  { %16306 = vmatpush1.bf16.msra.mxu1 %v21637_v37  ;;  %16184 = vmatprep.subr.bf16.mxu0 %v21642_v47  ;;  %v21720_v37 = vld [vmem:[#allocation20 + $0x314] ss:$24 sps:$4 sm:$0xff]   ;;  %v21718_v47 = vld [vmem:[#allocation20 + $0x310] ss:$24 sps:$4 sm:$0xff]  }
0x1012   :  { %16307 = vmatprep.subr.bf16.mxu1 %v21645_v57  ;;  %v21723_v57 = vld [vmem:[#allocation20 + $0x344] ss:$24 sps:$4 sm:$0xff]  }
0x1014   :  { %16185 = vmatpush1.bf16.msra.mxu0 %v21640_v25  ;;  %v21721_v25 = vld [vmem:[#allocation20 + $0x340] ss:$24 sps:$4 sm:$0xff]  }
0x1015   :  { %16308 = vmatpush1.bf16.msra.mxu1 %v21643_v21  ;;  %16186 = vmatprep.subr.bf16.mxu0 %v21648_v59  ;;  %v21726_v21 = vld [vmem:[#allocation20 + $0x374] ss:$24 sps:$4 sm:$0xff]   ;;  %v21724_v59 = vld [vmem:[#allocation20 + $0x370] ss:$24 sps:$4 sm:$0xff]  }
0x1016   :  { %16309 = vmatprep.subr.bf16.mxu1 %v21651_v39  ;;  %v21729_v39 = vld [vmem:[#allocation20 + $0x3a4] ss:$24 sps:$4 sm:$0xff]  }
0x1018   :  { %16187 = vmatpush1.bf16.msra.mxu0 %v21646_v13  ;;  %v21727_v13 = vld [vmem:[#allocation20 + $0x3a0] ss:$24 sps:$4 sm:$0xff]  }
0x1019   :  { %16310 = vmatpush1.bf16.msra.mxu1 %v21649_v42  ;;  %16188 = vmatprep.subr.bf16.mxu0 %v21654_v18  ;;  %v21732_v42 = vld [vmem:[#allocation20 + $0x3d4] ss:$24 sps:$4 sm:$0xff]   ;;  %v21730_v18 = vld [vmem:[#allocation20 + $0x3d0] ss:$24 sps:$4 sm:$0xff]  }
0x101a   :  { %16311 = vmatprep.subr.bf16.mxu1 %v21657_v3  ;;  %v21735_v3 = vld [vmem:[#allocation20 + $0x404] ss:$24 sps:$4 sm:$0xff]  }
0x101c   :  { %16189 = vmatpush1.bf16.msra.mxu0 %v21652_v30  ;;  %v21738_v30 = vld [vmem:[#allocation20 + $0x434] ss:$24 sps:$4 sm:$0xff]  }
0x101d   :  { %16312 = vmatpush1.bf16.msra.mxu1 %v21655_v51  ;;  %16190 = vmatprep.subr.bf16.mxu0 %v21660_v20  ;;  %v21741_v51 = vld [vmem:[#allocation20 + $0x464] ss:$24 sps:$4 sm:$0xff]   ;;  %v21739_v20 = vld [vmem:[#allocation20 + $0x460] ss:$24 sps:$4 sm:$0xff]  }
0x101e   :  { %16313 = vmatprep.subr.bf16.mxu1 %v21663_v10  ;;  %v21744_v10 = vld [vmem:[#allocation20 + $0x494] ss:$24 sps:$4 sm:$0xff]  }
0x1020   :  { %16191 = vmatpush1.bf16.msra.mxu0 %v21658_v2  ;;  %v21742_v2 = vld [vmem:[#allocation20 + $0x490] ss:$24 sps:$4 sm:$0xff]  }
0x1021   :  { %16314 = vmatpush1.bf16.msra.mxu1 %v21661_v17  ;;  %16192 = vmatprep.subr.bf16.mxu0 %v21666_v16  ;;  %v21747_v17 = vld [vmem:[#allocation20 + $0x4c4] ss:$24 sps:$4 sm:$0xff]   ;;  %v21745_v16 = vld [vmem:[#allocation20 + $0x4c0] ss:$24 sps:$4 sm:$0xff]  }
0x1022   :  { %16315 = vmatprep.subr.bf16.mxu1 %v21669_v45  ;;  %v21750_v45 = vld [vmem:[#allocation20 + $0x4f4] ss:$24 sps:$4 sm:$0xff]  }
0x1024   :  { %16193 = vmatpush1.bf16.msra.mxu0 %v21664_v4  ;;  %v21748_v4 = vld [vmem:[#allocation20 + $0x4f0] ss:$24 sps:$4 sm:$0xff]  }
0x1025   :  { %16316 = vmatpush1.bf16.msra.mxu1 %v21667_v6  ;;  %16326 = vmatprep.subr.bf16.mxu0 %v21672_v40  ;;  %v21753_v6 = vld [vmem:[#allocation20 + $0x524] ss:$24 sps:$4 sm:$0xff]   ;;  %v21751_v40 = vld [vmem:[#allocation20 + $0x520] ss:$24 sps:$4 sm:$0xff]  }
0x1027   :  { %16195 = vmatmul.mubr.bf16.vlgmr.msra.gmra.mrb[36].mxu0 %v23140_v55 }
0x1028   :  { %16318 = vmatmul.mubr.bf16.vlgmr.msra.gmra.mrb[56].mxu1 %v23140_v55  ;;  %16327 = vmatpush1.bf16.msra.mxu0 %v21670_v53  ;;  %v21756_v53 = vld [vmem:[#allocation20 + $0x554] ss:$24 sps:$4 sm:$0xff]  }
0x1029   :  { %16358 = vmatprep.mubr.bf16.mxu0 %v23107_v61  ;;  %16328 = vmatprep.subr.bf16.mxu0 %v21675_v50  ;;  %v21688_v61 = vld [vmem:[#allocation20 + $0x130] ss:$24 sps:$4 sm:$0xff]  }
0x102a   :  { %v21754_v50 = vld [vmem:[#allocation20 + $0x550] ss:$24 sps:$4 sm:$0xff]  }
0x102c   :  { %16329 = vmatpush1.bf16.msra.mxu0 %v21673_v11  ;;  %v21759_v11 = vld [vmem:[#allocation20 + $0x584] ss:$24 sps:$4 sm:$0xff]  }
0x102d   :  { %16330 = vmatprep.subr.bf16.mxu0 %v21678_v63  ;;  %v21757_v63 = vld [vmem:[#allocation20 + $0x580] ss:$24 sps:$4 sm:$0xff]  }
0x1030   :  { %16331 = vmatpush1.bf16.msra.mxu0 %v21676_v28  ;;  %v21762_v28 = vld [vmem:[#allocation20 + $0x5b4] ss:$24 sps:$4 sm:$0xff]  }
0x1031   :  { %16332 = vmatprep.subr.bf16.mxu0 %v21681_v26  ;;  %v21760_v26 = vld [vmem:[#allocation20 + $0x5b0] ss:$24 sps:$4 sm:$0xff]  }
0x1034   :  { %16333 = vmatpush1.bf16.msra.mxu0 %v21679_v5  ;;  %v21765_v5 = vld [vmem:[#allocation20 + $0x5e4] ss:$24 sps:$4 sm:$0xff]  }
0x1035   :  { %16334 = vmatprep.subr.bf16.mxu0 %v21684_v7  ;;  %v21763_v7 = vld [vmem:[#allocation20 + $0x5e0] ss:$24 sps:$4 sm:$0xff]  }
0x1038   :  { %16335 = vmatpush1.bf16.msra.mxu0 %v21682_v48  ;;  %v21768_v48 = vld [vmem:[#allocation20 + $0x614] ss:$24 sps:$4 sm:$0xff]  }
0x1039   :  { %16336 = vmatprep.subr.bf16.mxu0 %v21687_v56  ;;  %v21766_v56 = vld [vmem:[#allocation20 + $0x610] ss:$24 sps:$4 sm:$0xff]  }
0x103c   :  { %16337 = vmatpush1.bf16.msra.mxu0 %v21685_v58  ;;  %v21771_v58 = vld [vmem:[#allocation20 + $0x644] ss:$24 sps:$4 sm:$0xff]  }
0x103d   :  { %16338 = vmatprep.subr.bf16.mxu0 %v21690_v29  ;;  %v21769_v29 = vld [vmem:[#allocation20 + $0x640] ss:$24 sps:$4 sm:$0xff]  }
0x1040   :  { %16339 = vmatpush1.bf16.msra.mxu0 %v21688_v61  ;;  %v21774_v61 = vld [vmem:[#allocation20 + $0x674] ss:$24 sps:$4 sm:$0xff]  }
0x1041   :  { %16340 = vmatprep.subr.bf16.mxu0 %v21693_v24  ;;  %v21772_v24 = vld [vmem:[#allocation20 + $0x670] ss:$24 sps:$4 sm:$0xff]  }
0x1044   :  { %16341 = vmatpush1.bf16.msra.mxu0 %v21691_v54  ;;  %v21777_v54 = vld [vmem:[#allocation20 + $0x6a4] ss:$24 sps:$4 sm:$0xff]  }
0x1045   :  { %16342 = vmatprep.subr.bf16.mxu0 %v21696_v34  ;;  %v21775_v34 = vld [vmem:[#allocation20 + $0x6a0] ss:$24 sps:$4 sm:$0xff]  }
0x1048   :  { %16343 = vmatpush1.bf16.msra.mxu0 %v21694_v33  ;;  %v21780_v33 = vld [vmem:[#allocation20 + $0x6d4] ss:$24 sps:$4 sm:$0xff]  }
0x1049   :  { %16344 = vmatprep.subr.bf16.mxu0 %v21699_v38  ;;  %v21778_v38 = vld [vmem:[#allocation20 + $0x6d0] ss:$24 sps:$4 sm:$0xff]  }
0x104c   :  { %16345 = vmatpush1.bf16.msra.mxu0 %v21697_v12  ;;  %v21783_v12 = vld [vmem:[#allocation20 + $0x704] ss:$24 sps:$4 sm:$0xff]  }
0x104d   :  { %16346 = vmatprep.subr.bf16.mxu0 %v21702_v62  ;;  %v21786_v62 = vld [vmem:[#allocation20 + $0x734] ss:$24 sps:$4 sm:$0xff]  }
0x1050   :  { %16347 = vmatpush1.bf16.msra.mxu0 %v21700_v36  ;;  %v21789_v36 = vld [vmem:[#allocation20 + $0x764] ss:$24 sps:$4 sm:$0xff]  }
0x1051   :  { %16348 = vmatprep.subr.bf16.mxu0 %v21705_v1  ;;  %v21787_v1 = vld [vmem:[#allocation20 + $0x760] ss:$24 sps:$4 sm:$0xff]  }
0x1054   :  { %16349 = vmatpush1.bf16.msra.mxu0 %v21703_v60  ;;  %v21792_v60 = vld [vmem:[#allocation20 + $0x794] ss:$24 sps:$4 sm:$0xff]  }
0x1055   :  { %16350 = vmatprep.subr.bf16.mxu0 %v21708_v9  ;;  %v21790_v9 = vld [vmem:[#allocation20 + $0x790] ss:$24 sps:$4 sm:$0xff]  }
0x1058   :  { %16351 = vmatpush1.bf16.msra.mxu0 %v21706_v8  ;;  %v21795_v8 = vld [vmem:[#allocation20 + $0x7c4] ss:$24 sps:$4 sm:$0xff]  }
0x1059   :  { %16352 = vmatprep.subr.bf16.mxu0 %v21711_v46  ;;  %v21793_v46 = vld [vmem:[#allocation20 + $0x7c0] ss:$24 sps:$4 sm:$0xff]  }
0x105c   :  { %16353 = vmatpush1.bf16.msra.mxu0 %v21709_v43  ;;  %v21798_v43 = vld [vmem:[#allocation20 + $0x7f4] ss:$24 sps:$4 sm:$0xff]  }
0x105d   :  { %16354 = vmatprep.subr.bf16.mxu0 %v21714_v41  ;;  %v21796_v41 = vld [vmem:[#allocation20 + $0x7f0] ss:$24 sps:$4 sm:$0xff]  }
0x1060   :  { %16355 = vmatpush1.bf16.msra.mxu0 %v21712_v44  ;;  %v21801_v44 = vld [vmem:[#allocation20 + $0x824] ss:$24 sps:$4 sm:$0xff]  }
0x1061   :  { %16356 = vmatprep.subr.bf16.mxu0 %v21717_v35  ;;  %v21799_v35 = vld [vmem:[#allocation20 + $0x820] ss:$24 sps:$4 sm:$0xff]  }
0x1064   :  { %16357 = vmatpush1.bf16.msra.mxu0 %v21715_v0  ;;  %v21804_v0 = vld [vmem:[#allocation20 + $0x854] ss:$24 sps:$4 sm:$0xff]  }
0x1065   :  { %16367 = vmatprep.subr.bf16.mxu0 %v21720_v37  ;;  %v21802_v37 = vld [vmem:[#allocation20 + $0x850] ss:$24 sps:$4 sm:$0xff]  }
0x1067   :  { %16359 = vmatmul.mubr.bf16.vlgmr.msra.gmra.mrb[40].mxu0 %v23109_v15  ;;  %v21733_v15 = vld [vmem:[#allocation20 + $0x400] ss:$24 sps:$4 sm:$0xff]  }
0x1068   :  { %16368 = vmatpush1.bf16.msra.mxu0 %v21718_v47  ;;  %16399 = vmatprep.mubr.bf16.mxu0 %v23116_v27  ;;  %v21736_v27 = vld [vmem:[#allocation20 + $0x430] ss:$24 sps:$4 sm:$0xff]   ;;  %v21807_v47 = vld [vmem:[#allocation20 + $0x884] ss:$24 sps:$4 sm:$0xff]  }
0x1069   :  { %16369 = vmatprep.subr.bf16.mxu0 %v21723_v57  ;;  %v21805_v57 = vld [vmem:[#allocation20 + $0x880] ss:$24 sps:$4 sm:$0xff]  }
0x106c   :  { %16370 = vmatpush1.bf16.msra.mxu0 %v21721_v25  ;;  %v21810_v25 = vld [vmem:[#allocation20 + $0x8b4] ss:$24 sps:$4 sm:$0xff]  }
0x106d   :  { %16371 = vmatprep.subr.bf16.mxu0 %v21726_v21  ;;  %v21808_v21 = vld [vmem:[#allocation20 + $0x8b0] ss:$24 sps:$4 sm:$0xff]  }
0x1070   :  { %16372 = vmatpush1.bf16.msra.mxu0 %v21724_v59  ;;  %v21813_v59 = vld [vmem:[#allocation20 + $0x8e4] ss:$24 sps:$4 sm:$0xff]  }
0x1071   :  { %16373 = vmatprep.subr.bf16.mxu0 %v21729_v39  ;;  %v21811_v39 = vld [vmem:[#allocation20 + $0x8e0] ss:$24 sps:$4 sm:$0xff]  }
0x1074   :  { %16374 = vmatpush1.bf16.msra.mxu0 %v21727_v13  ;;  %v14559_v13 = vld [vmem:[#allocation21] sm:$0x3f] }
0x1075   :  { %16375 = vmatprep.subr.bf16.mxu0 %v21732_v42  ;;  %v14564_v42 = vrot.slane %v14559_v13, %v22820_v32 }
0x1078   :  { %16376 = vmatpush1.bf16.msra.mxu0 %v21730_v18  ;;  %v16455_v18 = vld [vmem:[#allocation23] sm:$0x3f] }
0x1079   :  { %16377 = vmatprep.subr.bf16.mxu0 %v21735_v3  ;;  %v14572_v3 = vrot.slane %v14559_v13, %v22824_v23 }
0x107c   :  { %16378 = vmatpush1.bf16.msra.mxu0 %v21733_v15  ;;  %v14568_v15 = vrot.slane %v14559_v13, %v22818_v19 }
0x107d   :  { %16379 = vmatprep.subr.bf16.mxu0 %v21738_v30  ;;  %v14576_v30 = vrot.slane %v14559_v13, %v22822_v22 }
0x1080   :  { %16380 = vmatpush1.bf16.msra.mxu0 %v21736_v27 }
0x1081   :  { %16381 = vmatprep.subr.bf16.mxu0 %v21741_v51 }
0x1084   :  { %16382 = vmatpush1.bf16.msra.mxu0 %v21739_v20  ;;  %v16460_v20 = vrot.slane %v16455_v18, %v22820_v32 }
0x1085   :  { %16383 = vmatprep.subr.bf16.mxu0 %v21744_v10 }
0x1088   :  { %16384 = vmatpush1.bf16.msra.mxu0 %v21742_v2 }
0x1089   :  { %16385 = vmatprep.subr.bf16.mxu0 %v21747_v17 }
0x108c   :  { %16386 = vmatpush1.bf16.msra.mxu0 %v21745_v16  ;;  %v16468_v16 = vrot.slane %v16455_v18, %v22824_v23 }
0x108d   :  { %16387 = vmatprep.subr.bf16.mxu0 %v21750_v45  ;;  %v16464_v45 = vrot.slane %v16455_v18, %v22818_v19 }
0x1090   :  { %16388 = vmatpush1.bf16.msra.mxu0 %v21748_v4 }
0x1091   :  { %16389 = vmatprep.subr.bf16.mxu0 %v21753_v6 }
0x1094   :  { %16390 = vmatpush1.bf16.msra.mxu0 %v21751_v40 }
0x1095   :  { %16391 = vmatprep.subr.bf16.mxu0 %v21756_v53 }
0x1098   :  { %16392 = vmatpush1.bf16.msra.mxu0 %v21754_v50 }
0x1099   :  { %16393 = vmatprep.subr.bf16.mxu0 %v21759_v11 }
0x109c   :  { %16394 = vmatpush1.bf16.msra.mxu0 %v21757_v63 }
0x109d   :  { %16395 = vmatprep.subr.bf16.mxu0 %v21762_v28 }
0x10a0   :  { %16396 = vmatpush1.bf16.msra.mxu0 %v21760_v26  ;;  %v16472_v26 = vrot.slane %v16455_v18, %v22822_v22  ;;  %v14584_v22 = vrot.slane %v14559_v13, %v22826_v31 }
0x10a1   :  { %16397 = vmatprep.subr.bf16.mxu0 %v21765_v5 }
0x10a4   :  { %16398 = vmatpush1.bf16.msra.mxu0 %v21763_v7 }
0x10a5   :  { %16408 = vmatprep.subr.bf16.mxu0 %v21768_v48 }
0x10a7   :  { %16400 = vmatmul.mubr.bf16.vlgmr.msra.gmra.mrb[40].mxu0 %v23128_v14  ;;  %v21781_v14 = vld [vmem:[#allocation20 + $0x700] ss:$24 sps:$4 sm:$0xff]  }
0x10a8   :  { %16409 = vmatpush1.bf16.msra.mxu0 %v21766_v56  ;;  %16440 = vmatprep.mubr.bf16.mxu0 %v23132_v52  ;;  %v21784_v52 = vld [vmem:[#allocation20 + $0x730] ss:$24 sps:$4 sm:$0xff]  }
0x10a9   :  { %16410 = vmatprep.subr.bf16.mxu0 %v21771_v58 }
0x10ac   :  { %16411 = vmatpush1.bf16.msra.mxu0 %v21769_v29 }
0x10ad   :  { %16412 = vmatprep.subr.bf16.mxu0 %v21774_v61 }
0x10b0   :  { %16413 = vmatpush1.bf16.msra.mxu0 %v21772_v24 }
0x10b1   :  { %16414 = vmatprep.subr.bf16.mxu0 %v21777_v54 }
0x10b4   :  { %16415 = vmatpush1.bf16.msra.mxu0 %v21775_v34 }
0x10b5   :  { %16416 = vmatprep.subr.bf16.mxu0 %v21780_v33  ;;  %v14580_v33 = vrot.slane %v14559_v13, %v22828_v49 }
0x10b8   :  { %16417 = vmatpush1.bf16.msra.mxu0 %v21778_v38 }
0x10b9   :  { %16418 = vmatprep.subr.bf16.mxu0 %v21783_v12 }
0x10bc   :  { %16419 = vmatpush1.bf16.msra.mxu0 %v21781_v14  ;;  %v16476_v14 = vrot.slane %v16455_v18, %v22828_v49  ;;  %v16507_v49 = vld [vmem:[%s23200_s14] sm:$0x3] }
0x10bd   :  { %16420 = vmatprep.subr.bf16.mxu0 %v21786_v62 }
0x10c0   :  { %16421 = vmatpush1.bf16.msra.mxu0 %v21784_v52 }
0x10c1   :  { %16422 = vmatprep.subr.bf16.mxu0 %v21789_v36  ;;  %v16480_v36 = vrot.slane %v16455_v18, %v22826_v31  ;;  %v18563_v31 = vld [vmem:[#allocation3] ss:$0 sm:$0xff] }
0x10c4   :  { %16423 = vmatpush1.bf16.msra.mxu0 %v21787_v1 }
0x10c5   :  { %16424 = vmatprep.subr.bf16.mxu0 %v21792_v60 }
0x10c8   :  { %16425 = vmatpush1.bf16.msra.mxu0 %v21790_v9 }
0x10c9   :  { %16426 = vmatprep.subr.bf16.mxu0 %v21795_v8 }
0x10cc   :  { %16427 = vmatpush1.bf16.msra.mxu0 %v21793_v46 }
0x10cd   :  { %16428 = vmatprep.subr.bf16.mxu0 %v21798_v43 }
0x10d0   :  { %16429 = vmatpush1.bf16.msra.mxu0 %v21796_v41 }
0x10d1   :  { %16430 = vmatprep.subr.bf16.mxu0 %v21801_v44 }
0x10d4   :  { %16431 = vmatpush1.bf16.msra.mxu0 %v21799_v35 }
0x10d5   :  { %16432 = vmatprep.subr.bf16.mxu0 %v21804_v0 }
0x10d8   :  { %16433 = vmatpush1.bf16.msra.mxu0 %v21802_v37  ;;  %v18562_v37 = vld [vmem:[#allocation2] ss:$0 sm:$0xff] }
0x10d9   :  { %16434 = vmatprep.subr.bf16.mxu0 %v21807_v47  ;;  %v16515_v47 = vmul.f32 %v18562_v37, %v16507_v49 }
0x10dc   :  { %16435 = vmatpush1.bf16.msra.mxu0 %v21805_v57 }
0x10dd   :  { %16436 = vmatprep.subr.bf16.mxu0 %v21810_v25 }
0x10e0   :  { %16437 = vmatpush1.bf16.msra.mxu0 %v21808_v21 }
0x10e1   :  { %16438 = vmatprep.subr.bf16.mxu0 %v21813_v59 }
0x10e4   :  { %16439 = vmatpush1.bf16.msra.mxu0 %v21811_v39 }
0x10e7   :  { %16441 = vmatmul.mubr.bf16.vlgmr.msra.gmra.mrb[40].mxu0 %v23140_v55 }
0x10fa   :  { %v16196_v27 = vpop.f32.mrb[36].mxu0 }
0x10fb   :  { %v18594_v51 = vadd.f32 %v16196_v27, %v14564_v42  ;;  %v16319_v10 = vpop.f32.mrb[56].mxu1  ;;  %v16198_v2 = vpop.f32.mrb[37].mxu0 }
0x10fc   :  { %v18596_v17 = vadd.f32 %v16319_v10, %v14572_v3  ;;  %v18595_v55 = vadd.f32 %v16198_v2, %v14568_v15  ;;  %v16321_v4 = vpop.f32.mrb[57].mxu1  ;;  %v16200_v6 = vpop.f32.mrb[38].mxu0 }
0x10fd   :  { %v16449_v40 = vmax.f32 %v18594_v51, 0.0  ;;  %v18597_v53 = vadd.f32 %v16321_v4, %v14576_v30  ;;  %v16323_v50 = vpop.f32.mrb[58].mxu1  ;;  %v16201_v11 = vpop.f32.mrb[39].mxu0 }
0x10fe   :  { %v16451_v63 = vmax.f32 %v18596_v17, 0.0  ;;  %v16450_v28 = vmax.f32 %v18595_v55, 0.0  ;;  %v16324_v32 = vpop.f32.mrb[59].mxu1 }
0x10ff   :  { %v16487_v5 = vmul.f32 %v16460_v20, %v16449_v40  ;;  %v16452_v7 = vmax.f32 %v18597_v53, 0.0 }
0x1100   :  { %v16489_v48 = vmul.f32 %v16468_v16, %v16451_v63  ;;  %v16488_v56 = vmul.f32 %v16464_v45, %v16450_v28 }
0x1101   :  { %v16494_v23 = vsel %vm16493_vm2, %v16487_v5, 0.0  ;;  %v16490_v58 = vmul.f32 %v16472_v26, %v16452_v7 }
0x1102   :  { %v16495_v19 = vsel %vm16493_vm2, %v16488_v56, 0.0  ;;  %v16497_v61 = vsel %vm16493_vm2, %v16489_v48, 0.0 }
0x1103   :  { %v16496_v29 = vadd.f32 %v16495_v19, %v16494_v23  ;;  %v16499_v54 = vsel %vm16493_vm2, %v16490_v58, 0.0 }
0x1105   :  { %v16498_v24 = vadd.f32 %v16497_v61, %v16496_v29 }
0x1107   :  { %v16500_v34 = vadd.f32 %v16499_v54, %v16498_v24 }
0x11ba   :  { %v16442_v38 = vpop.f32.mrb[40].mxu0 }
0x11bb   :  { %v18598_v12 = vadd.f32 %v16442_v38, %v14580_v33  ;;  %v16444_v62 = vpop.f32.mrb[41].mxu0 }
0x11bc   :  { %v18599_v52 = vadd.f32 %v16444_v62, %v14584_v22  ;;  %v16446_v1 = vpop.f32.mrb[42].mxu0 }
0x11bd   :  { %v16453_v60 = vmax.f32 %v18598_v12, 0.0  ;;  %v16447_v9 = vpop.f32.mrb[43].mxu0 }
0x11be   :  { %v16454_v8 = vmax.f32 %v18599_v52, 0.0 }
0x11bf   :  { %v16491_v46 = vmul.f32 %v16476_v14, %v16453_v60 }
0x11c0   :  { %v16492_v43 = vmul.f32 %v16480_v36, %v16454_v8 }
0x11c1   :  { %v16501_v41 = vsel %vm16493_vm2, %v16491_v46, 0.0 }
0x11c2   :  { %v16502_v44 = vadd.f32 %v16501_v41, %v16500_v34  ;;  %v16503_v35 = vsel %vm16493_vm2, %v16492_v43, 0.0 }
0x11c4   :  { %v16504_v0 = vadd.f32 %v16503_v35, %v16502_v44 }
0x11c6   :  { %16505 = vadd.xlane.f32.xlu0 %v16504_v0 }
0x1253   :  { %v16506_v57 = vpop.xlane.xlu0 %16505 }
0x1254   :  { %v16516_v25 = vadd.f32 %v16515_v47, %v16506_v57 }
0x1256   :  { %v16524_v21 = vadd.f32 %v18563_v31, %v16516_v25 }
0x1258   :  { %16526 = vst.msk [vmem:[%s23191_s18] sm:$0x3] %vm16525_vm3, %v16524_v21 }
0x1259   :  { %16531 = vsyncpa [#allocation5], 1 }
0x125a   :  { %16532 = vsyncpa [#allocation7], 1 }
0x125b   :  { %16533 = vsyncpa [#allocation10], 1 }
0x125c   :  { %16534 = vsyncpa [#allocation13], 1 }
0x125d   :  { %16535 = vsyncpa [#allocation16], 1 }
0x125e   :  { %16536 = vsyncpa [#allocation19], 1 }
0x125f   :  { %16537 = vsyncpa [#allocation22], 1 }

</bundles_post_ra>
